<compile_context>
chip_gen: v5e
topology: v5e:2x2
jax: 0.10.0
libtpu: 0.0.40
codegen_flags: <defaults>
</compile_context>

<pallas_src>
import functools

import jax
import jax.numpy as jnp
import numpy as np
from jax import lax
from jax.experimental import pallas as pl
from jax.experimental.pallas import tpu as pltpu


# ---------------------------------------------------------------------------
# Kernels
# ---------------------------------------------------------------------------

def _kernel_full_k(x_ref, w_ref, s_ref, o_ref):
    """Single reduction step: MXU -> scale -> store, no accumulator scratch."""
    w = w_ref[...].astype(jnp.bfloat16)                       # (tk, tn) fp8->bf16 (exact)
    y = lax.dot_general(
        x_ref[...], w,
        dimension_numbers=(((1,), (0,)), ((), ())),           # MXU-native, no transpose
        preferred_element_type=jnp.float32)                   # (tm, tn) f32
    o_ref[...] = (y * s_ref[...]).astype(o_ref.dtype)         # (1, tn) lane-dense scale


def _kernel_k_split(x_ref, w_ref, s_ref, o_ref, acc_ref):
    """K-split path with an f32 accumulator resident across the K grid axis."""
    k = pl.program_id(2)

    @pl.when(k == 0)
    def _():
        acc_ref[...] = jnp.zeros_like(acc_ref)

    w = w_ref[...].astype(jnp.bfloat16)                       # (tk, tn)
    acc_ref[...] += lax.dot_general(
        x_ref[...], w,
        dimension_numbers=(((1,), (0,)), ((), ())),
        preferred_element_type=jnp.float32)

    @pl.when(k == pl.num_programs(2) - 1)
    def _():
        o_ref[...] = (acc_ref[...] * s_ref[...]).astype(o_ref.dtype)


# ---------------------------------------------------------------------------
# Wrapper
# ---------------------------------------------------------------------------

def _vmem_budget_bytes():
    """Chip VMEM capacity minus headroom for compiler-internal scratch."""
    try:
        cap = int(pltpu.get_tpu_info().vmem_capacity_bytes)
    except Exception:  # CPU tracing / older jax: assume the smallest part (v7x).
        cap = 64 << 20
    return max(16 << 20, cap - (16 << 20))


def _tile_vmem_bytes(tm, tn, tk, K, out_bytes):
    """Double-buffered working-set estimate, incl. the bf16 weight-cast temp."""
    return (2 * tm * tk * 2                       # bf16 x tiles (double buffered)
            + 2 * tk * tn * 1                     # fp8 weight tiles (double buffered)
            + tk * tn * 2                         # bf16 cast temp of one weight tile
            + 2 * tm * tn * out_bytes             # output tiles (double buffered)
            + (0 if tk == K else tm * tn * 4)     # f32 accumulator scratch
            + 2 * 8 * tn * 4)                     # (1, tn) scale tiles, sublane padded


def packed_linear(x, weight, weight_scale, *, tm=256, tn=256, tk=None,
                  vmem_limit_bytes=None):
    """y = x @ (weight.astype(f32) * weight_scale).T computed in Pallas.

    x:            [M, K]   bf16 (f32 input is downcast to bf16 for the MXU)
    weight:       [N, K]   fp8 (torch.nn.Linear layout: out_features first)
    weight_scale: [N, 1]   f32 per-output-channel dequant scale
    returns:      [M, N]   in x.dtype
    """
    M, K = x.shape
    N, K2 = weight.shape
    assert K == K2, (K, K2)
    assert weight_scale.shape == (N, 1), weight_scale.shape
    out_dtype = x.dtype
    out_bytes = x.dtype.itemsize

    # One-time, hoisted layout / dtype work (fused by XLA; the weight transpose
    # is fully amortized for a static checkpoint weight).
    x_bf16 = x.astype(jnp.bfloat16)                              # MXU operand dtype
    w_t = weight.T                                               # [K, N] fp8, MXU-native RHS
    scale_row = weight_scale.reshape(1, N).astype(jnp.float32)   # lane-dense scale

    tm = min(tm, M)
    tn = min(tn, N)

    # v7x shards the "parallel" grid axes across its 2 TensorCores; make sure
    # there are >= 2 parallel iterations when the problem allows it.
    while ((M // tm) * (N // tn) < 2 and tn > 128 and tn % 2 == 0
           and N % (tn // 2) == 0):
        tn //= 2

    budget = _vmem_budget_bytes()

    if tk is None:
        for cand in (K, 4096, 2048, 1024, 512, 256, 128):
            if cand <= K and K % cand == 0 and \
                    _tile_vmem_bytes(tm, tn, cand, K, out_bytes) <= budget:
                tk = cand
                break
        if tk is None:
            tk = 128 if K % 128 == 0 else K
    tk = min(tk, K)

    assert M % tm == 0 and N % tn == 0 and K % tk == 0, (M, N, K, tm, tn, tk)

    est = _tile_vmem_bytes(tm, tn, tk, K, out_bytes)
    if vmem_limit_bytes is None:
        vmem_limit_bytes = int(min(budget, max(32 << 20, 2 * est)))

    cost = pl.CostEstimate(
        flops=2 * M * N * K,
        transcendentals=0,
        bytes_accessed=M * K * 2 + N * K * 1 + M * N * out_bytes + N * 4)

    if tk == K:
        grid = (M // tm, N // tn)
        kernel = _kernel_full_k
        in_specs = [
            pl.BlockSpec((tm, tk), lambda i, j: (i, 0)),   # x tile (bf16)
            pl.BlockSpec((tk, tn), lambda i, j: (0, j)),   # fp8 [K, N] weight tile
            pl.BlockSpec((1, tn), lambda i, j: (0, j)),    # lane-dense scale
        ]
        out_specs = pl.BlockSpec((tm, tn), lambda i, j: (i, j))
        scratch_shapes = []
        dim_sem = ("parallel", "parallel")
    else:
        grid = (M // tm, N // tn, K // tk)
        kernel = _kernel_k_split
        in_specs = [
            pl.BlockSpec((tm, tk), lambda i, j, k: (i, k)),
            pl.BlockSpec((tk, tn), lambda i, j, k: (k, j)),
            pl.BlockSpec((1, tn), lambda i, j, k: (0, j)),
        ]
        out_specs = pl.BlockSpec((tm, tn), lambda i, j, k: (i, j))
        scratch_shapes = [pltpu.VMEM((tm, tn), jnp.float32)]
        dim_sem = ("parallel", "parallel", "arbitrary")

    return pl.pallas_call(
        kernel,
        out_shape=jax.ShapeDtypeStruct((M, N), out_dtype),
        grid_spec=pltpu.PrefetchScalarGridSpec(
            num_scalar_prefetch=0,
            grid=grid,
            in_specs=in_specs,
            out_specs=out_specs,
            scratch_shapes=scratch_shapes),
        compiler_params=pltpu.CompilerParams(
            dimension_semantics=dim_sem,
            vmem_limit_bytes=vmem_limit_bytes),
        cost_estimate=cost,
    )(x_bf16, w_t, scale_row)


# ---------------------------------------------------------------------------
# Self-test
# ---------------------------------------------------------------------------

if __name__ == "__main__":
    # Small-but-aligned shapes: 256 tokens, 1024 -> 512 features.
    M, K, N = 256, 1024, 512

    key = jax.random.PRNGKey(0)
    kx, kw, ks = jax.random.split(key, 3)

    x = jax.random.normal(kx, (M, K), dtype=jnp.float32).astype(jnp.bfloat16)
    # Packed fp8 weight (as stored by PackedLinear) + per-output-channel scale.
    weight = jax.random.normal(kw, (N, K), dtype=jnp.float32).astype(
        jnp.float8_e4m3fn)
    weight_scale = (
        jax.random.uniform(ks, (N, 1), dtype=jnp.float32) * 0.05 + 0.01)

    # Pure-JAX reference of the dequantized linear.
    ref = (x.astype(jnp.float32)
           @ (weight.astype(jnp.float32) * weight_scale).T).astype(jnp.bfloat16)
    ref_np = np.asarray(ref, dtype=np.float32)

    # Default path: tk == K -> single reduction step, no accumulator scratch,
    # grid = (1, 2) all-parallel.
    out_full = jax.block_until_ready(packed_linear(x, weight, weight_scale))
    np.testing.assert_allclose(np.asarray(out_full, dtype=np.float32), ref_np,
                               rtol=1e-1, atol=1e-1)

    # Also exercise the K-split accumulator path (grid = (1, 2, 4)).
    out_split = jax.block_until_ready(
        packed_linear(x, weight, weight_scale, tk=256))
    np.testing.assert_allclose(np.asarray(out_split, dtype=np.float32), ref_np,
                               rtol=1e-1, atol=1e-1)

    print("KERNEL_OK")
</pallas_src>

<mosaic_0001>
module attributes {stable_mosaic.version = 11 : i64} {
  func.func @_kernel_full_k(%arg0: i32, %arg1: i32, %arg2: memref<256x1024xbf16, #tpu.memory_space<vmem>>, %arg3: memref<1024x256xf8E4M3FN, #tpu.memory_space<vmem>>, %arg4: memref<1x256xf32, #tpu.memory_space<vmem>>, %arg5: memref<256x256xbf16, #tpu.memory_space<vmem>>) attributes {dimension_semantics = [#tpu.dimension_semantics<parallel>, #tpu.dimension_semantics<parallel>], iteration_bounds = array<i64: 1, 2>, scalar_prefetch = 0 : i64, scratch_operands = 0 : i64, tpu.core_type = #tpu.core_type<tc>, window_params = [{transform_indices = @transform_0, window_bounds = array<i64: 256, 1024>}, {transform_indices = @transform_1, window_bounds = array<i64: 1024, 256>}, {transform_indices = @transform_2, window_bounds = array<i64: 1, 256>}, {transform_indices = @transform_3, window_bounds = array<i64: 256, 256>}]} {
    %c0 = arith.constant 0 : index
    %c0_0 = arith.constant 0 : index
    %0 = vector.load %arg3[%c0, %c0_0] : memref<1024x256xf8E4M3FN, #tpu.memory_space<vmem>>, vector<1024x256xf8E4M3FN>
    %1 = arith.extf %0 : vector<1024x256xf8E4M3FN> to vector<1024x256xbf16>
    %c0_1 = arith.constant 0 : index
    %c0_2 = arith.constant 0 : index
    %2 = vector.load %arg2[%c0_1, %c0_2] : memref<256x1024xbf16, #tpu.memory_space<vmem>>, vector<256x1024xbf16>
    %cst = arith.constant dense<0.000000e+00> : vector<256x256xf32>
    %3 = tpu.matmul %2, %1, %cst {dimension_numbers = #tpu.dot_dimension_numbers<[1], [0], [0], [1], [0, 0, 1, 1], [], []>} : vector<256x1024xbf16>, vector<1024x256xbf16>, vector<256x256xf32> -> vector<256x256xf32>
    %c0_3 = arith.constant 0 : index
    %c0_4 = arith.constant 0 : index
    %4 = vector.load %arg4[%c0_3, %c0_4] : memref<1x256xf32, #tpu.memory_space<vmem>>, vector<1x256xf32>
    %5 = vector.broadcast %4 : vector<1x256xf32> to vector<256x256xf32>
    %6 = arith.mulf %3, %5 : vector<256x256xf32>
    %7 = arith.truncf %6 : vector<256x256xf32> to vector<256x256xbf16>
    %c0_5 = arith.constant 0 : index
    %c0_6 = arith.constant 0 : index
    %8 = vector.load %arg5[%c0_5, %c0_6] : memref<256x256xbf16, #tpu.memory_space<vmem>>, vector<256x256xbf16>
    tpu.vector_store %arg5[%c0_5, %c0_6], %7 {strides = array<i32>} : memref<256x256xbf16, #tpu.memory_space<vmem>>, vector<256x256xbf16>,
    return
  }
  func.func @transform_0(%arg0: i32, %arg1: i32) -> (i32, i32) {
    %c0_i32 = arith.constant 0 : i32
    %c0_i32_0 = arith.constant 0 : i32
    return %arg0, %c0_i32 : i32, i32
  }
  func.func @transform_1(%arg0: i32, %arg1: i32) -> (i32, i32) {
    %c0_i32 = arith.constant 0 : i32
    %c0_i32_0 = arith.constant 0 : i32
    return %c0_i32, %arg1 : i32, i32
  }
  func.func @transform_2(%arg0: i32, %arg1: i32) -> (i32, i32) {
    %c0_i32 = arith.constant 0 : i32
    %c0_i32_0 = arith.constant 0 : i32
    return %c0_i32, %arg1 : i32, i32
  }
  func.func @transform_3(%arg0: i32, %arg1: i32) -> (i32, i32) {
    %c0_i32 = arith.constant 0 : i32
    return %arg0, %arg1 : i32, i32
  }
}

</mosaic_0001>

<bundles_post_ra>
// kernel: tpu_custom_call.1
= control target key start
LH: loop header
LB: loop body
LE: loop exit
PB: predicated region body
PF: predicated region fallthrough
CT: control target
= control target key end

     0   :  { %s16617_s0 = inlined_call_operand.hbm [shape: bf16[256,1024], index: 0, kind: input, shape index: {}]   ;;  %s16618_s1 = inlined_call_operand.hbm [shape: f8e4m3fn[1024,512], index: 1, kind: input, shape index: {}]   ;;  %s16619_s2 = inlined_call_operand.hbm [shape: f32[1,512], index: 2, kind: input, shape index: {}]   ;;  %s16620_s3 = inlined_call_operand.hbm [shape: bf16[256,512], index: 3, kind: output, shape index: {}]  }
   0x1   :  { %17432 = sst [smem:[#allocation724_spill]] %s16617_s0 }
   0x2   :  { %17433 = sst [smem:[#allocation725_spill]] %s16618_s1 }
   0x3   :  { %8 = vsyncpa [#allocation3], 0 }
   0x4   :  { %9 = vsyncpa [#allocation6], 0 }
   0x5   :  { %11 = vsyncpa [#allocation6 + $0x1], 0 }
   0x6   :  { %12 = vsyncpa [#allocation4], 0 }
   0x7   :  { %14 = vsyncpa [#allocation4 + $0x1], 0  ;;  %s11752_s12 = smov 0   ;;  %s11754_s13 = smov 0  }
   0x8   :  { %s11756_s14 = smov 0   ;;  %s11758_s15 = smov 0  }
   0x9   :  { %s11760_s16 = smov 0   ;;  %s11762_s17 = smov 0  }
   0xa LB: > { %s29_s18 = sadd.s32 1, %s11718_s16  ;;  %s65_s19 = sadd.s32 1, %s11710_s14  ;;  %s11722_s17 = sphi %s11762_s17, %s20_s17   ;;  %s11718_s16 = sphi %s11760_s16, %s19668_s16   ;;  %s11714_s15 = sphi %s11758_s15, %s19667_s15   ;;  %s11710_s14 = sphi %s11756_s14, %s19666_s14   ;;  %s11706_s13 = sphi %s11754_s13, %s19665_s13   ;;  %s11702_s12 = sphi %s11752_s12, %s19664_s12  }
   0xb   : > { %p30_p0 = scmp.ge.s32.totalorder %s29_s18, 2  ;;  %p72_p1 = scmp.ne.s32.totalorder %s11710_s14, %s11706_s13 }
   0xc   : > { %p73_p2 = scmp.eq.s32.totalorder %s11722_s17, 0  ;;  %p10803_p4 = scmp.ge.s32.totalorder %s11722_s17, 2 }
   0xd   : > { %s19670_s18 = smov (%p30_p0, %s29_s18), 0  ;;  %p11487_p5 = scmp.lt.s32.totalorder %s11722_s17, 2 }
   0xe   : > { %p11792_p3 = por %p73_p2, %p72_p1  ;;  %s62_s21 = ssub.s32 %s11718_s16, %s19670_s18 }
   0xf   : > { %p63_p6 = scmp.eq.s32.totalorder %s62_s21, 0  ;;  %s174_s22 = sand.u32 1, %s11722_s17  }
  0x10   : > { %s176_s23 = sand.u32 1, %s11710_s14   ;;  %s11331_s26 = sshll.u32 %s11718_s16, 4 }
  0x11   : > { %s11803_s24 = scalar_select %p63_p6, %s11710_s14, %s65_s19  }
  0x12   : > { %s10804_s25 = sshll.u32 %s176_s23, 9  ;;  %s17435_s1 = sld [smem:[#allocation725_spill]] }
  0x13   : > { %s178_s4 = scalar_lea.vmem [#allocation5], %s10804_s25  ;;  %p11815_p7 = pnand %p11487_p5, %p11792_p3 }
  0x14   : > { %s186_s5 = sshll.u32 %s178_s4, 4  ;;  %s11819_s7 = scalar_lea.sflag [#allocation6], %s174_s22  ;;  %s187_s5 = int_to_ptr.vmem [resolvable:$true] %s186_s5 }
  0x15   : > { %s16621_s8 = smov 512   ;;  %s11725_s9 = smov 256  }
  0x16   : > { %s11726_s10 = smov 16   ;;  %s11826_s11 = sadd.s32 4294967295, %s11722_s17  }
  0x17   : > { %s10800_s19 = sadd.s32 4294967294, %s11722_s17   ;;  %p78_p8 = scmp.ne.s32.totalorder %s11706_s13, %s11702_s12 }
  0x18   : > { %s183_s29 = scalar_lea.hbm %s17435_s1, %s11331_s26  ;;  %p79_p9 = scmp.eq.s32.totalorder %s11826_s11, 0 }
  0x19   : > { %s184_s30 = sshll.u32 %s183_s29, 4  ;;  %p130_p10 = scmp.eq.s32.totalorder %s11826_s11, 1  ;;  %s185_s30 = int_to_ptr.hbm [resolvable:$true] %s184_s30 }
  0x1a   : > { %11478 = dma.hbm_to_vmem [thread:$0]  (!%p11815_p7), %s185_s30, 8192, %s187_s5, %s11819_s7, %s16621_s8, %s11725_s9, %s11726_s10  }
  0x1b   : > { %p136_p11 = scmp.eq.s32.totalorder %s10800_s19, 1  ;;  %p11835_p12 = por %p79_p9, %p78_p8 }
  0x1c   : > { %p10801_p13 = scmp.ge.s32.totalorder %s11722_s17, 1  ;;  %p11843_p0 = por %p130_p10, %p72_p1 }
  0x1d   : > { %p11847_p2 = por %p136_p11, %p78_p8  ;;  %p143_p3 = scmp.lt.s32.totalorder %s11722_s17, 3 }
  0x1e   : > { %s17440_s0 = sld [smem:[#allocation724_spill]]  ;;  %s11727_s29 = smov [#allocation2]  }
  0x1f   : > { %p11855_p5 = pnand %p10801_p13, %p143_p3  ;;  %s160_s30 = sshll.u32 %s11727_s29, 4  ;;  %s161_s30 = int_to_ptr.vmem [resolvable:$true] %s160_s30 }
  0x20   : > { %s10807_s4 = sshll.u32 %s176_s23, 1  ;;  %s10808_s5 = sshll.u32 %s11718_s16, 1 }
  0x21   : > { %p11471_p1 = pneg %p11855_p5  ;;  %s204_s19 = scalar_lea.hbm %s16619_s2, %s10808_s5 }
  0x22   : > { %s200_s25 = scalar_lea.vmem [#allocation7], %s10807_s4  ;;  %s206_s8 = sshll.u32 %s204_s19, 4  ;;  %s207_s8 = int_to_ptr.hbm [resolvable:$true] %s206_s8 }
  0x23   : > { %p11472_p6 = pnand %p11471_p1, %p79_p9  ;;  %s208_s26 = sshll.u32 %s200_s25, 4  ;;  %s209_s26 = int_to_ptr.vmem [resolvable:$true] %s208_s26 }
  0x24   : > { %s158_s27 = sshll.u32 %s17440_s0, 4  ;;  %s11728_s0 = smov 32   ;;  %s159_s27 = int_to_ptr.hbm [resolvable:$true] %s158_s27 }
  0x25   : > { %s17442_s1 = smov 512   ;;  %217 = sbr.rel (%p11855_p5) target bundleno = 5091 (0x13e3), region = 32 }
  0x26   : > { %11474 = dma.hbm_to_vmem [thread:$0]  (!%p11472_p6), %s159_s27, 16384, %s161_s30, [#allocation3], %s17442_s1, %s17442_s1, %s11728_s0  }
  0x27   : > { %11481 = dma.hbm_to_vmem [thread:$0]  (!%p11815_p7), %s207_s8, 32, %s209_s26, %s11819_s7  }
  0x2a   : > { %11689 = dma.done.wait (%p79_p9), [#allocation3], 16384  }
  0x2b   : > { %11691 = vsyncadd (%p79_p9), [#allocation3], 4294950912  ;;  %s224_s23 = sand.u32 1, %s11826_s11   ;;  %s11882_s29 = sand.u32 1, %s11706_s13  }
  0x2c   : > { %s10811_s0 = sshll.u32 %s11882_s29, 9  ;;  %s225_s1 = scalar_lea.sflag [#allocation6], %s224_s23 }
  0x2d   : > { %s11885_s6 = scalar_lea.vmem [#allocation5], %s10811_s0 }
  0x2e   : > { %11693 = dma.done.wait (%p11835_p12), %s225_s1, 8224  }
  0x2f   : > { %11695 = vsyncadd (%p11835_p12), %s225_s1, 4294959072  ;;  %s10812_s7 = sshll.u32 %s11882_s29, 1  ;;  %s10813_s8 = sshll.u32 %s11882_s29, 8  ;;  %v11894_v0 = vld [vmem:[%s11885_s6] sm:$0xff]  ;;  %v11897_v1 = vld [vmem:[%s11885_s6 + $0x8] sm:$0xff] }
  0x30   : > { %v11900_v2 = vld [vmem:[%s11885_s6 + $0x10] sm:$0xff]  ;;  %v11903_v3 = vld [vmem:[%s11885_s6 + $0x18] sm:$0xff]  ;;  %v11906_v4 = vld [vmem:[%s11885_s6 + $0x20] sm:$0xff]  ;;  %s12087_s11 = scalar_lea.vmem [#allocation7], %s10812_s7  ;;  %s12091_s20 = scalar_lea.vmem [#allocation8], %s10813_s8 }
  0x31   : > { %v11909_v5 = vld [vmem:[%s11885_s6 + $0x28] sm:$0xff]  ;;  %v11912_v6 = vld [vmem:[%s11885_s6 + $0x30] sm:$0xff]  ;;  %v11915_v7 = vld [vmem:[%s11885_s6 + $0x38] sm:$0xff] }
  0x32   : > { %v11918_v8 = vld [vmem:[%s11885_s6 + $0x40] sm:$0xff]  ;;  %v11921_v9 = vld [vmem:[%s11885_s6 + $0x48] sm:$0xff]  ;;  %v11924_v10 = vld [vmem:[%s11885_s6 + $0x50] sm:$0xff] }
  0x33   : > { %v11927_v11 = vld [vmem:[%s11885_s6 + $0x58] sm:$0xff]  ;;  %v11930_v12 = vld [vmem:[%s11885_s6 + $0x60] sm:$0xff]  ;;  %v11933_v13 = vld [vmem:[%s11885_s6 + $0x68] sm:$0xff] }
  0x34   : > { %v11936_v14 = vld [vmem:[%s11885_s6 + $0x70] sm:$0xff]  ;;  %v11939_v15 = vld [vmem:[%s11885_s6 + $0x78] sm:$0xff]  ;;  %v11942_v16 = vld [vmem:[%s11885_s6 + $0x80] sm:$0xff] }
  0x35   : > { %v11945_v17 = vld [vmem:[%s11885_s6 + $0x88] sm:$0xff]  ;;  %v11948_v18 = vld [vmem:[%s11885_s6 + $0x90] sm:$0xff]  ;;  %v11951_v19 = vld [vmem:[%s11885_s6 + $0x98] sm:$0xff] }
  0x36   : > { %v11954_v20 = vld [vmem:[%s11885_s6 + $0xa0] sm:$0xff]  ;;  %v11957_v21 = vld [vmem:[%s11885_s6 + $0xa8] sm:$0xff]  ;;  %v11960_v22 = vld [vmem:[%s11885_s6 + $0xb0] sm:$0xff] }
  0x37   : > { %v11963_v23 = vld [vmem:[%s11885_s6 + $0xb8] sm:$0xff]  ;;  %v11966_v24 = vld [vmem:[%s11885_s6 + $0xc0] sm:$0xff]  ;;  %v11969_v25 = vld [vmem:[%s11885_s6 + $0xc8] sm:$0xff] }
  0x38   : > { %v11972_v26 = vld [vmem:[%s11885_s6 + $0xd0] sm:$0xff]  ;;  %v11975_v27 = vld [vmem:[%s11885_s6 + $0xd8] sm:$0xff]  ;;  %v11978_v28 = vld [vmem:[%s11885_s6 + $0xe0] sm:$0xff] }
  0x39   : > { %v11981_v29 = vld [vmem:[%s11885_s6 + $0xe8] sm:$0xff]  ;;  %v11984_v30 = vld [vmem:[%s11885_s6 + $0xf0] sm:$0xff]  ;;  %v11987_v31 = vld [vmem:[%s11885_s6 + $0xf8] sm:$0xff] }
  0x3a   : > { %v11990_v32 = vld [vmem:[%s11885_s6 + $0x100] sm:$0xff]  ;;  %v11993_v33 = vld [vmem:[%s11885_s6 + $0x108] sm:$0xff]  ;;  %v11996_v34 = vld [vmem:[%s11885_s6 + $0x110] sm:$0xff] }
  0x3b   : > { %v11999_v35 = vld [vmem:[%s11885_s6 + $0x118] sm:$0xff]  ;;  %v12002_v36 = vld [vmem:[%s11885_s6 + $0x120] sm:$0xff]  ;;  %v12005_v37 = vld [vmem:[%s11885_s6 + $0x128] sm:$0xff] }
  0x3c   : > { %v12008_v38 = vld [vmem:[%s11885_s6 + $0x130] sm:$0xff]  ;;  %v12011_v39 = vld [vmem:[%s11885_s6 + $0x138] sm:$0xff]  ;;  %v12014_v40 = vld [vmem:[%s11885_s6 + $0x140] sm:$0xff] }
  0x3d   : > { %v12017_v41 = vld [vmem:[%s11885_s6 + $0x148] sm:$0xff]  ;;  %v12020_v42 = vld [vmem:[%s11885_s6 + $0x150] sm:$0xff]  ;;  %v12023_v43 = vld [vmem:[%s11885_s6 + $0x158] sm:$0xff] }
  0x3e   : > { %v12026_v44 = vld [vmem:[%s11885_s6 + $0x160] sm:$0xff]  ;;  %v12029_v45 = vld [vmem:[%s11885_s6 + $0x168] sm:$0xff]  ;;  %v12032_v46 = vld [vmem:[%s11885_s6 + $0x170] sm:$0xff] }
  0x3f   : > { %v12035_v47 = vld [vmem:[%s11885_s6 + $0x178] sm:$0xff]  ;;  %v12038_v48 = vld [vmem:[%s11885_s6 + $0x180] sm:$0xff]  ;;  %v12041_v49 = vld [vmem:[%s11885_s6 + $0x188] sm:$0xff] }
  0x40   : > { %v12044_v50 = vld [vmem:[%s11885_s6 + $0x190] sm:$0xff]  ;;  %v12047_v51 = vld [vmem:[%s11885_s6 + $0x198] sm:$0xff]  ;;  %v12050_v52 = vld [vmem:[%s11885_s6 + $0x1a0] sm:$0xff] }
  0x41   : > { %v12053_v53 = vld [vmem:[%s11885_s6 + $0x1a8] sm:$0xff]  ;;  %v12056_v54 = vld [vmem:[%s11885_s6 + $0x1b0] sm:$0xff]  ;;  %v12059_v55 = vld [vmem:[%s11885_s6 + $0x1b8] sm:$0xff] }
  0x42   : > { %17443 = vst [vmem:[#allocation268_spill] sm:$0xff] %v12053_v53  ;;  %v12062_v56 = vld [vmem:[%s11885_s6 + $0x1c0] sm:$0xff]  ;;  %v12065_v57 = vld [vmem:[%s11885_s6 + $0x1c8] sm:$0xff]  ;;  %v12068_v58 = vld [vmem:[%s11885_s6 + $0x1d0] sm:$0xff] }
  0x43   : > { %17444 = vst [vmem:[#allocation269_spill] sm:$0xff] %v12056_v54  ;;  %v12071_v59 = vld [vmem:[%s11885_s6 + $0x1d8] sm:$0xff]  ;;  %v12074_v60 = vld [vmem:[%s11885_s6 + $0x1e0] sm:$0xff]  ;;  %v12077_v61 = vld [vmem:[%s11885_s6 + $0x1e8] sm:$0xff] }
  0x44   : > { %17445 = vst [vmem:[#allocation270_spill] sm:$0xff] %v12059_v55  ;;  %v12080_v62 = vld [vmem:[%s11885_s6 + $0x1f0] sm:$0xff]  ;;  %v12083_v63 = vld [vmem:[%s11885_s6 + $0x1f8] sm:$0xff] }
  0x45   : > { %17446 = vst [vmem:[#allocation271_spill] sm:$0xff] %v12062_v56 }
  0x46   : > { %17447 = vst [vmem:[#allocation272_spill] sm:$0xff] %v12065_v57 }
  0x47   : > { %17448 = vst [vmem:[#allocation273_spill] sm:$0xff] %v12068_v58 }
  0x48   : > { %17449 = vst [vmem:[#allocation274_spill] sm:$0xff] %v12071_v59 }
  0x49   : > { %17450 = vst [vmem:[#allocation275_spill] sm:$0xff] %v12074_v60 }
  0x4a   : > { %17451 = vst [vmem:[#allocation276_spill] sm:$0xff] %v12077_v61 }
  0x4b   : > { %17452 = vst [vmem:[#allocation277_spill] sm:$0xff] %v12080_v62 }
  0x4c   : > { %17453 = vst [vmem:[#allocation278_spill] sm:$0xff] %v12083_v63 }
  0x4d   : > { %336 = vst [vmem:[#allocation9] sm:$0xff] %v11894_v0  ;;  %v17454_v60 = vmov 0 }
  0x54   : > { %v337_v57 = vld [vmem:[#allocation9] sm:$0x3] }
  0x55   : > { %v338_v58 = vunpack.c.0.f8e4m3b11 %v337_v57 }
  0x57   : > { %v342_v56 = vand.u32 2147483647, %v338_v58  ;;  %vm344_vm0 = vcmp.ne.f32.partialorder %v338_v58, %v338_v58  ;;  %v345_v59 = vmul.f32 16.0, %v338_v58 }
  0x59   : > { %vm12094_vm1 = vcmp.gt.f32.partialorder %v342_v56, 29.0  ;;  %v12098_v62 = vsel %vm344_vm0, -0.0, %v345_v59 }
  0x5a   : > { %v17455_v60 = vsel %vm12094_vm1, 4294967295, %v17454_v60  ;;  %17457 = vst [vmem:[#allocation280_spill] sm:$0xff] %v12098_v62 }
  0x5b   : > { %17456 = vst [vmem:[#allocation279_spill] sm:$0xff] %v17455_v60 }
  0x5c   : > { %366 = vst [vmem:[#allocation10] sm:$0xff] %v11897_v1  ;;  %v17458_v53 = vmov 0 }
  0x63   : > { %v367_v61 = vld [vmem:[#allocation10] sm:$0x3] }
  0x64   : > { %v368_v55 = vunpack.c.0.f8e4m3b11 %v367_v61 }
  0x66   : > { %v372_v54 = vand.u32 2147483647, %v368_v55  ;;  %vm374_vm2 = vcmp.ne.f32.partialorder %v368_v55, %v368_v55  ;;  %v375_v57 = vmul.f32 16.0, %v368_v55 }
  0x68   : > { %vm12104_vm3 = vcmp.gt.f32.partialorder %v372_v54, 29.0  ;;  %v12108_v56 = vsel %vm374_vm2, -0.0, %v375_v57 }
  0x69   : > { %v17459_v53 = vsel %vm12104_vm3, 4294967295, %v17458_v53  ;;  %17461 = vst [vmem:[#allocation282_spill] sm:$0xff] %v12108_v56 }
  0x6a   : > { %17460 = vst [vmem:[#allocation281_spill] sm:$0xff] %v17459_v53 }
  0x6b   : > { %396 = vst [vmem:[#allocation11] sm:$0xff] %v11894_v0  ;;  %v17462_v60 = vmov 0 }
  0x72   : > { %v398_v59 = vld [vmem:[#allocation11 + $0x2] sm:$0x3] }
  0x73   : > { %v399_v63 = vunpack.c.0.f8e4m3b11 %v398_v59 }
  0x75   : > { %v403_v62 = vand.u32 2147483647, %v399_v63  ;;  %vm405_vm4 = vcmp.ne.f32.partialorder %v399_v63, %v399_v63  ;;  %v406_v61 = vmul.f32 16.0, %v399_v63 }
  0x77   : > { %vm12114_vm5 = vcmp.gt.f32.partialorder %v403_v62, 29.0  ;;  %v12118_v54 = vsel %vm405_vm4, -0.0, %v406_v61 }
  0x78   : > { %v17463_v60 = vsel %vm12114_vm5, 4294967295, %v17462_v60  ;;  %17465 = vst [vmem:[#allocation284_spill] sm:$0xff] %v12118_v54 }
  0x79   : > { %17464 = vst [vmem:[#allocation283_spill] sm:$0xff] %v17463_v60 }
  0x7a   : > { %427 = vst [vmem:[#allocation12] sm:$0xff] %v11897_v1  ;;  %v17466_v53 = vmov 0 }
  0x81   : > { %v429_v57 = vld [vmem:[#allocation12 + $0x2] sm:$0x3] }
  0x82   : > { %v430_v58 = vunpack.c.0.f8e4m3b11 %v429_v57 }
  0x84   : > { %v434_v56 = vand.u32 2147483647, %v430_v58  ;;  %vm436_vm6 = vcmp.ne.f32.partialorder %v430_v58, %v430_v58  ;;  %v437_v59 = vmul.f32 16.0, %v430_v58 }
  0x86   : > { %vm12124_vm7 = vcmp.gt.f32.partialorder %v434_v56, 29.0  ;;  %v12128_v62 = vsel %vm436_vm6, -0.0, %v437_v59 }
  0x87   : > { %v17467_v53 = vsel %vm12124_vm7, 4294967295, %v17466_v53  ;;  %17469 = vst [vmem:[#allocation286_spill] sm:$0xff] %v12128_v62 }
  0x88   : > { %17468 = vst [vmem:[#allocation285_spill] sm:$0xff] %v17467_v53 }
  0x89   : > { %458 = vst [vmem:[#allocation13] sm:$0xff] %v11894_v0  ;;  %v17470_v60 = vmov 0 }
  0x90   : > { %v460_v61 = vld [vmem:[#allocation13 + $0x4] sm:$0x3] }
  0x91   : > { %v461_v55 = vunpack.c.0.f8e4m3b11 %v460_v61 }
  0x93   : > { %v465_v54 = vand.u32 2147483647, %v461_v55  ;;  %vm467_vm8 = vcmp.ne.f32.partialorder %v461_v55, %v461_v55  ;;  %v468_v57 = vmul.f32 16.0, %v461_v55 }
  0x95   : > { %vm12134_vm9 = vcmp.gt.f32.partialorder %v465_v54, 29.0  ;;  %v12138_v56 = vsel %vm467_vm8, -0.0, %v468_v57 }
  0x96   : > { %v17471_v60 = vsel %vm12134_vm9, 4294967295, %v17470_v60  ;;  %17473 = vst [vmem:[#allocation288_spill] sm:$0xff] %v12138_v56 }
  0x97   : > { %17472 = vst [vmem:[#allocation287_spill] sm:$0xff] %v17471_v60 }
  0x98   : > { %489 = vst [vmem:[#allocation14] sm:$0xff] %v11897_v1  ;;  %v17474_v53 = vmov 0 }
  0x9f   : > { %v491_v59 = vld [vmem:[#allocation14 + $0x4] sm:$0x3] }
  0xa0   : > { %v492_v63 = vunpack.c.0.f8e4m3b11 %v491_v59 }
  0xa2   : > { %v496_v62 = vand.u32 2147483647, %v492_v63  ;;  %vm498_vm10 = vcmp.ne.f32.partialorder %v492_v63, %v492_v63  ;;  %v499_v61 = vmul.f32 16.0, %v492_v63 }
  0xa4   : > { %vm12144_vm11 = vcmp.gt.f32.partialorder %v496_v62, 29.0  ;;  %v12148_v54 = vsel %vm498_vm10, -0.0, %v499_v61 }
  0xa5   : > { %v17475_v53 = vsel %vm12144_vm11, 4294967295, %v17474_v53  ;;  %17477 = vst [vmem:[#allocation290_spill] sm:$0xff] %v12148_v54 }
  0xa6   : > { %17476 = vst [vmem:[#allocation289_spill] sm:$0xff] %v17475_v53 }
  0xa7   : > { %520 = vst [vmem:[#allocation15] sm:$0xff] %v11894_v0  ;;  %v17478_v60 = vmov 0 }
  0xae   : > { %v522_v57 = vld [vmem:[#allocation15 + $0x6] sm:$0x3] }
  0xaf   : > { %v523_v58 = vunpack.c.0.f8e4m3b11 %v522_v57 }
  0xb1   : > { %v527_v56 = vand.u32 2147483647, %v523_v58  ;;  %vm529_vm12 = vcmp.ne.f32.partialorder %v523_v58, %v523_v58  ;;  %v530_v59 = vmul.f32 16.0, %v523_v58 }
  0xb3   : > { %vm12154_vm13 = vcmp.gt.f32.partialorder %v527_v56, 29.0  ;;  %v12158_v62 = vsel %vm529_vm12, -0.0, %v530_v59 }
  0xb4   : > { %v17479_v60 = vsel %vm12154_vm13, 4294967295, %v17478_v60  ;;  %17481 = vst [vmem:[#allocation292_spill] sm:$0xff] %v12158_v62 }
  0xb5   : > { %17480 = vst [vmem:[#allocation291_spill] sm:$0xff] %v17479_v60 }
  0xb6   : > { %551 = vst [vmem:[#allocation16] sm:$0xff] %v11897_v1  ;;  %v17482_v54 = vmov 0 }
  0xbd   : > { %v553_v61 = vld [vmem:[#allocation16 + $0x6] sm:$0x3] }
  0xbe   : > { %v554_v55 = vunpack.c.0.f8e4m3b11 %v553_v61 }
  0xc0   : > { %v558_v0 = vand.u32 2147483647, %v554_v55  ;;  %vm560_vm14 = vcmp.ne.f32.partialorder %v554_v55, %v554_v55  ;;  %v561_v57 = vmul.f32 16.0, %v554_v55 }
  0xc2   : > { %vm12164_vm15 = vcmp.gt.f32.partialorder %v558_v0, 29.0  ;;  %v12168_v56 = vsel %vm560_vm14, -0.0, %v561_v57 }
  0xc3   : > { %v17483_v54 = vsel %vm12164_vm15, 4294967295, %v17482_v54  ;;  %17485 = vst [vmem:[#allocation294_spill] sm:$0xff] %v12168_v56 }
  0xc4   : > { %17484 = vst [vmem:[#allocation293_spill] sm:$0xff] %v17483_v54 }
  0xc5   : > { %582 = vst [vmem:[#allocation17] sm:$0xff] %v11900_v2  ;;  %v17486_v53 = vmov 0 }
  0xcc   : > { %v583_v59 = vld [vmem:[#allocation17] sm:$0x3] }
  0xcd   : > { %v584_v63 = vunpack.c.0.f8e4m3b11 %v583_v59 }
  0xcf   : > { %v588_v1 = vand.u32 2147483647, %v584_v63  ;;  %vm590_vm0 = vcmp.ne.f32.partialorder %v584_v63, %v584_v63  ;;  %v591_v61 = vmul.f32 16.0, %v584_v63 }
  0xd1   : > { %vm12174_vm2 = vcmp.gt.f32.partialorder %v588_v1, 29.0  ;;  %v12178_v55 = vsel %vm590_vm0, -0.0, %v591_v61 }
  0xd2   : > { %v17487_v53 = vsel %vm12174_vm2, 4294967295, %v17486_v53  ;;  %17489 = vst [vmem:[#allocation296_spill] sm:$0xff] %v12178_v55 }
  0xd3   : > { %17488 = vst [vmem:[#allocation295_spill] sm:$0xff] %v17487_v53 }
  0xd4   : > { %612 = vst [vmem:[#allocation18] sm:$0xff] %v11903_v3  ;;  %v17490_v54 = vmov 0 }
  0xdb   : > { %v613_v57 = vld [vmem:[#allocation18] sm:$0x3] }
  0xdc   : > { %v614_v58 = vunpack.c.0.f8e4m3b11 %v613_v57 }
  0xde   : > { %v618_v56 = vand.u32 2147483647, %v614_v58  ;;  %vm620_vm4 = vcmp.ne.f32.partialorder %v614_v58, %v614_v58  ;;  %v621_v59 = vmul.f32 16.0, %v614_v58 }
  0xe0   : > { %vm12184_vm6 = vcmp.gt.f32.partialorder %v618_v56, 29.0  ;;  %v12188_v63 = vsel %vm620_vm4, -0.0, %v621_v59 }
  0xe1   : > { %v17491_v54 = vsel %vm12184_vm6, 4294967295, %v17490_v54  ;;  %17493 = vst [vmem:[#allocation298_spill] sm:$0xff] %v12188_v63 }
  0xe2   : > { %17492 = vst [vmem:[#allocation297_spill] sm:$0xff] %v17491_v54 }
  0xe3   : > { %642 = vst [vmem:[#allocation19] sm:$0xff] %v11900_v2  ;;  %v17494_v60 = vmov 0 }
  0xea   : > { %v644_v61 = vld [vmem:[#allocation19 + $0x2] sm:$0x3] }
  0xeb   : > { %v645_v0 = vunpack.c.0.f8e4m3b11 %v644_v61 }
  0xed   : > { %v649_v62 = vand.u32 2147483647, %v645_v0  ;;  %vm651_vm8 = vcmp.ne.f32.partialorder %v645_v0, %v645_v0  ;;  %v652_v57 = vmul.f32 16.0, %v645_v0 }
  0xef   : > { %vm12194_vm10 = vcmp.gt.f32.partialorder %v649_v62, 29.0  ;;  %v12198_v56 = vsel %vm651_vm8, -0.0, %v652_v57 }
  0xf0   : > { %v17495_v60 = vsel %vm12194_vm10, 4294967295, %v17494_v60  ;;  %17497 = vst [vmem:[#allocation300_spill] sm:$0xff] %v12198_v56 }
  0xf1   : > { %17496 = vst [vmem:[#allocation299_spill] sm:$0xff] %v17495_v60 }
  0xf2   : > { %673 = vst [vmem:[#allocation20] sm:$0xff] %v11903_v3  ;;  %v17498_v54 = vmov 0 }
  0xf9   : > { %v675_v59 = vld [vmem:[#allocation20 + $0x2] sm:$0x3] }
  0xfa   : > { %v676_v1 = vunpack.c.0.f8e4m3b11 %v675_v59 }
  0xfc   : > { %v680_v63 = vand.u32 2147483647, %v676_v1  ;;  %vm682_vm12 = vcmp.ne.f32.partialorder %v676_v1, %v676_v1  ;;  %v683_v61 = vmul.f32 16.0, %v676_v1 }
  0xfe   : > { %vm12204_vm14 = vcmp.gt.f32.partialorder %v680_v63, 29.0  ;;  %v12208_v62 = vsel %vm682_vm12, -0.0, %v683_v61 }
  0xff   : > { %v17499_v54 = vsel %vm12204_vm14, 4294967295, %v17498_v54  ;;  %17501 = vst [vmem:[#allocation302_spill] sm:$0xff] %v12208_v62 }
 0x100   : > { %17500 = vst [vmem:[#allocation301_spill] sm:$0xff] %v17499_v54 }
 0x101   : > { %704 = vst [vmem:[#allocation21] sm:$0xff] %v11900_v2  ;;  %v17502_v60 = vmov 0 }
 0x108   : > { %v706_v57 = vld [vmem:[#allocation21 + $0x4] sm:$0x3] }
 0x109   : > { %v707_v58 = vunpack.c.0.f8e4m3b11 %v706_v57 }
 0x10b   : > { %v711_v56 = vand.u32 2147483647, %v707_v58  ;;  %vm713_vm0 = vcmp.ne.f32.partialorder %v707_v58, %v707_v58  ;;  %v714_v59 = vmul.f32 16.0, %v707_v58 }
 0x10d   : > { %vm12214_vm4 = vcmp.gt.f32.partialorder %v711_v56, 29.0  ;;  %v12218_v63 = vsel %vm713_vm0, -0.0, %v714_v59 }
 0x10e   : > { %v17503_v60 = vsel %vm12214_vm4, 4294967295, %v17502_v60  ;;  %17505 = vst [vmem:[#allocation304_spill] sm:$0xff] %v12218_v63 }
 0x10f   : > { %17504 = vst [vmem:[#allocation303_spill] sm:$0xff] %v17503_v60 }
 0x110   : > { %735 = vst [vmem:[#allocation22] sm:$0xff] %v11903_v3  ;;  %v17506_v54 = vmov 0 }
 0x117   : > { %v737_v61 = vld [vmem:[#allocation22 + $0x4] sm:$0x3] }
 0x118   : > { %v738_v0 = vunpack.c.0.f8e4m3b11 %v737_v61 }
 0x11a   : > { %v742_v62 = vand.u32 2147483647, %v738_v0  ;;  %vm744_vm8 = vcmp.ne.f32.partialorder %v738_v0, %v738_v0  ;;  %v745_v57 = vmul.f32 16.0, %v738_v0 }
 0x11c   : > { %vm12224_vm12 = vcmp.gt.f32.partialorder %v742_v62, 29.0  ;;  %v12228_v56 = vsel %vm744_vm8, -0.0, %v745_v57 }
 0x11d   : > { %v17507_v54 = vsel %vm12224_vm12, 4294967295, %v17506_v54  ;;  %17509 = vst [vmem:[#allocation306_spill] sm:$0xff] %v12228_v56 }
 0x11e   : > { %17508 = vst [vmem:[#allocation305_spill] sm:$0xff] %v17507_v54 }
 0x11f   : > { %766 = vst [vmem:[#allocation23] sm:$0xff] %v11900_v2  ;;  %v17510_v53 = vmov 0 }
 0x126   : > { %v768_v59 = vld [vmem:[#allocation23 + $0x6] sm:$0x3] }
 0x127   : > { %v769_v1 = vunpack.c.0.f8e4m3b11 %v768_v59 }
 0x129   : > { %v773_v55 = vand.u32 2147483647, %v769_v1  ;;  %vm775_vm0 = vcmp.ne.f32.partialorder %v769_v1, %v769_v1  ;;  %v776_v61 = vmul.f32 16.0, %v769_v1 }
 0x12b   : > { %vm12234_vm7 = vcmp.gt.f32.partialorder %v773_v55, 29.0  ;;  %v12238_v62 = vsel %vm775_vm0, -0.0, %v776_v61 }
 0x12c   : > { %v17511_v53 = vsel %vm12234_vm7, 4294967295, %v17510_v53  ;;  %17513 = vst [vmem:[#allocation308_spill] sm:$0xff] %v12238_v62 }
 0x12d   : > { %17512 = vst [vmem:[#allocation307_spill] sm:$0xff] %v17511_v53 }
 0x12e   : > { %797 = vst [vmem:[#allocation24] sm:$0xff] %v11903_v3  ;;  %v17514_v56 = vmov 0 }
 0x135   : > { %v799_v57 = vld [vmem:[#allocation24 + $0x6] sm:$0x3] }
 0x136   : > { %v800_v58 = vunpack.c.0.f8e4m3b11 %v799_v57 }
 0x138   : > { %v804_v2 = vand.u32 2147483647, %v800_v58  ;;  %vm806_vm8 = vcmp.ne.f32.partialorder %v800_v58, %v800_v58  ;;  %v807_v59 = vmul.f32 16.0, %v800_v58 }
 0x13a   : > { %vm12244_vm3 = vcmp.gt.f32.partialorder %v804_v2, 29.0  ;;  %v12248_v55 = vsel %vm806_vm8, -0.0, %v807_v59 }
 0x13b   : > { %v17515_v56 = vsel %vm12244_vm3, 4294967295, %v17514_v56  ;;  %17517 = vst [vmem:[#allocation310_spill] sm:$0xff] %v12248_v55 }
 0x13c   : > { %17516 = vst [vmem:[#allocation309_spill] sm:$0xff] %v17515_v56 }
 0x13d   : > { %828 = vst [vmem:[#allocation25] sm:$0xff] %v11906_v4  ;;  %v17518_v54 = vmov 0 }
 0x144   : > { %v829_v61 = vld [vmem:[#allocation25] sm:$0x3] }
 0x145   : > { %v830_v0 = vunpack.c.0.f8e4m3b11 %v829_v61 }
 0x147   : > { %v834_v3 = vand.u32 2147483647, %v830_v0  ;;  %vm836_vm0 = vcmp.ne.f32.partialorder %v830_v0, %v830_v0  ;;  %v837_v57 = vmul.f32 16.0, %v830_v0 }
 0x149   : > { %vm12254_vm15 = vcmp.gt.f32.partialorder %v834_v3, 29.0  ;;  %v12258_v58 = vsel %vm836_vm0, -0.0, %v837_v57 }
 0x14a   : > { %v17519_v54 = vsel %vm12254_vm15, 4294967295, %v17518_v54  ;;  %17521 = vst [vmem:[#allocation312_spill] sm:$0xff] %v12258_v58 }
 0x14b   : > { %17520 = vst [vmem:[#allocation311_spill] sm:$0xff] %v17519_v54 }
 0x14c   : > { %858 = vst [vmem:[#allocation26] sm:$0xff] %v11909_v5  ;;  %v17522_v56 = vmov 0 }
 0x153   : > { %v859_v59 = vld [vmem:[#allocation26] sm:$0x3] }
 0x154   : > { %v860_v1 = vunpack.c.0.f8e4m3b11 %v859_v59 }
 0x156   : > { %v864_v55 = vand.u32 2147483647, %v860_v1  ;;  %vm866_vm8 = vcmp.ne.f32.partialorder %v860_v1, %v860_v1  ;;  %v867_v61 = vmul.f32 16.0, %v860_v1 }
 0x158   : > { %vm12264_vm11 = vcmp.gt.f32.partialorder %v864_v55, 29.0  ;;  %v12268_v0 = vsel %vm866_vm8, -0.0, %v867_v61 }
 0x159   : > { %v17523_v56 = vsel %vm12264_vm11, 4294967295, %v17522_v56  ;;  %17525 = vst [vmem:[#allocation314_spill] sm:$0xff] %v12268_v0 }
 0x15a   : > { %17524 = vst [vmem:[#allocation313_spill] sm:$0xff] %v17523_v56 }
 0x15b   : > { %888 = vst [vmem:[#allocation27] sm:$0xff] %v11906_v4  ;;  %v17526_v53 = vmov 0 }
 0x162   : > { %v890_v57 = vld [vmem:[#allocation27 + $0x2] sm:$0x3] }
 0x163   : > { %v891_v2 = vunpack.c.0.f8e4m3b11 %v890_v57 }
 0x165   : > { %v895_v62 = vand.u32 2147483647, %v891_v2  ;;  %vm897_vm0 = vcmp.ne.f32.partialorder %v891_v2, %v891_v2  ;;  %v898_v59 = vmul.f32 16.0, %v891_v2 }
 0x167   : > { %vm12274_vm14 = vcmp.gt.f32.partialorder %v895_v62, 29.0  ;;  %v12278_v55 = vsel %vm897_vm0, -0.0, %v898_v59 }
 0x168   : > { %v17527_v53 = vsel %vm12274_vm14, 4294967295, %v17526_v53  ;;  %17529 = vst [vmem:[#allocation316_spill] sm:$0xff] %v12278_v55 }
 0x169   : > { %17528 = vst [vmem:[#allocation315_spill] sm:$0xff] %v17527_v53 }
 0x16a   : > { %919 = vst [vmem:[#allocation28] sm:$0xff] %v11909_v5  ;;  %v17530_v56 = vmov 0 }
 0x171   : > { %v921_v61 = vld [vmem:[#allocation28 + $0x2] sm:$0x3] }
 0x172   : > { %v922_v3 = vunpack.c.0.f8e4m3b11 %v921_v61 }
 0x174   : > { %v926_v0 = vand.u32 2147483647, %v922_v3  ;;  %vm928_vm8 = vcmp.ne.f32.partialorder %v922_v3, %v922_v3  ;;  %v929_v57 = vmul.f32 16.0, %v922_v3 }
 0x176   : > { %vm12284_vm6 = vcmp.gt.f32.partialorder %v926_v0, 29.0  ;;  %v12288_v62 = vsel %vm928_vm8, -0.0, %v929_v57 }
 0x177   : > { %v17531_v56 = vsel %vm12284_vm6, 4294967295, %v17530_v56  ;;  %17533 = vst [vmem:[#allocation318_spill] sm:$0xff] %v12288_v62 }
 0x178   : > { %17532 = vst [vmem:[#allocation317_spill] sm:$0xff] %v17531_v56 }
 0x179   : > { %950 = vst [vmem:[#allocation29] sm:$0xff] %v11906_v4  ;;  %v17534_v60 = vmov 0 }
 0x180   : > { %v952_v59 = vld [vmem:[#allocation29 + $0x4] sm:$0x3] }
 0x181   : > { %v953_v1 = vunpack.c.0.f8e4m3b11 %v952_v59 }
 0x183   : > { %v957_v63 = vand.u32 2147483647, %v953_v1  ;;  %vm959_vm0 = vcmp.ne.f32.partialorder %v953_v1, %v953_v1  ;;  %v960_v61 = vmul.f32 16.0, %v953_v1 }
 0x185   : > { %vm12294_vm3 = vcmp.gt.f32.partialorder %v957_v63, 29.0  ;;  %v12298_v0 = vsel %vm959_vm0, -0.0, %v960_v61 }
 0x186   : > { %v17535_v60 = vsel %vm12294_vm3, 4294967295, %v17534_v60  ;;  %17537 = vst [vmem:[#allocation320_spill] sm:$0xff] %v12298_v0 }
 0x187   : > { %17536 = vst [vmem:[#allocation319_spill] sm:$0xff] %v17535_v60 }
 0x188   : > { %981 = vst [vmem:[#allocation30] sm:$0xff] %v11909_v5  ;;  %v17538_v56 = vmov 0 }
 0x18f   : > { %v983_v57 = vld [vmem:[#allocation30 + $0x4] sm:$0x3] }
 0x190   : > { %v984_v2 = vunpack.c.0.f8e4m3b11 %v983_v57 }
 0x192   : > { %v988_v62 = vand.u32 2147483647, %v984_v2  ;;  %vm990_vm8 = vcmp.ne.f32.partialorder %v984_v2, %v984_v2  ;;  %v991_v59 = vmul.f32 16.0, %v984_v2 }
 0x194   : > { %vm12304_vm12 = vcmp.gt.f32.partialorder %v988_v62, 29.0  ;;  %v12308_v63 = vsel %vm990_vm8, -0.0, %v991_v59 }
 0x195   : > { %v17539_v56 = vsel %vm12304_vm12, 4294967295, %v17538_v56  ;;  %17541 = vst [vmem:[#allocation322_spill] sm:$0xff] %v12308_v63 }
 0x196   : > { %17540 = vst [vmem:[#allocation321_spill] sm:$0xff] %v17539_v56 }
 0x197   : > { %1012 = vst [vmem:[#allocation31] sm:$0xff] %v11906_v4  ;;  %v17542_v53 = vmov 0 }
 0x19e   : > { %v1014_v61 = vld [vmem:[#allocation31 + $0x6] sm:$0x3] }
 0x19f   : > { %v1015_v3 = vunpack.c.0.f8e4m3b11 %v1014_v61 }
 0x1a1   : > { %v1019_v55 = vand.u32 2147483647, %v1015_v3  ;;  %vm1021_vm0 = vcmp.ne.f32.partialorder %v1015_v3, %v1015_v3  ;;  %v1022_v57 = vmul.f32 16.0, %v1015_v3 }
 0x1a3   : > { %vm12314_vm6 = vcmp.gt.f32.partialorder %v1019_v55, 29.0  ;;  %v12318_v62 = vsel %vm1021_vm0, -0.0, %v1022_v57 }
 0x1a4   : > { %v17543_v53 = vsel %vm12314_vm6, 4294967295, %v17542_v53  ;;  %17545 = vst [vmem:[#allocation324_spill] sm:$0xff] %v12318_v62 }
 0x1a5   : > { %17544 = vst [vmem:[#allocation323_spill] sm:$0xff] %v17543_v53 }
 0x1a6   : > { %1043 = vst [vmem:[#allocation32] sm:$0xff] %v11909_v5  ;;  %v17546_v63 = vmov 0 }
 0x1ad   : > { %v1045_v59 = vld [vmem:[#allocation32 + $0x6] sm:$0x3] }
 0x1ae   : > { %v1046_v1 = vunpack.c.0.f8e4m3b11 %v1045_v59 }
 0x1b0   : > { %v1050_v4 = vand.u32 2147483647, %v1046_v1  ;;  %vm1052_vm8 = vcmp.ne.f32.partialorder %v1046_v1, %v1046_v1  ;;  %v1053_v61 = vmul.f32 16.0, %v1046_v1 }
 0x1b2   : > { %vm12324_vm11 = vcmp.gt.f32.partialorder %v1050_v4, 29.0  ;;  %v12328_v55 = vsel %vm1052_vm8, -0.0, %v1053_v61 }
 0x1b3   : > { %v17547_v63 = vsel %vm12324_vm11, 4294967295, %v17546_v63  ;;  %17549 = vst [vmem:[#allocation326_spill] sm:$0xff] %v12328_v55 }
 0x1b4   : > { %17548 = vst [vmem:[#allocation325_spill] sm:$0xff] %v17547_v63 }
 0x1b5   : > { %1074 = vst [vmem:[#allocation33] sm:$0xff] %v11912_v6 }
 0x1bc   : > { %v1075_v57 = vld [vmem:[#allocation33] sm:$0x3] }
 0x1bd   : > { %v1076_v2 = vunpack.c.0.f8e4m3b11 %v1075_v57 }
 0x1bf   : > { %v1080_v5 = vand.u32 2147483647, %v1076_v2  ;;  %vm1082_vm0 = vcmp.ne.f32.partialorder %v1076_v2, %v1076_v2  ;;  %v1083_v59 = vmul.f32 16.0, %v1076_v2 }
 0x1c1   : > { %vm12334_vm12 = vcmp.gt.f32.partialorder %v1080_v5, 29.0  ;;  %v12338_v1 = vsel %vm1082_vm0, -0.0, %v1083_v59 }
 0x1c2   : > { %1104 = vst [vmem:[#allocation34] sm:$0xff] %v11915_v7  ;;  %v17552_v63 = vmov 0 }
 0x1c9   : > { %v1105_v61 = vld [vmem:[#allocation34] sm:$0x3] }
 0x1ca   : > { %v1106_v3 = vunpack.c.0.f8e4m3b11 %v1105_v61 }
 0x1cc   : > { %v1110_v55 = vand.u32 2147483647, %v1106_v3  ;;  %vm1112_vm8 = vcmp.ne.f32.partialorder %v1106_v3, %v1106_v3  ;;  %v1113_v57 = vmul.f32 16.0, %v1106_v3 }
 0x1ce   : > { %vm12344_vm11 = vcmp.gt.f32.partialorder %v1110_v55, 29.0  ;;  %v12348_v2 = vsel %vm1112_vm8, -0.0, %v1113_v57 }
 0x1cf   : > { %v17553_v63 = vsel %vm12344_vm11, 4294967295, %v17552_v63  ;;  %17555 = vst [vmem:[#allocation328_spill] sm:$0xff] %v12348_v2 }
 0x1d0   : > { %17554 = vst [vmem:[#allocation327_spill] sm:$0xff] %v17553_v63 }
 0x1d1   : > { %1134 = vst [vmem:[#allocation35] sm:$0xff] %v11912_v6 }
 0x1d8   : > { %v1136_v59 = vld [vmem:[#allocation35 + $0x2] sm:$0x3] }
 0x1d9   : > { %v1137_v4 = vunpack.c.0.f8e4m3b11 %v1136_v59 }
 0x1db   : > { %v1141_v58 = vand.u32 2147483647, %v1137_v4  ;;  %vm1143_vm0 = vcmp.ne.f32.partialorder %v1137_v4, %v1137_v4  ;;  %v1144_v61 = vmul.f32 16.0, %v1137_v4 }
 0x1dd   : > { %vm12354_vm5 = vcmp.gt.f32.partialorder %v1141_v58, 29.0  ;;  %v12358_v55 = vsel %vm1143_vm0, -0.0, %v1144_v61 }
 0x1de   : > { %1165 = vst [vmem:[#allocation36] sm:$0xff] %v11915_v7  ;;  %v17558_v63 = vmov 0 }
 0x1e5   : > { %v1167_v57 = vld [vmem:[#allocation36 + $0x2] sm:$0x3] }
 0x1e6   : > { %v1168_v5 = vunpack.c.0.f8e4m3b11 %v1167_v57 }
 0x1e8   : > { %v1172_v2 = vand.u32 2147483647, %v1168_v5  ;;  %vm1174_vm8 = vcmp.ne.f32.partialorder %v1168_v5, %v1168_v5  ;;  %v1175_v59 = vmul.f32 16.0, %v1168_v5 }
 0x1ea   : > { %vm12364_vm11 = vcmp.gt.f32.partialorder %v1172_v2, 29.0  ;;  %v12368_v58 = vsel %vm1174_vm8, -0.0, %v1175_v59 }
 0x1eb   : > { %v17559_v63 = vsel %vm12364_vm11, 4294967295, %v17558_v63  ;;  %17561 = vst [vmem:[#allocation330_spill] sm:$0xff] %v12368_v58 }
 0x1ec   : > { %17560 = vst [vmem:[#allocation329_spill] sm:$0xff] %v17559_v63 }
 0x1ed   : > { %1196 = vst [vmem:[#allocation37] sm:$0xff] %v11912_v6 }
 0x1f4   : > { %v1198_v61 = vld [vmem:[#allocation37 + $0x4] sm:$0x3] }
 0x1f5   : > { %v1199_v3 = vunpack.c.0.f8e4m3b11 %v1198_v61 }
 0x1f7   : > { %v1203_v62 = vand.u32 2147483647, %v1199_v3  ;;  %vm1205_vm0 = vcmp.ne.f32.partialorder %v1199_v3, %v1199_v3  ;;  %v1206_v57 = vmul.f32 16.0, %v1199_v3 }
 0x1f9   : > { %vm12374_vm1 = vcmp.gt.f32.partialorder %v1203_v62, 29.0  ;;  %v12378_v2 = vsel %vm1205_vm0, -0.0, %v1206_v57 }
 0x1fa   : > { %1227 = vst [vmem:[#allocation38] sm:$0xff] %v11915_v7  ;;  %v17564_v63 = vmov 0 }
 0x201   : > { %v1229_v59 = vld [vmem:[#allocation38 + $0x4] sm:$0x3] }
 0x202   : > { %v1230_v4 = vunpack.c.0.f8e4m3b11 %v1229_v59 }
 0x204   : > { %v1234_v58 = vand.u32 2147483647, %v1230_v4  ;;  %vm1236_vm8 = vcmp.ne.f32.partialorder %v1230_v4, %v1230_v4  ;;  %v1237_v61 = vmul.f32 16.0, %v1230_v4 }
 0x206   : > { %vm12384_vm11 = vcmp.gt.f32.partialorder %v1234_v58, 29.0  ;;  %v12388_v62 = vsel %vm1236_vm8, -0.0, %v1237_v61 }
 0x207   : > { %v17565_v63 = vsel %vm12384_vm11, 4294967295, %v17564_v63  ;;  %17567 = vst [vmem:[#allocation332_spill] sm:$0xff] %v12388_v62 }
 0x208   : > { %17566 = vst [vmem:[#allocation331_spill] sm:$0xff] %v17565_v63 }
 0x209   : > { %1258 = vst [vmem:[#allocation39] sm:$0xff] %v11912_v6 }
 0x210   : > { %v1260_v57 = vld [vmem:[#allocation39 + $0x6] sm:$0x3] }
 0x211   : > { %v1261_v5 = vunpack.c.0.f8e4m3b11 %v1260_v57 }
 0x213   : > { %v1265_v0 = vand.u32 2147483647, %v1261_v5  ;;  %vm1267_vm0 = vcmp.ne.f32.partialorder %v1261_v5, %v1261_v5  ;;  %v1268_v59 = vmul.f32 16.0, %v1261_v5 }
 0x215   : > { %vm12394_vm13 = vcmp.gt.f32.partialorder %v1265_v0, 29.0  ;;  %v12398_v58 = vsel %vm1267_vm0, -0.0, %v1268_v59 }
 0x216   : > { %1289 = vst [vmem:[#allocation40] sm:$0xff] %v11915_v7  ;;  %v17570_v62 = vmov 0 }
 0x21d   : > { %v1291_v61 = vld [vmem:[#allocation40 + $0x6] sm:$0x3] }
 0x21e   : > { %v1292_v3 = vunpack.c.0.f8e4m3b11 %v1291_v61 }
 0x220   : > { %v1296_v6 = vand.u32 2147483647, %v1292_v3  ;;  %vm1298_vm8 = vcmp.ne.f32.partialorder %v1292_v3, %v1292_v3  ;;  %v1299_v57 = vmul.f32 16.0, %v1292_v3 }
 0x222   : > { %vm12404_vm11 = vcmp.gt.f32.partialorder %v1296_v6, 29.0  ;;  %v12408_v0 = vsel %vm1298_vm8, -0.0, %v1299_v57 }
 0x223   : > { %v17571_v62 = vsel %vm12404_vm11, 4294967295, %v17570_v62  ;;  %17573 = vst [vmem:[#allocation334_spill] sm:$0xff] %v12408_v0 }
 0x224   : > { %17572 = vst [vmem:[#allocation333_spill] sm:$0xff] %v17571_v62 }
 0x225   : > { %1320 = vst [vmem:[#allocation41] sm:$0xff] %v11918_v8  ;;  %v17574_v63 = vmov 0 }
 0x22c   : > { %v1321_v59 = vld [vmem:[#allocation41] sm:$0x3] }
 0x22d   : > { %v1322_v4 = vunpack.c.0.f8e4m3b11 %v1321_v59 }
 0x22f   : > { %v1326_v7 = vand.u32 2147483647, %v1322_v4  ;;  %vm1328_vm0 = vcmp.ne.f32.partialorder %v1322_v4, %v1322_v4  ;;  %v1329_v61 = vmul.f32 16.0, %v1322_v4 }
 0x231   : > { %vm12414_vm9 = vcmp.gt.f32.partialorder %v1326_v7, 29.0  ;;  %v12418_v3 = vsel %vm1328_vm0, -0.0, %v1329_v61 }
 0x232   : > { %v17575_v63 = vsel %vm12414_vm9, 4294967295, %v17574_v63  ;;  %17577 = vst [vmem:[#allocation336_spill] sm:$0xff] %v12418_v3 }
 0x233   : > { %17576 = vst [vmem:[#allocation335_spill] sm:$0xff] %v17575_v63 }
 0x234   : > { %1350 = vst [vmem:[#allocation42] sm:$0xff] %v11921_v9  ;;  %v17578_v62 = vmov 0 }
 0x23b   : > { %v1351_v57 = vld [vmem:[#allocation42] sm:$0x3] }
 0x23c   : > { %v1352_v5 = vunpack.c.0.f8e4m3b11 %v1351_v57 }
 0x23e   : > { %v1356_v0 = vand.u32 2147483647, %v1352_v5  ;;  %vm1358_vm8 = vcmp.ne.f32.partialorder %v1352_v5, %v1352_v5  ;;  %v1359_v59 = vmul.f32 16.0, %v1352_v5 }
 0x240   : > { %vm12424_vm11 = vcmp.gt.f32.partialorder %v1356_v0, 29.0  ;;  %v12428_v4 = vsel %vm1358_vm8, -0.0, %v1359_v59 }
 0x241   : > { %v17579_v62 = vsel %vm12424_vm11, 4294967295, %v17578_v62  ;;  %17581 = vst [vmem:[#allocation338_spill] sm:$0xff] %v12428_v4 }
 0x242   : > { %17580 = vst [vmem:[#allocation337_spill] sm:$0xff] %v17579_v62 }
 0x243   : > { %1380 = vst [vmem:[#allocation43] sm:$0xff] %v11918_v8  ;;  %v17582_v63 = vmov 0 }
 0x24a   : > { %v1382_v61 = vld [vmem:[#allocation43 + $0x2] sm:$0x3] }
 0x24b   : > { %v1383_v6 = vunpack.c.0.f8e4m3b11 %v1382_v61 }
 0x24d   : > { %v1387_v3 = vand.u32 2147483647, %v1383_v6  ;;  %vm1389_vm0 = vcmp.ne.f32.partialorder %v1383_v6, %v1383_v6  ;;  %v1390_v57 = vmul.f32 16.0, %v1383_v6 }
 0x24f   : > { %vm12434_vm9 = vcmp.gt.f32.partialorder %v1387_v3, 29.0  ;;  %v12438_v0 = vsel %vm1389_vm0, -0.0, %v1390_v57 }
 0x250   : > { %v17583_v63 = vsel %vm12434_vm9, 4294967295, %v17582_v63  ;;  %17585 = vst [vmem:[#allocation340_spill] sm:$0xff] %v12438_v0 }
 0x251   : > { %17584 = vst [vmem:[#allocation339_spill] sm:$0xff] %v17583_v63 }
 0x252   : > { %1411 = vst [vmem:[#allocation44] sm:$0xff] %v11921_v9  ;;  %v17586_v62 = vmov 0 }
 0x259   : > { %v1413_v59 = vld [vmem:[#allocation44 + $0x2] sm:$0x3] }
 0x25a   : > { %v1414_v7 = vunpack.c.0.f8e4m3b11 %v1413_v59 }
 0x25c   : > { %v1418_v4 = vand.u32 2147483647, %v1414_v7  ;;  %vm1420_vm8 = vcmp.ne.f32.partialorder %v1414_v7, %v1414_v7  ;;  %v1421_v61 = vmul.f32 16.0, %v1414_v7 }
 0x25e   : > { %vm12444_vm11 = vcmp.gt.f32.partialorder %v1418_v4, 29.0  ;;  %v12448_v3 = vsel %vm1420_vm8, -0.0, %v1421_v61 }
 0x25f   : > { %v17587_v62 = vsel %vm12444_vm11, 4294967295, %v17586_v62  ;;  %17589 = vst [vmem:[#allocation342_spill] sm:$0xff] %v12448_v3 }
 0x260   : > { %17588 = vst [vmem:[#allocation341_spill] sm:$0xff] %v17587_v62 }
 0x261   : > { %1442 = vst [vmem:[#allocation45] sm:$0xff] %v11918_v8  ;;  %v17590_v63 = vmov 0 }
 0x268   : > { %v1444_v57 = vld [vmem:[#allocation45 + $0x4] sm:$0x3] }
 0x269   : > { %v1445_v5 = vunpack.c.0.f8e4m3b11 %v1444_v57 }
 0x26b   : > { %v1449_v0 = vand.u32 2147483647, %v1445_v5  ;;  %vm1451_vm0 = vcmp.ne.f32.partialorder %v1445_v5, %v1445_v5  ;;  %v1452_v59 = vmul.f32 16.0, %v1445_v5 }
 0x26d   : > { %vm12454_vm9 = vcmp.gt.f32.partialorder %v1449_v0, 29.0  ;;  %v12458_v4 = vsel %vm1451_vm0, -0.0, %v1452_v59 }
 0x26e   : > { %v17591_v63 = vsel %vm12454_vm9, 4294967295, %v17590_v63  ;;  %17593 = vst [vmem:[#allocation344_spill] sm:$0xff] %v12458_v4 }
 0x26f   : > { %17592 = vst [vmem:[#allocation343_spill] sm:$0xff] %v17591_v63 }
 0x270   : > { %1473 = vst [vmem:[#allocation46] sm:$0xff] %v11921_v9  ;;  %v17594_v62 = vmov 0 }
 0x277   : > { %v1475_v61 = vld [vmem:[#allocation46 + $0x4] sm:$0x3] }
 0x278   : > { %v1476_v6 = vunpack.c.0.f8e4m3b11 %v1475_v61 }
 0x27a   : > { %v1480_v3 = vand.u32 2147483647, %v1476_v6  ;;  %vm1482_vm8 = vcmp.ne.f32.partialorder %v1476_v6, %v1476_v6  ;;  %v1483_v57 = vmul.f32 16.0, %v1476_v6 }
 0x27c   : > { %vm12464_vm11 = vcmp.gt.f32.partialorder %v1480_v3, 29.0  ;;  %v12468_v0 = vsel %vm1482_vm8, -0.0, %v1483_v57 }
 0x27d   : > { %v17595_v62 = vsel %vm12464_vm11, 4294967295, %v17594_v62  ;;  %17597 = vst [vmem:[#allocation346_spill] sm:$0xff] %v12468_v0 }
 0x27e   : > { %17596 = vst [vmem:[#allocation345_spill] sm:$0xff] %v17595_v62 }
 0x27f   : > { %1504 = vst [vmem:[#allocation47] sm:$0xff] %v11918_v8  ;;  %v17598_v63 = vmov 0 }
 0x286   : > { %v1506_v59 = vld [vmem:[#allocation47 + $0x6] sm:$0x3] }
 0x287   : > { %v1507_v7 = vunpack.c.0.f8e4m3b11 %v1506_v59 }
 0x289   : > { %v1511_v4 = vand.u32 2147483647, %v1507_v7  ;;  %vm1513_vm0 = vcmp.ne.f32.partialorder %v1507_v7, %v1507_v7  ;;  %v1514_v61 = vmul.f32 16.0, %v1507_v7 }
 0x28b   : > { %vm12474_vm9 = vcmp.gt.f32.partialorder %v1511_v4, 29.0  ;;  %v12478_v3 = vsel %vm1513_vm0, -0.0, %v1514_v61 }
 0x28c   : > { %v17599_v63 = vsel %vm12474_vm9, 4294967295, %v17598_v63  ;;  %17601 = vst [vmem:[#allocation348_spill] sm:$0xff] %v12478_v3 }
 0x28d   : > { %17600 = vst [vmem:[#allocation347_spill] sm:$0xff] %v17599_v63 }
 0x28e   : > { %1535 = vst [vmem:[#allocation48] sm:$0xff] %v11921_v9  ;;  %v17602_v0 = vmov 0 }
 0x295   : > { %v1537_v57 = vld [vmem:[#allocation48 + $0x6] sm:$0x3] }
 0x296   : > { %v1538_v5 = vunpack.c.0.f8e4m3b11 %v1537_v57 }
 0x298   : > { %v1542_v8 = vand.u32 2147483647, %v1538_v5  ;;  %vm1544_vm8 = vcmp.ne.f32.partialorder %v1538_v5, %v1538_v5  ;;  %v1545_v59 = vmul.f32 16.0, %v1538_v5 }
 0x29a   : > { %vm12484_vm11 = vcmp.gt.f32.partialorder %v1542_v8, 29.0  ;;  %v12488_v4 = vsel %vm1544_vm8, -0.0, %v1545_v59 }
 0x29b   : > { %v17603_v0 = vsel %vm12484_vm11, 4294967295, %v17602_v0  ;;  %17605 = vst [vmem:[#allocation350_spill] sm:$0xff] %v12488_v4 }
 0x29c   : > { %17604 = vst [vmem:[#allocation349_spill] sm:$0xff] %v17603_v0 }
 0x29d   : > { %1566 = vst [vmem:[#allocation49] sm:$0xff] %v11924_v10  ;;  %v17606_v62 = vmov 0 }
 0x2a4   : > { %v1567_v61 = vld [vmem:[#allocation49] sm:$0x3] }
 0x2a5   : > { %v1568_v6 = vunpack.c.0.f8e4m3b11 %v1567_v61 }
 0x2a7   : > { %v1572_v9 = vand.u32 2147483647, %v1568_v6  ;;  %vm1574_vm0 = vcmp.ne.f32.partialorder %v1568_v6, %v1568_v6  ;;  %v1575_v57 = vmul.f32 16.0, %v1568_v6 }
 0x2a9   : > { %vm12494_vm9 = vcmp.gt.f32.partialorder %v1572_v9, 29.0  ;;  %v12498_v5 = vsel %vm1574_vm0, -0.0, %v1575_v57 }
 0x2aa   : > { %v17607_v62 = vsel %vm12494_vm9, 4294967295, %v17606_v62  ;;  %17609 = vst [vmem:[#allocation352_spill] sm:$0xff] %v12498_v5 }
 0x2ab   : > { %17608 = vst [vmem:[#allocation351_spill] sm:$0xff] %v17607_v62 }
 0x2ac   : > { %1596 = vst [vmem:[#allocation50] sm:$0xff] %v11927_v11  ;;  %v17610_v0 = vmov 0 }
 0x2b3   : > { %v1597_v59 = vld [vmem:[#allocation50] sm:$0x3] }
 0x2b4   : > { %v1598_v7 = vunpack.c.0.f8e4m3b11 %v1597_v59 }
 0x2b6   : > { %v1602_v4 = vand.u32 2147483647, %v1598_v7  ;;  %vm1604_vm8 = vcmp.ne.f32.partialorder %v1598_v7, %v1598_v7  ;;  %v1605_v61 = vmul.f32 16.0, %v1598_v7 }
 0x2b8   : > { %vm12504_vm11 = vcmp.gt.f32.partialorder %v1602_v4, 29.0  ;;  %v12508_v6 = vsel %vm1604_vm8, -0.0, %v1605_v61 }
 0x2b9   : > { %v17611_v0 = vsel %vm12504_vm11, 4294967295, %v17610_v0  ;;  %17613 = vst [vmem:[#allocation354_spill] sm:$0xff] %v12508_v6 }
 0x2ba   : > { %17612 = vst [vmem:[#allocation353_spill] sm:$0xff] %v17611_v0 }
 0x2bb   : > { %1626 = vst [vmem:[#allocation51] sm:$0xff] %v11924_v10  ;;  %v17614_v63 = vmov 0 }
 0x2c2   : > { %v1628_v57 = vld [vmem:[#allocation51 + $0x2] sm:$0x3] }
 0x2c3   : > { %v1629_v8 = vunpack.c.0.f8e4m3b11 %v1628_v57 }
 0x2c5   : > { %v1633_v3 = vand.u32 2147483647, %v1629_v8  ;;  %vm1635_vm0 = vcmp.ne.f32.partialorder %v1629_v8, %v1629_v8  ;;  %v1636_v59 = vmul.f32 16.0, %v1629_v8 }
 0x2c7   : > { %vm12514_vm9 = vcmp.gt.f32.partialorder %v1633_v3, 29.0  ;;  %v12518_v4 = vsel %vm1635_vm0, -0.0, %v1636_v59 }
 0x2c8   : > { %v17615_v63 = vsel %vm12514_vm9, 4294967295, %v17614_v63  ;;  %17617 = vst [vmem:[#allocation356_spill] sm:$0xff] %v12518_v4 }
 0x2c9   : > { %17616 = vst [vmem:[#allocation355_spill] sm:$0xff] %v17615_v63 }
 0x2ca   : > { %1657 = vst [vmem:[#allocation52] sm:$0xff] %v11927_v11  ;;  %v17618_v0 = vmov 0 }
 0x2d1   : > { %v1659_v61 = vld [vmem:[#allocation52 + $0x2] sm:$0x3] }
 0x2d2   : > { %v1660_v9 = vunpack.c.0.f8e4m3b11 %v1659_v61 }
 0x2d4   : > { %v1664_v6 = vand.u32 2147483647, %v1660_v9  ;;  %vm1666_vm8 = vcmp.ne.f32.partialorder %v1660_v9, %v1660_v9  ;;  %v1667_v57 = vmul.f32 16.0, %v1660_v9 }
 0x2d6   : > { %vm12524_vm11 = vcmp.gt.f32.partialorder %v1664_v6, 29.0  ;;  %v12528_v3 = vsel %vm1666_vm8, -0.0, %v1667_v57 }
 0x2d7   : > { %v17619_v0 = vsel %vm12524_vm11, 4294967295, %v17618_v0  ;;  %17621 = vst [vmem:[#allocation358_spill] sm:$0xff] %v12528_v3 }
 0x2d8   : > { %17620 = vst [vmem:[#allocation357_spill] sm:$0xff] %v17619_v0 }
 0x2d9   : > { %1688 = vst [vmem:[#allocation53] sm:$0xff] %v11924_v10  ;;  %v17622_v63 = vmov 0 }
 0x2e0   : > { %v1690_v59 = vld [vmem:[#allocation53 + $0x4] sm:$0x3] }
 0x2e1   : > { %v1691_v7 = vunpack.c.0.f8e4m3b11 %v1690_v59 }
 0x2e3   : > { %v1695_v4 = vand.u32 2147483647, %v1691_v7  ;;  %vm1697_vm0 = vcmp.ne.f32.partialorder %v1691_v7, %v1691_v7  ;;  %v1698_v61 = vmul.f32 16.0, %v1691_v7 }
 0x2e5   : > { %vm12534_vm9 = vcmp.gt.f32.partialorder %v1695_v4, 29.0  ;;  %v12538_v6 = vsel %vm1697_vm0, -0.0, %v1698_v61 }
 0x2e6   : > { %v17623_v63 = vsel %vm12534_vm9, 4294967295, %v17622_v63  ;;  %17625 = vst [vmem:[#allocation360_spill] sm:$0xff] %v12538_v6 }
 0x2e7   : > { %17624 = vst [vmem:[#allocation359_spill] sm:$0xff] %v17623_v63 }
 0x2e8   : > { %1719 = vst [vmem:[#allocation54] sm:$0xff] %v11927_v11  ;;  %v17626_v0 = vmov 0 }
 0x2ef   : > { %v1721_v57 = vld [vmem:[#allocation54 + $0x4] sm:$0x3] }
 0x2f0   : > { %v1722_v8 = vunpack.c.0.f8e4m3b11 %v1721_v57 }
 0x2f2   : > { %v1726_v3 = vand.u32 2147483647, %v1722_v8  ;;  %vm1728_vm8 = vcmp.ne.f32.partialorder %v1722_v8, %v1722_v8  ;;  %v1729_v59 = vmul.f32 16.0, %v1722_v8 }
 0x2f4   : > { %vm12544_vm11 = vcmp.gt.f32.partialorder %v1726_v3, 29.0  ;;  %v12548_v4 = vsel %vm1728_vm8, -0.0, %v1729_v59 }
 0x2f5   : > { %v17627_v0 = vsel %vm12544_vm11, 4294967295, %v17626_v0  ;;  %17629 = vst [vmem:[#allocation362_spill] sm:$0xff] %v12548_v4 }
 0x2f6   : > { %17628 = vst [vmem:[#allocation361_spill] sm:$0xff] %v17627_v0 }
 0x2f7   : > { %1750 = vst [vmem:[#allocation55] sm:$0xff] %v11924_v10  ;;  %v17630_v62 = vmov 0 }
 0x2fe   : > { %v1752_v61 = vld [vmem:[#allocation55 + $0x6] sm:$0x3] }
 0x2ff   : > { %v1753_v9 = vunpack.c.0.f8e4m3b11 %v1752_v61 }
 0x301   : > { %v1757_v5 = vand.u32 2147483647, %v1753_v9  ;;  %vm1759_vm0 = vcmp.ne.f32.partialorder %v1753_v9, %v1753_v9  ;;  %v1760_v57 = vmul.f32 16.0, %v1753_v9 }
 0x303   : > { %vm12554_vm10 = vcmp.gt.f32.partialorder %v1757_v5, 29.0  ;;  %v12558_v3 = vsel %vm1759_vm0, -0.0, %v1760_v57 }
 0x304   : > { %v17631_v62 = vsel %vm12554_vm10, 4294967295, %v17630_v62  ;;  %17633 = vst [vmem:[#allocation364_spill] sm:$0xff] %v12558_v3 }
 0x305   : > { %17632 = vst [vmem:[#allocation363_spill] sm:$0xff] %v17631_v62 }
 0x306   : > { %1781 = vst [vmem:[#allocation56] sm:$0xff] %v11927_v11  ;;  %v17634_v4 = vmov 0 }
 0x30d   : > { %v1783_v59 = vld [vmem:[#allocation56 + $0x6] sm:$0x3] }
 0x30e   : > { %v1784_v7 = vunpack.c.0.f8e4m3b11 %v1783_v59 }
 0x310   : > { %v1788_v10 = vand.u32 2147483647, %v1784_v7  ;;  %vm1790_vm8 = vcmp.ne.f32.partialorder %v1784_v7, %v1784_v7  ;;  %v1791_v61 = vmul.f32 16.0, %v1784_v7 }
 0x312   : > { %vm12564_vm11 = vcmp.gt.f32.partialorder %v1788_v10, 29.0  ;;  %v12568_v5 = vsel %vm1790_vm8, -0.0, %v1791_v61 }
 0x313   : > { %v17635_v4 = vsel %vm12564_vm11, 4294967295, %v17634_v4  ;;  %17637 = vst [vmem:[#allocation366_spill] sm:$0xff] %v12568_v5 }
 0x314   : > { %17636 = vst [vmem:[#allocation365_spill] sm:$0xff] %v17635_v4 }
 0x315   : > { %1812 = vst [vmem:[#allocation57] sm:$0xff] %v11930_v12  ;;  %v17638_v0 = vmov 0 }
 0x31c   : > { %v1813_v57 = vld [vmem:[#allocation57] sm:$0x3] }
 0x31d   : > { %v1814_v8 = vunpack.c.0.f8e4m3b11 %v1813_v57 }
 0x31f   : > { %v1818_v11 = vand.u32 2147483647, %v1814_v8  ;;  %vm1820_vm0 = vcmp.ne.f32.partialorder %v1814_v8, %v1814_v8  ;;  %v1821_v59 = vmul.f32 16.0, %v1814_v8 }
 0x321   : > { %vm12574_vm2 = vcmp.gt.f32.partialorder %v1818_v11, 29.0  ;;  %v12578_v7 = vsel %vm1820_vm0, -0.0, %v1821_v59 }
 0x322   : > { %v17639_v0 = vsel %vm12574_vm2, 4294967295, %v17638_v0  ;;  %17641 = vst [vmem:[#allocation368_spill] sm:$0xff] %v12578_v7 }
 0x323   : > { %17640 = vst [vmem:[#allocation367_spill] sm:$0xff] %v17639_v0 }
 0x324   : > { %1842 = vst [vmem:[#allocation58] sm:$0xff] %v11933_v13  ;;  %v17642_v4 = vmov 0 }
 0x32b   : > { %v1843_v61 = vld [vmem:[#allocation58] sm:$0x3] }
 0x32c   : > { %v1844_v9 = vunpack.c.0.f8e4m3b11 %v1843_v61 }
 0x32e   : > { %v1848_v5 = vand.u32 2147483647, %v1844_v9  ;;  %vm1850_vm8 = vcmp.ne.f32.partialorder %v1844_v9, %v1844_v9  ;;  %v1851_v57 = vmul.f32 16.0, %v1844_v9 }
 0x330   : > { %vm12584_vm11 = vcmp.gt.f32.partialorder %v1848_v5, 29.0  ;;  %v12588_v8 = vsel %vm1850_vm8, -0.0, %v1851_v57 }
 0x331   : > { %v17643_v4 = vsel %vm12584_vm11, 4294967295, %v17642_v4  ;;  %17645 = vst [vmem:[#allocation370_spill] sm:$0xff] %v12588_v8 }
 0x332   : > { %17644 = vst [vmem:[#allocation369_spill] sm:$0xff] %v17643_v4 }
 0x333   : > { %1872 = vst [vmem:[#allocation59] sm:$0xff] %v11930_v12  ;;  %v17646_v62 = vmov 0 }
 0x33a   : > { %v1874_v59 = vld [vmem:[#allocation59 + $0x2] sm:$0x3] }
 0x33b   : > { %v1875_v10 = vunpack.c.0.f8e4m3b11 %v1874_v59 }
 0x33d   : > { %v1879_v3 = vand.u32 2147483647, %v1875_v10  ;;  %vm1881_vm0 = vcmp.ne.f32.partialorder %v1875_v10, %v1875_v10  ;;  %v1882_v61 = vmul.f32 16.0, %v1875_v10 }
 0x33f   : > { %vm12594_vm10 = vcmp.gt.f32.partialorder %v1879_v3, 29.0  ;;  %v12598_v5 = vsel %vm1881_vm0, -0.0, %v1882_v61 }
 0x340   : > { %v17647_v62 = vsel %vm12594_vm10, 4294967295, %v17646_v62  ;;  %17649 = vst [vmem:[#allocation372_spill] sm:$0xff] %v12598_v5 }
 0x341   : > { %17648 = vst [vmem:[#allocation371_spill] sm:$0xff] %v17647_v62 }
 0x342   : > { %1903 = vst [vmem:[#allocation60] sm:$0xff] %v11933_v13  ;;  %v17650_v4 = vmov 0 }
 0x349   : > { %v1905_v57 = vld [vmem:[#allocation60 + $0x2] sm:$0x3] }
 0x34a   : > { %v1906_v11 = vunpack.c.0.f8e4m3b11 %v1905_v57 }
 0x34c   : > { %v1910_v8 = vand.u32 2147483647, %v1906_v11  ;;  %vm1912_vm8 = vcmp.ne.f32.partialorder %v1906_v11, %v1906_v11  ;;  %v1913_v59 = vmul.f32 16.0, %v1906_v11 }
 0x34e   : > { %vm12604_vm11 = vcmp.gt.f32.partialorder %v1910_v8, 29.0  ;;  %v12608_v3 = vsel %vm1912_vm8, -0.0, %v1913_v59 }
 0x34f   : > { %v17651_v4 = vsel %vm12604_vm11, 4294967295, %v17650_v4  ;;  %17653 = vst [vmem:[#allocation374_spill] sm:$0xff] %v12608_v3 }
 0x350   : > { %17652 = vst [vmem:[#allocation373_spill] sm:$0xff] %v17651_v4 }
 0x351   : > { %1934 = vst [vmem:[#allocation61] sm:$0xff] %v11930_v12  ;;  %v17654_v63 = vmov 0 }
 0x358   : > { %v1936_v61 = vld [vmem:[#allocation61 + $0x4] sm:$0x3] }
 0x359   : > { %v1937_v9 = vunpack.c.0.f8e4m3b11 %v1936_v61 }
 0x35b   : > { %v1941_v6 = vand.u32 2147483647, %v1937_v9  ;;  %vm1943_vm0 = vcmp.ne.f32.partialorder %v1937_v9, %v1937_v9  ;;  %v1944_v57 = vmul.f32 16.0, %v1937_v9 }
 0x35d   : > { %vm12614_vm9 = vcmp.gt.f32.partialorder %v1941_v6, 29.0  ;;  %v12618_v8 = vsel %vm1943_vm0, -0.0, %v1944_v57 }
 0x35e   : > { %v17655_v63 = vsel %vm12614_vm9, 4294967295, %v17654_v63  ;;  %17657 = vst [vmem:[#allocation376_spill] sm:$0xff] %v12618_v8 }
 0x35f   : > { %17656 = vst [vmem:[#allocation375_spill] sm:$0xff] %v17655_v63 }
 0x360   : > { %1965 = vst [vmem:[#allocation62] sm:$0xff] %v11933_v13  ;;  %v17658_v4 = vmov 0 }
 0x367   : > { %v1967_v59 = vld [vmem:[#allocation62 + $0x4] sm:$0x3] }
 0x368   : > { %v1968_v10 = vunpack.c.0.f8e4m3b11 %v1967_v59 }
 0x36a   : > { %v1972_v3 = vand.u32 2147483647, %v1968_v10  ;;  %vm1974_vm8 = vcmp.ne.f32.partialorder %v1968_v10, %v1968_v10  ;;  %v1975_v61 = vmul.f32 16.0, %v1968_v10 }
 0x36c   : > { %vm12624_vm11 = vcmp.gt.f32.partialorder %v1972_v3, 29.0  ;;  %v12628_v6 = vsel %vm1974_vm8, -0.0, %v1975_v61 }
 0x36d   : > { %v17659_v4 = vsel %vm12624_vm11, 4294967295, %v17658_v4  ;;  %17661 = vst [vmem:[#allocation378_spill] sm:$0xff] %v12628_v6 }
 0x36e   : > { %17660 = vst [vmem:[#allocation377_spill] sm:$0xff] %v17659_v4 }
 0x36f   : > { %1996 = vst [vmem:[#allocation63] sm:$0xff] %v11930_v12  ;;  %v17662_v62 = vmov 0 }
 0x376   : > { %v1998_v57 = vld [vmem:[#allocation63 + $0x6] sm:$0x3] }
 0x377   : > { %v1999_v11 = vunpack.c.0.f8e4m3b11 %v1998_v57 }
 0x379   : > { %v2003_v5 = vand.u32 2147483647, %v1999_v11  ;;  %vm2005_vm0 = vcmp.ne.f32.partialorder %v1999_v11, %v1999_v11  ;;  %v2006_v59 = vmul.f32 16.0, %v1999_v11 }
 0x37b   : > { %vm12634_vm7 = vcmp.gt.f32.partialorder %v2003_v5, 29.0  ;;  %v12638_v3 = vsel %vm2005_vm0, -0.0, %v2006_v59 }
 0x37c   : > { %v17663_v62 = vsel %vm12634_vm7, 4294967295, %v17662_v62  ;;  %17665 = vst [vmem:[#allocation380_spill] sm:$0xff] %v12638_v3 }
 0x37d   : > { %17664 = vst [vmem:[#allocation379_spill] sm:$0xff] %v17663_v62 }
 0x37e   : > { %2027 = vst [vmem:[#allocation64] sm:$0xff] %v11933_v13  ;;  %v17666_v6 = vmov 0 }
 0x385   : > { %v2029_v61 = vld [vmem:[#allocation64 + $0x6] sm:$0x3] }
 0x386   : > { %v2030_v9 = vunpack.c.0.f8e4m3b11 %v2029_v61 }
 0x388   : > { %v2034_v12 = vand.u32 2147483647, %v2030_v9  ;;  %vm2036_vm8 = vcmp.ne.f32.partialorder %v2030_v9, %v2030_v9  ;;  %v2037_v57 = vmul.f32 16.0, %v2030_v9 }
 0x38a   : > { %vm12644_vm11 = vcmp.gt.f32.partialorder %v2034_v12, 29.0  ;;  %v12648_v5 = vsel %vm2036_vm8, -0.0, %v2037_v57 }
 0x38b   : > { %v17667_v6 = vsel %vm12644_vm11, 4294967295, %v17666_v6  ;;  %17669 = vst [vmem:[#allocation382_spill] sm:$0xff] %v12648_v5 }
 0x38c   : > { %17668 = vst [vmem:[#allocation381_spill] sm:$0xff] %v17667_v6 }
 0x38d   : > { %2058 = vst [vmem:[#allocation65] sm:$0xff] %v11936_v14 }
 0x394   : > { %v2059_v59 = vld [vmem:[#allocation65] sm:$0x3] }
 0x395   : > { %v2060_v10 = vunpack.c.0.f8e4m3b11 %v2059_v59 }
 0x397   : > { %v2064_v13 = vand.u32 2147483647, %v2060_v10  ;;  %vm2066_vm0 = vcmp.ne.f32.partialorder %v2060_v10, %v2060_v10  ;;  %v2067_v61 = vmul.f32 16.0, %v2060_v10 }
 0x399   : > { %vm12654_vm4 = vcmp.gt.f32.partialorder %v2064_v13, 29.0  ;;  %v12658_v9 = vsel %vm2066_vm0, -0.0, %v2067_v61 }
 0x39a   : > { %2088 = vst [vmem:[#allocation66] sm:$0xff] %v11939_v15  ;;  %v17672_v6 = vmov 0 }
 0x3a1   : > { %v2089_v57 = vld [vmem:[#allocation66] sm:$0x3] }
 0x3a2   : > { %v2090_v11 = vunpack.c.0.f8e4m3b11 %v2089_v57 }
 0x3a4   : > { %v2094_v5 = vand.u32 2147483647, %v2090_v11  ;;  %vm2096_vm8 = vcmp.ne.f32.partialorder %v2090_v11, %v2090_v11  ;;  %v2097_v59 = vmul.f32 16.0, %v2090_v11 }
 0x3a6   : > { %vm12664_vm11 = vcmp.gt.f32.partialorder %v2094_v5, 29.0  ;;  %v12668_v10 = vsel %vm2096_vm8, -0.0, %v2097_v59 }
 0x3a7   : > { %v17673_v6 = vsel %vm12664_vm11, 4294967295, %v17672_v6  ;;  %17675 = vst [vmem:[#allocation384_spill] sm:$0xff] %v12668_v10 }
 0x3a8   : > { %17674 = vst [vmem:[#allocation383_spill] sm:$0xff] %v17673_v6 }
 0x3a9   : > { %2118 = vst [vmem:[#allocation67] sm:$0xff] %v11936_v14 }
 0x3b0   : > { %v2120_v61 = vld [vmem:[#allocation67 + $0x2] sm:$0x3] }
 0x3b1   : > { %v2121_v12 = vunpack.c.0.f8e4m3b11 %v2120_v61 }
 0x3b3   : > { %v2125_v7 = vand.u32 2147483647, %v2121_v12  ;;  %vm2127_vm0 = vcmp.ne.f32.partialorder %v2121_v12, %v2121_v12  ;;  %v2128_v57 = vmul.f32 16.0, %v2121_v12 }
 0x3b5   : > { %vm12674_vm10 = vcmp.gt.f32.partialorder %v2125_v7, 29.0  ;;  %v12678_v5 = vsel %vm2127_vm0, -0.0, %v2128_v57 }
 0x3b6   : > { %2149 = vst [vmem:[#allocation68] sm:$0xff] %v11939_v15  ;;  %v17678_v6 = vmov 0 }
 0x3bd   : > { %v2151_v59 = vld [vmem:[#allocation68 + $0x2] sm:$0x3] }
 0x3be   : > { %v2152_v13 = vunpack.c.0.f8e4m3b11 %v2151_v59 }
 0x3c0   : > { %v2156_v10 = vand.u32 2147483647, %v2152_v13  ;;  %vm2158_vm8 = vcmp.ne.f32.partialorder %v2152_v13, %v2152_v13  ;;  %v2159_v61 = vmul.f32 16.0, %v2152_v13 }
 0x3c2   : > { %vm12684_vm11 = vcmp.gt.f32.partialorder %v2156_v10, 29.0  ;;  %v12688_v7 = vsel %vm2158_vm8, -0.0, %v2159_v61 }
 0x3c3   : > { %v17679_v6 = vsel %vm12684_vm11, 4294967295, %v17678_v6  ;;  %17681 = vst [vmem:[#allocation386_spill] sm:$0xff] %v12688_v7 }
 0x3c4   : > { %17680 = vst [vmem:[#allocation385_spill] sm:$0xff] %v17679_v6 }
 0x3c5   : > { %2180 = vst [vmem:[#allocation69] sm:$0xff] %v11936_v14 }
 0x3cc   : > { %v2182_v57 = vld [vmem:[#allocation69 + $0x4] sm:$0x3] }
 0x3cd   : > { %v2183_v11 = vunpack.c.0.f8e4m3b11 %v2182_v57 }
 0x3cf   : > { %v2187_v3 = vand.u32 2147483647, %v2183_v11  ;;  %vm2189_vm0 = vcmp.ne.f32.partialorder %v2183_v11, %v2183_v11  ;;  %v2190_v59 = vmul.f32 16.0, %v2183_v11 }
 0x3d1   : > { %vm12694_vm2 = vcmp.gt.f32.partialorder %v2187_v3, 29.0  ;;  %v12698_v10 = vsel %vm2189_vm0, -0.0, %v2190_v59 }
 0x3d2   : > { %2211 = vst [vmem:[#allocation70] sm:$0xff] %v11939_v15  ;;  %v17684_v6 = vmov 0 }
 0x3d9   : > { %v2213_v61 = vld [vmem:[#allocation70 + $0x4] sm:$0x3] }
 0x3da   : > { %v2214_v12 = vunpack.c.0.f8e4m3b11 %v2213_v61 }
 0x3dc   : > { %v2218_v7 = vand.u32 2147483647, %v2214_v12  ;;  %vm2220_vm8 = vcmp.ne.f32.partialorder %v2214_v12, %v2214_v12  ;;  %v2221_v57 = vmul.f32 16.0, %v2214_v12 }
 0x3de   : > { %vm12704_vm11 = vcmp.gt.f32.partialorder %v2218_v7, 29.0  ;;  %v12708_v3 = vsel %vm2220_vm8, -0.0, %v2221_v57 }
 0x3df   : > { %v17685_v6 = vsel %vm12704_vm11, 4294967295, %v17684_v6  ;;  %17687 = vst [vmem:[#allocation388_spill] sm:$0xff] %v12708_v3 }
 0x3e0   : > { %17686 = vst [vmem:[#allocation387_spill] sm:$0xff] %v17685_v6 }
 0x3e1   : > { %2242 = vst [vmem:[#allocation71] sm:$0xff] %v11936_v14 }
 0x3e8   : > { %v2244_v59 = vld [vmem:[#allocation71 + $0x6] sm:$0x3] }
 0x3e9   : > { %v2245_v13 = vunpack.c.0.f8e4m3b11 %v2244_v59 }
 0x3eb   : > { %v2249_v8 = vand.u32 2147483647, %v2245_v13  ;;  %vm2251_vm0 = vcmp.ne.f32.partialorder %v2245_v13, %v2245_v13  ;;  %v2252_v61 = vmul.f32 16.0, %v2245_v13 }
 0x3ed   : > { %vm12714_vm14 = vcmp.gt.f32.partialorder %v2249_v8, 29.0  ;;  %v12718_v7 = vsel %vm2251_vm0, -0.0, %v2252_v61 }
 0x3ee   : > { %2273 = vst [vmem:[#allocation72] sm:$0xff] %v11939_v15  ;;  %v17690_v3 = vmov 0 }
 0x3f5   : > { %v2275_v57 = vld [vmem:[#allocation72 + $0x6] sm:$0x3] }
 0x3f6   : > { %v2276_v11 = vunpack.c.0.f8e4m3b11 %v2275_v57 }
 0x3f8   : > { %v2280_v14 = vand.u32 2147483647, %v2276_v11  ;;  %vm2282_vm8 = vcmp.ne.f32.partialorder %v2276_v11, %v2276_v11  ;;  %v2283_v59 = vmul.f32 16.0, %v2276_v11 }
 0x3fa   : > { %vm12724_vm11 = vcmp.gt.f32.partialorder %v2280_v14, 29.0  ;;  %v12728_v8 = vsel %vm2282_vm8, -0.0, %v2283_v59 }
 0x3fb   : > { %v17691_v3 = vsel %vm12724_vm11, 4294967295, %v17690_v3  ;;  %17693 = vst [vmem:[#allocation390_spill] sm:$0xff] %v12728_v8 }
 0x3fc   : > { %17692 = vst [vmem:[#allocation389_spill] sm:$0xff] %v17691_v3 }
 0x3fd   : > { %2304 = vst [vmem:[#allocation73] sm:$0xff] %v11942_v16  ;;  %v17694_v6 = vmov 0 }
 0x404   : > { %v2305_v61 = vld [vmem:[#allocation73] sm:$0x3] }
 0x405   : > { %v2306_v12 = vunpack.c.0.f8e4m3b11 %v2305_v61 }
 0x407   : > { %v2310_v15 = vand.u32 2147483647, %v2306_v12  ;;  %vm2312_vm0 = vcmp.ne.f32.partialorder %v2306_v12, %v2306_v12  ;;  %v2313_v57 = vmul.f32 16.0, %v2306_v12 }
 0x409   : > { %vm12734_vm15 = vcmp.gt.f32.partialorder %v2310_v15, 29.0  ;;  %v12738_v11 = vsel %vm2312_vm0, -0.0, %v2313_v57 }
 0x40a   : > { %v17695_v6 = vsel %vm12734_vm15, 4294967295, %v17694_v6  ;;  %17697 = vst [vmem:[#allocation392_spill] sm:$0xff] %v12738_v11 }
 0x40b   : > { %17696 = vst [vmem:[#allocation391_spill] sm:$0xff] %v17695_v6 }
 0x40c   : > { %2334 = vst [vmem:[#allocation74] sm:$0xff] %v11945_v17  ;;  %v17698_v3 = vmov 0 }
 0x413   : > { %v2335_v59 = vld [vmem:[#allocation74] sm:$0x3] }
 0x414   : > { %v2336_v13 = vunpack.c.0.f8e4m3b11 %v2335_v59 }
 0x416   : > { %v2340_v8 = vand.u32 2147483647, %v2336_v13  ;;  %vm2342_vm8 = vcmp.ne.f32.partialorder %v2336_v13, %v2336_v13  ;;  %v2343_v61 = vmul.f32 16.0, %v2336_v13 }
 0x418   : > { %vm12744_vm11 = vcmp.gt.f32.partialorder %v2340_v8, 29.0  ;;  %v12748_v12 = vsel %vm2342_vm8, -0.0, %v2343_v61 }
 0x419   : > { %v17699_v3 = vsel %vm12744_vm11, 4294967295, %v17698_v3  ;;  %17701 = vst [vmem:[#allocation394_spill] sm:$0xff] %v12748_v12 }
 0x41a   : > { %17700 = vst [vmem:[#allocation393_spill] sm:$0xff] %v17699_v3 }
 0x41b   : > { %2364 = vst [vmem:[#allocation75] sm:$0xff] %v11942_v16  ;;  %v17702_v6 = vmov 0 }
 0x422   : > { %v2366_v57 = vld [vmem:[#allocation75 + $0x2] sm:$0x3] }
 0x423   : > { %v2367_v14 = vunpack.c.0.f8e4m3b11 %v2366_v57 }
 0x425   : > { %v2371_v11 = vand.u32 2147483647, %v2367_v14  ;;  %vm2373_vm0 = vcmp.ne.f32.partialorder %v2367_v14, %v2367_v14  ;;  %v2374_v59 = vmul.f32 16.0, %v2367_v14 }
 0x427   : > { %vm12754_vm15 = vcmp.gt.f32.partialorder %v2371_v11, 29.0  ;;  %v12758_v8 = vsel %vm2373_vm0, -0.0, %v2374_v59 }
 0x428   : > { %v17703_v6 = vsel %vm12754_vm15, 4294967295, %v17702_v6  ;;  %17705 = vst [vmem:[#allocation396_spill] sm:$0xff] %v12758_v8 }
 0x429   : > { %17704 = vst [vmem:[#allocation395_spill] sm:$0xff] %v17703_v6 }
 0x42a   : > { %2395 = vst [vmem:[#allocation76] sm:$0xff] %v11945_v17  ;;  %v17706_v3 = vmov 0 }
 0x431   : > { %v2397_v61 = vld [vmem:[#allocation76 + $0x2] sm:$0x3] }
 0x432   : > { %v2398_v15 = vunpack.c.0.f8e4m3b11 %v2397_v61 }
 0x434   : > { %v2402_v12 = vand.u32 2147483647, %v2398_v15  ;;  %vm2404_vm8 = vcmp.ne.f32.partialorder %v2398_v15, %v2398_v15  ;;  %v2405_v57 = vmul.f32 16.0, %v2398_v15 }
 0x436   : > { %vm12764_vm11 = vcmp.gt.f32.partialorder %v2402_v12, 29.0  ;;  %v12768_v11 = vsel %vm2404_vm8, -0.0, %v2405_v57 }
 0x437   : > { %v17707_v3 = vsel %vm12764_vm11, 4294967295, %v17706_v3  ;;  %17709 = vst [vmem:[#allocation398_spill] sm:$0xff] %v12768_v11 }
 0x438   : > { %17708 = vst [vmem:[#allocation397_spill] sm:$0xff] %v17707_v3 }
 0x439   : > { %2426 = vst [vmem:[#allocation77] sm:$0xff] %v11942_v16  ;;  %v17710_v6 = vmov 0 }
 0x440   : > { %v2428_v59 = vld [vmem:[#allocation77 + $0x4] sm:$0x3] }
 0x441   : > { %v2429_v13 = vunpack.c.0.f8e4m3b11 %v2428_v59 }
 0x443   : > { %v2433_v8 = vand.u32 2147483647, %v2429_v13  ;;  %vm2435_vm0 = vcmp.ne.f32.partialorder %v2429_v13, %v2429_v13  ;;  %v2436_v61 = vmul.f32 16.0, %v2429_v13 }
 0x445   : > { %vm12774_vm15 = vcmp.gt.f32.partialorder %v2433_v8, 29.0  ;;  %v12778_v12 = vsel %vm2435_vm0, -0.0, %v2436_v61 }
 0x446   : > { %v17711_v6 = vsel %vm12774_vm15, 4294967295, %v17710_v6  ;;  %17713 = vst [vmem:[#allocation400_spill] sm:$0xff] %v12778_v12 }
 0x447   : > { %17712 = vst [vmem:[#allocation399_spill] sm:$0xff] %v17711_v6 }
 0x448   : > { %2457 = vst [vmem:[#allocation78] sm:$0xff] %v11945_v17  ;;  %v17714_v3 = vmov 0 }
 0x44f   : > { %v2459_v57 = vld [vmem:[#allocation78 + $0x4] sm:$0x3] }
 0x450   : > { %v2460_v14 = vunpack.c.0.f8e4m3b11 %v2459_v57 }
 0x452   : > { %v2464_v11 = vand.u32 2147483647, %v2460_v14  ;;  %vm2466_vm8 = vcmp.ne.f32.partialorder %v2460_v14, %v2460_v14  ;;  %v2467_v59 = vmul.f32 16.0, %v2460_v14 }
 0x454   : > { %vm12784_vm11 = vcmp.gt.f32.partialorder %v2464_v11, 29.0  ;;  %v12788_v8 = vsel %vm2466_vm8, -0.0, %v2467_v59 }
 0x455   : > { %v17715_v3 = vsel %vm12784_vm11, 4294967295, %v17714_v3  ;;  %17717 = vst [vmem:[#allocation402_spill] sm:$0xff] %v12788_v8 }
 0x456   : > { %17716 = vst [vmem:[#allocation401_spill] sm:$0xff] %v17715_v3 }
 0x457   : > { %2488 = vst [vmem:[#allocation79] sm:$0xff] %v11942_v16  ;;  %v17718_v6 = vmov 0 }
 0x45e   : > { %v2490_v61 = vld [vmem:[#allocation79 + $0x6] sm:$0x3] }
 0x45f   : > { %v2491_v15 = vunpack.c.0.f8e4m3b11 %v2490_v61 }
 0x461   : > { %v2495_v12 = vand.u32 2147483647, %v2491_v15  ;;  %vm2497_vm0 = vcmp.ne.f32.partialorder %v2491_v15, %v2491_v15  ;;  %v2498_v57 = vmul.f32 16.0, %v2491_v15 }
 0x463   : > { %vm12794_vm15 = vcmp.gt.f32.partialorder %v2495_v12, 29.0  ;;  %v12798_v11 = vsel %vm2497_vm0, -0.0, %v2498_v57 }
 0x464   : > { %v17719_v6 = vsel %vm12794_vm15, 4294967295, %v17718_v6  ;;  %17721 = vst [vmem:[#allocation404_spill] sm:$0xff] %v12798_v11 }
 0x465   : > { %17720 = vst [vmem:[#allocation403_spill] sm:$0xff] %v17719_v6 }
 0x466   : > { %2519 = vst [vmem:[#allocation80] sm:$0xff] %v11945_v17  ;;  %v17722_v8 = vmov 0 }
 0x46d   : > { %v2521_v59 = vld [vmem:[#allocation80 + $0x6] sm:$0x3] }
 0x46e   : > { %v2522_v13 = vunpack.c.0.f8e4m3b11 %v2521_v59 }
 0x470   : > { %v2526_v16 = vand.u32 2147483647, %v2522_v13  ;;  %vm2528_vm8 = vcmp.ne.f32.partialorder %v2522_v13, %v2522_v13  ;;  %v2529_v61 = vmul.f32 16.0, %v2522_v13 }
 0x472   : > { %vm12804_vm11 = vcmp.gt.f32.partialorder %v2526_v16, 29.0  ;;  %v12808_v12 = vsel %vm2528_vm8, -0.0, %v2529_v61 }
 0x473   : > { %v17723_v8 = vsel %vm12804_vm11, 4294967295, %v17722_v8  ;;  %17725 = vst [vmem:[#allocation406_spill] sm:$0xff] %v12808_v12 }
 0x474   : > { %17724 = vst [vmem:[#allocation405_spill] sm:$0xff] %v17723_v8 }
 0x475   : > { %2550 = vst [vmem:[#allocation81] sm:$0xff] %v11948_v18  ;;  %v17726_v3 = vmov 0 }
 0x47c   : > { %v2551_v57 = vld [vmem:[#allocation81] sm:$0x3] }
 0x47d   : > { %v2552_v14 = vunpack.c.0.f8e4m3b11 %v2551_v57 }
 0x47f   : > { %v2556_v17 = vand.u32 2147483647, %v2552_v14  ;;  %vm2558_vm0 = vcmp.ne.f32.partialorder %v2552_v14, %v2552_v14  ;;  %v2559_v59 = vmul.f32 16.0, %v2552_v14 }
 0x481   : > { %vm12814_vm15 = vcmp.gt.f32.partialorder %v2556_v17, 29.0  ;;  %v12818_v13 = vsel %vm2558_vm0, -0.0, %v2559_v59 }
 0x482   : > { %v17727_v3 = vsel %vm12814_vm15, 4294967295, %v17726_v3  ;;  %17729 = vst [vmem:[#allocation408_spill] sm:$0xff] %v12818_v13 }
 0x483   : > { %17728 = vst [vmem:[#allocation407_spill] sm:$0xff] %v17727_v3 }
 0x484   : > { %2580 = vst [vmem:[#allocation82] sm:$0xff] %v11951_v19  ;;  %v17730_v8 = vmov 0 }
 0x48b   : > { %v2581_v61 = vld [vmem:[#allocation82] sm:$0x3] }
 0x48c   : > { %v2582_v15 = vunpack.c.0.f8e4m3b11 %v2581_v61 }
 0x48e   : > { %v2586_v12 = vand.u32 2147483647, %v2582_v15  ;;  %vm2588_vm8 = vcmp.ne.f32.partialorder %v2582_v15, %v2582_v15  ;;  %v2589_v57 = vmul.f32 16.0, %v2582_v15 }
 0x490   : > { %vm12824_vm11 = vcmp.gt.f32.partialorder %v2586_v12, 29.0  ;;  %v12828_v14 = vsel %vm2588_vm8, -0.0, %v2589_v57 }
 0x491   : > { %v17731_v8 = vsel %vm12824_vm11, 4294967295, %v17730_v8  ;;  %17733 = vst [vmem:[#allocation410_spill] sm:$0xff] %v12828_v14 }
 0x492   : > { %17732 = vst [vmem:[#allocation409_spill] sm:$0xff] %v17731_v8 }
 0x493   : > { %2610 = vst [vmem:[#allocation83] sm:$0xff] %v11948_v18  ;;  %v17734_v6 = vmov 0 }
 0x49a   : > { %v2612_v59 = vld [vmem:[#allocation83 + $0x2] sm:$0x3] }
 0x49b   : > { %v2613_v16 = vunpack.c.0.f8e4m3b11 %v2612_v59 }
 0x49d   : > { %v2617_v11 = vand.u32 2147483647, %v2613_v16  ;;  %vm2619_vm0 = vcmp.ne.f32.partialorder %v2613_v16, %v2613_v16  ;;  %v2620_v61 = vmul.f32 16.0, %v2613_v16 }
 0x49f   : > { %vm12834_vm15 = vcmp.gt.f32.partialorder %v2617_v11, 29.0  ;;  %v12838_v12 = vsel %vm2619_vm0, -0.0, %v2620_v61 }
 0x4a0   : > { %v17735_v6 = vsel %vm12834_vm15, 4294967295, %v17734_v6  ;;  %17737 = vst [vmem:[#allocation412_spill] sm:$0xff] %v12838_v12 }
 0x4a1   : > { %17736 = vst [vmem:[#allocation411_spill] sm:$0xff] %v17735_v6 }
 0x4a2   : > { %2641 = vst [vmem:[#allocation84] sm:$0xff] %v11951_v19  ;;  %v17738_v8 = vmov 0 }
 0x4a9   : > { %v2643_v57 = vld [vmem:[#allocation84 + $0x2] sm:$0x3] }
 0x4aa   : > { %v2644_v17 = vunpack.c.0.f8e4m3b11 %v2643_v57 }
 0x4ac   : > { %v2648_v14 = vand.u32 2147483647, %v2644_v17  ;;  %vm2650_vm8 = vcmp.ne.f32.partialorder %v2644_v17, %v2644_v17  ;;  %v2651_v59 = vmul.f32 16.0, %v2644_v17 }
 0x4ae   : > { %vm12844_vm11 = vcmp.gt.f32.partialorder %v2648_v14, 29.0  ;;  %v12848_v11 = vsel %vm2650_vm8, -0.0, %v2651_v59 }
 0x4af   : > { %v17739_v8 = vsel %vm12844_vm11, 4294967295, %v17738_v8  ;;  %17741 = vst [vmem:[#allocation414_spill] sm:$0xff] %v12848_v11 }
 0x4b0   : > { %17740 = vst [vmem:[#allocation413_spill] sm:$0xff] %v17739_v8 }
 0x4b1   : > { %2672 = vst [vmem:[#allocation85] sm:$0xff] %v11948_v18  ;;  %v17742_v6 = vmov 0 }
 0x4b8   : > { %v2674_v61 = vld [vmem:[#allocation85 + $0x4] sm:$0x3] }
 0x4b9   : > { %v2675_v15 = vunpack.c.0.f8e4m3b11 %v2674_v61 }
 0x4bb   : > { %v2679_v12 = vand.u32 2147483647, %v2675_v15  ;;  %vm2681_vm0 = vcmp.ne.f32.partialorder %v2675_v15, %v2675_v15  ;;  %v2682_v57 = vmul.f32 16.0, %v2675_v15 }
 0x4bd   : > { %vm12854_vm15 = vcmp.gt.f32.partialorder %v2679_v12, 29.0  ;;  %v12858_v14 = vsel %vm2681_vm0, -0.0, %v2682_v57 }
 0x4be   : > { %v17743_v6 = vsel %vm12854_vm15, 4294967295, %v17742_v6  ;;  %17745 = vst [vmem:[#allocation416_spill] sm:$0xff] %v12858_v14 }
 0x4bf   : > { %17744 = vst [vmem:[#allocation415_spill] sm:$0xff] %v17743_v6 }
 0x4c0   : > { %2703 = vst [vmem:[#allocation86] sm:$0xff] %v11951_v19  ;;  %v17746_v8 = vmov 0 }
 0x4c7   : > { %v2705_v59 = vld [vmem:[#allocation86 + $0x4] sm:$0x3] }
 0x4c8   : > { %v2706_v16 = vunpack.c.0.f8e4m3b11 %v2705_v59 }
 0x4ca   : > { %v2710_v11 = vand.u32 2147483647, %v2706_v16  ;;  %vm2712_vm8 = vcmp.ne.f32.partialorder %v2706_v16, %v2706_v16  ;;  %v2713_v61 = vmul.f32 16.0, %v2706_v16 }
 0x4cc   : > { %vm12864_vm11 = vcmp.gt.f32.partialorder %v2710_v11, 29.0  ;;  %v12868_v12 = vsel %vm2712_vm8, -0.0, %v2713_v61 }
 0x4cd   : > { %v17747_v8 = vsel %vm12864_vm11, 4294967295, %v17746_v8  ;;  %17749 = vst [vmem:[#allocation418_spill] sm:$0xff] %v12868_v12 }
 0x4ce   : > { %17748 = vst [vmem:[#allocation417_spill] sm:$0xff] %v17747_v8 }
 0x4cf   : > { %2734 = vst [vmem:[#allocation87] sm:$0xff] %v11948_v18  ;;  %v17750_v3 = vmov 0 }
 0x4d6   : > { %v2736_v57 = vld [vmem:[#allocation87 + $0x6] sm:$0x3] }
 0x4d7   : > { %v2737_v17 = vunpack.c.0.f8e4m3b11 %v2736_v57 }
 0x4d9   : > { %v2741_v13 = vand.u32 2147483647, %v2737_v17  ;;  %vm2743_vm0 = vcmp.ne.f32.partialorder %v2737_v17, %v2737_v17  ;;  %v2744_v59 = vmul.f32 16.0, %v2737_v17 }
 0x4db   : > { %vm12874_vm15 = vcmp.gt.f32.partialorder %v2741_v13, 29.0  ;;  %v12878_v11 = vsel %vm2743_vm0, -0.0, %v2744_v59 }
 0x4dc   : > { %v17751_v3 = vsel %vm12874_vm15, 4294967295, %v17750_v3  ;;  %17753 = vst [vmem:[#allocation420_spill] sm:$0xff] %v12878_v11 }
 0x4dd   : > { %17752 = vst [vmem:[#allocation419_spill] sm:$0xff] %v17751_v3 }
 0x4de   : > { %2765 = vst [vmem:[#allocation88] sm:$0xff] %v11951_v19  ;;  %v17754_v12 = vmov 0 }
 0x4e5   : > { %v2767_v61 = vld [vmem:[#allocation88 + $0x6] sm:$0x3] }
 0x4e6   : > { %v2768_v15 = vunpack.c.0.f8e4m3b11 %v2767_v61 }
 0x4e8   : > { %v2772_v18 = vand.u32 2147483647, %v2768_v15  ;;  %vm2774_vm8 = vcmp.ne.f32.partialorder %v2768_v15, %v2768_v15  ;;  %v2775_v57 = vmul.f32 16.0, %v2768_v15 }
 0x4ea   : > { %vm12884_vm11 = vcmp.gt.f32.partialorder %v2772_v18, 29.0  ;;  %v12888_v13 = vsel %vm2774_vm8, -0.0, %v2775_v57 }
 0x4eb   : > { %v17755_v12 = vsel %vm12884_vm11, 4294967295, %v17754_v12  ;;  %17757 = vst [vmem:[#allocation422_spill] sm:$0xff] %v12888_v13 }
 0x4ec   : > { %17756 = vst [vmem:[#allocation421_spill] sm:$0xff] %v17755_v12 }
 0x4ed   : > { %2796 = vst [vmem:[#allocation89] sm:$0xff] %v11954_v20  ;;  %v17758_v8 = vmov 0 }
 0x4f4   : > { %v2797_v59 = vld [vmem:[#allocation89] sm:$0x3] }
 0x4f5   : > { %v2798_v16 = vunpack.c.0.f8e4m3b11 %v2797_v59 }
 0x4f7   : > { %v2802_v19 = vand.u32 2147483647, %v2798_v16  ;;  %vm2804_vm0 = vcmp.ne.f32.partialorder %v2798_v16, %v2798_v16  ;;  %v2805_v61 = vmul.f32 16.0, %v2798_v16 }
 0x4f9   : > { %vm12894_vm15 = vcmp.gt.f32.partialorder %v2802_v19, 29.0  ;;  %v12898_v15 = vsel %vm2804_vm0, -0.0, %v2805_v61 }
 0x4fa   : > { %v17759_v8 = vsel %vm12894_vm15, 4294967295, %v17758_v8  ;;  %17761 = vst [vmem:[#allocation424_spill] sm:$0xff] %v12898_v15 }
 0x4fb   : > { %17760 = vst [vmem:[#allocation423_spill] sm:$0xff] %v17759_v8 }
 0x4fc   : > { %2826 = vst [vmem:[#allocation90] sm:$0xff] %v11957_v21  ;;  %v17762_v12 = vmov 0 }
 0x503   : > { %v2827_v57 = vld [vmem:[#allocation90] sm:$0x3] }
 0x504   : > { %v2828_v17 = vunpack.c.0.f8e4m3b11 %v2827_v57 }
 0x506   : > { %v2832_v13 = vand.u32 2147483647, %v2828_v17  ;;  %vm2834_vm8 = vcmp.ne.f32.partialorder %v2828_v17, %v2828_v17  ;;  %v2835_v59 = vmul.f32 16.0, %v2828_v17 }
 0x508   : > { %vm12904_vm11 = vcmp.gt.f32.partialorder %v2832_v13, 29.0  ;;  %v12908_v16 = vsel %vm2834_vm8, -0.0, %v2835_v59 }
 0x509   : > { %v17763_v12 = vsel %vm12904_vm11, 4294967295, %v17762_v12  ;;  %17765 = vst [vmem:[#allocation426_spill] sm:$0xff] %v12908_v16 }
 0x50a   : > { %17764 = vst [vmem:[#allocation425_spill] sm:$0xff] %v17763_v12 }
 0x50b   : > { %2856 = vst [vmem:[#allocation91] sm:$0xff] %v11954_v20  ;;  %v17766_v3 = vmov 0 }
 0x512   : > { %v2858_v61 = vld [vmem:[#allocation91 + $0x2] sm:$0x3] }
 0x513   : > { %v2859_v18 = vunpack.c.0.f8e4m3b11 %v2858_v61 }
 0x515   : > { %v2863_v11 = vand.u32 2147483647, %v2859_v18  ;;  %vm2865_vm0 = vcmp.ne.f32.partialorder %v2859_v18, %v2859_v18  ;;  %v2866_v57 = vmul.f32 16.0, %v2859_v18 }
 0x517   : > { %vm12914_vm15 = vcmp.gt.f32.partialorder %v2863_v11, 29.0  ;;  %v12918_v13 = vsel %vm2865_vm0, -0.0, %v2866_v57 }
 0x518   : > { %v17767_v3 = vsel %vm12914_vm15, 4294967295, %v17766_v3  ;;  %17769 = vst [vmem:[#allocation428_spill] sm:$0xff] %v12918_v13 }
 0x519   : > { %17768 = vst [vmem:[#allocation427_spill] sm:$0xff] %v17767_v3 }
 0x51a   : > { %2887 = vst [vmem:[#allocation92] sm:$0xff] %v11957_v21  ;;  %v17770_v12 = vmov 0 }
 0x521   : > { %v2889_v59 = vld [vmem:[#allocation92 + $0x2] sm:$0x3] }
 0x522   : > { %v2890_v19 = vunpack.c.0.f8e4m3b11 %v2889_v59 }
 0x524   : > { %v2894_v16 = vand.u32 2147483647, %v2890_v19  ;;  %vm2896_vm8 = vcmp.ne.f32.partialorder %v2890_v19, %v2890_v19  ;;  %v2897_v61 = vmul.f32 16.0, %v2890_v19 }
 0x526   : > { %vm12924_vm11 = vcmp.gt.f32.partialorder %v2894_v16, 29.0  ;;  %v12928_v11 = vsel %vm2896_vm8, -0.0, %v2897_v61 }
 0x527   : > { %v17771_v12 = vsel %vm12924_vm11, 4294967295, %v17770_v12  ;;  %17773 = vst [vmem:[#allocation430_spill] sm:$0xff] %v12928_v11 }
 0x528   : > { %17772 = vst [vmem:[#allocation429_spill] sm:$0xff] %v17771_v12 }
 0x529   : > { %2918 = vst [vmem:[#allocation93] sm:$0xff] %v11954_v20  ;;  %v17774_v6 = vmov 0 }
 0x530   : > { %v2920_v57 = vld [vmem:[#allocation93 + $0x4] sm:$0x3] }
 0x531   : > { %v2921_v17 = vunpack.c.0.f8e4m3b11 %v2920_v57 }
 0x533   : > { %v2925_v14 = vand.u32 2147483647, %v2921_v17  ;;  %vm2927_vm0 = vcmp.ne.f32.partialorder %v2921_v17, %v2921_v17  ;;  %v2928_v59 = vmul.f32 16.0, %v2921_v17 }
 0x535   : > { %vm12934_vm15 = vcmp.gt.f32.partialorder %v2925_v14, 29.0  ;;  %v12938_v16 = vsel %vm2927_vm0, -0.0, %v2928_v59 }
 0x536   : > { %v17775_v6 = vsel %vm12934_vm15, 4294967295, %v17774_v6  ;;  %17777 = vst [vmem:[#allocation432_spill] sm:$0xff] %v12938_v16 }
 0x537   : > { %17776 = vst [vmem:[#allocation431_spill] sm:$0xff] %v17775_v6 }
 0x538   : > { %2949 = vst [vmem:[#allocation94] sm:$0xff] %v11957_v21  ;;  %v17778_v12 = vmov 0 }
 0x53f   : > { %v2951_v61 = vld [vmem:[#allocation94 + $0x4] sm:$0x3] }
 0x540   : > { %v2952_v18 = vunpack.c.0.f8e4m3b11 %v2951_v61 }
 0x542   : > { %v2956_v11 = vand.u32 2147483647, %v2952_v18  ;;  %vm2958_vm8 = vcmp.ne.f32.partialorder %v2952_v18, %v2952_v18  ;;  %v2959_v57 = vmul.f32 16.0, %v2952_v18 }
 0x544   : > { %vm12944_vm11 = vcmp.gt.f32.partialorder %v2956_v11, 29.0  ;;  %v12948_v14 = vsel %vm2958_vm8, -0.0, %v2959_v57 }
 0x545   : > { %v17779_v12 = vsel %vm12944_vm11, 4294967295, %v17778_v12  ;;  %17781 = vst [vmem:[#allocation434_spill] sm:$0xff] %v12948_v14 }
 0x546   : > { %17780 = vst [vmem:[#allocation433_spill] sm:$0xff] %v17779_v12 }
 0x547   : > { %2980 = vst [vmem:[#allocation95] sm:$0xff] %v11954_v20  ;;  %v17782_v3 = vmov 0 }
 0x54e   : > { %v2982_v59 = vld [vmem:[#allocation95 + $0x6] sm:$0x3] }
 0x54f   : > { %v2983_v19 = vunpack.c.0.f8e4m3b11 %v2982_v59 }
 0x551   : > { %v2987_v13 = vand.u32 2147483647, %v2983_v19  ;;  %vm2989_vm0 = vcmp.ne.f32.partialorder %v2983_v19, %v2983_v19  ;;  %v2990_v61 = vmul.f32 16.0, %v2983_v19 }
 0x553   : > { %vm12954_vm15 = vcmp.gt.f32.partialorder %v2987_v13, 29.0  ;;  %v12958_v11 = vsel %vm2989_vm0, -0.0, %v2990_v61 }
 0x554   : > { %v17783_v3 = vsel %vm12954_vm15, 4294967295, %v17782_v3  ;;  %17785 = vst [vmem:[#allocation436_spill] sm:$0xff] %v12958_v11 }
 0x555   : > { %17784 = vst [vmem:[#allocation435_spill] sm:$0xff] %v17783_v3 }
 0x556   : > { %3011 = vst [vmem:[#allocation96] sm:$0xff] %v11957_v21  ;;  %v17786_v14 = vmov 0 }
 0x55d   : > { %v3013_v57 = vld [vmem:[#allocation96 + $0x6] sm:$0x3] }
 0x55e   : > { %v3014_v17 = vunpack.c.0.f8e4m3b11 %v3013_v57 }
 0x560   : > { %v3018_v20 = vand.u32 2147483647, %v3014_v17  ;;  %vm3020_vm8 = vcmp.ne.f32.partialorder %v3014_v17, %v3014_v17  ;;  %v3021_v59 = vmul.f32 16.0, %v3014_v17 }
 0x562   : > { %vm12964_vm11 = vcmp.gt.f32.partialorder %v3018_v20, 29.0  ;;  %v12968_v13 = vsel %vm3020_vm8, -0.0, %v3021_v59 }
 0x563   : > { %v17787_v14 = vsel %vm12964_vm11, 4294967295, %v17786_v14  ;;  %17789 = vst [vmem:[#allocation438_spill] sm:$0xff] %v12968_v13 }
 0x564   : > { %17788 = vst [vmem:[#allocation437_spill] sm:$0xff] %v17787_v14 }
 0x565   : > { %3042 = vst [vmem:[#allocation97] sm:$0xff] %v11960_v22  ;;  %v17790_v12 = vmov 0 }
 0x56c   : > { %v3043_v61 = vld [vmem:[#allocation97] sm:$0x3] }
 0x56d   : > { %v3044_v18 = vunpack.c.0.f8e4m3b11 %v3043_v61 }
 0x56f   : > { %v3048_v21 = vand.u32 2147483647, %v3044_v18  ;;  %vm3050_vm0 = vcmp.ne.f32.partialorder %v3044_v18, %v3044_v18  ;;  %v3051_v57 = vmul.f32 16.0, %v3044_v18 }
 0x571   : > { %vm12974_vm15 = vcmp.gt.f32.partialorder %v3048_v21, 29.0  ;;  %v12978_v17 = vsel %vm3050_vm0, -0.0, %v3051_v57 }
 0x572   : > { %v17791_v12 = vsel %vm12974_vm15, 4294967295, %v17790_v12 }
 0x573   : > { %3072 = vst [vmem:[#allocation98] sm:$0xff] %v11963_v23  ;;  %v17792_v14 = vmov 0 }
 0x57a   : > { %v3073_v59 = vld [vmem:[#allocation98] sm:$0x3] }
 0x57b   : > { %v3074_v19 = vunpack.c.0.f8e4m3b11 %v3073_v59 }
 0x57d   : > { %v3078_v13 = vand.u32 2147483647, %v3074_v19  ;;  %vm3080_vm8 = vcmp.ne.f32.partialorder %v3074_v19, %v3074_v19  ;;  %v3081_v61 = vmul.f32 16.0, %v3074_v19 }
 0x57f   : > { %vm12984_vm11 = vcmp.gt.f32.partialorder %v3078_v13, 29.0  ;;  %v12988_v18 = vsel %vm3080_vm8, -0.0, %v3081_v61 }
 0x580   : > { %v17793_v14 = vsel %vm12984_vm11, 4294967295, %v17792_v14  ;;  %17795 = vst [vmem:[#allocation440_spill] sm:$0xff] %v12988_v18 }
 0x581   : > { %17794 = vst [vmem:[#allocation439_spill] sm:$0xff] %v17793_v14 }
 0x582   : > { %3102 = vst [vmem:[#allocation99] sm:$0xff] %v11960_v22  ;;  %v17796_v8 = vmov 0 }
 0x589   : > { %v3104_v57 = vld [vmem:[#allocation99 + $0x2] sm:$0x3] }
 0x58a   : > { %v3105_v20 = vunpack.c.0.f8e4m3b11 %v3104_v57 }
 0x58c   : > { %v3109_v15 = vand.u32 2147483647, %v3105_v20  ;;  %vm3111_vm0 = vcmp.ne.f32.partialorder %v3105_v20, %v3105_v20  ;;  %v3112_v59 = vmul.f32 16.0, %v3105_v20 }
 0x58e   : > { %vm12994_vm7 = vcmp.gt.f32.partialorder %v3109_v15, 29.0  ;;  %v12998_v13 = vsel %vm3111_vm0, -0.0, %v3112_v59 }
 0x58f   : > { %v17797_v8 = vsel %vm12994_vm7, 4294967295, %v17796_v8 }
 0x590   : > { %3133 = vst [vmem:[#allocation100] sm:$0xff] %v11963_v23  ;;  %v17798_v14 = vmov 0 }
 0x597   : > { %v3135_v61 = vld [vmem:[#allocation100 + $0x2] sm:$0x3] }
 0x598   : > { %v3136_v21 = vunpack.c.0.f8e4m3b11 %v3135_v61 }
 0x59a   : > { %v3140_v18 = vand.u32 2147483647, %v3136_v21  ;;  %vm3142_vm8 = vcmp.ne.f32.partialorder %v3136_v21, %v3136_v21  ;;  %v3143_v57 = vmul.f32 16.0, %v3136_v21 }
 0x59c   : > { %vm13004_vm11 = vcmp.gt.f32.partialorder %v3140_v18, 29.0  ;;  %v13008_v15 = vsel %vm3142_vm8, -0.0, %v3143_v57 }
 0x59d   : > { %v17799_v14 = vsel %vm13004_vm11, 4294967295, %v17798_v14  ;;  %17801 = vst [vmem:[#allocation442_spill] sm:$0xff] %v13008_v15 }
 0x59e   : > { %17800 = vst [vmem:[#allocation441_spill] sm:$0xff] %v17799_v14 }
 0x59f   : > { %3164 = vst [vmem:[#allocation101] sm:$0xff] %v11960_v22 }
 0x5a6   : > { %v3166_v59 = vld [vmem:[#allocation101 + $0x4] sm:$0x3] }
 0x5a7   : > { %v3167_v19 = vunpack.c.0.f8e4m3b11 %v3166_v59 }
 0x5a9   : > { %v3171_v11 = vand.u32 2147483647, %v3167_v19  ;;  %vm3173_vm0 = vcmp.ne.f32.partialorder %v3167_v19, %v3167_v19  ;;  %v3174_v61 = vmul.f32 16.0, %v3167_v19 }
 0x5ab   : > { %vm13014_vm9 = vcmp.gt.f32.partialorder %v3171_v11, 29.0  ;;  %v13018_v18 = vsel %vm3173_vm0, -0.0, %v3174_v61 }
 0x5ac   : > { %3195 = vst [vmem:[#allocation102] sm:$0xff] %v11963_v23  ;;  %v17804_v14 = vmov 0 }
 0x5b3   : > { %v3197_v57 = vld [vmem:[#allocation102 + $0x4] sm:$0x3] }
 0x5b4   : > { %v3198_v20 = vunpack.c.0.f8e4m3b11 %v3197_v57 }
 0x5b6   : > { %v3202_v15 = vand.u32 2147483647, %v3198_v20  ;;  %vm3204_vm8 = vcmp.ne.f32.partialorder %v3198_v20, %v3198_v20  ;;  %v3205_v59 = vmul.f32 16.0, %v3198_v20 }
 0x5b8   : > { %vm13024_vm11 = vcmp.gt.f32.partialorder %v3202_v15, 29.0  ;;  %v13028_v11 = vsel %vm3204_vm8, -0.0, %v3205_v59 }
 0x5b9   : > { %v17805_v14 = vsel %vm13024_vm11, 4294967295, %v17804_v14  ;;  %17807 = vst [vmem:[#allocation444_spill] sm:$0xff] %v13028_v11 }
 0x5ba   : > { %17806 = vst [vmem:[#allocation443_spill] sm:$0xff] %v17805_v14 }
 0x5bb   : > { %3226 = vst [vmem:[#allocation103] sm:$0xff] %v11960_v22 }
 0x5c2   : > { %v3228_v61 = vld [vmem:[#allocation103 + $0x6] sm:$0x3] }
 0x5c3   : > { %v3229_v21 = vunpack.c.0.f8e4m3b11 %v3228_v61 }
 0x5c5   : > { %v3233_v16 = vand.u32 2147483647, %v3229_v21  ;;  %vm3235_vm0 = vcmp.ne.f32.partialorder %v3229_v21, %v3229_v21  ;;  %v3236_v57 = vmul.f32 16.0, %v3229_v21 }
 0x5c7   : > { %vm13034_vm6 = vcmp.gt.f32.partialorder %v3233_v16, 29.0  ;;  %v13038_v15 = vsel %vm3235_vm0, -0.0, %v3236_v57 }
 0x5c8   : > { %3257 = vst [vmem:[#allocation104] sm:$0xff] %v11963_v23  ;;  %v17810_v11 = vmov 0 }
 0x5cf   : > { %v3259_v59 = vld [vmem:[#allocation104 + $0x6] sm:$0x3] }
 0x5d0   : > { %v3260_v19 = vunpack.c.0.f8e4m3b11 %v3259_v59 }
 0x5d2   : > { %v3264_v22 = vand.u32 2147483647, %v3260_v19  ;;  %vm3266_vm8 = vcmp.ne.f32.partialorder %v3260_v19, %v3260_v19  ;;  %v3267_v61 = vmul.f32 16.0, %v3260_v19 }
 0x5d4   : > { %vm13044_vm11 = vcmp.gt.f32.partialorder %v3264_v22, 29.0  ;;  %v13048_v16 = vsel %vm3266_vm8, -0.0, %v3267_v61 }
 0x5d5   : > { %v17811_v11 = vsel %vm13044_vm11, 4294967295, %v17810_v11  ;;  %17813 = vst [vmem:[#allocation446_spill] sm:$0xff] %v13048_v16 }
 0x5d6   : > { %17812 = vst [vmem:[#allocation445_spill] sm:$0xff] %v17811_v11 }
 0x5d7   : > { %3288 = vst [vmem:[#allocation105] sm:$0xff] %v11966_v24  ;;  %v17814_v14 = vmov 0 }
 0x5de   : > { %v3289_v57 = vld [vmem:[#allocation105] sm:$0x3] }
 0x5df   : > { %v3290_v20 = vunpack.c.0.f8e4m3b11 %v3289_v57 }
 0x5e1   : > { %v3294_v23 = vand.u32 2147483647, %v3290_v20  ;;  %vm3296_vm0 = vcmp.ne.f32.partialorder %v3290_v20, %v3290_v20  ;;  %v3297_v59 = vmul.f32 16.0, %v3290_v20 }
 0x5e3   : > { %vm13054_vm3 = vcmp.gt.f32.partialorder %v3294_v23, 29.0  ;;  %v13058_v19 = vsel %vm3296_vm0, -0.0, %v3297_v59 }
 0x5e4   : > { %v17815_v14 = vsel %vm13054_vm3, 4294967295, %v17814_v14  ;;  %17817 = vst [vmem:[#allocation448_spill] sm:$0xff] %v13058_v19 }
 0x5e5   : > { %17816 = vst [vmem:[#allocation447_spill] sm:$0xff] %v17815_v14 }
 0x5e6   : > { %3318 = vst [vmem:[#allocation106] sm:$0xff] %v11969_v25  ;;  %v17818_v11 = vmov 0 }
 0x5ed   : > { %v3319_v61 = vld [vmem:[#allocation106] sm:$0x3] }
 0x5ee   : > { %v3320_v21 = vunpack.c.0.f8e4m3b11 %v3319_v61 }
 0x5f0   : > { %v3324_v16 = vand.u32 2147483647, %v3320_v21  ;;  %vm3326_vm8 = vcmp.ne.f32.partialorder %v3320_v21, %v3320_v21  ;;  %v3327_v57 = vmul.f32 16.0, %v3320_v21 }
 0x5f2   : > { %vm13064_vm11 = vcmp.gt.f32.partialorder %v3324_v16, 29.0  ;;  %v13068_v20 = vsel %vm3326_vm8, -0.0, %v3327_v57 }
 0x5f3   : > { %v17819_v11 = vsel %vm13064_vm11, 4294967295, %v17818_v11  ;;  %17821 = vst [vmem:[#allocation450_spill] sm:$0xff] %v13068_v20 }
 0x5f4   : > { %17820 = vst [vmem:[#allocation449_spill] sm:$0xff] %v17819_v11 }
 0x5f5   : > { %3348 = vst [vmem:[#allocation107] sm:$0xff] %v11966_v24  ;;  %v17822_v14 = vmov 0 }
 0x5fc   : > { %v3350_v59 = vld [vmem:[#allocation107 + $0x2] sm:$0x3] }
 0x5fd   : > { %v3351_v22 = vunpack.c.0.f8e4m3b11 %v3350_v59 }
 0x5ff   : > { %v3355_v19 = vand.u32 2147483647, %v3351_v22  ;;  %vm3357_vm0 = vcmp.ne.f32.partialorder %v3351_v22, %v3351_v22  ;;  %v3358_v61 = vmul.f32 16.0, %v3351_v22 }
 0x601   : > { %vm13074_vm3 = vcmp.gt.f32.partialorder %v3355_v19, 29.0  ;;  %v13078_v16 = vsel %vm3357_vm0, -0.0, %v3358_v61 }
 0x602   : > { %v17823_v14 = vsel %vm13074_vm3, 4294967295, %v17822_v14  ;;  %17825 = vst [vmem:[#allocation452_spill] sm:$0xff] %v13078_v16 }
 0x603   : > { %17824 = vst [vmem:[#allocation451_spill] sm:$0xff] %v17823_v14 }
 0x604   : > { %3379 = vst [vmem:[#allocation108] sm:$0xff] %v11969_v25  ;;  %v17826_v11 = vmov 0 }
 0x60b   : > { %v3381_v57 = vld [vmem:[#allocation108 + $0x2] sm:$0x3] }
 0x60c   : > { %v3382_v23 = vunpack.c.0.f8e4m3b11 %v3381_v57 }
 0x60e   : > { %v3386_v20 = vand.u32 2147483647, %v3382_v23  ;;  %vm3388_vm8 = vcmp.ne.f32.partialorder %v3382_v23, %v3382_v23  ;;  %v3389_v59 = vmul.f32 16.0, %v3382_v23 }
 0x610   : > { %vm13084_vm11 = vcmp.gt.f32.partialorder %v3386_v20, 29.0  ;;  %v13088_v19 = vsel %vm3388_vm8, -0.0, %v3389_v59 }
 0x611   : > { %v17827_v11 = vsel %vm13084_vm11, 4294967295, %v17826_v11  ;;  %17829 = vst [vmem:[#allocation454_spill] sm:$0xff] %v13088_v19 }
 0x612   : > { %17828 = vst [vmem:[#allocation453_spill] sm:$0xff] %v17827_v11 }
 0x613   : > { %3410 = vst [vmem:[#allocation109] sm:$0xff] %v11966_v24  ;;  %v17830_v14 = vmov 0 }
 0x61a   : > { %v3412_v61 = vld [vmem:[#allocation109 + $0x4] sm:$0x3] }
 0x61b   : > { %v3413_v21 = vunpack.c.0.f8e4m3b11 %v3412_v61 }
 0x61d   : > { %v3417_v16 = vand.u32 2147483647, %v3413_v21  ;;  %vm3419_vm0 = vcmp.ne.f32.partialorder %v3413_v21, %v3413_v21  ;;  %v3420_v57 = vmul.f32 16.0, %v3413_v21 }
 0x61f   : > { %vm13094_vm3 = vcmp.gt.f32.partialorder %v3417_v16, 29.0  ;;  %v13098_v20 = vsel %vm3419_vm0, -0.0, %v3420_v57 }
 0x620   : > { %v17831_v14 = vsel %vm13094_vm3, 4294967295, %v17830_v14  ;;  %17833 = vst [vmem:[#allocation456_spill] sm:$0xff] %v13098_v20 }
 0x621   : > { %17832 = vst [vmem:[#allocation455_spill] sm:$0xff] %v17831_v14 }
 0x622   : > { %3441 = vst [vmem:[#allocation110] sm:$0xff] %v11969_v25  ;;  %v17834_v11 = vmov 0 }
 0x629   : > { %v3443_v59 = vld [vmem:[#allocation110 + $0x4] sm:$0x3] }
 0x62a   : > { %v3444_v22 = vunpack.c.0.f8e4m3b11 %v3443_v59 }
 0x62c   : > { %v3448_v19 = vand.u32 2147483647, %v3444_v22  ;;  %vm3450_vm8 = vcmp.ne.f32.partialorder %v3444_v22, %v3444_v22  ;;  %v3451_v61 = vmul.f32 16.0, %v3444_v22 }
 0x62e   : > { %vm13104_vm11 = vcmp.gt.f32.partialorder %v3448_v19, 29.0  ;;  %v13108_v16 = vsel %vm3450_vm8, -0.0, %v3451_v61 }
 0x62f   : > { %v17835_v11 = vsel %vm13104_vm11, 4294967295, %v17834_v11  ;;  %17837 = vst [vmem:[#allocation458_spill] sm:$0xff] %v13108_v16 }
 0x630   : > { %17836 = vst [vmem:[#allocation457_spill] sm:$0xff] %v17835_v11 }
 0x631   : > { %3472 = vst [vmem:[#allocation111] sm:$0xff] %v11966_v24  ;;  %v17838_v14 = vmov 0 }
 0x638   : > { %v3474_v57 = vld [vmem:[#allocation111 + $0x6] sm:$0x3] }
 0x639   : > { %v3475_v23 = vunpack.c.0.f8e4m3b11 %v3474_v57 }
 0x63b   : > { %v3479_v20 = vand.u32 2147483647, %v3475_v23  ;;  %vm3481_vm0 = vcmp.ne.f32.partialorder %v3475_v23, %v3475_v23  ;;  %v3482_v59 = vmul.f32 16.0, %v3475_v23 }
 0x63d   : > { %vm13114_vm3 = vcmp.gt.f32.partialorder %v3479_v20, 29.0  ;;  %v13118_v19 = vsel %vm3481_vm0, -0.0, %v3482_v59 }
 0x63e   : > { %v17839_v14 = vsel %vm13114_vm3, 4294967295, %v17838_v14  ;;  %17841 = vst [vmem:[#allocation460_spill] sm:$0xff] %v13118_v19 }
 0x63f   : > { %17840 = vst [vmem:[#allocation459_spill] sm:$0xff] %v17839_v14 }
 0x640   : > { %3503 = vst [vmem:[#allocation112] sm:$0xff] %v11969_v25  ;;  %v17842_v16 = vmov 0 }
 0x647   : > { %v3505_v61 = vld [vmem:[#allocation112 + $0x6] sm:$0x3] }
 0x648   : > { %v3506_v21 = vunpack.c.0.f8e4m3b11 %v3505_v61 }
 0x64a   : > { %v3510_v24 = vand.u32 2147483647, %v3506_v21  ;;  %vm3512_vm8 = vcmp.ne.f32.partialorder %v3506_v21, %v3506_v21  ;;  %v3513_v57 = vmul.f32 16.0, %v3506_v21 }
 0x64c   : > { %vm13124_vm11 = vcmp.gt.f32.partialorder %v3510_v24, 29.0  ;;  %v13128_v20 = vsel %vm3512_vm8, -0.0, %v3513_v57 }
 0x64d   : > { %v17843_v16 = vsel %vm13124_vm11, 4294967295, %v17842_v16  ;;  %17845 = vst [vmem:[#allocation462_spill] sm:$0xff] %v13128_v20 }
 0x64e   : > { %17844 = vst [vmem:[#allocation461_spill] sm:$0xff] %v17843_v16 }
 0x64f   : > { %3534 = vst [vmem:[#allocation113] sm:$0xff] %v11972_v26  ;;  %v17846_v11 = vmov 0 }
 0x656   : > { %v3535_v59 = vld [vmem:[#allocation113] sm:$0x3] }
 0x657   : > { %v3536_v22 = vunpack.c.0.f8e4m3b11 %v3535_v59 }
 0x659   : > { %v3540_v25 = vand.u32 2147483647, %v3536_v22  ;;  %vm3542_vm0 = vcmp.ne.f32.partialorder %v3536_v22, %v3536_v22  ;;  %v3543_v61 = vmul.f32 16.0, %v3536_v22 }
 0x65b   : > { %vm13134_vm3 = vcmp.gt.f32.partialorder %v3540_v25, 29.0  ;;  %v13138_v21 = vsel %vm3542_vm0, -0.0, %v3543_v61 }
 0x65c   : > { %v17847_v11 = vsel %vm13134_vm3, 4294967295, %v17846_v11  ;;  %17849 = vst [vmem:[#allocation464_spill] sm:$0xff] %v13138_v21 }
 0x65d   : > { %17848 = vst [vmem:[#allocation463_spill] sm:$0xff] %v17847_v11 }
 0x65e   : > { %3564 = vst [vmem:[#allocation114] sm:$0xff] %v11975_v27  ;;  %v17850_v16 = vmov 0 }
 0x665   : > { %v3565_v57 = vld [vmem:[#allocation114] sm:$0x3] }
 0x666   : > { %v3566_v23 = vunpack.c.0.f8e4m3b11 %v3565_v57 }
 0x668   : > { %v3570_v20 = vand.u32 2147483647, %v3566_v23  ;;  %vm3572_vm8 = vcmp.ne.f32.partialorder %v3566_v23, %v3566_v23  ;;  %v3573_v59 = vmul.f32 16.0, %v3566_v23 }
 0x66a   : > { %vm13144_vm11 = vcmp.gt.f32.partialorder %v3570_v20, 29.0  ;;  %v13148_v22 = vsel %vm3572_vm8, -0.0, %v3573_v59 }
 0x66b   : > { %v17851_v16 = vsel %vm13144_vm11, 4294967295, %v17850_v16  ;;  %17853 = vst [vmem:[#allocation466_spill] sm:$0xff] %v13148_v22 }
 0x66c   : > { %17852 = vst [vmem:[#allocation465_spill] sm:$0xff] %v17851_v16 }
 0x66d   : > { %3594 = vst [vmem:[#allocation115] sm:$0xff] %v11972_v26  ;;  %v17854_v14 = vmov 0 }
 0x674   : > { %v3596_v61 = vld [vmem:[#allocation115 + $0x2] sm:$0x3] }
 0x675   : > { %v3597_v24 = vunpack.c.0.f8e4m3b11 %v3596_v61 }
 0x677   : > { %v3601_v19 = vand.u32 2147483647, %v3597_v24  ;;  %vm3603_vm0 = vcmp.ne.f32.partialorder %v3597_v24, %v3597_v24  ;;  %v3604_v57 = vmul.f32 16.0, %v3597_v24 }
 0x679   : > { %vm13154_vm3 = vcmp.gt.f32.partialorder %v3601_v19, 29.0  ;;  %v13158_v20 = vsel %vm3603_vm0, -0.0, %v3604_v57 }
 0x67a   : > { %v17855_v14 = vsel %vm13154_vm3, 4294967295, %v17854_v14  ;;  %17857 = vst [vmem:[#allocation468_spill] sm:$0xff] %v13158_v20 }
 0x67b   : > { %17856 = vst [vmem:[#allocation467_spill] sm:$0xff] %v17855_v14 }
 0x67c   : > { %3625 = vst [vmem:[#allocation116] sm:$0xff] %v11975_v27  ;;  %v17858_v16 = vmov 0 }
 0x683   : > { %v3627_v59 = vld [vmem:[#allocation116 + $0x2] sm:$0x3] }
 0x684   : > { %v3628_v25 = vunpack.c.0.f8e4m3b11 %v3627_v59 }
 0x686   : > { %v3632_v22 = vand.u32 2147483647, %v3628_v25  ;;  %vm3634_vm8 = vcmp.ne.f32.partialorder %v3628_v25, %v3628_v25  ;;  %v3635_v61 = vmul.f32 16.0, %v3628_v25 }
 0x688   : > { %vm13164_vm11 = vcmp.gt.f32.partialorder %v3632_v22, 29.0  ;;  %v13168_v19 = vsel %vm3634_vm8, -0.0, %v3635_v61 }
 0x689   : > { %v17859_v16 = vsel %vm13164_vm11, 4294967295, %v17858_v16  ;;  %17861 = vst [vmem:[#allocation470_spill] sm:$0xff] %v13168_v19 }
 0x68a   : > { %17860 = vst [vmem:[#allocation469_spill] sm:$0xff] %v17859_v16 }
 0x68b   : > { %3656 = vst [vmem:[#allocation117] sm:$0xff] %v11972_v26  ;;  %v17862_v14 = vmov 0 }
 0x692   : > { %v3658_v57 = vld [vmem:[#allocation117 + $0x4] sm:$0x3] }
 0x693   : > { %v3659_v23 = vunpack.c.0.f8e4m3b11 %v3658_v57 }
 0x695   : > { %v3663_v20 = vand.u32 2147483647, %v3659_v23  ;;  %vm3665_vm0 = vcmp.ne.f32.partialorder %v3659_v23, %v3659_v23  ;;  %v3666_v59 = vmul.f32 16.0, %v3659_v23 }
 0x697   : > { %vm13174_vm3 = vcmp.gt.f32.partialorder %v3663_v20, 29.0  ;;  %v13178_v22 = vsel %vm3665_vm0, -0.0, %v3666_v59 }
 0x698   : > { %v17863_v14 = vsel %vm13174_vm3, 4294967295, %v17862_v14  ;;  %17865 = vst [vmem:[#allocation472_spill] sm:$0xff] %v13178_v22 }
 0x699   : > { %17864 = vst [vmem:[#allocation471_spill] sm:$0xff] %v17863_v14 }
 0x69a   : > { %3687 = vst [vmem:[#allocation118] sm:$0xff] %v11975_v27  ;;  %v17866_v16 = vmov 0 }
 0x6a1   : > { %v3689_v61 = vld [vmem:[#allocation118 + $0x4] sm:$0x3] }
 0x6a2   : > { %v3690_v24 = vunpack.c.0.f8e4m3b11 %v3689_v61 }
 0x6a4   : > { %v3694_v19 = vand.u32 2147483647, %v3690_v24  ;;  %vm3696_vm8 = vcmp.ne.f32.partialorder %v3690_v24, %v3690_v24  ;;  %v3697_v57 = vmul.f32 16.0, %v3690_v24 }
 0x6a6   : > { %vm13184_vm11 = vcmp.gt.f32.partialorder %v3694_v19, 29.0  ;;  %v13188_v20 = vsel %vm3696_vm8, -0.0, %v3697_v57 }
 0x6a7   : > { %v17867_v16 = vsel %vm13184_vm11, 4294967295, %v17866_v16  ;;  %17869 = vst [vmem:[#allocation474_spill] sm:$0xff] %v13188_v20 }
 0x6a8   : > { %17868 = vst [vmem:[#allocation473_spill] sm:$0xff] %v17867_v16 }
 0x6a9   : > { %3718 = vst [vmem:[#allocation119] sm:$0xff] %v11972_v26  ;;  %v17870_v11 = vmov 0 }
 0x6b0   : > { %v3720_v59 = vld [vmem:[#allocation119 + $0x6] sm:$0x3] }
 0x6b1   : > { %v3721_v25 = vunpack.c.0.f8e4m3b11 %v3720_v59 }
 0x6b3   : > { %v3725_v21 = vand.u32 2147483647, %v3721_v25  ;;  %vm3727_vm0 = vcmp.ne.f32.partialorder %v3721_v25, %v3721_v25  ;;  %v3728_v61 = vmul.f32 16.0, %v3721_v25 }
 0x6b5   : > { %vm13194_vm3 = vcmp.gt.f32.partialorder %v3725_v21, 29.0  ;;  %v13198_v19 = vsel %vm3727_vm0, -0.0, %v3728_v61 }
 0x6b6   : > { %v17871_v11 = vsel %vm13194_vm3, 4294967295, %v17870_v11  ;;  %17873 = vst [vmem:[#allocation476_spill] sm:$0xff] %v13198_v19 }
 0x6b7   : > { %17872 = vst [vmem:[#allocation475_spill] sm:$0xff] %v17871_v11 }
 0x6b8   : > { %3749 = vst [vmem:[#allocation120] sm:$0xff] %v11975_v27  ;;  %v17874_v20 = vmov 0 }
 0x6bf   : > { %v3751_v57 = vld [vmem:[#allocation120 + $0x6] sm:$0x3] }
 0x6c0   : > { %v3752_v23 = vunpack.c.0.f8e4m3b11 %v3751_v57 }
 0x6c2   : > { %v3756_v26 = vand.u32 2147483647, %v3752_v23  ;;  %vm3758_vm8 = vcmp.ne.f32.partialorder %v3752_v23, %v3752_v23  ;;  %v3759_v59 = vmul.f32 16.0, %v3752_v23 }
 0x6c4   : > { %vm13204_vm11 = vcmp.gt.f32.partialorder %v3756_v26, 29.0  ;;  %v13208_v21 = vsel %vm3758_vm8, -0.0, %v3759_v59 }
 0x6c5   : > { %v17875_v20 = vsel %vm13204_vm11, 4294967295, %v17874_v20  ;;  %17877 = vst [vmem:[#allocation478_spill] sm:$0xff] %v13208_v21 }
 0x6c6   : > { %17876 = vst [vmem:[#allocation477_spill] sm:$0xff] %v17875_v20 }
 0x6c7   : > { %3780 = vst [vmem:[#allocation121] sm:$0xff] %v11978_v28  ;;  %v17878_v16 = vmov 0 }
 0x6ce   : > { %v3781_v61 = vld [vmem:[#allocation121] sm:$0x3] }
 0x6cf   : > { %v3782_v24 = vunpack.c.0.f8e4m3b11 %v3781_v61 }
 0x6d1   : > { %v3786_v27 = vand.u32 2147483647, %v3782_v24  ;;  %vm3788_vm0 = vcmp.ne.f32.partialorder %v3782_v24, %v3782_v24  ;;  %v3789_v57 = vmul.f32 16.0, %v3782_v24 }
 0x6d3   : > { %vm13214_vm3 = vcmp.gt.f32.partialorder %v3786_v27, 29.0  ;;  %v13218_v23 = vsel %vm3788_vm0, -0.0, %v3789_v57 }
 0x6d4   : > { %v17879_v16 = vsel %vm13214_vm3, 4294967295, %v17878_v16  ;;  %17881 = vst [vmem:[#allocation480_spill] sm:$0xff] %v13218_v23 }
 0x6d5   : > { %17880 = vst [vmem:[#allocation479_spill] sm:$0xff] %v17879_v16 }
 0x6d6   : > { %3810 = vst [vmem:[#allocation122] sm:$0xff] %v11981_v29  ;;  %v17882_v20 = vmov 0 }
 0x6dd   : > { %v3811_v59 = vld [vmem:[#allocation122] sm:$0x3] }
 0x6de   : > { %v3812_v25 = vunpack.c.0.f8e4m3b11 %v3811_v59 }
 0x6e0   : > { %v3816_v21 = vand.u32 2147483647, %v3812_v25  ;;  %vm3818_vm8 = vcmp.ne.f32.partialorder %v3812_v25, %v3812_v25  ;;  %v3819_v61 = vmul.f32 16.0, %v3812_v25 }
 0x6e2   : > { %vm13224_vm11 = vcmp.gt.f32.partialorder %v3816_v21, 29.0  ;;  %v13228_v24 = vsel %vm3818_vm8, -0.0, %v3819_v61 }
 0x6e3   : > { %v17883_v20 = vsel %vm13224_vm11, 4294967295, %v17882_v20  ;;  %17885 = vst [vmem:[#allocation482_spill] sm:$0xff] %v13228_v24 }
 0x6e4   : > { %17884 = vst [vmem:[#allocation481_spill] sm:$0xff] %v17883_v20 }
 0x6e5   : > { %3840 = vst [vmem:[#allocation123] sm:$0xff] %v11978_v28  ;;  %v17886_v11 = vmov 0 }
 0x6ec   : > { %v3842_v57 = vld [vmem:[#allocation123 + $0x2] sm:$0x3] }
 0x6ed   : > { %v3843_v26 = vunpack.c.0.f8e4m3b11 %v3842_v57 }
 0x6ef   : > { %v3847_v19 = vand.u32 2147483647, %v3843_v26  ;;  %vm3849_vm0 = vcmp.ne.f32.partialorder %v3843_v26, %v3843_v26  ;;  %v3850_v59 = vmul.f32 16.0, %v3843_v26 }
 0x6f1   : > { %vm13234_vm3 = vcmp.gt.f32.partialorder %v3847_v19, 29.0  ;;  %v13238_v21 = vsel %vm3849_vm0, -0.0, %v3850_v59 }
 0x6f2   : > { %v17887_v11 = vsel %vm13234_vm3, 4294967295, %v17886_v11  ;;  %17889 = vst [vmem:[#allocation484_spill] sm:$0xff] %v13238_v21 }
 0x6f3   : > { %17888 = vst [vmem:[#allocation483_spill] sm:$0xff] %v17887_v11 }
 0x6f4   : > { %3871 = vst [vmem:[#allocation124] sm:$0xff] %v11981_v29  ;;  %v17890_v20 = vmov 0 }
 0x6fb   : > { %v3873_v61 = vld [vmem:[#allocation124 + $0x2] sm:$0x3] }
 0x6fc   : > { %v3874_v27 = vunpack.c.0.f8e4m3b11 %v3873_v61 }
 0x6fe   : > { %v3878_v24 = vand.u32 2147483647, %v3874_v27  ;;  %vm3880_vm8 = vcmp.ne.f32.partialorder %v3874_v27, %v3874_v27  ;;  %v3881_v57 = vmul.f32 16.0, %v3874_v27 }
 0x700   : > { %vm13244_vm11 = vcmp.gt.f32.partialorder %v3878_v24, 29.0  ;;  %v13248_v19 = vsel %vm3880_vm8, -0.0, %v3881_v57 }
 0x701   : > { %v17891_v20 = vsel %vm13244_vm11, 4294967295, %v17890_v20  ;;  %17893 = vst [vmem:[#allocation486_spill] sm:$0xff] %v13248_v19 }
 0x702   : > { %17892 = vst [vmem:[#allocation485_spill] sm:$0xff] %v17891_v20 }
 0x703   : > { %3902 = vst [vmem:[#allocation125] sm:$0xff] %v11978_v28  ;;  %v17894_v14 = vmov 0 }
 0x70a   : > { %v3904_v59 = vld [vmem:[#allocation125 + $0x4] sm:$0x3] }
 0x70b   : > { %v3905_v25 = vunpack.c.0.f8e4m3b11 %v3904_v59 }
 0x70d   : > { %v3909_v22 = vand.u32 2147483647, %v3905_v25  ;;  %vm3911_vm0 = vcmp.ne.f32.partialorder %v3905_v25, %v3905_v25  ;;  %v3912_v61 = vmul.f32 16.0, %v3905_v25 }
 0x70f   : > { %vm13254_vm3 = vcmp.gt.f32.partialorder %v3909_v22, 29.0  ;;  %v13258_v24 = vsel %vm3911_vm0, -0.0, %v3912_v61 }
 0x710   : > { %v17895_v14 = vsel %vm13254_vm3, 4294967295, %v17894_v14  ;;  %17897 = vst [vmem:[#allocation488_spill] sm:$0xff] %v13258_v24 }
 0x711   : > { %17896 = vst [vmem:[#allocation487_spill] sm:$0xff] %v17895_v14 }
 0x712   : > { %3933 = vst [vmem:[#allocation126] sm:$0xff] %v11981_v29  ;;  %v17898_v20 = vmov 0 }
 0x719   : > { %v3935_v57 = vld [vmem:[#allocation126 + $0x4] sm:$0x3] }
 0x71a   : > { %v3936_v26 = vunpack.c.0.f8e4m3b11 %v3935_v57 }
 0x71c   : > { %v3940_v19 = vand.u32 2147483647, %v3936_v26  ;;  %vm3942_vm8 = vcmp.ne.f32.partialorder %v3936_v26, %v3936_v26  ;;  %v3943_v59 = vmul.f32 16.0, %v3936_v26 }
 0x71e   : > { %vm13264_vm11 = vcmp.gt.f32.partialorder %v3940_v19, 29.0  ;;  %v13268_v22 = vsel %vm3942_vm8, -0.0, %v3943_v59 }
 0x71f   : > { %v17899_v20 = vsel %vm13264_vm11, 4294967295, %v17898_v20  ;;  %17901 = vst [vmem:[#allocation490_spill] sm:$0xff] %v13268_v22 }
 0x720   : > { %17900 = vst [vmem:[#allocation489_spill] sm:$0xff] %v17899_v20 }
 0x721   : > { %3964 = vst [vmem:[#allocation127] sm:$0xff] %v11978_v28  ;;  %v17902_v11 = vmov 0 }
 0x728   : > { %v3966_v61 = vld [vmem:[#allocation127 + $0x6] sm:$0x3] }
 0x729   : > { %v3967_v27 = vunpack.c.0.f8e4m3b11 %v3966_v61 }
 0x72b   : > { %v3971_v21 = vand.u32 2147483647, %v3967_v27  ;;  %vm3973_vm0 = vcmp.ne.f32.partialorder %v3967_v27, %v3967_v27  ;;  %v3974_v57 = vmul.f32 16.0, %v3967_v27 }
 0x72d   : > { %vm13274_vm3 = vcmp.gt.f32.partialorder %v3971_v21, 29.0  ;;  %v13278_v19 = vsel %vm3973_vm0, -0.0, %v3974_v57 }
 0x72e   : > { %v17903_v11 = vsel %vm13274_vm3, 4294967295, %v17902_v11  ;;  %17905 = vst [vmem:[#allocation492_spill] sm:$0xff] %v13278_v19 }
 0x72f   : > { %17904 = vst [vmem:[#allocation491_spill] sm:$0xff] %v17903_v11 }
 0x730   : > { %3995 = vst [vmem:[#allocation128] sm:$0xff] %v11981_v29  ;;  %v17906_v22 = vmov 0 }
 0x737   : > { %v3997_v59 = vld [vmem:[#allocation128 + $0x6] sm:$0x3] }
 0x738   : > { %v3998_v25 = vunpack.c.0.f8e4m3b11 %v3997_v59 }
 0x73a   : > { %v4002_v28 = vand.u32 2147483647, %v3998_v25  ;;  %vm4004_vm8 = vcmp.ne.f32.partialorder %v3998_v25, %v3998_v25  ;;  %v4005_v61 = vmul.f32 16.0, %v3998_v25 }
 0x73c   : > { %vm13284_vm11 = vcmp.gt.f32.partialorder %v4002_v28, 29.0  ;;  %v13288_v21 = vsel %vm4004_vm8, -0.0, %v4005_v61 }
 0x73d   : > { %v17907_v22 = vsel %vm13284_vm11, 4294967295, %v17906_v22  ;;  %17909 = vst [vmem:[#allocation494_spill] sm:$0xff] %v13288_v21 }
 0x73e   : > { %17908 = vst [vmem:[#allocation493_spill] sm:$0xff] %v17907_v22 }
 0x73f   : > { %4026 = vst [vmem:[#allocation129] sm:$0xff] %v11984_v30  ;;  %v17910_v20 = vmov 0 }
 0x746   : > { %v4027_v57 = vld [vmem:[#allocation129] sm:$0x3] }
 0x747   : > { %v4028_v26 = vunpack.c.0.f8e4m3b11 %v4027_v57 }
 0x749   : > { %v4032_v29 = vand.u32 2147483647, %v4028_v26  ;;  %vm4034_vm0 = vcmp.ne.f32.partialorder %v4028_v26, %v4028_v26  ;;  %v4035_v59 = vmul.f32 16.0, %v4028_v26 }
 0x74b   : > { %vm13294_vm3 = vcmp.gt.f32.partialorder %v4032_v29, 29.0  ;;  %v13298_v25 = vsel %vm4034_vm0, -0.0, %v4035_v59 }
 0x74c   : > { %v17911_v20 = vsel %vm13294_vm3, 4294967295, %v17910_v20 }
 0x74d   : > { %4056 = vst [vmem:[#allocation130] sm:$0xff] %v11987_v31  ;;  %v17912_v22 = vmov 0 }
 0x754   : > { %v4057_v61 = vld [vmem:[#allocation130] sm:$0x3] }
 0x755   : > { %v4058_v27 = vunpack.c.0.f8e4m3b11 %v4057_v61 }
 0x757   : > { %v4062_v21 = vand.u32 2147483647, %v4058_v27  ;;  %vm4064_vm8 = vcmp.ne.f32.partialorder %v4058_v27, %v4058_v27  ;;  %v4065_v57 = vmul.f32 16.0, %v4058_v27 }
 0x759   : > { %vm13304_vm11 = vcmp.gt.f32.partialorder %v4062_v21, 29.0  ;;  %v13308_v26 = vsel %vm4064_vm8, -0.0, %v4065_v57 }
 0x75a   : > { %v17913_v22 = vsel %vm13304_vm11, 4294967295, %v17912_v22  ;;  %17915 = vst [vmem:[#allocation496_spill] sm:$0xff] %v13308_v26 }
 0x75b   : > { %17914 = vst [vmem:[#allocation495_spill] sm:$0xff] %v17913_v22 }
 0x75c   : > { %4086 = vst [vmem:[#allocation131] sm:$0xff] %v11984_v30  ;;  %v17916_v16 = vmov 0 }
 0x763   : > { %v4088_v59 = vld [vmem:[#allocation131 + $0x2] sm:$0x3] }
 0x764   : > { %v4089_v28 = vunpack.c.0.f8e4m3b11 %v4088_v59 }
 0x766   : > { %v4093_v23 = vand.u32 2147483647, %v4089_v28  ;;  %vm4095_vm0 = vcmp.ne.f32.partialorder %v4089_v28, %v4089_v28  ;;  %v4096_v61 = vmul.f32 16.0, %v4089_v28 }
 0x768   : > { %vm13314_vm3 = vcmp.gt.f32.partialorder %v4093_v23, 29.0  ;;  %v13318_v21 = vsel %vm4095_vm0, -0.0, %v4096_v61 }
 0x769   : > { %v17917_v16 = vsel %vm13314_vm3, 4294967295, %v17916_v16 }
 0x76a   : > { %4117 = vst [vmem:[#allocation132] sm:$0xff] %v11987_v31  ;;  %v17918_v22 = vmov 0 }
 0x771   : > { %v4119_v57 = vld [vmem:[#allocation132 + $0x2] sm:$0x3] }
 0x772   : > { %v4120_v29 = vunpack.c.0.f8e4m3b11 %v4119_v57 }
 0x774   : > { %v4124_v26 = vand.u32 2147483647, %v4120_v29  ;;  %vm4126_vm8 = vcmp.ne.f32.partialorder %v4120_v29, %v4120_v29  ;;  %v4127_v59 = vmul.f32 16.0, %v4120_v29 }
 0x776   : > { %vm13324_vm11 = vcmp.gt.f32.partialorder %v4124_v26, 29.0  ;;  %v13328_v23 = vsel %vm4126_vm8, -0.0, %v4127_v59 }
 0x777   : > { %v17919_v22 = vsel %vm13324_vm11, 4294967295, %v17918_v22  ;;  %17921 = vst [vmem:[#allocation498_spill] sm:$0xff] %v13328_v23 }
 0x778   : > { %17920 = vst [vmem:[#allocation497_spill] sm:$0xff] %v17919_v22 }
 0x779   : > { %4148 = vst [vmem:[#allocation133] sm:$0xff] %v11984_v30 }
 0x780   : > { %v4150_v61 = vld [vmem:[#allocation133 + $0x4] sm:$0x3] }
 0x781   : > { %v4151_v27 = vunpack.c.0.f8e4m3b11 %v4150_v61 }
 0x783   : > { %v4155_v19 = vand.u32 2147483647, %v4151_v27  ;;  %vm4157_vm0 = vcmp.ne.f32.partialorder %v4151_v27, %v4151_v27  ;;  %v4158_v57 = vmul.f32 16.0, %v4151_v27 }
 0x785   : > { %vm13334_vm3 = vcmp.gt.f32.partialorder %v4155_v19, 29.0  ;;  %v13338_v26 = vsel %vm4157_vm0, -0.0, %v4158_v57 }
 0x786   : > { %4179 = vst [vmem:[#allocation134] sm:$0xff] %v11987_v31  ;;  %v17924_v22 = vmov 0 }
 0x78d   : > { %v4181_v59 = vld [vmem:[#allocation134 + $0x4] sm:$0x3] }
 0x78e   : > { %v4182_v28 = vunpack.c.0.f8e4m3b11 %v4181_v59 }
 0x790   : > { %v4186_v23 = vand.u32 2147483647, %v4182_v28  ;;  %vm4188_vm8 = vcmp.ne.f32.partialorder %v4182_v28, %v4182_v28  ;;  %v4189_v61 = vmul.f32 16.0, %v4182_v28 }
 0x792   : > { %vm13344_vm11 = vcmp.gt.f32.partialorder %v4186_v23, 29.0  ;;  %v13348_v19 = vsel %vm4188_vm8, -0.0, %v4189_v61 }
 0x793   : > { %v17925_v22 = vsel %vm13344_vm11, 4294967295, %v17924_v22  ;;  %17927 = vst [vmem:[#allocation500_spill] sm:$0xff] %v13348_v19 }
 0x794   : > { %17926 = vst [vmem:[#allocation499_spill] sm:$0xff] %v17925_v22 }
 0x795   : > { %4210 = vst [vmem:[#allocation135] sm:$0xff] %v11984_v30 }
 0x79c   : > { %v4212_v57 = vld [vmem:[#allocation135 + $0x6] sm:$0x3] }
 0x79d   : > { %v4213_v29 = vunpack.c.0.f8e4m3b11 %v4212_v57 }
 0x79f   : > { %v4217_v24 = vand.u32 2147483647, %v4213_v29  ;;  %vm4219_vm0 = vcmp.ne.f32.partialorder %v4213_v29, %v4213_v29  ;;  %v4220_v59 = vmul.f32 16.0, %v4213_v29 }
 0x7a1   : > { %vm13354_vm7 = vcmp.gt.f32.partialorder %v4217_v24, 29.0  ;;  %v13358_v23 = vsel %vm4219_vm0, -0.0, %v4220_v59 }
 0x7a2   : > { %4241 = vst [vmem:[#allocation136] sm:$0xff] %v11987_v31  ;;  %v17930_v19 = vmov 0 }
 0x7a9   : > { %v4243_v61 = vld [vmem:[#allocation136 + $0x6] sm:$0x3] }
 0x7aa   : > { %v4244_v27 = vunpack.c.0.f8e4m3b11 %v4243_v61 }
 0x7ac   : > { %v4248_v30 = vand.u32 2147483647, %v4244_v27  ;;  %vm4250_vm8 = vcmp.ne.f32.partialorder %v4244_v27, %v4244_v27  ;;  %v4251_v57 = vmul.f32 16.0, %v4244_v27 }
 0x7ae   : > { %vm13364_vm11 = vcmp.gt.f32.partialorder %v4248_v30, 29.0  ;;  %v13368_v24 = vsel %vm4250_vm8, -0.0, %v4251_v57 }
 0x7af   : > { %v17931_v19 = vsel %vm13364_vm11, 4294967295, %v17930_v19  ;;  %17933 = vst [vmem:[#allocation502_spill] sm:$0xff] %v13368_v24 }
 0x7b0   : > { %17932 = vst [vmem:[#allocation501_spill] sm:$0xff] %v17931_v19 }
 0x7b1   : > { %4272 = vst [vmem:[#allocation137] sm:$0xff] %v11990_v32  ;;  %v17934_v22 = vmov 0 }
 0x7b8   : > { %v4273_v59 = vld [vmem:[#allocation137] sm:$0x3] }
 0x7b9   : > { %v4274_v28 = vunpack.c.0.f8e4m3b11 %v4273_v59 }
 0x7bb   : > { %v4278_v31 = vand.u32 2147483647, %v4274_v28  ;;  %vm4280_vm0 = vcmp.ne.f32.partialorder %v4274_v28, %v4274_v28  ;;  %v4281_v61 = vmul.f32 16.0, %v4274_v28 }
 0x7bd   : > { %vm13374_vm15 = vcmp.gt.f32.partialorder %v4278_v31, 29.0  ;;  %v13378_v27 = vsel %vm4280_vm0, -0.0, %v4281_v61 }
 0x7be   : > { %v17935_v22 = vsel %vm13374_vm15, 4294967295, %v17934_v22  ;;  %17937 = vst [vmem:[#allocation504_spill] sm:$0xff] %v13378_v27 }
 0x7bf   : > { %17936 = vst [vmem:[#allocation503_spill] sm:$0xff] %v17935_v22 }
 0x7c0   : > { %4302 = vst [vmem:[#allocation138] sm:$0xff] %v11993_v33  ;;  %v17938_v19 = vmov 0 }
 0x7c7   : > { %v4303_v57 = vld [vmem:[#allocation138] sm:$0x3] }
 0x7c8   : > { %v4304_v29 = vunpack.c.0.f8e4m3b11 %v4303_v57 }
 0x7ca   : > { %v4308_v24 = vand.u32 2147483647, %v4304_v29  ;;  %vm4310_vm8 = vcmp.ne.f32.partialorder %v4304_v29, %v4304_v29  ;;  %v4311_v59 = vmul.f32 16.0, %v4304_v29 }
 0x7cc   : > { %vm13384_vm11 = vcmp.gt.f32.partialorder %v4308_v24, 29.0  ;;  %v13388_v28 = vsel %vm4310_vm8, -0.0, %v4311_v59 }
 0x7cd   : > { %v17939_v19 = vsel %vm13384_vm11, 4294967295, %v17938_v19  ;;  %17941 = vst [vmem:[#allocation506_spill] sm:$0xff] %v13388_v28 }
 0x7ce   : > { %17940 = vst [vmem:[#allocation505_spill] sm:$0xff] %v17939_v19 }
 0x7cf   : > { %4332 = vst [vmem:[#allocation139] sm:$0xff] %v11990_v32  ;;  %v17942_v22 = vmov 0 }
 0x7d6   : > { %v4334_v61 = vld [vmem:[#allocation139 + $0x2] sm:$0x3] }
 0x7d7   : > { %v4335_v30 = vunpack.c.0.f8e4m3b11 %v4334_v61 }
 0x7d9   : > { %v4339_v27 = vand.u32 2147483647, %v4335_v30  ;;  %vm4341_vm0 = vcmp.ne.f32.partialorder %v4335_v30, %v4335_v30  ;;  %v4342_v57 = vmul.f32 16.0, %v4335_v30 }
 0x7db   : > { %vm13394_vm15 = vcmp.gt.f32.partialorder %v4339_v27, 29.0  ;;  %v13398_v24 = vsel %vm4341_vm0, -0.0, %v4342_v57 }
 0x7dc   : > { %v17943_v22 = vsel %vm13394_vm15, 4294967295, %v17942_v22  ;;  %17945 = vst [vmem:[#allocation508_spill] sm:$0xff] %v13398_v24 }
 0x7dd   : > { %17944 = vst [vmem:[#allocation507_spill] sm:$0xff] %v17943_v22 }
 0x7de   : > { %4363 = vst [vmem:[#allocation140] sm:$0xff] %v11993_v33  ;;  %v17946_v19 = vmov 0 }
 0x7e5   : > { %v4365_v59 = vld [vmem:[#allocation140 + $0x2] sm:$0x3] }
 0x7e6   : > { %v4366_v31 = vunpack.c.0.f8e4m3b11 %v4365_v59 }
 0x7e8   : > { %v4370_v28 = vand.u32 2147483647, %v4366_v31  ;;  %vm4372_vm8 = vcmp.ne.f32.partialorder %v4366_v31, %v4366_v31  ;;  %v4373_v61 = vmul.f32 16.0, %v4366_v31 }
 0x7ea   : > { %vm13404_vm11 = vcmp.gt.f32.partialorder %v4370_v28, 29.0  ;;  %v13408_v27 = vsel %vm4372_vm8, -0.0, %v4373_v61 }
 0x7eb   : > { %v17947_v19 = vsel %vm13404_vm11, 4294967295, %v17946_v19  ;;  %17949 = vst [vmem:[#allocation510_spill] sm:$0xff] %v13408_v27 }
 0x7ec   : > { %17948 = vst [vmem:[#allocation509_spill] sm:$0xff] %v17947_v19 }
 0x7ed   : > { %4394 = vst [vmem:[#allocation141] sm:$0xff] %v11990_v32  ;;  %v17950_v22 = vmov 0 }
 0x7f4   : > { %v4396_v57 = vld [vmem:[#allocation141 + $0x4] sm:$0x3] }
 0x7f5   : > { %v4397_v29 = vunpack.c.0.f8e4m3b11 %v4396_v57 }
 0x7f7   : > { %v4401_v24 = vand.u32 2147483647, %v4397_v29  ;;  %vm4403_vm0 = vcmp.ne.f32.partialorder %v4397_v29, %v4397_v29  ;;  %v4404_v59 = vmul.f32 16.0, %v4397_v29 }
 0x7f9   : > { %vm13414_vm15 = vcmp.gt.f32.partialorder %v4401_v24, 29.0  ;;  %v13418_v28 = vsel %vm4403_vm0, -0.0, %v4404_v59 }
 0x7fa   : > { %v17951_v22 = vsel %vm13414_vm15, 4294967295, %v17950_v22  ;;  %17953 = vst [vmem:[#allocation512_spill] sm:$0xff] %v13418_v28 }
 0x7fb   : > { %17952 = vst [vmem:[#allocation511_spill] sm:$0xff] %v17951_v22 }
 0x7fc   : > { %4425 = vst [vmem:[#allocation142] sm:$0xff] %v11993_v33  ;;  %v17954_v19 = vmov 0 }
 0x803   : > { %v4427_v61 = vld [vmem:[#allocation142 + $0x4] sm:$0x3] }
 0x804   : > { %v4428_v30 = vunpack.c.0.f8e4m3b11 %v4427_v61 }
 0x806   : > { %v4432_v27 = vand.u32 2147483647, %v4428_v30  ;;  %vm4434_vm8 = vcmp.ne.f32.partialorder %v4428_v30, %v4428_v30  ;;  %v4435_v57 = vmul.f32 16.0, %v4428_v30 }
 0x808   : > { %vm13424_vm11 = vcmp.gt.f32.partialorder %v4432_v27, 29.0  ;;  %v13428_v24 = vsel %vm4434_vm8, -0.0, %v4435_v57 }
 0x809   : > { %v17955_v19 = vsel %vm13424_vm11, 4294967295, %v17954_v19  ;;  %17957 = vst [vmem:[#allocation514_spill] sm:$0xff] %v13428_v24 }
 0x80a   : > { %17956 = vst [vmem:[#allocation513_spill] sm:$0xff] %v17955_v19 }
 0x80b   : > { %4456 = vst [vmem:[#allocation143] sm:$0xff] %v11990_v32  ;;  %v17958_v22 = vmov 0 }
 0x812   : > { %v4458_v59 = vld [vmem:[#allocation143 + $0x6] sm:$0x3] }
 0x813   : > { %v4459_v31 = vunpack.c.0.f8e4m3b11 %v4458_v59 }
 0x815   : > { %v4463_v28 = vand.u32 2147483647, %v4459_v31  ;;  %vm4465_vm0 = vcmp.ne.f32.partialorder %v4459_v31, %v4459_v31  ;;  %v4466_v61 = vmul.f32 16.0, %v4459_v31 }
 0x817   : > { %vm13434_vm15 = vcmp.gt.f32.partialorder %v4463_v28, 29.0  ;;  %v13438_v27 = vsel %vm4465_vm0, -0.0, %v4466_v61 }
 0x818   : > { %v17959_v22 = vsel %vm13434_vm15, 4294967295, %v17958_v22  ;;  %17961 = vst [vmem:[#allocation516_spill] sm:$0xff] %v13438_v27 }
 0x819   : > { %17960 = vst [vmem:[#allocation515_spill] sm:$0xff] %v17959_v22 }
 0x81a   : > { %4487 = vst [vmem:[#allocation144] sm:$0xff] %v11993_v33  ;;  %v17962_v24 = vmov 0 }
 0x821   : > { %v4489_v57 = vld [vmem:[#allocation144 + $0x6] sm:$0x3] }
 0x822   : > { %v4490_v29 = vunpack.c.0.f8e4m3b11 %v4489_v57 }
 0x824   : > { %v4494_v32 = vand.u32 2147483647, %v4490_v29  ;;  %vm4496_vm8 = vcmp.ne.f32.partialorder %v4490_v29, %v4490_v29  ;;  %v4497_v59 = vmul.f32 16.0, %v4490_v29 }
 0x826   : > { %vm13444_vm11 = vcmp.gt.f32.partialorder %v4494_v32, 29.0  ;;  %v13448_v28 = vsel %vm4496_vm8, -0.0, %v4497_v59 }
 0x827   : > { %v17963_v24 = vsel %vm13444_vm11, 4294967295, %v17962_v24  ;;  %17965 = vst [vmem:[#allocation518_spill] sm:$0xff] %v13448_v28 }
 0x828   : > { %17964 = vst [vmem:[#allocation517_spill] sm:$0xff] %v17963_v24 }
 0x829   : > { %4518 = vst [vmem:[#allocation145] sm:$0xff] %v11996_v34  ;;  %v17966_v19 = vmov 0 }
 0x830   : > { %v4519_v61 = vld [vmem:[#allocation145] sm:$0x3] }
 0x831   : > { %v4520_v30 = vunpack.c.0.f8e4m3b11 %v4519_v61 }
 0x833   : > { %v4524_v33 = vand.u32 2147483647, %v4520_v30  ;;  %vm4526_vm0 = vcmp.ne.f32.partialorder %v4520_v30, %v4520_v30  ;;  %v4527_v57 = vmul.f32 16.0, %v4520_v30 }
 0x835   : > { %vm13454_vm15 = vcmp.gt.f32.partialorder %v4524_v33, 29.0  ;;  %v13458_v29 = vsel %vm4526_vm0, -0.0, %v4527_v57 }
 0x836   : > { %v17967_v19 = vsel %vm13454_vm15, 4294967295, %v17966_v19  ;;  %17969 = vst [vmem:[#allocation520_spill] sm:$0xff] %v13458_v29 }
 0x837   : > { %17968 = vst [vmem:[#allocation519_spill] sm:$0xff] %v17967_v19 }
 0x838   : > { %4548 = vst [vmem:[#allocation146] sm:$0xff] %v11999_v35  ;;  %v17970_v24 = vmov 0 }
 0x83f   : > { %v4549_v59 = vld [vmem:[#allocation146] sm:$0x3] }
 0x840   : > { %v4550_v31 = vunpack.c.0.f8e4m3b11 %v4549_v59 }
 0x842   : > { %v4554_v28 = vand.u32 2147483647, %v4550_v31  ;;  %vm4556_vm8 = vcmp.ne.f32.partialorder %v4550_v31, %v4550_v31  ;;  %v4557_v61 = vmul.f32 16.0, %v4550_v31 }
 0x844   : > { %vm13464_vm11 = vcmp.gt.f32.partialorder %v4554_v28, 29.0  ;;  %v13468_v30 = vsel %vm4556_vm8, -0.0, %v4557_v61 }
 0x845   : > { %v17971_v24 = vsel %vm13464_vm11, 4294967295, %v17970_v24  ;;  %17973 = vst [vmem:[#allocation522_spill] sm:$0xff] %v13468_v30 }
 0x846   : > { %17972 = vst [vmem:[#allocation521_spill] sm:$0xff] %v17971_v24 }
 0x847   : > { %4578 = vst [vmem:[#allocation147] sm:$0xff] %v11996_v34  ;;  %v17974_v22 = vmov 0 }
 0x84e   : > { %v4580_v57 = vld [vmem:[#allocation147 + $0x2] sm:$0x3] }
 0x84f   : > { %v4581_v32 = vunpack.c.0.f8e4m3b11 %v4580_v57 }
 0x851   : > { %v4585_v27 = vand.u32 2147483647, %v4581_v32  ;;  %vm4587_vm0 = vcmp.ne.f32.partialorder %v4581_v32, %v4581_v32  ;;  %v4588_v59 = vmul.f32 16.0, %v4581_v32 }
 0x853   : > { %vm13474_vm15 = vcmp.gt.f32.partialorder %v4585_v27, 29.0  ;;  %v13478_v28 = vsel %vm4587_vm0, -0.0, %v4588_v59 }
 0x854   : > { %v17975_v22 = vsel %vm13474_vm15, 4294967295, %v17974_v22  ;;  %17977 = vst [vmem:[#allocation524_spill] sm:$0xff] %v13478_v28 }
 0x855   : > { %17976 = vst [vmem:[#allocation523_spill] sm:$0xff] %v17975_v22 }
 0x856   : > { %4609 = vst [vmem:[#allocation148] sm:$0xff] %v11999_v35  ;;  %v17978_v24 = vmov 0 }
 0x85d   : > { %v4611_v61 = vld [vmem:[#allocation148 + $0x2] sm:$0x3] }
 0x85e   : > { %v4612_v33 = vunpack.c.0.f8e4m3b11 %v4611_v61 }
 0x860   : > { %v4616_v30 = vand.u32 2147483647, %v4612_v33  ;;  %vm4618_vm8 = vcmp.ne.f32.partialorder %v4612_v33, %v4612_v33  ;;  %v4619_v57 = vmul.f32 16.0, %v4612_v33 }
 0x862   : > { %vm13484_vm11 = vcmp.gt.f32.partialorder %v4616_v30, 29.0  ;;  %v13488_v27 = vsel %vm4618_vm8, -0.0, %v4619_v57 }
 0x863   : > { %v17979_v24 = vsel %vm13484_vm11, 4294967295, %v17978_v24  ;;  %17981 = vst [vmem:[#allocation526_spill] sm:$0xff] %v13488_v27 }
 0x864   : > { %17980 = vst [vmem:[#allocation525_spill] sm:$0xff] %v17979_v24 }
 0x865   : > { %4640 = vst [vmem:[#allocation149] sm:$0xff] %v11996_v34  ;;  %v17982_v22 = vmov 0 }
 0x86c   : > { %v4642_v59 = vld [vmem:[#allocation149 + $0x4] sm:$0x3] }
 0x86d   : > { %v4643_v31 = vunpack.c.0.f8e4m3b11 %v4642_v59 }
 0x86f   : > { %v4647_v28 = vand.u32 2147483647, %v4643_v31  ;;  %vm4649_vm0 = vcmp.ne.f32.partialorder %v4643_v31, %v4643_v31  ;;  %v4650_v61 = vmul.f32 16.0, %v4643_v31 }
 0x871   : > { %vm13494_vm15 = vcmp.gt.f32.partialorder %v4647_v28, 29.0  ;;  %v13498_v30 = vsel %vm4649_vm0, -0.0, %v4650_v61 }
 0x872   : > { %v17983_v22 = vsel %vm13494_vm15, 4294967295, %v17982_v22  ;;  %17985 = vst [vmem:[#allocation528_spill] sm:$0xff] %v13498_v30 }
 0x873   : > { %17984 = vst [vmem:[#allocation527_spill] sm:$0xff] %v17983_v22 }
 0x874   : > { %4671 = vst [vmem:[#allocation150] sm:$0xff] %v11999_v35  ;;  %v17986_v24 = vmov 0 }
 0x87b   : > { %v4673_v57 = vld [vmem:[#allocation150 + $0x4] sm:$0x3] }
 0x87c   : > { %v4674_v32 = vunpack.c.0.f8e4m3b11 %v4673_v57 }
 0x87e   : > { %v4678_v27 = vand.u32 2147483647, %v4674_v32  ;;  %vm4680_vm8 = vcmp.ne.f32.partialorder %v4674_v32, %v4674_v32  ;;  %v4681_v59 = vmul.f32 16.0, %v4674_v32 }
 0x880   : > { %vm13504_vm11 = vcmp.gt.f32.partialorder %v4678_v27, 29.0  ;;  %v13508_v28 = vsel %vm4680_vm8, -0.0, %v4681_v59 }
 0x881   : > { %v17987_v24 = vsel %vm13504_vm11, 4294967295, %v17986_v24  ;;  %17989 = vst [vmem:[#allocation530_spill] sm:$0xff] %v13508_v28 }
 0x882   : > { %17988 = vst [vmem:[#allocation529_spill] sm:$0xff] %v17987_v24 }
 0x883   : > { %4702 = vst [vmem:[#allocation151] sm:$0xff] %v11996_v34  ;;  %v17990_v19 = vmov 0 }
 0x88a   : > { %v4704_v61 = vld [vmem:[#allocation151 + $0x6] sm:$0x3] }
 0x88b   : > { %v4705_v33 = vunpack.c.0.f8e4m3b11 %v4704_v61 }
 0x88d   : > { %v4709_v29 = vand.u32 2147483647, %v4705_v33  ;;  %vm4711_vm0 = vcmp.ne.f32.partialorder %v4705_v33, %v4705_v33  ;;  %v4712_v57 = vmul.f32 16.0, %v4705_v33 }
 0x88f   : > { %vm13514_vm15 = vcmp.gt.f32.partialorder %v4709_v29, 29.0  ;;  %v13518_v27 = vsel %vm4711_vm0, -0.0, %v4712_v57 }
 0x890   : > { %v17991_v19 = vsel %vm13514_vm15, 4294967295, %v17990_v19  ;;  %17993 = vst [vmem:[#allocation532_spill] sm:$0xff] %v13518_v27 }
 0x891   : > { %17992 = vst [vmem:[#allocation531_spill] sm:$0xff] %v17991_v19 }
 0x892   : > { %4733 = vst [vmem:[#allocation152] sm:$0xff] %v11999_v35  ;;  %v17994_v28 = vmov 0 }
 0x899   : > { %v4735_v59 = vld [vmem:[#allocation152 + $0x6] sm:$0x3] }
 0x89a   : > { %v4736_v31 = vunpack.c.0.f8e4m3b11 %v4735_v59 }
 0x89c   : > { %v4740_v34 = vand.u32 2147483647, %v4736_v31  ;;  %vm4742_vm8 = vcmp.ne.f32.partialorder %v4736_v31, %v4736_v31  ;;  %v4743_v61 = vmul.f32 16.0, %v4736_v31 }
 0x89e   : > { %vm13524_vm11 = vcmp.gt.f32.partialorder %v4740_v34, 29.0  ;;  %v13528_v29 = vsel %vm4742_vm8, -0.0, %v4743_v61 }
 0x89f   : > { %v17995_v28 = vsel %vm13524_vm11, 4294967295, %v17994_v28  ;;  %17997 = vst [vmem:[#allocation534_spill] sm:$0xff] %v13528_v29 }
 0x8a0   : > { %17996 = vst [vmem:[#allocation533_spill] sm:$0xff] %v17995_v28 }
 0x8a1   : > { %4764 = vst [vmem:[#allocation153] sm:$0xff] %v12002_v36  ;;  %v17998_v24 = vmov 0 }
 0x8a8   : > { %v4765_v57 = vld [vmem:[#allocation153] sm:$0x3] }
 0x8a9   : > { %v4766_v32 = vunpack.c.0.f8e4m3b11 %v4765_v57 }
 0x8ab   : > { %v4770_v35 = vand.u32 2147483647, %v4766_v32  ;;  %vm4772_vm0 = vcmp.ne.f32.partialorder %v4766_v32, %v4766_v32  ;;  %v4773_v59 = vmul.f32 16.0, %v4766_v32 }
 0x8ad   : > { %vm13534_vm15 = vcmp.gt.f32.partialorder %v4770_v35, 29.0  ;;  %v13538_v31 = vsel %vm4772_vm0, -0.0, %v4773_v59 }
 0x8ae   : > { %v17999_v24 = vsel %vm13534_vm15, 4294967295, %v17998_v24  ;;  %18001 = vst [vmem:[#allocation536_spill] sm:$0xff] %v13538_v31 }
 0x8af   : > { %18000 = vst [vmem:[#allocation535_spill] sm:$0xff] %v17999_v24 }
 0x8b0   : > { %4794 = vst [vmem:[#allocation154] sm:$0xff] %v12005_v37  ;;  %v18002_v28 = vmov 0 }
 0x8b7   : > { %v4795_v61 = vld [vmem:[#allocation154] sm:$0x3] }
 0x8b8   : > { %v4796_v33 = vunpack.c.0.f8e4m3b11 %v4795_v61 }
 0x8ba   : > { %v4800_v29 = vand.u32 2147483647, %v4796_v33  ;;  %vm4802_vm8 = vcmp.ne.f32.partialorder %v4796_v33, %v4796_v33  ;;  %v4803_v57 = vmul.f32 16.0, %v4796_v33 }
 0x8bc   : > { %vm13544_vm11 = vcmp.gt.f32.partialorder %v4800_v29, 29.0  ;;  %v13548_v32 = vsel %vm4802_vm8, -0.0, %v4803_v57 }
 0x8bd   : > { %v18003_v28 = vsel %vm13544_vm11, 4294967295, %v18002_v28  ;;  %18005 = vst [vmem:[#allocation538_spill] sm:$0xff] %v13548_v32 }
 0x8be   : > { %18004 = vst [vmem:[#allocation537_spill] sm:$0xff] %v18003_v28 }
 0x8bf   : > { %4824 = vst [vmem:[#allocation155] sm:$0xff] %v12002_v36  ;;  %v18006_v19 = vmov 0 }
 0x8c6   : > { %v4826_v59 = vld [vmem:[#allocation155 + $0x2] sm:$0x3] }
 0x8c7   : > { %v4827_v34 = vunpack.c.0.f8e4m3b11 %v4826_v59 }
 0x8c9   : > { %v4831_v27 = vand.u32 2147483647, %v4827_v34  ;;  %vm4833_vm0 = vcmp.ne.f32.partialorder %v4827_v34, %v4827_v34  ;;  %v4834_v61 = vmul.f32 16.0, %v4827_v34 }
 0x8cb   : > { %vm13554_vm15 = vcmp.gt.f32.partialorder %v4831_v27, 29.0  ;;  %v13558_v29 = vsel %vm4833_vm0, -0.0, %v4834_v61 }
 0x8cc   : > { %v18007_v19 = vsel %vm13554_vm15, 4294967295, %v18006_v19  ;;  %18009 = vst [vmem:[#allocation540_spill] sm:$0xff] %v13558_v29 }
 0x8cd   : > { %18008 = vst [vmem:[#allocation539_spill] sm:$0xff] %v18007_v19 }
 0x8ce   : > { %4855 = vst [vmem:[#allocation156] sm:$0xff] %v12005_v37  ;;  %v18010_v28 = vmov 0 }
 0x8d5   : > { %v4857_v57 = vld [vmem:[#allocation156 + $0x2] sm:$0x3] }
 0x8d6   : > { %v4858_v35 = vunpack.c.0.f8e4m3b11 %v4857_v57 }
 0x8d8   : > { %v4862_v32 = vand.u32 2147483647, %v4858_v35  ;;  %vm4864_vm8 = vcmp.ne.f32.partialorder %v4858_v35, %v4858_v35  ;;  %v4865_v59 = vmul.f32 16.0, %v4858_v35 }
 0x8da   : > { %vm13564_vm11 = vcmp.gt.f32.partialorder %v4862_v32, 29.0  ;;  %v13568_v27 = vsel %vm4864_vm8, -0.0, %v4865_v59 }
 0x8db   : > { %v18011_v28 = vsel %vm13564_vm11, 4294967295, %v18010_v28  ;;  %18013 = vst [vmem:[#allocation542_spill] sm:$0xff] %v13568_v27 }
 0x8dc   : > { %18012 = vst [vmem:[#allocation541_spill] sm:$0xff] %v18011_v28 }
 0x8dd   : > { %4886 = vst [vmem:[#allocation157] sm:$0xff] %v12002_v36  ;;  %v18014_v22 = vmov 0 }
 0x8e4   : > { %v4888_v61 = vld [vmem:[#allocation157 + $0x4] sm:$0x3] }
 0x8e5   : > { %v4889_v33 = vunpack.c.0.f8e4m3b11 %v4888_v61 }
 0x8e7   : > { %v4893_v30 = vand.u32 2147483647, %v4889_v33  ;;  %vm4895_vm0 = vcmp.ne.f32.partialorder %v4889_v33, %v4889_v33  ;;  %v4896_v57 = vmul.f32 16.0, %v4889_v33 }
 0x8e9   : > { %vm13574_vm15 = vcmp.gt.f32.partialorder %v4893_v30, 29.0  ;;  %v13578_v32 = vsel %vm4895_vm0, -0.0, %v4896_v57 }
 0x8ea   : > { %v18015_v22 = vsel %vm13574_vm15, 4294967295, %v18014_v22  ;;  %18017 = vst [vmem:[#allocation544_spill] sm:$0xff] %v13578_v32 }
 0x8eb   : > { %18016 = vst [vmem:[#allocation543_spill] sm:$0xff] %v18015_v22 }
 0x8ec   : > { %4917 = vst [vmem:[#allocation158] sm:$0xff] %v12005_v37  ;;  %v18018_v28 = vmov 0 }
 0x8f3   : > { %v4919_v59 = vld [vmem:[#allocation158 + $0x4] sm:$0x3] }
 0x8f4   : > { %v4920_v34 = vunpack.c.0.f8e4m3b11 %v4919_v59 }
 0x8f6   : > { %v4924_v27 = vand.u32 2147483647, %v4920_v34  ;;  %vm4926_vm8 = vcmp.ne.f32.partialorder %v4920_v34, %v4920_v34  ;;  %v4927_v61 = vmul.f32 16.0, %v4920_v34 }
 0x8f8   : > { %vm13584_vm11 = vcmp.gt.f32.partialorder %v4924_v27, 29.0  ;;  %v13588_v30 = vsel %vm4926_vm8, -0.0, %v4927_v61 }
 0x8f9   : > { %v18019_v28 = vsel %vm13584_vm11, 4294967295, %v18018_v28  ;;  %18021 = vst [vmem:[#allocation546_spill] sm:$0xff] %v13588_v30 }
 0x8fa   : > { %18020 = vst [vmem:[#allocation545_spill] sm:$0xff] %v18019_v28 }
 0x8fb   : > { %4948 = vst [vmem:[#allocation159] sm:$0xff] %v12002_v36  ;;  %v18022_v19 = vmov 0 }
 0x902   : > { %v4950_v57 = vld [vmem:[#allocation159 + $0x6] sm:$0x3] }
 0x903   : > { %v4951_v35 = vunpack.c.0.f8e4m3b11 %v4950_v57 }
 0x905   : > { %v4955_v29 = vand.u32 2147483647, %v4951_v35  ;;  %vm4957_vm0 = vcmp.ne.f32.partialorder %v4951_v35, %v4951_v35  ;;  %v4958_v59 = vmul.f32 16.0, %v4951_v35 }
 0x907   : > { %vm13594_vm15 = vcmp.gt.f32.partialorder %v4955_v29, 29.0  ;;  %v13598_v27 = vsel %vm4957_vm0, -0.0, %v4958_v59 }
 0x908   : > { %v18023_v19 = vsel %vm13594_vm15, 4294967295, %v18022_v19  ;;  %18025 = vst [vmem:[#allocation548_spill] sm:$0xff] %v13598_v27 }
 0x909   : > { %18024 = vst [vmem:[#allocation547_spill] sm:$0xff] %v18023_v19 }
 0x90a   : > { %4979 = vst [vmem:[#allocation160] sm:$0xff] %v12005_v37  ;;  %v18026_v30 = vmov 0 }
 0x911   : > { %v4981_v61 = vld [vmem:[#allocation160 + $0x6] sm:$0x3] }
 0x912   : > { %v4982_v33 = vunpack.c.0.f8e4m3b11 %v4981_v61 }
 0x914   : > { %v4986_v36 = vand.u32 2147483647, %v4982_v33  ;;  %vm4988_vm8 = vcmp.ne.f32.partialorder %v4982_v33, %v4982_v33  ;;  %v4989_v57 = vmul.f32 16.0, %v4982_v33 }
 0x916   : > { %vm13604_vm11 = vcmp.gt.f32.partialorder %v4986_v36, 29.0  ;;  %v13608_v29 = vsel %vm4988_vm8, -0.0, %v4989_v57 }
 0x917   : > { %v18027_v30 = vsel %vm13604_vm11, 4294967295, %v18026_v30  ;;  %18029 = vst [vmem:[#allocation550_spill] sm:$0xff] %v13608_v29 }
 0x918   : > { %18028 = vst [vmem:[#allocation549_spill] sm:$0xff] %v18027_v30 }
 0x919   : > { %5010 = vst [vmem:[#allocation161] sm:$0xff] %v12008_v38  ;;  %v18030_v28 = vmov 0 }
 0x920   : > { %v5011_v59 = vld [vmem:[#allocation161] sm:$0x3] }
 0x921   : > { %v5012_v34 = vunpack.c.0.f8e4m3b11 %v5011_v59 }
 0x923   : > { %v5016_v37 = vand.u32 2147483647, %v5012_v34  ;;  %vm5018_vm0 = vcmp.ne.f32.partialorder %v5012_v34, %v5012_v34  ;;  %v5019_v61 = vmul.f32 16.0, %v5012_v34 }
 0x925   : > { %vm13614_vm15 = vcmp.gt.f32.partialorder %v5016_v37, 29.0  ;;  %v13618_v33 = vsel %vm5018_vm0, -0.0, %v5019_v61 }
 0x926   : > { %v18031_v28 = vsel %vm13614_vm15, 4294967295, %v18030_v28  ;;  %18032 = vst [vmem:[#allocation551_spill] sm:$0xff] %v13618_v33 }
 0x927   : > { %5040 = vst [vmem:[#allocation162] sm:$0xff] %v12011_v39  ;;  %v18033_v30 = vmov 0 }
 0x92e   : > { %v5041_v57 = vld [vmem:[#allocation162] sm:$0x3] }
 0x92f   : > { %v5042_v35 = vunpack.c.0.f8e4m3b11 %v5041_v57 }
 0x931   : > { %v5046_v29 = vand.u32 2147483647, %v5042_v35  ;;  %vm5048_vm8 = vcmp.ne.f32.partialorder %v5042_v35, %v5042_v35  ;;  %v5049_v59 = vmul.f32 16.0, %v5042_v35 }
 0x933   : > { %vm13624_vm11 = vcmp.gt.f32.partialorder %v5046_v29, 29.0  ;;  %v13628_v34 = vsel %vm5048_vm8, -0.0, %v5049_v59 }
 0x934   : > { %v18034_v30 = vsel %vm13624_vm11, 4294967295, %v18033_v30  ;;  %18036 = vst [vmem:[#allocation553_spill] sm:$0xff] %v13628_v34 }
 0x935   : > { %18035 = vst [vmem:[#allocation552_spill] sm:$0xff] %v18034_v30 }
 0x936   : > { %5070 = vst [vmem:[#allocation163] sm:$0xff] %v12008_v38  ;;  %v18037_v24 = vmov 0 }
 0x93d   : > { %v5072_v61 = vld [vmem:[#allocation163 + $0x2] sm:$0x3] }
 0x93e   : > { %v5073_v36 = vunpack.c.0.f8e4m3b11 %v5072_v61 }
 0x940   : > { %v5077_v31 = vand.u32 2147483647, %v5073_v36  ;;  %vm5079_vm0 = vcmp.ne.f32.partialorder %v5073_v36, %v5073_v36  ;;  %v5080_v57 = vmul.f32 16.0, %v5073_v36 }
 0x942   : > { %vm13634_vm15 = vcmp.gt.f32.partialorder %v5077_v31, 29.0  ;;  %v13638_v29 = vsel %vm5079_vm0, -0.0, %v5080_v57 }
 0x943   : > { %v18038_v24 = vsel %vm13634_vm15, 4294967295, %v18037_v24  ;;  %18040 = vst [vmem:[#allocation555_spill] sm:$0xff] %v13638_v29 }
 0x944   : > { %18039 = vst [vmem:[#allocation554_spill] sm:$0xff] %v18038_v24 }
 0x945   : > { %5101 = vst [vmem:[#allocation164] sm:$0xff] %v12011_v39  ;;  %v18041_v30 = vmov 0 }
 0x94c   : > { %v5103_v59 = vld [vmem:[#allocation164 + $0x2] sm:$0x3] }
 0x94d   : > { %v5104_v37 = vunpack.c.0.f8e4m3b11 %v5103_v59 }
 0x94f   : > { %v5108_v34 = vand.u32 2147483647, %v5104_v37  ;;  %vm5110_vm8 = vcmp.ne.f32.partialorder %v5104_v37, %v5104_v37  ;;  %v5111_v61 = vmul.f32 16.0, %v5104_v37 }
 0x951   : > { %vm13644_vm11 = vcmp.gt.f32.partialorder %v5108_v34, 29.0  ;;  %v13648_v31 = vsel %vm5110_vm8, -0.0, %v5111_v61 }
 0x952   : > { %v18042_v30 = vsel %vm13644_vm11, 4294967295, %v18041_v30  ;;  %18044 = vst [vmem:[#allocation557_spill] sm:$0xff] %v13648_v31 }
 0x953   : > { %18043 = vst [vmem:[#allocation556_spill] sm:$0xff] %v18042_v30 }
 0x954   : > { %5132 = vst [vmem:[#allocation165] sm:$0xff] %v12008_v38  ;;  %v18045_v19 = vmov 0 }
 0x95b   : > { %v5134_v57 = vld [vmem:[#allocation165 + $0x4] sm:$0x3] }
 0x95c   : > { %v5135_v35 = vunpack.c.0.f8e4m3b11 %v5134_v57 }
 0x95e   : > { %v5139_v27 = vand.u32 2147483647, %v5135_v35  ;;  %vm5141_vm0 = vcmp.ne.f32.partialorder %v5135_v35, %v5135_v35  ;;  %v5142_v59 = vmul.f32 16.0, %v5135_v35 }
 0x960   : > { %vm13654_vm15 = vcmp.gt.f32.partialorder %v5139_v27, 29.0  ;;  %v13658_v34 = vsel %vm5141_vm0, -0.0, %v5142_v59 }
 0x961   : > { %v18046_v19 = vsel %vm13654_vm15, 4294967295, %v18045_v19 }
 0x962   : > { %5163 = vst [vmem:[#allocation166] sm:$0xff] %v12011_v39  ;;  %v18047_v30 = vmov 0 }
 0x969   : > { %v5165_v61 = vld [vmem:[#allocation166 + $0x4] sm:$0x3] }
 0x96a   : > { %v5166_v36 = vunpack.c.0.f8e4m3b11 %v5165_v61 }
 0x96c   : > { %v5170_v31 = vand.u32 2147483647, %v5166_v36  ;;  %vm5172_vm8 = vcmp.ne.f32.partialorder %v5166_v36, %v5166_v36  ;;  %v5173_v57 = vmul.f32 16.0, %v5166_v36 }
 0x96e   : > { %vm13664_vm11 = vcmp.gt.f32.partialorder %v5170_v31, 29.0  ;;  %v13668_v27 = vsel %vm5172_vm8, -0.0, %v5173_v57 }
 0x96f   : > { %v18048_v30 = vsel %vm13664_vm11, 4294967295, %v18047_v30  ;;  %18050 = vst [vmem:[#allocation559_spill] sm:$0xff] %v13668_v27 }
 0x970   : > { %18049 = vst [vmem:[#allocation558_spill] sm:$0xff] %v18048_v30 }
 0x971   : > { %5194 = vst [vmem:[#allocation167] sm:$0xff] %v12008_v38  ;;  %v18051_v22 = vmov 0 }
 0x978   : > { %v5196_v59 = vld [vmem:[#allocation167 + $0x6] sm:$0x3] }
 0x979   : > { %v5197_v37 = vunpack.c.0.f8e4m3b11 %v5196_v59 }
 0x97b   : > { %v5201_v32 = vand.u32 2147483647, %v5197_v37  ;;  %vm5203_vm0 = vcmp.ne.f32.partialorder %v5197_v37, %v5197_v37  ;;  %v5204_v61 = vmul.f32 16.0, %v5197_v37 }
 0x97d   : > { %vm13674_vm15 = vcmp.gt.f32.partialorder %v5201_v32, 29.0  ;;  %v13678_v31 = vsel %vm5203_vm0, -0.0, %v5204_v61 }
 0x97e   : > { %v18052_v22 = vsel %vm13674_vm15, 4294967295, %v18051_v22 }
 0x97f   : > { %5225 = vst [vmem:[#allocation168] sm:$0xff] %v12011_v39  ;;  %v18053_v27 = vmov 0 }
 0x986   : > { %v5227_v57 = vld [vmem:[#allocation168 + $0x6] sm:$0x3] }
 0x987   : > { %v5228_v35 = vunpack.c.0.f8e4m3b11 %v5227_v57 }
 0x989   : > { %v5232_v38 = vand.u32 2147483647, %v5228_v35  ;;  %vm5234_vm8 = vcmp.ne.f32.partialorder %v5228_v35, %v5228_v35  ;;  %v5235_v59 = vmul.f32 16.0, %v5228_v35 }
 0x98b   : > { %vm13684_vm11 = vcmp.gt.f32.partialorder %v5232_v38, 29.0  ;;  %v13688_v32 = vsel %vm5234_vm8, -0.0, %v5235_v59 }
 0x98c   : > { %v18054_v27 = vsel %vm13684_vm11, 4294967295, %v18053_v27  ;;  %18056 = vst [vmem:[#allocation561_spill] sm:$0xff] %v13688_v32 }
 0x98d   : > { %18055 = vst [vmem:[#allocation560_spill] sm:$0xff] %v18054_v27 }
 0x98e   : > { %5256 = vst [vmem:[#allocation169] sm:$0xff] %v12014_v40  ;;  %v18057_v30 = vmov 0 }
 0x995   : > { %v5257_v61 = vld [vmem:[#allocation169] sm:$0x3] }
 0x996   : > { %v5258_v36 = vunpack.c.0.f8e4m3b11 %v5257_v61 }
 0x998   : > { %v5262_v39 = vand.u32 2147483647, %v5258_v36  ;;  %vm5264_vm0 = vcmp.ne.f32.partialorder %v5258_v36, %v5258_v36  ;;  %v5265_v57 = vmul.f32 16.0, %v5258_v36 }
 0x99a   : > { %vm13694_vm15 = vcmp.gt.f32.partialorder %v5262_v39, 29.0  ;;  %v13698_v35 = vsel %vm5264_vm0, -0.0, %v5265_v57 }
 0x99b   : > { %v18058_v30 = vsel %vm13694_vm15, 4294967295, %v18057_v30  ;;  %18060 = vst [vmem:[#allocation563_spill] sm:$0xff] %v13698_v35 }
 0x99c   : > { %18059 = vst [vmem:[#allocation562_spill] sm:$0xff] %v18058_v30 }
 0x99d   : > { %5286 = vst [vmem:[#allocation170] sm:$0xff] %v12017_v41  ;;  %v18061_v27 = vmov 0 }
 0x9a4   : > { %v5287_v59 = vld [vmem:[#allocation170] sm:$0x3] }
 0x9a5   : > { %v5288_v37 = vunpack.c.0.f8e4m3b11 %v5287_v59 }
 0x9a7   : > { %v5292_v32 = vand.u32 2147483647, %v5288_v37  ;;  %vm5294_vm8 = vcmp.ne.f32.partialorder %v5288_v37, %v5288_v37  ;;  %v5295_v61 = vmul.f32 16.0, %v5288_v37 }
 0x9a9   : > { %vm13704_vm11 = vcmp.gt.f32.partialorder %v5292_v32, 29.0  ;;  %v13708_v36 = vsel %vm5294_vm8, -0.0, %v5295_v61 }
 0x9aa   : > { %v18062_v27 = vsel %vm13704_vm11, 4294967295, %v18061_v27  ;;  %18064 = vst [vmem:[#allocation565_spill] sm:$0xff] %v13708_v36 }
 0x9ab   : > { %18063 = vst [vmem:[#allocation564_spill] sm:$0xff] %v18062_v27 }
 0x9ac   : > { %5316 = vst [vmem:[#allocation171] sm:$0xff] %v12014_v40  ;;  %v18065_v30 = vmov 0 }
 0x9b3   : > { %v5318_v57 = vld [vmem:[#allocation171 + $0x2] sm:$0x3] }
 0x9b4   : > { %v5319_v38 = vunpack.c.0.f8e4m3b11 %v5318_v57 }
 0x9b6   : > { %v5323_v35 = vand.u32 2147483647, %v5319_v38  ;;  %vm5325_vm0 = vcmp.ne.f32.partialorder %v5319_v38, %v5319_v38  ;;  %v5326_v59 = vmul.f32 16.0, %v5319_v38 }
 0x9b8   : > { %vm13714_vm15 = vcmp.gt.f32.partialorder %v5323_v35, 29.0  ;;  %v13718_v32 = vsel %vm5325_vm0, -0.0, %v5326_v59 }
 0x9b9   : > { %v18066_v30 = vsel %vm13714_vm15, 4294967295, %v18065_v30  ;;  %18068 = vst [vmem:[#allocation567_spill] sm:$0xff] %v13718_v32 }
 0x9ba   : > { %18067 = vst [vmem:[#allocation566_spill] sm:$0xff] %v18066_v30 }
 0x9bb   : > { %5347 = vst [vmem:[#allocation172] sm:$0xff] %v12017_v41  ;;  %v18069_v27 = vmov 0 }
 0x9c2   : > { %v5349_v61 = vld [vmem:[#allocation172 + $0x2] sm:$0x3] }
 0x9c3   : > { %v5350_v39 = vunpack.c.0.f8e4m3b11 %v5349_v61 }
 0x9c5   : > { %v5354_v36 = vand.u32 2147483647, %v5350_v39  ;;  %vm5356_vm8 = vcmp.ne.f32.partialorder %v5350_v39, %v5350_v39  ;;  %v5357_v57 = vmul.f32 16.0, %v5350_v39 }
 0x9c7   : > { %vm13724_vm11 = vcmp.gt.f32.partialorder %v5354_v36, 29.0  ;;  %v13728_v35 = vsel %vm5356_vm8, -0.0, %v5357_v57 }
 0x9c8   : > { %v18070_v27 = vsel %vm13724_vm11, 4294967295, %v18069_v27  ;;  %18072 = vst [vmem:[#allocation569_spill] sm:$0xff] %v13728_v35 }
 0x9c9   : > { %18071 = vst [vmem:[#allocation568_spill] sm:$0xff] %v18070_v27 }
 0x9ca   : > { %5378 = vst [vmem:[#allocation173] sm:$0xff] %v12014_v40  ;;  %v18073_v30 = vmov 0 }
 0x9d1   : > { %v5380_v59 = vld [vmem:[#allocation173 + $0x4] sm:$0x3] }
 0x9d2   : > { %v5381_v37 = vunpack.c.0.f8e4m3b11 %v5380_v59 }
 0x9d4   : > { %v5385_v32 = vand.u32 2147483647, %v5381_v37  ;;  %vm5387_vm0 = vcmp.ne.f32.partialorder %v5381_v37, %v5381_v37  ;;  %v5388_v61 = vmul.f32 16.0, %v5381_v37 }
 0x9d6   : > { %vm13734_vm15 = vcmp.gt.f32.partialorder %v5385_v32, 29.0  ;;  %v13738_v36 = vsel %vm5387_vm0, -0.0, %v5388_v61 }
 0x9d7   : > { %v18074_v30 = vsel %vm13734_vm15, 4294967295, %v18073_v30  ;;  %18076 = vst [vmem:[#allocation571_spill] sm:$0xff] %v13738_v36 }
 0x9d8   : > { %18075 = vst [vmem:[#allocation570_spill] sm:$0xff] %v18074_v30 }
 0x9d9   : > { %5409 = vst [vmem:[#allocation174] sm:$0xff] %v12017_v41  ;;  %v18077_v27 = vmov 0 }
 0x9e0   : > { %v5411_v57 = vld [vmem:[#allocation174 + $0x4] sm:$0x3] }
 0x9e1   : > { %v5412_v38 = vunpack.c.0.f8e4m3b11 %v5411_v57 }
 0x9e3   : > { %v5416_v35 = vand.u32 2147483647, %v5412_v38  ;;  %vm5418_vm8 = vcmp.ne.f32.partialorder %v5412_v38, %v5412_v38  ;;  %v5419_v59 = vmul.f32 16.0, %v5412_v38 }
 0x9e5   : > { %vm13744_vm11 = vcmp.gt.f32.partialorder %v5416_v35, 29.0  ;;  %v13748_v32 = vsel %vm5418_vm8, -0.0, %v5419_v59 }
 0x9e6   : > { %v18078_v27 = vsel %vm13744_vm11, 4294967295, %v18077_v27  ;;  %18080 = vst [vmem:[#allocation573_spill] sm:$0xff] %v13748_v32 }
 0x9e7   : > { %18079 = vst [vmem:[#allocation572_spill] sm:$0xff] %v18078_v27 }
 0x9e8   : > { %5440 = vst [vmem:[#allocation175] sm:$0xff] %v12014_v40  ;;  %v18081_v30 = vmov 0 }
 0x9ef   : > { %v5442_v61 = vld [vmem:[#allocation175 + $0x6] sm:$0x3] }
 0x9f0   : > { %v5443_v39 = vunpack.c.0.f8e4m3b11 %v5442_v61 }
 0x9f2   : > { %v5447_v36 = vand.u32 2147483647, %v5443_v39  ;;  %vm5449_vm0 = vcmp.ne.f32.partialorder %v5443_v39, %v5443_v39  ;;  %v5450_v57 = vmul.f32 16.0, %v5443_v39 }
 0x9f4   : > { %vm13754_vm15 = vcmp.gt.f32.partialorder %v5447_v36, 29.0  ;;  %v13758_v35 = vsel %vm5449_vm0, -0.0, %v5450_v57 }
 0x9f5   : > { %v18082_v30 = vsel %vm13754_vm15, 4294967295, %v18081_v30  ;;  %18084 = vst [vmem:[#allocation575_spill] sm:$0xff] %v13758_v35 }
 0x9f6   : > { %18083 = vst [vmem:[#allocation574_spill] sm:$0xff] %v18082_v30 }
 0x9f7   : > { %5471 = vst [vmem:[#allocation176] sm:$0xff] %v12017_v41  ;;  %v18085_v32 = vmov 0 }
 0x9fe   : > { %v5473_v59 = vld [vmem:[#allocation176 + $0x6] sm:$0x3] }
 0x9ff   : > { %v5474_v37 = vunpack.c.0.f8e4m3b11 %v5473_v59 }
 0xa01   : > { %v5478_v40 = vand.u32 2147483647, %v5474_v37  ;;  %vm5480_vm8 = vcmp.ne.f32.partialorder %v5474_v37, %v5474_v37  ;;  %v5481_v61 = vmul.f32 16.0, %v5474_v37 }
 0xa03   : > { %vm13764_vm11 = vcmp.gt.f32.partialorder %v5478_v40, 29.0  ;;  %v13768_v36 = vsel %vm5480_vm8, -0.0, %v5481_v61 }
 0xa04   : > { %v18086_v32 = vsel %vm13764_vm11, 4294967295, %v18085_v32  ;;  %18088 = vst [vmem:[#allocation577_spill] sm:$0xff] %v13768_v36 }
 0xa05   : > { %18087 = vst [vmem:[#allocation576_spill] sm:$0xff] %v18086_v32 }
 0xa06   : > { %5502 = vst [vmem:[#allocation177] sm:$0xff] %v12020_v42  ;;  %v18089_v27 = vmov 0 }
 0xa0d   : > { %v5503_v57 = vld [vmem:[#allocation177] sm:$0x3] }
 0xa0e   : > { %v5504_v38 = vunpack.c.0.f8e4m3b11 %v5503_v57 }
 0xa10   : > { %v5508_v41 = vand.u32 2147483647, %v5504_v38  ;;  %vm5510_vm0 = vcmp.ne.f32.partialorder %v5504_v38, %v5504_v38  ;;  %v5511_v59 = vmul.f32 16.0, %v5504_v38 }
 0xa12   : > { %vm13774_vm15 = vcmp.gt.f32.partialorder %v5508_v41, 29.0  ;;  %v13778_v37 = vsel %vm5510_vm0, -0.0, %v5511_v59 }
 0xa13   : > { %v18090_v27 = vsel %vm13774_vm15, 4294967295, %v18089_v27  ;;  %18092 = vst [vmem:[#allocation579_spill] sm:$0xff] %v13778_v37 }
 0xa14   : > { %18091 = vst [vmem:[#allocation578_spill] sm:$0xff] %v18090_v27 }
 0xa15   : > { %5532 = vst [vmem:[#allocation178] sm:$0xff] %v12023_v43  ;;  %v18093_v32 = vmov 0 }
 0xa1c   : > { %v5533_v61 = vld [vmem:[#allocation178] sm:$0x3] }
 0xa1d   : > { %v5534_v39 = vunpack.c.0.f8e4m3b11 %v5533_v61 }
 0xa1f   : > { %v5538_v36 = vand.u32 2147483647, %v5534_v39  ;;  %vm5540_vm8 = vcmp.ne.f32.partialorder %v5534_v39, %v5534_v39  ;;  %v5541_v57 = vmul.f32 16.0, %v5534_v39 }
 0xa21   : > { %vm13784_vm11 = vcmp.gt.f32.partialorder %v5538_v36, 29.0  ;;  %v13788_v38 = vsel %vm5540_vm8, -0.0, %v5541_v57 }
 0xa22   : > { %v18094_v32 = vsel %vm13784_vm11, 4294967295, %v18093_v32  ;;  %18096 = vst [vmem:[#allocation581_spill] sm:$0xff] %v13788_v38 }
 0xa23   : > { %18095 = vst [vmem:[#allocation580_spill] sm:$0xff] %v18094_v32 }
 0xa24   : > { %5562 = vst [vmem:[#allocation179] sm:$0xff] %v12020_v42  ;;  %v18097_v30 = vmov 0 }
 0xa2b   : > { %v5564_v59 = vld [vmem:[#allocation179 + $0x2] sm:$0x3] }
 0xa2c   : > { %v5565_v40 = vunpack.c.0.f8e4m3b11 %v5564_v59 }
 0xa2e   : > { %v5569_v35 = vand.u32 2147483647, %v5565_v40  ;;  %vm5571_vm0 = vcmp.ne.f32.partialorder %v5565_v40, %v5565_v40  ;;  %v5572_v61 = vmul.f32 16.0, %v5565_v40 }
 0xa30   : > { %vm13794_vm15 = vcmp.gt.f32.partialorder %v5569_v35, 29.0  ;;  %v13798_v36 = vsel %vm5571_vm0, -0.0, %v5572_v61 }
 0xa31   : > { %v18098_v30 = vsel %vm13794_vm15, 4294967295, %v18097_v30  ;;  %18100 = vst [vmem:[#allocation583_spill] sm:$0xff] %v13798_v36 }
 0xa32   : > { %18099 = vst [vmem:[#allocation582_spill] sm:$0xff] %v18098_v30 }
 0xa33   : > { %5593 = vst [vmem:[#allocation180] sm:$0xff] %v12023_v43  ;;  %v18101_v32 = vmov 0 }
 0xa3a   : > { %v5595_v57 = vld [vmem:[#allocation180 + $0x2] sm:$0x3] }
 0xa3b   : > { %v5596_v41 = vunpack.c.0.f8e4m3b11 %v5595_v57 }
 0xa3d   : > { %v5600_v38 = vand.u32 2147483647, %v5596_v41  ;;  %vm5602_vm8 = vcmp.ne.f32.partialorder %v5596_v41, %v5596_v41  ;;  %v5603_v59 = vmul.f32 16.0, %v5596_v41 }
 0xa3f   : > { %vm13804_vm11 = vcmp.gt.f32.partialorder %v5600_v38, 29.0  ;;  %v13808_v35 = vsel %vm5602_vm8, -0.0, %v5603_v59 }
 0xa40   : > { %v18102_v32 = vsel %vm13804_vm11, 4294967295, %v18101_v32  ;;  %18104 = vst [vmem:[#allocation585_spill] sm:$0xff] %v13808_v35 }
 0xa41   : > { %18103 = vst [vmem:[#allocation584_spill] sm:$0xff] %v18102_v32 }
 0xa42   : > { %5624 = vst [vmem:[#allocation181] sm:$0xff] %v12020_v42  ;;  %v18105_v30 = vmov 0 }
 0xa49   : > { %v5626_v61 = vld [vmem:[#allocation181 + $0x4] sm:$0x3] }
 0xa4a   : > { %v5627_v39 = vunpack.c.0.f8e4m3b11 %v5626_v61 }
 0xa4c   : > { %v5631_v36 = vand.u32 2147483647, %v5627_v39  ;;  %vm5633_vm0 = vcmp.ne.f32.partialorder %v5627_v39, %v5627_v39  ;;  %v5634_v57 = vmul.f32 16.0, %v5627_v39 }
 0xa4e   : > { %vm13814_vm15 = vcmp.gt.f32.partialorder %v5631_v36, 29.0  ;;  %v13818_v38 = vsel %vm5633_vm0, -0.0, %v5634_v57 }
 0xa4f   : > { %v18106_v30 = vsel %vm13814_vm15, 4294967295, %v18105_v30  ;;  %18108 = vst [vmem:[#allocation587_spill] sm:$0xff] %v13818_v38 }
 0xa50   : > { %18107 = vst [vmem:[#allocation586_spill] sm:$0xff] %v18106_v30 }
 0xa51   : > { %5655 = vst [vmem:[#allocation182] sm:$0xff] %v12023_v43  ;;  %v18109_v32 = vmov 0 }
 0xa58   : > { %v5657_v59 = vld [vmem:[#allocation182 + $0x4] sm:$0x3] }
 0xa59   : > { %v5658_v40 = vunpack.c.0.f8e4m3b11 %v5657_v59 }
 0xa5b   : > { %v5662_v35 = vand.u32 2147483647, %v5658_v40  ;;  %vm5664_vm8 = vcmp.ne.f32.partialorder %v5658_v40, %v5658_v40  ;;  %v5665_v61 = vmul.f32 16.0, %v5658_v40 }
 0xa5d   : > { %vm13824_vm11 = vcmp.gt.f32.partialorder %v5662_v35, 29.0  ;;  %v13828_v36 = vsel %vm5664_vm8, -0.0, %v5665_v61 }
 0xa5e   : > { %v18110_v32 = vsel %vm13824_vm11, 4294967295, %v18109_v32  ;;  %18112 = vst [vmem:[#allocation589_spill] sm:$0xff] %v13828_v36 }
 0xa5f   : > { %18111 = vst [vmem:[#allocation588_spill] sm:$0xff] %v18110_v32 }
 0xa60   : > { %5686 = vst [vmem:[#allocation183] sm:$0xff] %v12020_v42  ;;  %v18113_v27 = vmov 0 }
 0xa67   : > { %v5688_v57 = vld [vmem:[#allocation183 + $0x6] sm:$0x3] }
 0xa68   : > { %v5689_v41 = vunpack.c.0.f8e4m3b11 %v5688_v57 }
 0xa6a   : > { %v5693_v37 = vand.u32 2147483647, %v5689_v41  ;;  %vm5695_vm0 = vcmp.ne.f32.partialorder %v5689_v41, %v5689_v41  ;;  %v5696_v59 = vmul.f32 16.0, %v5689_v41 }
 0xa6c   : > { %vm13834_vm15 = vcmp.gt.f32.partialorder %v5693_v37, 29.0  ;;  %v13838_v35 = vsel %vm5695_vm0, -0.0, %v5696_v59 }
 0xa6d   : > { %v18114_v27 = vsel %vm13834_vm15, 4294967295, %v18113_v27  ;;  %18116 = vst [vmem:[#allocation591_spill] sm:$0xff] %v13838_v35 }
 0xa6e   : > { %18115 = vst [vmem:[#allocation590_spill] sm:$0xff] %v18114_v27 }
 0xa6f   : > { %5717 = vst [vmem:[#allocation184] sm:$0xff] %v12023_v43  ;;  %v18117_v36 = vmov 0 }
 0xa76   : > { %v5719_v61 = vld [vmem:[#allocation184 + $0x6] sm:$0x3] }
 0xa77   : > { %v5720_v39 = vunpack.c.0.f8e4m3b11 %v5719_v61 }
 0xa79   : > { %v5724_v42 = vand.u32 2147483647, %v5720_v39  ;;  %vm5726_vm8 = vcmp.ne.f32.partialorder %v5720_v39, %v5720_v39  ;;  %v5727_v57 = vmul.f32 16.0, %v5720_v39 }
 0xa7b   : > { %vm13844_vm11 = vcmp.gt.f32.partialorder %v5724_v42, 29.0  ;;  %v13848_v37 = vsel %vm5726_vm8, -0.0, %v5727_v57 }
 0xa7c   : > { %v18118_v36 = vsel %vm13844_vm11, 4294967295, %v18117_v36  ;;  %18120 = vst [vmem:[#allocation593_spill] sm:$0xff] %v13848_v37 }
 0xa7d   : > { %18119 = vst [vmem:[#allocation592_spill] sm:$0xff] %v18118_v36 }
 0xa7e   : > { %5748 = vst [vmem:[#allocation185] sm:$0xff] %v12026_v44  ;;  %v18121_v32 = vmov 0 }
 0xa85   : > { %v5749_v59 = vld [vmem:[#allocation185] sm:$0x3] }
 0xa86   : > { %v5750_v40 = vunpack.c.0.f8e4m3b11 %v5749_v59 }
 0xa88   : > { %v5754_v43 = vand.u32 2147483647, %v5750_v40  ;;  %vm5756_vm0 = vcmp.ne.f32.partialorder %v5750_v40, %v5750_v40  ;;  %v5757_v61 = vmul.f32 16.0, %v5750_v40 }
 0xa8a   : > { %vm13854_vm15 = vcmp.gt.f32.partialorder %v5754_v43, 29.0  ;;  %v13858_v39 = vsel %vm5756_vm0, -0.0, %v5757_v61 }
 0xa8b   : > { %v18122_v32 = vsel %vm13854_vm15, 4294967295, %v18121_v32  ;;  %18124 = vst [vmem:[#allocation595_spill] sm:$0xff] %v13858_v39 }
 0xa8c   : > { %18123 = vst [vmem:[#allocation594_spill] sm:$0xff] %v18122_v32 }
 0xa8d   : > { %5778 = vst [vmem:[#allocation186] sm:$0xff] %v12029_v45  ;;  %v18125_v36 = vmov 0 }
 0xa94   : > { %v5779_v57 = vld [vmem:[#allocation186] sm:$0x3] }
 0xa95   : > { %v5780_v41 = vunpack.c.0.f8e4m3b11 %v5779_v57 }
 0xa97   : > { %v5784_v37 = vand.u32 2147483647, %v5780_v41  ;;  %vm5786_vm8 = vcmp.ne.f32.partialorder %v5780_v41, %v5780_v41  ;;  %v5787_v59 = vmul.f32 16.0, %v5780_v41 }
 0xa99   : > { %vm13864_vm11 = vcmp.gt.f32.partialorder %v5784_v37, 29.0  ;;  %v13868_v40 = vsel %vm5786_vm8, -0.0, %v5787_v59 }
 0xa9a   : > { %v18126_v36 = vsel %vm13864_vm11, 4294967295, %v18125_v36  ;;  %18128 = vst [vmem:[#allocation597_spill] sm:$0xff] %v13868_v40 }
 0xa9b   : > { %18127 = vst [vmem:[#allocation596_spill] sm:$0xff] %v18126_v36 }
 0xa9c   : > { %5808 = vst [vmem:[#allocation187] sm:$0xff] %v12026_v44  ;;  %v18129_v27 = vmov 0 }
 0xaa3   : > { %v5810_v61 = vld [vmem:[#allocation187 + $0x2] sm:$0x3] }
 0xaa4   : > { %v5811_v42 = vunpack.c.0.f8e4m3b11 %v5810_v61 }
 0xaa6   : > { %v5815_v35 = vand.u32 2147483647, %v5811_v42  ;;  %vm5817_vm0 = vcmp.ne.f32.partialorder %v5811_v42, %v5811_v42  ;;  %v5818_v57 = vmul.f32 16.0, %v5811_v42 }
 0xaa8   : > { %vm13874_vm15 = vcmp.gt.f32.partialorder %v5815_v35, 29.0  ;;  %v13878_v37 = vsel %vm5817_vm0, -0.0, %v5818_v57 }
 0xaa9   : > { %v18130_v27 = vsel %vm13874_vm15, 4294967295, %v18129_v27  ;;  %18132 = vst [vmem:[#allocation599_spill] sm:$0xff] %v13878_v37 }
 0xaaa   : > { %18131 = vst [vmem:[#allocation598_spill] sm:$0xff] %v18130_v27 }
 0xaab   : > { %5839 = vst [vmem:[#allocation188] sm:$0xff] %v12029_v45  ;;  %v18133_v36 = vmov 0 }
 0xab2   : > { %v5841_v59 = vld [vmem:[#allocation188 + $0x2] sm:$0x3] }
 0xab3   : > { %v5842_v43 = vunpack.c.0.f8e4m3b11 %v5841_v59 }
 0xab5   : > { %v5846_v40 = vand.u32 2147483647, %v5842_v43  ;;  %vm5848_vm8 = vcmp.ne.f32.partialorder %v5842_v43, %v5842_v43  ;;  %v5849_v61 = vmul.f32 16.0, %v5842_v43 }
 0xab7   : > { %vm13884_vm11 = vcmp.gt.f32.partialorder %v5846_v40, 29.0  ;;  %v13888_v35 = vsel %vm5848_vm8, -0.0, %v5849_v61 }
 0xab8   : > { %v18134_v36 = vsel %vm13884_vm11, 4294967295, %v18133_v36  ;;  %18136 = vst [vmem:[#allocation601_spill] sm:$0xff] %v13888_v35 }
 0xab9   : > { %18135 = vst [vmem:[#allocation600_spill] sm:$0xff] %v18134_v36 }
 0xaba   : > { %5870 = vst [vmem:[#allocation189] sm:$0xff] %v12026_v44  ;;  %v18137_v30 = vmov 0 }
 0xac1   : > { %v5872_v57 = vld [vmem:[#allocation189 + $0x4] sm:$0x3] }
 0xac2   : > { %v5873_v41 = vunpack.c.0.f8e4m3b11 %v5872_v57 }
 0xac4   : > { %v5877_v38 = vand.u32 2147483647, %v5873_v41  ;;  %vm5879_vm0 = vcmp.ne.f32.partialorder %v5873_v41, %v5873_v41  ;;  %v5880_v59 = vmul.f32 16.0, %v5873_v41 }
 0xac6   : > { %vm13894_vm15 = vcmp.gt.f32.partialorder %v5877_v38, 29.0  ;;  %v13898_v40 = vsel %vm5879_vm0, -0.0, %v5880_v59 }
 0xac7   : > { %v18138_v30 = vsel %vm13894_vm15, 4294967295, %v18137_v30  ;;  %18140 = vst [vmem:[#allocation603_spill] sm:$0xff] %v13898_v40 }
 0xac8   : > { %18139 = vst [vmem:[#allocation602_spill] sm:$0xff] %v18138_v30 }
 0xac9   : > { %5901 = vst [vmem:[#allocation190] sm:$0xff] %v12029_v45  ;;  %v18141_v36 = vmov 0 }
 0xad0   : > { %v5903_v61 = vld [vmem:[#allocation190 + $0x4] sm:$0x3] }
 0xad1   : > { %v5904_v42 = vunpack.c.0.f8e4m3b11 %v5903_v61 }
 0xad3   : > { %v5908_v35 = vand.u32 2147483647, %v5904_v42  ;;  %vm5910_vm8 = vcmp.ne.f32.partialorder %v5904_v42, %v5904_v42  ;;  %v5911_v57 = vmul.f32 16.0, %v5904_v42 }
 0xad5   : > { %vm13904_vm11 = vcmp.gt.f32.partialorder %v5908_v35, 29.0  ;;  %v13908_v38 = vsel %vm5910_vm8, -0.0, %v5911_v57 }
 0xad6   : > { %v18142_v36 = vsel %vm13904_vm11, 4294967295, %v18141_v36  ;;  %18144 = vst [vmem:[#allocation605_spill] sm:$0xff] %v13908_v38 }
 0xad7   : > { %18143 = vst [vmem:[#allocation604_spill] sm:$0xff] %v18142_v36 }
 0xad8   : > { %5932 = vst [vmem:[#allocation191] sm:$0xff] %v12026_v44  ;;  %v18145_v27 = vmov 0 }
 0xadf   : > { %v5934_v59 = vld [vmem:[#allocation191 + $0x6] sm:$0x3] }
 0xae0   : > { %v5935_v43 = vunpack.c.0.f8e4m3b11 %v5934_v59 }
 0xae2   : > { %v5939_v37 = vand.u32 2147483647, %v5935_v43  ;;  %vm5941_vm0 = vcmp.ne.f32.partialorder %v5935_v43, %v5935_v43  ;;  %v5942_v61 = vmul.f32 16.0, %v5935_v43 }
 0xae4   : > { %vm13914_vm15 = vcmp.gt.f32.partialorder %v5939_v37, 29.0  ;;  %v13918_v35 = vsel %vm5941_vm0, -0.0, %v5942_v61 }
 0xae5   : > { %v18146_v27 = vsel %vm13914_vm15, 4294967295, %v18145_v27  ;;  %18148 = vst [vmem:[#allocation607_spill] sm:$0xff] %v13918_v35 }
 0xae6   : > { %18147 = vst [vmem:[#allocation606_spill] sm:$0xff] %v18146_v27 }
 0xae7   : > { %5963 = vst [vmem:[#allocation192] sm:$0xff] %v12029_v45  ;;  %v18149_v38 = vmov 0 }
 0xaee   : > { %v5965_v57 = vld [vmem:[#allocation192 + $0x6] sm:$0x3] }
 0xaef   : > { %v5966_v41 = vunpack.c.0.f8e4m3b11 %v5965_v57 }
 0xaf1   : > { %v5970_v44 = vand.u32 2147483647, %v5966_v41  ;;  %vm5972_vm8 = vcmp.ne.f32.partialorder %v5966_v41, %v5966_v41  ;;  %v5973_v59 = vmul.f32 16.0, %v5966_v41 }
 0xaf3   : > { %vm13924_vm11 = vcmp.gt.f32.partialorder %v5970_v44, 29.0  ;;  %v13928_v37 = vsel %vm5972_vm8, -0.0, %v5973_v59 }
 0xaf4   : > { %v18150_v38 = vsel %vm13924_vm11, 4294967295, %v18149_v38  ;;  %18152 = vst [vmem:[#allocation609_spill] sm:$0xff] %v13928_v37 }
 0xaf5   : > { %18151 = vst [vmem:[#allocation608_spill] sm:$0xff] %v18150_v38 }
 0xaf6   : > { %5994 = vst [vmem:[#allocation193] sm:$0xff] %v12032_v46  ;;  %v18153_v36 = vmov 0 }
 0xafd   : > { %v5995_v61 = vld [vmem:[#allocation193] sm:$0x3] }
 0xafe   : > { %v5996_v42 = vunpack.c.0.f8e4m3b11 %v5995_v61 }
 0xb00   : > { %v6000_v45 = vand.u32 2147483647, %v5996_v42  ;;  %vm6002_vm0 = vcmp.ne.f32.partialorder %v5996_v42, %v5996_v42  ;;  %v6003_v57 = vmul.f32 16.0, %v5996_v42 }
 0xb02   : > { %vm13934_vm15 = vcmp.gt.f32.partialorder %v6000_v45, 29.0  ;;  %v13938_v41 = vsel %vm6002_vm0, -0.0, %v6003_v57 }
 0xb03   : > { %v18154_v36 = vsel %vm13934_vm15, 4294967295, %v18153_v36  ;;  %18156 = vst [vmem:[#allocation611_spill] sm:$0xff] %v13938_v41 }
 0xb04   : > { %18155 = vst [vmem:[#allocation610_spill] sm:$0xff] %v18154_v36 }
 0xb05   : > { %6024 = vst [vmem:[#allocation194] sm:$0xff] %v12035_v47  ;;  %v18157_v38 = vmov 0 }
 0xb0c   : > { %v6025_v59 = vld [vmem:[#allocation194] sm:$0x3] }
 0xb0d   : > { %v6026_v43 = vunpack.c.0.f8e4m3b11 %v6025_v59 }
 0xb0f   : > { %v6030_v37 = vand.u32 2147483647, %v6026_v43  ;;  %vm6032_vm8 = vcmp.ne.f32.partialorder %v6026_v43, %v6026_v43  ;;  %v6033_v61 = vmul.f32 16.0, %v6026_v43 }
 0xb11   : > { %vm13944_vm11 = vcmp.gt.f32.partialorder %v6030_v37, 29.0  ;;  %v13948_v42 = vsel %vm6032_vm8, -0.0, %v6033_v61 }
 0xb12   : > { %v18158_v38 = vsel %vm13944_vm11, 4294967295, %v18157_v38  ;;  %18160 = vst [vmem:[#allocation613_spill] sm:$0xff] %v13948_v42 }
 0xb13   : > { %18159 = vst [vmem:[#allocation612_spill] sm:$0xff] %v18158_v38 }
 0xb14   : > { %6054 = vst [vmem:[#allocation195] sm:$0xff] %v12032_v46  ;;  %v18161_v32 = vmov 0 }
 0xb1b   : > { %v6056_v57 = vld [vmem:[#allocation195 + $0x2] sm:$0x3] }
 0xb1c   : > { %v6057_v44 = vunpack.c.0.f8e4m3b11 %v6056_v57 }
 0xb1e   : > { %v6061_v39 = vand.u32 2147483647, %v6057_v44  ;;  %vm6063_vm0 = vcmp.ne.f32.partialorder %v6057_v44, %v6057_v44  ;;  %v6064_v59 = vmul.f32 16.0, %v6057_v44 }
 0xb20   : > { %vm13954_vm15 = vcmp.gt.f32.partialorder %v6061_v39, 29.0  ;;  %v13958_v37 = vsel %vm6063_vm0, -0.0, %v6064_v59 }
 0xb21   : > { %v18162_v32 = vsel %vm13954_vm15, 4294967295, %v18161_v32  ;;  %18164 = vst [vmem:[#allocation615_spill] sm:$0xff] %v13958_v37 }
 0xb22   : > { %18163 = vst [vmem:[#allocation614_spill] sm:$0xff] %v18162_v32 }
 0xb23   : > { %6085 = vst [vmem:[#allocation196] sm:$0xff] %v12035_v47  ;;  %v18165_v38 = vmov 0 }
 0xb2a   : > { %v6087_v61 = vld [vmem:[#allocation196 + $0x2] sm:$0x3] }
 0xb2b   : > { %v6088_v45 = vunpack.c.0.f8e4m3b11 %v6087_v61 }
 0xb2d   : > { %v6092_v42 = vand.u32 2147483647, %v6088_v45  ;;  %vm6094_vm8 = vcmp.ne.f32.partialorder %v6088_v45, %v6088_v45  ;;  %v6095_v57 = vmul.f32 16.0, %v6088_v45 }
 0xb2f   : > { %vm13964_vm11 = vcmp.gt.f32.partialorder %v6092_v42, 29.0  ;;  %v13968_v39 = vsel %vm6094_vm8, -0.0, %v6095_v57 }
 0xb30   : > { %v18166_v38 = vsel %vm13964_vm11, 4294967295, %v18165_v38  ;;  %18168 = vst [vmem:[#allocation617_spill] sm:$0xff] %v13968_v39 }
 0xb31   : > { %18167 = vst [vmem:[#allocation616_spill] sm:$0xff] %v18166_v38 }
 0xb32   : > { %6116 = vst [vmem:[#allocation197] sm:$0xff] %v12032_v46  ;;  %v18169_v27 = vmov 0 }
 0xb39   : > { %v6118_v59 = vld [vmem:[#allocation197 + $0x4] sm:$0x3] }
 0xb3a   : > { %v6119_v43 = vunpack.c.0.f8e4m3b11 %v6118_v59 }
 0xb3c   : > { %v6123_v35 = vand.u32 2147483647, %v6119_v43  ;;  %vm6125_vm0 = vcmp.ne.f32.partialorder %v6119_v43, %v6119_v43  ;;  %v6126_v61 = vmul.f32 16.0, %v6119_v43 }
 0xb3e   : > { %vm13974_vm15 = vcmp.gt.f32.partialorder %v6123_v35, 29.0  ;;  %v13978_v42 = vsel %vm6125_vm0, -0.0, %v6126_v61 }
 0xb3f   : > { %v18170_v27 = vsel %vm13974_vm15, 4294967295, %v18169_v27 }
 0xb40   : > { %6147 = vst [vmem:[#allocation198] sm:$0xff] %v12035_v47  ;;  %v18171_v38 = vmov 0 }
 0xb47   : > { %v6149_v57 = vld [vmem:[#allocation198 + $0x4] sm:$0x3] }
 0xb48   : > { %v6150_v44 = vunpack.c.0.f8e4m3b11 %v6149_v57 }
 0xb4a   : > { %v6154_v39 = vand.u32 2147483647, %v6150_v44  ;;  %vm6156_vm8 = vcmp.ne.f32.partialorder %v6150_v44, %v6150_v44  ;;  %v6157_v59 = vmul.f32 16.0, %v6150_v44 }
 0xb4c   : > { %vm13984_vm11 = vcmp.gt.f32.partialorder %v6154_v39, 29.0  ;;  %v13988_v35 = vsel %vm6156_vm8, -0.0, %v6157_v59 }
 0xb4d   : > { %v18172_v38 = vsel %vm13984_vm11, 4294967295, %v18171_v38  ;;  %18174 = vst [vmem:[#allocation619_spill] sm:$0xff] %v13988_v35 }
 0xb4e   : > { %18173 = vst [vmem:[#allocation618_spill] sm:$0xff] %v18172_v38 }
 0xb4f   : > { %6178 = vst [vmem:[#allocation199] sm:$0xff] %v12032_v46  ;;  %v18175_v30 = vmov 0 }
 0xb56   : > { %v6180_v61 = vld [vmem:[#allocation199 + $0x6] sm:$0x3] }
 0xb57   : > { %v6181_v45 = vunpack.c.0.f8e4m3b11 %v6180_v61 }
 0xb59   : > { %v6185_v40 = vand.u32 2147483647, %v6181_v45  ;;  %vm6187_vm0 = vcmp.ne.f32.partialorder %v6181_v45, %v6181_v45  ;;  %v6188_v57 = vmul.f32 16.0, %v6181_v45 }
 0xb5b   : > { %vm13994_vm15 = vcmp.gt.f32.partialorder %v6185_v40, 29.0  ;;  %v13998_v39 = vsel %vm6187_vm0, -0.0, %v6188_v57 }
 0xb5c   : > { %v18176_v30 = vsel %vm13994_vm15, 4294967295, %v18175_v30 }
 0xb5d   : > { %6209 = vst [vmem:[#allocation200] sm:$0xff] %v12035_v47  ;;  %v18177_v35 = vmov 0 }
 0xb64   : > { %v6211_v59 = vld [vmem:[#allocation200 + $0x6] sm:$0x3] }
 0xb65   : > { %v6212_v43 = vunpack.c.0.f8e4m3b11 %v6211_v59 }
 0xb67   : > { %v6216_v46 = vand.u32 2147483647, %v6212_v43  ;;  %vm6218_vm8 = vcmp.ne.f32.partialorder %v6212_v43, %v6212_v43  ;;  %v6219_v61 = vmul.f32 16.0, %v6212_v43 }
 0xb69   : > { %vm14004_vm11 = vcmp.gt.f32.partialorder %v6216_v46, 29.0  ;;  %v14008_v40 = vsel %vm6218_vm8, -0.0, %v6219_v61 }
 0xb6a   : > { %v18178_v35 = vsel %vm14004_vm11, 4294967295, %v18177_v35  ;;  %18180 = vst [vmem:[#allocation621_spill] sm:$0xff] %v14008_v40 }
 0xb6b   : > { %18179 = vst [vmem:[#allocation620_spill] sm:$0xff] %v18178_v35 }
 0xb6c   : > { %6240 = vst [vmem:[#allocation201] sm:$0xff] %v12038_v48  ;;  %v18181_v38 = vmov 0 }
 0xb73   : > { %v6241_v57 = vld [vmem:[#allocation201] sm:$0x3] }
 0xb74   : > { %v6242_v44 = vunpack.c.0.f8e4m3b11 %v6241_v57 }
 0xb76   : > { %v6246_v47 = vand.u32 2147483647, %v6242_v44  ;;  %vm6248_vm0 = vcmp.ne.f32.partialorder %v6242_v44, %v6242_v44  ;;  %v6249_v59 = vmul.f32 16.0, %v6242_v44 }
 0xb78   : > { %vm14014_vm15 = vcmp.gt.f32.partialorder %v6246_v47, 29.0  ;;  %v14018_v43 = vsel %vm6248_vm0, -0.0, %v6249_v59 }
 0xb79   : > { %v18182_v38 = vsel %vm14014_vm15, 4294967295, %v18181_v38  ;;  %18184 = vst [vmem:[#allocation623_spill] sm:$0xff] %v14018_v43 }
 0xb7a   : > { %18183 = vst [vmem:[#allocation622_spill] sm:$0xff] %v18182_v38 }
 0xb7b   : > { %6270 = vst [vmem:[#allocation202] sm:$0xff] %v12041_v49  ;;  %v18185_v35 = vmov 0 }
 0xb82   : > { %v6271_v61 = vld [vmem:[#allocation202] sm:$0x3] }
 0xb83   : > { %v6272_v45 = vunpack.c.0.f8e4m3b11 %v6271_v61 }
 0xb85   : > { %v6276_v40 = vand.u32 2147483647, %v6272_v45  ;;  %vm6278_vm8 = vcmp.ne.f32.partialorder %v6272_v45, %v6272_v45  ;;  %v6279_v57 = vmul.f32 16.0, %v6272_v45 }
 0xb87   : > { %vm14024_vm11 = vcmp.gt.f32.partialorder %v6276_v40, 29.0  ;;  %v14028_v44 = vsel %vm6278_vm8, -0.0, %v6279_v57 }
 0xb88   : > { %v18186_v35 = vsel %vm14024_vm11, 4294967295, %v18185_v35  ;;  %18188 = vst [vmem:[#allocation625_spill] sm:$0xff] %v14028_v44 }
 0xb89   : > { %18187 = vst [vmem:[#allocation624_spill] sm:$0xff] %v18186_v35 }
 0xb8a   : > { %6300 = vst [vmem:[#allocation203] sm:$0xff] %v12038_v48  ;;  %v18189_v38 = vmov 0 }
 0xb91   : > { %v6302_v59 = vld [vmem:[#allocation203 + $0x2] sm:$0x3] }
 0xb92   : > { %v6303_v46 = vunpack.c.0.f8e4m3b11 %v6302_v59 }
 0xb94   : > { %v6307_v43 = vand.u32 2147483647, %v6303_v46  ;;  %vm6309_vm0 = vcmp.ne.f32.partialorder %v6303_v46, %v6303_v46  ;;  %v6310_v61 = vmul.f32 16.0, %v6303_v46 }
 0xb96   : > { %vm14034_vm15 = vcmp.gt.f32.partialorder %v6307_v43, 29.0  ;;  %v14038_v40 = vsel %vm6309_vm0, -0.0, %v6310_v61 }
 0xb97   : > { %v18190_v38 = vsel %vm14034_vm15, 4294967295, %v18189_v38  ;;  %18192 = vst [vmem:[#allocation627_spill] sm:$0xff] %v14038_v40 }
 0xb98   : > { %18191 = vst [vmem:[#allocation626_spill] sm:$0xff] %v18190_v38 }
 0xb99   : > { %6331 = vst [vmem:[#allocation204] sm:$0xff] %v12041_v49  ;;  %v18193_v35 = vmov 0 }
 0xba0   : > { %v6333_v57 = vld [vmem:[#allocation204 + $0x2] sm:$0x3] }
 0xba1   : > { %v6334_v47 = vunpack.c.0.f8e4m3b11 %v6333_v57 }
 0xba3   : > { %v6338_v44 = vand.u32 2147483647, %v6334_v47  ;;  %vm6340_vm8 = vcmp.ne.f32.partialorder %v6334_v47, %v6334_v47  ;;  %v6341_v59 = vmul.f32 16.0, %v6334_v47 }
 0xba5   : > { %vm14044_vm11 = vcmp.gt.f32.partialorder %v6338_v44, 29.0  ;;  %v14048_v43 = vsel %vm6340_vm8, -0.0, %v6341_v59 }
 0xba6   : > { %v18194_v35 = vsel %vm14044_vm11, 4294967295, %v18193_v35  ;;  %18196 = vst [vmem:[#allocation629_spill] sm:$0xff] %v14048_v43 }
 0xba7   : > { %18195 = vst [vmem:[#allocation628_spill] sm:$0xff] %v18194_v35 }
 0xba8   : > { %6362 = vst [vmem:[#allocation205] sm:$0xff] %v12038_v48  ;;  %v18197_v38 = vmov 0 }
 0xbaf   : > { %v6364_v61 = vld [vmem:[#allocation205 + $0x4] sm:$0x3] }
 0xbb0   : > { %v6365_v45 = vunpack.c.0.f8e4m3b11 %v6364_v61 }
 0xbb2   : > { %v6369_v40 = vand.u32 2147483647, %v6365_v45  ;;  %vm6371_vm0 = vcmp.ne.f32.partialorder %v6365_v45, %v6365_v45  ;;  %v6372_v57 = vmul.f32 16.0, %v6365_v45 }
 0xbb4   : > { %vm14054_vm15 = vcmp.gt.f32.partialorder %v6369_v40, 29.0  ;;  %v14058_v44 = vsel %vm6371_vm0, -0.0, %v6372_v57 }
 0xbb5   : > { %v18198_v38 = vsel %vm14054_vm15, 4294967295, %v18197_v38  ;;  %18200 = vst [vmem:[#allocation631_spill] sm:$0xff] %v14058_v44 }
 0xbb6   : > { %18199 = vst [vmem:[#allocation630_spill] sm:$0xff] %v18198_v38 }
 0xbb7   : > { %6393 = vst [vmem:[#allocation206] sm:$0xff] %v12041_v49  ;;  %v18201_v35 = vmov 0 }
 0xbbe   : > { %v6395_v59 = vld [vmem:[#allocation206 + $0x4] sm:$0x3] }
 0xbbf   : > { %v6396_v46 = vunpack.c.0.f8e4m3b11 %v6395_v59 }
 0xbc1   : > { %v6400_v43 = vand.u32 2147483647, %v6396_v46  ;;  %vm6402_vm8 = vcmp.ne.f32.partialorder %v6396_v46, %v6396_v46  ;;  %v6403_v61 = vmul.f32 16.0, %v6396_v46 }
 0xbc3   : > { %vm14064_vm11 = vcmp.gt.f32.partialorder %v6400_v43, 29.0  ;;  %v14068_v40 = vsel %vm6402_vm8, -0.0, %v6403_v61 }
 0xbc4   : > { %v18202_v35 = vsel %vm14064_vm11, 4294967295, %v18201_v35  ;;  %18204 = vst [vmem:[#allocation633_spill] sm:$0xff] %v14068_v40 }
 0xbc5   : > { %18203 = vst [vmem:[#allocation632_spill] sm:$0xff] %v18202_v35 }
 0xbc6   : > { %6424 = vst [vmem:[#allocation207] sm:$0xff] %v12038_v48  ;;  %v18205_v38 = vmov 0 }
 0xbcd   : > { %v6426_v57 = vld [vmem:[#allocation207 + $0x6] sm:$0x3] }
 0xbce   : > { %v6427_v47 = vunpack.c.0.f8e4m3b11 %v6426_v57 }
 0xbd0   : > { %v6431_v44 = vand.u32 2147483647, %v6427_v47  ;;  %vm6433_vm0 = vcmp.ne.f32.partialorder %v6427_v47, %v6427_v47  ;;  %v6434_v59 = vmul.f32 16.0, %v6427_v47 }
 0xbd2   : > { %vm14074_vm15 = vcmp.gt.f32.partialorder %v6431_v44, 29.0  ;;  %v14078_v43 = vsel %vm6433_vm0, -0.0, %v6434_v59 }
 0xbd3   : > { %v18206_v38 = vsel %vm14074_vm15, 4294967295, %v18205_v38  ;;  %18208 = vst [vmem:[#allocation635_spill] sm:$0xff] %v14078_v43 }
 0xbd4   : > { %18207 = vst [vmem:[#allocation634_spill] sm:$0xff] %v18206_v38 }
 0xbd5   : > { %6455 = vst [vmem:[#allocation208] sm:$0xff] %v12041_v49  ;;  %v18209_v40 = vmov 0 }
 0xbdc   : > { %v6457_v61 = vld [vmem:[#allocation208 + $0x6] sm:$0x3] }
 0xbdd   : > { %v6458_v45 = vunpack.c.0.f8e4m3b11 %v6457_v61 }
 0xbdf   : > { %v6462_v48 = vand.u32 2147483647, %v6458_v45  ;;  %vm6464_vm8 = vcmp.ne.f32.partialorder %v6458_v45, %v6458_v45  ;;  %v6465_v57 = vmul.f32 16.0, %v6458_v45 }
 0xbe1   : > { %vm14084_vm11 = vcmp.gt.f32.partialorder %v6462_v48, 29.0  ;;  %v14088_v44 = vsel %vm6464_vm8, -0.0, %v6465_v57 }
 0xbe2   : > { %v18210_v40 = vsel %vm14084_vm11, 4294967295, %v18209_v40  ;;  %18212 = vst [vmem:[#allocation637_spill] sm:$0xff] %v14088_v44 }
 0xbe3   : > { %18211 = vst [vmem:[#allocation636_spill] sm:$0xff] %v18210_v40 }
 0xbe4   : > { %6486 = vst [vmem:[#allocation209] sm:$0xff] %v12044_v50  ;;  %v18213_v35 = vmov 0 }
 0xbeb   : > { %v6487_v59 = vld [vmem:[#allocation209] sm:$0x3] }
 0xbec   : > { %v6488_v46 = vunpack.c.0.f8e4m3b11 %v6487_v59 }
 0xbee   : > { %v6492_v49 = vand.u32 2147483647, %v6488_v46  ;;  %vm6494_vm0 = vcmp.ne.f32.partialorder %v6488_v46, %v6488_v46  ;;  %v6495_v61 = vmul.f32 16.0, %v6488_v46 }
 0xbf0   : > { %vm14094_vm15 = vcmp.gt.f32.partialorder %v6492_v49, 29.0  ;;  %v14098_v45 = vsel %vm6494_vm0, -0.0, %v6495_v61 }
 0xbf1   : > { %v18214_v35 = vsel %vm14094_vm15, 4294967295, %v18213_v35  ;;  %18216 = vst [vmem:[#allocation639_spill] sm:$0xff] %v14098_v45 }
 0xbf2   : > { %18215 = vst [vmem:[#allocation638_spill] sm:$0xff] %v18214_v35 }
 0xbf3   : > { %6516 = vst [vmem:[#allocation210] sm:$0xff] %v12047_v51  ;;  %v18217_v40 = vmov 0 }
 0xbfa   : > { %v6517_v57 = vld [vmem:[#allocation210] sm:$0x3] }
 0xbfb   : > { %v6518_v47 = vunpack.c.0.f8e4m3b11 %v6517_v57 }
 0xbfd   : > { %v6522_v44 = vand.u32 2147483647, %v6518_v47  ;;  %vm6524_vm8 = vcmp.ne.f32.partialorder %v6518_v47, %v6518_v47  ;;  %v6525_v59 = vmul.f32 16.0, %v6518_v47 }
 0xbff   : > { %vm14104_vm11 = vcmp.gt.f32.partialorder %v6522_v44, 29.0  ;;  %v14108_v46 = vsel %vm6524_vm8, -0.0, %v6525_v59 }
 0xc00   : > { %v18218_v40 = vsel %vm14104_vm11, 4294967295, %v18217_v40  ;;  %18220 = vst [vmem:[#allocation641_spill] sm:$0xff] %v14108_v46 }
 0xc01   : > { %18219 = vst [vmem:[#allocation640_spill] sm:$0xff] %v18218_v40 }
 0xc02   : > { %6546 = vst [vmem:[#allocation211] sm:$0xff] %v12044_v50  ;;  %v18221_v38 = vmov 0 }
 0xc09   : > { %v6548_v61 = vld [vmem:[#allocation211 + $0x2] sm:$0x3] }
 0xc0a   : > { %v6549_v48 = vunpack.c.0.f8e4m3b11 %v6548_v61 }
 0xc0c   : > { %v6553_v43 = vand.u32 2147483647, %v6549_v48  ;;  %vm6555_vm0 = vcmp.ne.f32.partialorder %v6549_v48, %v6549_v48  ;;  %v6556_v57 = vmul.f32 16.0, %v6549_v48 }
 0xc0e   : > { %vm14114_vm15 = vcmp.gt.f32.partialorder %v6553_v43, 29.0  ;;  %v14118_v44 = vsel %vm6555_vm0, -0.0, %v6556_v57 }
 0xc0f   : > { %v18222_v38 = vsel %vm14114_vm15, 4294967295, %v18221_v38  ;;  %18224 = vst [vmem:[#allocation643_spill] sm:$0xff] %v14118_v44 }
 0xc10   : > { %18223 = vst [vmem:[#allocation642_spill] sm:$0xff] %v18222_v38 }
 0xc11   : > { %6577 = vst [vmem:[#allocation212] sm:$0xff] %v12047_v51  ;;  %v18225_v40 = vmov 0 }
 0xc18   : > { %v6579_v59 = vld [vmem:[#allocation212 + $0x2] sm:$0x3] }
 0xc19   : > { %v6580_v49 = vunpack.c.0.f8e4m3b11 %v6579_v59 }
 0xc1b   : > { %v6584_v46 = vand.u32 2147483647, %v6580_v49  ;;  %vm6586_vm8 = vcmp.ne.f32.partialorder %v6580_v49, %v6580_v49  ;;  %v6587_v61 = vmul.f32 16.0, %v6580_v49 }
 0xc1d   : > { %vm14124_vm11 = vcmp.gt.f32.partialorder %v6584_v46, 29.0  ;;  %v14128_v43 = vsel %vm6586_vm8, -0.0, %v6587_v61 }
 0xc1e   : > { %v18226_v40 = vsel %vm14124_vm11, 4294967295, %v18225_v40  ;;  %18228 = vst [vmem:[#allocation645_spill] sm:$0xff] %v14128_v43 }
 0xc1f   : > { %18227 = vst [vmem:[#allocation644_spill] sm:$0xff] %v18226_v40 }
 0xc20   : > { %6608 = vst [vmem:[#allocation213] sm:$0xff] %v12044_v50  ;;  %v18229_v38 = vmov 0 }
 0xc27   : > { %v6610_v57 = vld [vmem:[#allocation213 + $0x4] sm:$0x3] }
 0xc28   : > { %v6611_v47 = vunpack.c.0.f8e4m3b11 %v6610_v57 }
 0xc2a   : > { %v6615_v44 = vand.u32 2147483647, %v6611_v47  ;;  %vm6617_vm0 = vcmp.ne.f32.partialorder %v6611_v47, %v6611_v47  ;;  %v6618_v59 = vmul.f32 16.0, %v6611_v47 }
 0xc2c   : > { %vm14134_vm15 = vcmp.gt.f32.partialorder %v6615_v44, 29.0  ;;  %v14138_v46 = vsel %vm6617_vm0, -0.0, %v6618_v59 }
 0xc2d   : > { %v18230_v38 = vsel %vm14134_vm15, 4294967295, %v18229_v38  ;;  %18232 = vst [vmem:[#allocation647_spill] sm:$0xff] %v14138_v46 }
 0xc2e   : > { %18231 = vst [vmem:[#allocation646_spill] sm:$0xff] %v18230_v38 }
 0xc2f   : > { %6639 = vst [vmem:[#allocation214] sm:$0xff] %v12047_v51  ;;  %v18233_v40 = vmov 0 }
 0xc36   : > { %v6641_v61 = vld [vmem:[#allocation214 + $0x4] sm:$0x3] }
 0xc37   : > { %v6642_v48 = vunpack.c.0.f8e4m3b11 %v6641_v61 }
 0xc39   : > { %v6646_v43 = vand.u32 2147483647, %v6642_v48  ;;  %vm6648_vm8 = vcmp.ne.f32.partialorder %v6642_v48, %v6642_v48  ;;  %v6649_v57 = vmul.f32 16.0, %v6642_v48 }
 0xc3b   : > { %vm14144_vm11 = vcmp.gt.f32.partialorder %v6646_v43, 29.0  ;;  %v14148_v44 = vsel %vm6648_vm8, -0.0, %v6649_v57 }
 0xc3c   : > { %v18234_v40 = vsel %vm14144_vm11, 4294967295, %v18233_v40  ;;  %18236 = vst [vmem:[#allocation649_spill] sm:$0xff] %v14148_v44 }
 0xc3d   : > { %18235 = vst [vmem:[#allocation648_spill] sm:$0xff] %v18234_v40 }
 0xc3e   : > { %6670 = vst [vmem:[#allocation215] sm:$0xff] %v12044_v50  ;;  %v18237_v35 = vmov 0 }
 0xc45   : > { %v6672_v59 = vld [vmem:[#allocation215 + $0x6] sm:$0x3] }
 0xc46   : > { %v6673_v49 = vunpack.c.0.f8e4m3b11 %v6672_v59 }
 0xc48   : > { %v6677_v45 = vand.u32 2147483647, %v6673_v49  ;;  %vm6679_vm0 = vcmp.ne.f32.partialorder %v6673_v49, %v6673_v49  ;;  %v6680_v61 = vmul.f32 16.0, %v6673_v49 }
 0xc4a   : > { %vm14154_vm15 = vcmp.gt.f32.partialorder %v6677_v45, 29.0  ;;  %v14158_v43 = vsel %vm6679_vm0, -0.0, %v6680_v61 }
 0xc4b   : > { %v18238_v35 = vsel %vm14154_vm15, 4294967295, %v18237_v35  ;;  %18240 = vst [vmem:[#allocation651_spill] sm:$0xff] %v14158_v43 }
 0xc4c   : > { %18239 = vst [vmem:[#allocation650_spill] sm:$0xff] %v18238_v35 }
 0xc4d   : > { %6701 = vst [vmem:[#allocation216] sm:$0xff] %v12047_v51  ;;  %v18241_v44 = vmov 0 }
 0xc54   : > { %v6703_v57 = vld [vmem:[#allocation216 + $0x6] sm:$0x3] }
 0xc55   : > { %v6704_v47 = vunpack.c.0.f8e4m3b11 %v6703_v57 }
 0xc57   : > { %v6708_v50 = vand.u32 2147483647, %v6704_v47  ;;  %vm6710_vm8 = vcmp.ne.f32.partialorder %v6704_v47, %v6704_v47  ;;  %v6711_v59 = vmul.f32 16.0, %v6704_v47 }
 0xc59   : > { %vm14164_vm11 = vcmp.gt.f32.partialorder %v6708_v50, 29.0  ;;  %v14168_v45 = vsel %vm6710_vm8, -0.0, %v6711_v59 }
 0xc5a   : > { %v18242_v44 = vsel %vm14164_vm11, 4294967295, %v18241_v44  ;;  %18244 = vst [vmem:[#allocation653_spill] sm:$0xff] %v14168_v45 }
 0xc5b   : > { %18243 = vst [vmem:[#allocation652_spill] sm:$0xff] %v18242_v44 }
 0xc5c   : > { %6732 = vst [vmem:[#allocation217] sm:$0xff] %v12050_v52  ;;  %v18245_v40 = vmov 0 }
 0xc63   : > { %v6733_v61 = vld [vmem:[#allocation217] sm:$0x3] }
 0xc64   : > { %v6734_v48 = vunpack.c.0.f8e4m3b11 %v6733_v61 }
 0xc66   : > { %v6738_v51 = vand.u32 2147483647, %v6734_v48  ;;  %vm6740_vm0 = vcmp.ne.f32.partialorder %v6734_v48, %v6734_v48  ;;  %v6741_v57 = vmul.f32 16.0, %v6734_v48 }
 0xc68   : > { %vm14174_vm15 = vcmp.gt.f32.partialorder %v6738_v51, 29.0  ;;  %v14178_v47 = vsel %vm6740_vm0, -0.0, %v6741_v57 }
 0xc69   : > { %v18246_v40 = vsel %vm14174_vm15, 4294967295, %v18245_v40  ;;  %18248 = vst [vmem:[#allocation655_spill] sm:$0xff] %v14178_v47 }
 0xc6a   : > { %18247 = vst [vmem:[#allocation654_spill] sm:$0xff] %v18246_v40 }
 0xc6b   : > { %v18249_v59 = vld [vmem:[#allocation268_spill] sm:$0xff]  ;;  %v18250_v43 = vmov 0 }
 0xc6c   : > { %6762 = vst [vmem:[#allocation218] sm:$0xff] %v18249_v59 }
 0xc73   : > { %v6763_v49 = vld [vmem:[#allocation218] sm:$0x3] }
 0xc74   : > { %v6764_v45 = vunpack.c.0.f8e4m3b11 %v6763_v49 }
 0xc76   : > { %v6768_v44 = vand.u32 2147483647, %v6764_v45  ;;  %vm6770_vm8 = vcmp.ne.f32.partialorder %v6764_v45, %v6764_v45  ;;  %v6771_v61 = vmul.f32 16.0, %v6764_v45 }
 0xc78   : > { %vm14184_vm11 = vcmp.gt.f32.partialorder %v6768_v44, 29.0  ;;  %v14188_v48 = vsel %vm6770_vm8, -0.0, %v6771_v61 }
 0xc79   : > { %v18251_v43 = vsel %vm14184_vm11, 4294967295, %v18250_v43  ;;  %18253 = vst [vmem:[#allocation656_spill] sm:$0xff] %v14188_v48 }
 0xc7a   : > { %18252 = vst [vmem:[#allocation268_spill] sm:$0xff] %v18251_v43 }
 0xc7b   : > { %6792 = vst [vmem:[#allocation219] sm:$0xff] %v12050_v52  ;;  %v18254_v46 = vmov 0 }
 0xc82   : > { %v6794_v57 = vld [vmem:[#allocation219 + $0x2] sm:$0x3] }
 0xc83   : > { %v6795_v50 = vunpack.c.0.f8e4m3b11 %v6794_v57 }
 0xc85   : > { %v6799_v35 = vand.u32 2147483647, %v6795_v50  ;;  %vm6801_vm0 = vcmp.ne.f32.partialorder %v6795_v50, %v6795_v50  ;;  %v6802_v49 = vmul.f32 16.0, %v6795_v50 }
 0xc87   : > { %vm14194_vm15 = vcmp.gt.f32.partialorder %v6799_v35, 29.0  ;;  %v14198_v44 = vsel %vm6801_vm0, -0.0, %v6802_v49 }
 0xc88   : > { %v18255_v46 = vsel %vm14194_vm15, 4294967295, %v18254_v46  ;;  %18257 = vst [vmem:[#allocation658_spill] sm:$0xff] %v14198_v44 }
 0xc89   : > { %18256 = vst [vmem:[#allocation657_spill] sm:$0xff] %v18255_v46 }
 0xc8a   : > { %6823 = vst [vmem:[#allocation220] sm:$0xff] %v18249_v59  ;;  %v18258_v43 = vmov 0 }
 0xc91   : > { %v6825_v61 = vld [vmem:[#allocation220 + $0x2] sm:$0x3] }
 0xc92   : > { %v6826_v51 = vunpack.c.0.f8e4m3b11 %v6825_v61 }
 0xc94   : > { %v6830_v48 = vand.u32 2147483647, %v6826_v51  ;;  %vm6832_vm8 = vcmp.ne.f32.partialorder %v6826_v51, %v6826_v51  ;;  %v6833_v57 = vmul.f32 16.0, %v6826_v51 }
 0xc96   : > { %vm14204_vm11 = vcmp.gt.f32.partialorder %v6830_v48, 29.0  ;;  %v14208_v35 = vsel %vm6832_vm8, -0.0, %v6833_v57 }
 0xc97   : > { %v18259_v43 = vsel %vm14204_vm11, 4294967295, %v18258_v43  ;;  %18261 = vst [vmem:[#allocation660_spill] sm:$0xff] %v14208_v35 }
 0xc98   : > { %18260 = vst [vmem:[#allocation659_spill] sm:$0xff] %v18259_v43 }
 0xc99   : > { %6854 = vst [vmem:[#allocation221] sm:$0xff] %v12050_v52  ;;  %v18262_v44 = vmov 0 }
 0xca0   : > { %v6856_v49 = vld [vmem:[#allocation221 + $0x4] sm:$0x3] }
 0xca1   : > { %v6857_v45 = vunpack.c.0.f8e4m3b11 %v6856_v49 }
 0xca3   : > { %v6861_v38 = vand.u32 2147483647, %v6857_v45  ;;  %vm6863_vm0 = vcmp.ne.f32.partialorder %v6857_v45, %v6857_v45  ;;  %v6864_v61 = vmul.f32 16.0, %v6857_v45 }
 0xca5   : > { %vm14214_vm15 = vcmp.gt.f32.partialorder %v6861_v38, 29.0  ;;  %v14218_v48 = vsel %vm6863_vm0, -0.0, %v6864_v61 }
 0xca6   : > { %v18263_v44 = vsel %vm14214_vm15, 4294967295, %v18262_v44  ;;  %18265 = vst [vmem:[#allocation662_spill] sm:$0xff] %v14218_v48 }
 0xca7   : > { %18264 = vst [vmem:[#allocation661_spill] sm:$0xff] %v18263_v44 }
 0xca8   : > { %6885 = vst [vmem:[#allocation222] sm:$0xff] %v18249_v59  ;;  %v18266_v43 = vmov 0 }
 0xcaf   : > { %v6887_v57 = vld [vmem:[#allocation222 + $0x4] sm:$0x3] }
 0xcb0   : > { %v6888_v50 = vunpack.c.0.f8e4m3b11 %v6887_v57 }
 0xcb2   : > { %v6892_v35 = vand.u32 2147483647, %v6888_v50  ;;  %vm6894_vm8 = vcmp.ne.f32.partialorder %v6888_v50, %v6888_v50  ;;  %v6895_v49 = vmul.f32 16.0, %v6888_v50 }
 0xcb4   : > { %vm14224_vm11 = vcmp.gt.f32.partialorder %v6892_v35, 29.0  ;;  %v14228_v38 = vsel %vm6894_vm8, -0.0, %v6895_v49 }
 0xcb5   : > { %v18267_v43 = vsel %vm14224_vm11, 4294967295, %v18266_v43  ;;  %18269 = vst [vmem:[#allocation664_spill] sm:$0xff] %v14228_v38 }
 0xcb6   : > { %18268 = vst [vmem:[#allocation663_spill] sm:$0xff] %v18267_v43 }
 0xcb7   : > { %6916 = vst [vmem:[#allocation223] sm:$0xff] %v12050_v52  ;;  %v18270_v47 = vmov 0 }
 0xcbe   : > { %v6918_v61 = vld [vmem:[#allocation223 + $0x6] sm:$0x3] }
 0xcbf   : > { %v6919_v51 = vunpack.c.0.f8e4m3b11 %v6918_v61 }
 0xcc1   : > { %v6923_v46 = vand.u32 2147483647, %v6919_v51  ;;  %vm6925_vm0 = vcmp.ne.f32.partialorder %v6919_v51, %v6919_v51  ;;  %v6926_v57 = vmul.f32 16.0, %v6919_v51 }
 0xcc3   : > { %vm14234_vm15 = vcmp.gt.f32.partialorder %v6923_v46, 29.0  ;;  %v14238_v35 = vsel %vm6925_vm0, -0.0, %v6926_v57 }
 0xcc4   : > { %v18271_v47 = vsel %vm14234_vm15, 4294967295, %v18270_v47  ;;  %18273 = vst [vmem:[#allocation666_spill] sm:$0xff] %v14238_v35 }
 0xcc5   : > { %18272 = vst [vmem:[#allocation665_spill] sm:$0xff] %v18271_v47 }
 0xcc6   : > { %6947 = vst [vmem:[#allocation224] sm:$0xff] %v18249_v59  ;;  %v18274_v38 = vmov 0 }
 0xccd   : > { %v6949_v49 = vld [vmem:[#allocation224 + $0x6] sm:$0x3] }
 0xcce   : > { %v6950_v45 = vunpack.c.0.f8e4m3b11 %v6949_v49 }
 0xcd0   : > { %v6954_v52 = vand.u32 2147483647, %v6950_v45  ;;  %vm6956_vm8 = vcmp.ne.f32.partialorder %v6950_v45, %v6950_v45  ;;  %v6957_v61 = vmul.f32 16.0, %v6950_v45 }
 0xcd2   : > { %vm14244_vm11 = vcmp.gt.f32.partialorder %v6954_v52, 29.0  ;;  %v14248_v46 = vsel %vm6956_vm8, -0.0, %v6957_v61 }
 0xcd3   : > { %v18275_v38 = vsel %vm14244_vm11, 4294967295, %v18274_v38  ;;  %18277 = vst [vmem:[#allocation668_spill] sm:$0xff] %v14248_v46 }
 0xcd4   : > { %18276 = vst [vmem:[#allocation667_spill] sm:$0xff] %v18275_v38 }
 0xcd5   : > { %v18278_v57 = vld [vmem:[#allocation269_spill] sm:$0xff]  ;;  %v18279_v40 = vmov 0 }
 0xcd6   : > { %6978 = vst [vmem:[#allocation225] sm:$0xff] %v18278_v57 }
 0xcdd   : > { %v6979_v50 = vld [vmem:[#allocation225] sm:$0x3] }
 0xcde   : > { %v6980_v43 = vunpack.c.0.f8e4m3b11 %v6979_v50 }
 0xce0   : > { %v6984_v59 = vand.u32 2147483647, %v6980_v43  ;;  %vm6986_vm0 = vcmp.ne.f32.partialorder %v6980_v43, %v6980_v43  ;;  %v6987_v49 = vmul.f32 16.0, %v6980_v43 }
 0xce2   : > { %vm14254_vm15 = vcmp.gt.f32.partialorder %v6984_v59, 29.0  ;;  %v14258_v45 = vsel %vm6986_vm0, -0.0, %v6987_v49 }
 0xce3   : > { %v18280_v40 = vsel %vm14254_vm15, 4294967295, %v18279_v40 }
 0xce4   : > { %v18281_v61 = vld [vmem:[#allocation270_spill] sm:$0xff]  ;;  %v18282_v35 = vmov 0 }
 0xce5   : > { %7008 = vst [vmem:[#allocation226] sm:$0xff] %v18281_v61 }
 0xcec   : > { %v7009_v51 = vld [vmem:[#allocation226] sm:$0x3] }
 0xced   : > { %v7010_v46 = vunpack.c.0.f8e4m3b11 %v7009_v51 }
 0xcef   : > { %v7014_v38 = vand.u32 2147483647, %v7010_v46  ;;  %vm7016_vm8 = vcmp.ne.f32.partialorder %v7010_v46, %v7010_v46  ;;  %v7017_v50 = vmul.f32 16.0, %v7010_v46 }
 0xcf1   : > { %vm14264_vm11 = vcmp.gt.f32.partialorder %v7014_v38, 29.0  ;;  %v14268_v43 = vsel %vm7016_vm8, -0.0, %v7017_v50 }
 0xcf2   : > { %v18283_v35 = vsel %vm14264_vm11, 4294967295, %v18282_v35  ;;  %18285 = vst [vmem:[#allocation270_spill] sm:$0xff] %v14268_v43 }
 0xcf3   : > { %18284 = vst [vmem:[#allocation269_spill] sm:$0xff] %v18283_v35 }
 0xcf4   : > { %7038 = vst [vmem:[#allocation227] sm:$0xff] %v18278_v57  ;;  %v18286_v48 = vmov 0 }
 0xcfb   : > { %v7040_v49 = vld [vmem:[#allocation227 + $0x2] sm:$0x3] }
 0xcfc   : > { %v7041_v52 = vunpack.c.0.f8e4m3b11 %v7040_v49 }
 0xcfe   : > { %v7045_v47 = vand.u32 2147483647, %v7041_v52  ;;  %vm7047_vm0 = vcmp.ne.f32.partialorder %v7041_v52, %v7041_v52  ;;  %v7048_v51 = vmul.f32 16.0, %v7041_v52 }
 0xd00   : > { %vm14274_vm15 = vcmp.gt.f32.partialorder %v7045_v47, 29.0  ;;  %v14278_v38 = vsel %vm7047_vm0, -0.0, %v7048_v51 }
 0xd01   : > { %v18287_v48 = vsel %vm14274_vm15, 4294967295, %v18286_v48 }
 0xd02   : > { %7069 = vst [vmem:[#allocation228] sm:$0xff] %v18281_v61  ;;  %v18288_v35 = vmov 0 }
 0xd09   : > { %v7071_v50 = vld [vmem:[#allocation228 + $0x2] sm:$0x3] }
 0xd0a   : > { %v7072_v59 = vunpack.c.0.f8e4m3b11 %v7071_v50 }
 0xd0c   : > { %v7076_v43 = vand.u32 2147483647, %v7072_v59  ;;  %vm7078_vm8 = vcmp.ne.f32.partialorder %v7072_v59, %v7072_v59  ;;  %v7079_v49 = vmul.f32 16.0, %v7072_v59 }
 0xd0e   : > { %vm14284_vm11 = vcmp.gt.f32.partialorder %v7076_v43, 29.0  ;;  %v14288_v47 = vsel %vm7078_vm8, -0.0, %v7079_v49 }
 0xd0f   : > { %v18289_v35 = vsel %vm14284_vm11, 4294967295, %v18288_v35  ;;  %18291 = vst [vmem:[#allocation670_spill] sm:$0xff] %v14288_v47 }
 0xd10   : > { %18290 = vst [vmem:[#allocation669_spill] sm:$0xff] %v18289_v35 }
 0xd11   : > { %7100 = vst [vmem:[#allocation229] sm:$0xff] %v18278_v57  ;;  %v18292_v37 = vmov 0 }
 0xd18   : > { %v7102_v51 = vld [vmem:[#allocation229 + $0x4] sm:$0x3] }
 0xd19   : > { %v7103_v46 = vunpack.c.0.f8e4m3b11 %v7102_v51 }
 0xd1b   : > { %v7107_v44 = vand.u32 2147483647, %v7103_v46  ;;  %vm7109_vm0 = vcmp.ne.f32.partialorder %v7103_v46, %v7103_v46  ;;  %v7110_v50 = vmul.f32 16.0, %v7103_v46 }
 0xd1d   : > { %vm14294_vm15 = vcmp.gt.f32.partialorder %v7107_v44, 29.0  ;;  %v14298_v43 = vsel %vm7109_vm0, -0.0, %v7110_v50 }
 0xd1e   : > { %v18293_v37 = vsel %vm14294_vm15, 4294967295, %v18292_v37 }
 0xd1f   : > { %7131 = vst [vmem:[#allocation230] sm:$0xff] %v18281_v61  ;;  %v18294_v35 = vmov 0 }
 0xd26   : > { %v7133_v49 = vld [vmem:[#allocation230 + $0x4] sm:$0x3] }
 0xd27   : > { %v7134_v52 = vunpack.c.0.f8e4m3b11 %v7133_v49 }
 0xd29   : > { %v7138_v47 = vand.u32 2147483647, %v7134_v52  ;;  %vm7140_vm8 = vcmp.ne.f32.partialorder %v7134_v52, %v7134_v52  ;;  %v7141_v51 = vmul.f32 16.0, %v7134_v52 }
 0xd2b   : > { %vm14304_vm11 = vcmp.gt.f32.partialorder %v7138_v47, 29.0  ;;  %v14308_v44 = vsel %vm7140_vm8, -0.0, %v7141_v51 }
 0xd2c   : > { %v18295_v35 = vsel %vm14304_vm11, 4294967295, %v18294_v35  ;;  %18297 = vst [vmem:[#allocation672_spill] sm:$0xff] %v14308_v44 }
 0xd2d   : > { %18296 = vst [vmem:[#allocation671_spill] sm:$0xff] %v18295_v35 }
 0xd2e   : > { %7162 = vst [vmem:[#allocation231] sm:$0xff] %v18278_v57  ;;  %v18298_v41 = vmov 0 }
 0xd35   : > { %v7164_v50 = vld [vmem:[#allocation231 + $0x6] sm:$0x3] }
 0xd36   : > { %v7165_v59 = vunpack.c.0.f8e4m3b11 %v7164_v50 }
 0xd38   : > { %v7169_v32 = vand.u32 2147483647, %v7165_v59  ;;  %vm7171_vm0 = vcmp.ne.f32.partialorder %v7165_v59, %v7165_v59  ;;  %v7172_v49 = vmul.f32 16.0, %v7165_v59 }
 0xd3a   : > { %vm14314_vm15 = vcmp.gt.f32.partialorder %v7169_v32, 29.0  ;;  %v14318_v47 = vsel %vm7171_vm0, -0.0, %v7172_v49 }
 0xd3b   : > { %v18299_v41 = vsel %vm14314_vm15, 4294967295, %v18298_v41 }
 0xd3c   : > { %7193 = vst [vmem:[#allocation232] sm:$0xff] %v18281_v61  ;;  %v18300_v44 = vmov 0 }
 0xd43   : > { %v7195_v51 = vld [vmem:[#allocation232 + $0x6] sm:$0x3] }
 0xd44   : > { %v7196_v46 = vunpack.c.0.f8e4m3b11 %v7195_v51 }
 0xd46   : > { %v7200_v57 = vand.u32 2147483647, %v7196_v46  ;;  %vm7202_vm8 = vcmp.ne.f32.partialorder %v7196_v46, %v7196_v46  ;;  %v7203_v50 = vmul.f32 16.0, %v7196_v46 }
 0xd48   : > { %vm14324_vm11 = vcmp.gt.f32.partialorder %v7200_v57, 29.0  ;;  %v14328_v32 = vsel %vm7202_vm8, -0.0, %v7203_v50 }
 0xd49   : > { %v18301_v44 = vsel %vm14324_vm11, 4294967295, %v18300_v44  ;;  %18303 = vst [vmem:[#allocation674_spill] sm:$0xff] %v14328_v32 }
 0xd4a   : > { %18302 = vst [vmem:[#allocation673_spill] sm:$0xff] %v18301_v44 }
 0xd4b   : > { %v18304_v49 = vld [vmem:[#allocation271_spill] sm:$0xff]  ;;  %v18305_v36 = vmov 0 }
 0xd4c   : > { %7224 = vst [vmem:[#allocation233] sm:$0xff] %v18304_v49 }
 0xd53   : > { %v7225_v52 = vld [vmem:[#allocation233] sm:$0x3] }
 0xd54   : > { %v7226_v35 = vunpack.c.0.f8e4m3b11 %v7225_v52 }
 0xd56   : > { %v7230_v61 = vand.u32 2147483647, %v7226_v35  ;;  %vm7232_vm0 = vcmp.ne.f32.partialorder %v7226_v35, %v7226_v35  ;;  %v7233_v51 = vmul.f32 16.0, %v7226_v35 }
 0xd58   : > { %vm14334_vm15 = vcmp.gt.f32.partialorder %v7230_v61, 29.0  ;;  %v14338_v46 = vsel %vm7232_vm0, -0.0, %v7233_v51 }
 0xd59   : > { %v18306_v36 = vsel %vm14334_vm15, 4294967295, %v18305_v36  ;;  %18308 = vst [vmem:[#allocation675_spill] sm:$0xff] %v14338_v46 }
 0xd5a   : > { %18307 = vst [vmem:[#allocation271_spill] sm:$0xff] %v18306_v36 }
 0xd5b   : > { %v18309_v50 = vld [vmem:[#allocation272_spill] sm:$0xff]  ;;  %v18310_v29 = vmov 0 }
 0xd5c   : > { %7254 = vst [vmem:[#allocation234] sm:$0xff] %v18309_v50 }
 0xd63   : > { %v7255_v59 = vld [vmem:[#allocation234] sm:$0x3] }
 0xd64   : > { %v7256_v32 = vunpack.c.0.f8e4m3b11 %v7255_v59 }
 0xd66   : > { %v7260_v44 = vand.u32 2147483647, %v7256_v32  ;;  %vm7262_vm8 = vcmp.ne.f32.partialorder %v7256_v32, %v7256_v32  ;;  %v7263_v52 = vmul.f32 16.0, %v7256_v32 }
 0xd68   : > { %vm14344_vm11 = vcmp.gt.f32.partialorder %v7260_v44, 29.0  ;;  %v14348_v35 = vsel %vm7262_vm8, -0.0, %v7263_v52 }
 0xd69   : > { %v18311_v29 = vsel %vm14344_vm11, 4294967295, %v18310_v29  ;;  %18313 = vst [vmem:[#allocation676_spill] sm:$0xff] %v14348_v35 }
 0xd6a   : > { %18312 = vst [vmem:[#allocation272_spill] sm:$0xff] %v18311_v29 }
 0xd6b   : > { %7284 = vst [vmem:[#allocation235] sm:$0xff] %v18304_v49  ;;  %v18314_v36 = vmov 0 }
 0xd72   : > { %v7286_v51 = vld [vmem:[#allocation235 + $0x2] sm:$0x3] }
 0xd73   : > { %v7287_v57 = vunpack.c.0.f8e4m3b11 %v7286_v51 }
 0xd75   : > { %v7291_v46 = vand.u32 2147483647, %v7287_v57  ;;  %vm7293_vm0 = vcmp.ne.f32.partialorder %v7287_v57, %v7287_v57  ;;  %v7294_v59 = vmul.f32 16.0, %v7287_v57 }
 0xd77   : > { %vm14354_vm15 = vcmp.gt.f32.partialorder %v7291_v46, 29.0  ;;  %v14358_v44 = vsel %vm7293_vm0, -0.0, %v7294_v59 }
 0xd78   : > { %v18315_v36 = vsel %vm14354_vm15, 4294967295, %v18314_v36  ;;  %18317 = vst [vmem:[#allocation678_spill] sm:$0xff] %v14358_v44 }
 0xd79   : > { %18316 = vst [vmem:[#allocation677_spill] sm:$0xff] %v18315_v36 }
 0xd7a   : > { %7315 = vst [vmem:[#allocation236] sm:$0xff] %v18309_v50  ;;  %v18318_v29 = vmov 0 }
 0xd81   : > { %v7317_v52 = vld [vmem:[#allocation236 + $0x2] sm:$0x3] }
 0xd82   : > { %v7318_v61 = vunpack.c.0.f8e4m3b11 %v7317_v52 }
 0xd84   : > { %v7322_v35 = vand.u32 2147483647, %v7318_v61  ;;  %vm7324_vm8 = vcmp.ne.f32.partialorder %v7318_v61, %v7318_v61  ;;  %v7325_v51 = vmul.f32 16.0, %v7318_v61 }
 0xd86   : > { %vm14364_vm11 = vcmp.gt.f32.partialorder %v7322_v35, 29.0  ;;  %v14368_v46 = vsel %vm7324_vm8, -0.0, %v7325_v51 }
 0xd87   : > { %v18319_v29 = vsel %vm14364_vm11, 4294967295, %v18318_v29  ;;  %18321 = vst [vmem:[#allocation680_spill] sm:$0xff] %v14368_v46 }
 0xd88   : > { %18320 = vst [vmem:[#allocation679_spill] sm:$0xff] %v18319_v29 }
 0xd89   : > { %7346 = vst [vmem:[#allocation237] sm:$0xff] %v18304_v49  ;;  %v18322_v36 = vmov 0 }
 0xd90   : > { %v7348_v59 = vld [vmem:[#allocation237 + $0x4] sm:$0x3] }
 0xd91   : > { %v7349_v32 = vunpack.c.0.f8e4m3b11 %v7348_v59 }
 0xd93   : > { %v7353_v44 = vand.u32 2147483647, %v7349_v32  ;;  %vm7355_vm0 = vcmp.ne.f32.partialorder %v7349_v32, %v7349_v32  ;;  %v7356_v52 = vmul.f32 16.0, %v7349_v32 }
 0xd95   : > { %vm14374_vm15 = vcmp.gt.f32.partialorder %v7353_v44, 29.0  ;;  %v14378_v35 = vsel %vm7355_vm0, -0.0, %v7356_v52 }
 0xd96   : > { %v18323_v36 = vsel %vm14374_vm15, 4294967295, %v18322_v36  ;;  %18325 = vst [vmem:[#allocation682_spill] sm:$0xff] %v14378_v35 }
 0xd97   : > { %18324 = vst [vmem:[#allocation681_spill] sm:$0xff] %v18323_v36 }
 0xd98   : > { %7377 = vst [vmem:[#allocation238] sm:$0xff] %v18309_v50  ;;  %v18326_v29 = vmov 0 }
 0xd9f   : > { %v7379_v51 = vld [vmem:[#allocation238 + $0x4] sm:$0x3] }
 0xda0   : > { %v7380_v57 = vunpack.c.0.f8e4m3b11 %v7379_v51 }
 0xda2   : > { %v7384_v46 = vand.u32 2147483647, %v7380_v57  ;;  %vm7386_vm8 = vcmp.ne.f32.partialorder %v7380_v57, %v7380_v57  ;;  %v7387_v59 = vmul.f32 16.0, %v7380_v57 }
 0xda4   : > { %vm14384_vm11 = vcmp.gt.f32.partialorder %v7384_v46, 29.0  ;;  %v14388_v44 = vsel %vm7386_vm8, -0.0, %v7387_v59 }
 0xda5   : > { %v18327_v29 = vsel %vm14384_vm11, 4294967295, %v18326_v29  ;;  %18329 = vst [vmem:[#allocation684_spill] sm:$0xff] %v14388_v44 }
 0xda6   : > { %18328 = vst [vmem:[#allocation683_spill] sm:$0xff] %v18327_v29 }
 0xda7   : > { %7408 = vst [vmem:[#allocation239] sm:$0xff] %v18304_v49  ;;  %v18330_v36 = vmov 0 }
 0xdae   : > { %v7410_v52 = vld [vmem:[#allocation239 + $0x6] sm:$0x3] }
 0xdaf   : > { %v7411_v61 = vunpack.c.0.f8e4m3b11 %v7410_v52 }
 0xdb1   : > { %v7415_v35 = vand.u32 2147483647, %v7411_v61  ;;  %vm7417_vm0 = vcmp.ne.f32.partialorder %v7411_v61, %v7411_v61  ;;  %v7418_v51 = vmul.f32 16.0, %v7411_v61 }
 0xdb3   : > { %vm14394_vm15 = vcmp.gt.f32.partialorder %v7415_v35, 29.0  ;;  %v14398_v46 = vsel %vm7417_vm0, -0.0, %v7418_v51 }
 0xdb4   : > { %v18331_v36 = vsel %vm14394_vm15, 4294967295, %v18330_v36  ;;  %18333 = vst [vmem:[#allocation686_spill] sm:$0xff] %v14398_v46 }
 0xdb5   : > { %18332 = vst [vmem:[#allocation685_spill] sm:$0xff] %v18331_v36 }
 0xdb6   : > { %7439 = vst [vmem:[#allocation240] sm:$0xff] %v18309_v50  ;;  %v18334_v44 = vmov 0 }
 0xdbd   : > { %v7441_v59 = vld [vmem:[#allocation240 + $0x6] sm:$0x3] }
 0xdbe   : > { %v7442_v32 = vunpack.c.0.f8e4m3b11 %v7441_v59 }
 0xdc0   : > { %v7446_v49 = vand.u32 2147483647, %v7442_v32  ;;  %vm7448_vm8 = vcmp.ne.f32.partialorder %v7442_v32, %v7442_v32  ;;  %v7449_v52 = vmul.f32 16.0, %v7442_v32 }
 0xdc2   : > { %vm14404_vm11 = vcmp.gt.f32.partialorder %v7446_v49, 29.0  ;;  %v14408_v35 = vsel %vm7448_vm8, -0.0, %v7449_v52 }
 0xdc3   : > { %v18335_v44 = vsel %vm14404_vm11, 4294967295, %v18334_v44  ;;  %18337 = vst [vmem:[#allocation688_spill] sm:$0xff] %v14408_v35 }
 0xdc4   : > { %18336 = vst [vmem:[#allocation687_spill] sm:$0xff] %v18335_v44 }
 0xdc5   : > { %v18338_v51 = vld [vmem:[#allocation273_spill] sm:$0xff]  ;;  %v18339_v46 = vmov 0 }
 0xdc6   : > { %7470 = vst [vmem:[#allocation241] sm:$0xff] %v18338_v51 }
 0xdcd   : > { %v7471_v57 = vld [vmem:[#allocation241] sm:$0x3] }
 0xdce   : > { %v7472_v29 = vunpack.c.0.f8e4m3b11 %v7471_v57 }
 0xdd0   : > { %v7476_v50 = vand.u32 2147483647, %v7472_v29  ;;  %vm7478_vm0 = vcmp.ne.f32.partialorder %v7472_v29, %v7472_v29  ;;  %v7479_v59 = vmul.f32 16.0, %v7472_v29 }
 0xdd2   : > { %vm14414_vm15 = vcmp.gt.f32.partialorder %v7476_v50, 29.0  ;;  %v14418_v32 = vsel %vm7478_vm0, -0.0, %v7479_v59 }
 0xdd3   : > { %v18340_v46 = vsel %vm14414_vm15, 4294967295, %v18339_v46  ;;  %18342 = vst [vmem:[#allocation689_spill] sm:$0xff] %v14418_v32 }
 0xdd4   : > { %18341 = vst [vmem:[#allocation273_spill] sm:$0xff] %v18340_v46 }
 0xdd5   : > { %v18343_v52 = vld [vmem:[#allocation274_spill] sm:$0xff]  ;;  %v18344_v36 = vmov 0 }
 0xdd6   : > { %7500 = vst [vmem:[#allocation242] sm:$0xff] %v18343_v52 }
 0xddd   : > { %v7501_v61 = vld [vmem:[#allocation242] sm:$0x3] }
 0xdde   : > { %v7502_v35 = vunpack.c.0.f8e4m3b11 %v7501_v61 }
 0xde0   : > { %v7506_v44 = vand.u32 2147483647, %v7502_v35  ;;  %vm7508_vm8 = vcmp.ne.f32.partialorder %v7502_v35, %v7502_v35  ;;  %v7509_v57 = vmul.f32 16.0, %v7502_v35 }
 0xde2   : > { %vm14424_vm11 = vcmp.gt.f32.partialorder %v7506_v44, 29.0  ;;  %v14428_v29 = vsel %vm7508_vm8, -0.0, %v7509_v57 }
 0xde3   : > { %v18345_v36 = vsel %vm14424_vm11, 4294967295, %v18344_v36  ;;  %18347 = vst [vmem:[#allocation690_spill] sm:$0xff] %v14428_v29 }
 0xde4   : > { %18346 = vst [vmem:[#allocation274_spill] sm:$0xff] %v18345_v36 }
 0xde5   : > { %7530 = vst [vmem:[#allocation243] sm:$0xff] %v18338_v51  ;;  %v18348_v46 = vmov 0 }
 0xdec   : > { %v7532_v59 = vld [vmem:[#allocation243 + $0x2] sm:$0x3] }
 0xded   : > { %v7533_v49 = vunpack.c.0.f8e4m3b11 %v7532_v59 }
 0xdef   : > { %v7537_v32 = vand.u32 2147483647, %v7533_v49  ;;  %vm7539_vm0 = vcmp.ne.f32.partialorder %v7533_v49, %v7533_v49  ;;  %v7540_v61 = vmul.f32 16.0, %v7533_v49 }
 0xdf1   : > { %vm14434_vm15 = vcmp.gt.f32.partialorder %v7537_v32, 29.0  ;;  %v14438_v44 = vsel %vm7539_vm0, -0.0, %v7540_v61 }
 0xdf2   : > { %v18349_v46 = vsel %vm14434_vm15, 4294967295, %v18348_v46  ;;  %18351 = vst [vmem:[#allocation692_spill] sm:$0xff] %v14438_v44 }
 0xdf3   : > { %18350 = vst [vmem:[#allocation691_spill] sm:$0xff] %v18349_v46 }
 0xdf4   : > { %7561 = vst [vmem:[#allocation244] sm:$0xff] %v18343_v52  ;;  %v18352_v36 = vmov 0 }
 0xdfb   : > { %v7563_v57 = vld [vmem:[#allocation244 + $0x2] sm:$0x3] }
 0xdfc   : > { %v7564_v50 = vunpack.c.0.f8e4m3b11 %v7563_v57 }
 0xdfe   : > { %v7568_v29 = vand.u32 2147483647, %v7564_v50  ;;  %vm7570_vm8 = vcmp.ne.f32.partialorder %v7564_v50, %v7564_v50  ;;  %v7571_v59 = vmul.f32 16.0, %v7564_v50 }
 0xe00   : > { %vm14444_vm11 = vcmp.gt.f32.partialorder %v7568_v29, 29.0  ;;  %v14448_v32 = vsel %vm7570_vm8, -0.0, %v7571_v59 }
 0xe01   : > { %v18353_v36 = vsel %vm14444_vm11, 4294967295, %v18352_v36  ;;  %18355 = vst [vmem:[#allocation694_spill] sm:$0xff] %v14448_v32 }
 0xe02   : > { %18354 = vst [vmem:[#allocation693_spill] sm:$0xff] %v18353_v36 }
 0xe03   : > { %7592 = vst [vmem:[#allocation245] sm:$0xff] %v18338_v51  ;;  %v18356_v46 = vmov 0 }
 0xe0a   : > { %v7594_v61 = vld [vmem:[#allocation245 + $0x4] sm:$0x3] }
 0xe0b   : > { %v7595_v35 = vunpack.c.0.f8e4m3b11 %v7594_v61 }
 0xe0d   : > { %v7599_v44 = vand.u32 2147483647, %v7595_v35  ;;  %vm7601_vm0 = vcmp.ne.f32.partialorder %v7595_v35, %v7595_v35  ;;  %v7602_v57 = vmul.f32 16.0, %v7595_v35 }
 0xe0f   : > { %vm14454_vm15 = vcmp.gt.f32.partialorder %v7599_v44, 29.0  ;;  %v14458_v29 = vsel %vm7601_vm0, -0.0, %v7602_v57 }
 0xe10   : > { %v18357_v46 = vsel %vm14454_vm15, 4294967295, %v18356_v46  ;;  %18359 = vst [vmem:[#allocation696_spill] sm:$0xff] %v14458_v29 }
 0xe11   : > { %18358 = vst [vmem:[#allocation695_spill] sm:$0xff] %v18357_v46 }
 0xe12   : > { %7623 = vst [vmem:[#allocation246] sm:$0xff] %v18343_v52  ;;  %v18360_v36 = vmov 0 }
 0xe19   : > { %v7625_v59 = vld [vmem:[#allocation246 + $0x4] sm:$0x3] }
 0xe1a   : > { %v7626_v49 = vunpack.c.0.f8e4m3b11 %v7625_v59 }
 0xe1c   : > { %v7630_v32 = vand.u32 2147483647, %v7626_v49  ;;  %vm7632_vm8 = vcmp.ne.f32.partialorder %v7626_v49, %v7626_v49  ;;  %v7633_v61 = vmul.f32 16.0, %v7626_v49 }
 0xe1e   : > { %vm14464_vm11 = vcmp.gt.f32.partialorder %v7630_v32, 29.0  ;;  %v14468_v44 = vsel %vm7632_vm8, -0.0, %v7633_v61 }
 0xe1f   : > { %v18361_v36 = vsel %vm14464_vm11, 4294967295, %v18360_v36  ;;  %18363 = vst [vmem:[#allocation698_spill] sm:$0xff] %v14468_v44 }
 0xe20   : > { %18362 = vst [vmem:[#allocation697_spill] sm:$0xff] %v18361_v36 }
 0xe21   : > { %7654 = vst [vmem:[#allocation247] sm:$0xff] %v18338_v51  ;;  %v18364_v46 = vmov 0 }
 0xe28   : > { %v7656_v57 = vld [vmem:[#allocation247 + $0x6] sm:$0x3] }
 0xe29   : > { %v7657_v50 = vunpack.c.0.f8e4m3b11 %v7656_v57 }
 0xe2b   : > { %v7661_v29 = vand.u32 2147483647, %v7657_v50  ;;  %vm7663_vm0 = vcmp.ne.f32.partialorder %v7657_v50, %v7657_v50  ;;  %v7664_v59 = vmul.f32 16.0, %v7657_v50 }
 0xe2d   : > { %vm14474_vm15 = vcmp.gt.f32.partialorder %v7661_v29, 29.0  ;;  %v14478_v32 = vsel %vm7663_vm0, -0.0, %v7664_v59 }
 0xe2e   : > { %v18365_v46 = vsel %vm14474_vm15, 4294967295, %v18364_v46  ;;  %18367 = vst [vmem:[#allocation700_spill] sm:$0xff] %v14478_v32 }
 0xe2f   : > { %18366 = vst [vmem:[#allocation699_spill] sm:$0xff] %v18365_v46 }
 0xe30   : > { %7685 = vst [vmem:[#allocation248] sm:$0xff] %v18343_v52  ;;  %v18368_v44 = vmov 0 }
 0xe37   : > { %v7687_v61 = vld [vmem:[#allocation248 + $0x6] sm:$0x3] }
 0xe38   : > { %v7688_v35 = vunpack.c.0.f8e4m3b11 %v7687_v61 }
 0xe3a   : > { %v7692_v51 = vand.u32 2147483647, %v7688_v35  ;;  %vm7694_vm8 = vcmp.ne.f32.partialorder %v7688_v35, %v7688_v35  ;;  %v7695_v57 = vmul.f32 16.0, %v7688_v35 }
 0xe3c   : > { %vm14484_vm11 = vcmp.gt.f32.partialorder %v7692_v51, 29.0  ;;  %v14488_v29 = vsel %vm7694_vm8, -0.0, %v7695_v57 }
 0xe3d   : > { %v18369_v44 = vsel %vm14484_vm11, 4294967295, %v18368_v44  ;;  %18371 = vst [vmem:[#allocation702_spill] sm:$0xff] %v14488_v29 }
 0xe3e   : > { %18370 = vst [vmem:[#allocation701_spill] sm:$0xff] %v18369_v44 }
 0xe3f   : > { %v18372_v59 = vld [vmem:[#allocation275_spill] sm:$0xff]  ;;  %v18373_v32 = vmov 0 }
 0xe40   : > { %7716 = vst [vmem:[#allocation249] sm:$0xff] %v18372_v59 }
 0xe47   : > { %v7717_v49 = vld [vmem:[#allocation249] sm:$0x3] }
 0xe48   : > { %v7718_v36 = vunpack.c.0.f8e4m3b11 %v7717_v49 }
 0xe4a   : > { %v7722_v52 = vand.u32 2147483647, %v7718_v36  ;;  %vm7724_vm0 = vcmp.ne.f32.partialorder %v7718_v36, %v7718_v36  ;;  %v7725_v61 = vmul.f32 16.0, %v7718_v36 }
 0xe4c   : > { %vm14494_vm15 = vcmp.gt.f32.partialorder %v7722_v52, 29.0  ;;  %v14498_v35 = vsel %vm7724_vm0, -0.0, %v7725_v61 }
 0xe4d   : > { %v18374_v32 = vsel %vm14494_vm15, 4294967295, %v18373_v32  ;;  %18376 = vst [vmem:[#allocation703_spill] sm:$0xff] %v14498_v35 }
 0xe4e   : > { %18375 = vst [vmem:[#allocation275_spill] sm:$0xff] %v18374_v32 }
 0xe4f   : > { %v18377_v57 = vld [vmem:[#allocation276_spill] sm:$0xff]  ;;  %v18378_v46 = vmov 0 }
 0xe50   : > { %7746 = vst [vmem:[#allocation250] sm:$0xff] %v18377_v57 }
 0xe57   : > { %v7747_v50 = vld [vmem:[#allocation250] sm:$0x3] }
 0xe58   : > { %v7748_v29 = vunpack.c.0.f8e4m3b11 %v7747_v50 }
 0xe5a   : > { %v7752_v44 = vand.u32 2147483647, %v7748_v29  ;;  %vm7754_vm8 = vcmp.ne.f32.partialorder %v7748_v29, %v7748_v29  ;;  %v7755_v49 = vmul.f32 16.0, %v7748_v29 }
 0xe5c   : > { %vm14504_vm11 = vcmp.gt.f32.partialorder %v7752_v44, 29.0  ;;  %v14508_v36 = vsel %vm7754_vm8, -0.0, %v7755_v49 }
 0xe5d   : > { %v18379_v46 = vsel %vm14504_vm11, 4294967295, %v18378_v46  ;;  %18381 = vst [vmem:[#allocation704_spill] sm:$0xff] %v14508_v36 }
 0xe5e   : > { %18380 = vst [vmem:[#allocation276_spill] sm:$0xff] %v18379_v46 }
 0xe5f   : > { %7776 = vst [vmem:[#allocation251] sm:$0xff] %v18372_v59  ;;  %v18382_v32 = vmov 0 }
 0xe66   : > { %v7778_v61 = vld [vmem:[#allocation251 + $0x2] sm:$0x3] }
 0xe67   : > { %v7779_v51 = vunpack.c.0.f8e4m3b11 %v7778_v61 }
 0xe69   : > { %v7783_v35 = vand.u32 2147483647, %v7779_v51  ;;  %vm7785_vm0 = vcmp.ne.f32.partialorder %v7779_v51, %v7779_v51  ;;  %v7786_v50 = vmul.f32 16.0, %v7779_v51 }
 0xe6b   : > { %vm14514_vm15 = vcmp.gt.f32.partialorder %v7783_v35, 29.0  ;;  %v14518_v44 = vsel %vm7785_vm0, -0.0, %v7786_v50 }
 0xe6c   : > { %v18383_v32 = vsel %vm14514_vm15, 4294967295, %v18382_v32  ;;  %18385 = vst [vmem:[#allocation706_spill] sm:$0xff] %v14518_v44 }
 0xe6d   : > { %18384 = vst [vmem:[#allocation705_spill] sm:$0xff] %v18383_v32 }
 0xe6e   : > { %7807 = vst [vmem:[#allocation252] sm:$0xff] %v18377_v57  ;;  %v18386_v46 = vmov 0 }
 0xe75   : > { %v7809_v49 = vld [vmem:[#allocation252 + $0x2] sm:$0x3] }
 0xe76   : > { %v7810_v52 = vunpack.c.0.f8e4m3b11 %v7809_v49 }
 0xe78   : > { %v7814_v36 = vand.u32 2147483647, %v7810_v52  ;;  %vm7816_vm8 = vcmp.ne.f32.partialorder %v7810_v52, %v7810_v52  ;;  %v7817_v61 = vmul.f32 16.0, %v7810_v52 }
 0xe7a   : > { %vm14524_vm11 = vcmp.gt.f32.partialorder %v7814_v36, 29.0  ;;  %v14528_v35 = vsel %vm7816_vm8, -0.0, %v7817_v61 }
 0xe7b   : > { %v18387_v46 = vsel %vm14524_vm11, 4294967295, %v18386_v46  ;;  %18389 = vst [vmem:[#allocation708_spill] sm:$0xff] %v14528_v35 }
 0xe7c   : > { %18388 = vst [vmem:[#allocation707_spill] sm:$0xff] %v18387_v46 }
 0xe7d   : > { %7838 = vst [vmem:[#allocation253] sm:$0xff] %v18372_v59  ;;  %v18390_v32 = vmov 0 }
 0xe84   : > { %v7840_v50 = vld [vmem:[#allocation253 + $0x4] sm:$0x3] }
 0xe85   : > { %v7841_v29 = vunpack.c.0.f8e4m3b11 %v7840_v50 }
 0xe87   : > { %v7845_v44 = vand.u32 2147483647, %v7841_v29  ;;  %vm7847_vm0 = vcmp.ne.f32.partialorder %v7841_v29, %v7841_v29  ;;  %v7848_v49 = vmul.f32 16.0, %v7841_v29 }
 0xe89   : > { %vm14534_vm15 = vcmp.gt.f32.partialorder %v7845_v44, 29.0  ;;  %v14538_v36 = vsel %vm7847_vm0, -0.0, %v7848_v49 }
 0xe8a   : > { %v18391_v32 = vsel %vm14534_vm15, 4294967295, %v18390_v32  ;;  %18393 = vst [vmem:[#allocation710_spill] sm:$0xff] %v14538_v36 }
 0xe8b   : > { %18392 = vst [vmem:[#allocation709_spill] sm:$0xff] %v18391_v32 }
 0xe8c   : > { %7869 = vst [vmem:[#allocation254] sm:$0xff] %v18377_v57  ;;  %v18394_v46 = vmov 0 }
 0xe93   : > { %v7871_v61 = vld [vmem:[#allocation254 + $0x4] sm:$0x3] }
 0xe94   : > { %v7872_v51 = vunpack.c.0.f8e4m3b11 %v7871_v61 }
 0xe96   : > { %v7876_v35 = vand.u32 2147483647, %v7872_v51  ;;  %vm7878_vm8 = vcmp.ne.f32.partialorder %v7872_v51, %v7872_v51  ;;  %v7879_v50 = vmul.f32 16.0, %v7872_v51 }
 0xe98   : > { %vm14544_vm11 = vcmp.gt.f32.partialorder %v7876_v35, 29.0  ;;  %v14548_v44 = vsel %vm7878_vm8, -0.0, %v7879_v50 }
 0xe99   : > { %v18395_v46 = vsel %vm14544_vm11, 4294967295, %v18394_v46  ;;  %18397 = vst [vmem:[#allocation712_spill] sm:$0xff] %v14548_v44 }
 0xe9a   : > { %18396 = vst [vmem:[#allocation711_spill] sm:$0xff] %v18395_v46 }
 0xe9b   : > { %7900 = vst [vmem:[#allocation255] sm:$0xff] %v18372_v59  ;;  %v18398_v32 = vmov 0 }
 0xea2   : > { %v7902_v49 = vld [vmem:[#allocation255 + $0x6] sm:$0x3] }
 0xea3   : > { %v7903_v52 = vunpack.c.0.f8e4m3b11 %v7902_v49 }
 0xea5   : > { %v7907_v36 = vand.u32 2147483647, %v7903_v52  ;;  %vm7909_vm0 = vcmp.ne.f32.partialorder %v7903_v52, %v7903_v52  ;;  %v7910_v61 = vmul.f32 16.0, %v7903_v52 }
 0xea7   : > { %vm14554_vm15 = vcmp.gt.f32.partialorder %v7907_v36, 29.0  ;;  %v14558_v35 = vsel %vm7909_vm0, -0.0, %v7910_v61 }
 0xea8   : > { %v18399_v32 = vsel %vm14554_vm15, 4294967295, %v18398_v32  ;;  %18401 = vst [vmem:[#allocation714_spill] sm:$0xff] %v14558_v35 }
 0xea9   : > { %18400 = vst [vmem:[#allocation713_spill] sm:$0xff] %v18399_v32 }
 0xeaa   : > { %7931 = vst [vmem:[#allocation256] sm:$0xff] %v18377_v57  ;;  %v18402_v44 = vmov 0 }
 0xeb1   : > { %v7933_v50 = vld [vmem:[#allocation256 + $0x6] sm:$0x3] }
 0xeb2   : > { %v7934_v29 = vunpack.c.0.f8e4m3b11 %v7933_v50 }
 0xeb4   : > { %v7938_v59 = vand.u32 2147483647, %v7934_v29  ;;  %vm7940_vm8 = vcmp.ne.f32.partialorder %v7934_v29, %v7934_v29  ;;  %v7941_v49 = vmul.f32 16.0, %v7934_v29 }
 0xeb6   : > { %vm14564_vm11 = vcmp.gt.f32.partialorder %v7938_v59, 29.0  ;;  %v14568_v36 = vsel %vm7940_vm8, -0.0, %v7941_v49 }
 0xeb7   : > { %v18403_v44 = vsel %vm14564_vm11, 4294967295, %v18402_v44  ;;  %18405 = vst [vmem:[#allocation716_spill] sm:$0xff] %v14568_v36 }
 0xeb8   : > { %18404 = vst [vmem:[#allocation715_spill] sm:$0xff] %v18403_v44 }
 0xeb9   : > { %v18406_v61 = vld [vmem:[#allocation277_spill] sm:$0xff]  ;;  %v18407_v35 = vmov 0 }
 0xeba   : > { %7962 = vst [vmem:[#allocation257] sm:$0xff] %v18406_v61 }
 0xec1   : > { %v7963_v51 = vld [vmem:[#allocation257] sm:$0x3] }
 0xec2   : > { %v7964_v46 = vunpack.c.0.f8e4m3b11 %v7963_v51 }
 0xec4   : > { %v7968_v57 = vand.u32 2147483647, %v7964_v46  ;;  %vm7970_vm0 = vcmp.ne.f32.partialorder %v7964_v46, %v7964_v46  ;;  %v7971_v50 = vmul.f32 16.0, %v7964_v46 }
 0xec6   : > { %vm14574_vm15 = vcmp.gt.f32.partialorder %v7968_v57, 29.0  ;;  %v14578_v29 = vsel %vm7970_vm0, -0.0, %v7971_v50 }
 0xec7   : > { %v18408_v35 = vsel %vm14574_vm15, 4294967295, %v18407_v35  ;;  %18410 = vst [vmem:[#allocation717_spill] sm:$0xff] %v14578_v29 }
 0xec8   : > { %18409 = vst [vmem:[#allocation277_spill] sm:$0xff] %v18408_v35 }
 0xec9   : > { %v18411_v49 = vld [vmem:[#allocation278_spill] sm:$0xff]  ;;  %v18412_v32 = vmov 0 }
 0xeca   : > { %7992 = vst [vmem:[#allocation258] sm:$0xff] %v18411_v49 }
 0xed1   : > { %v7993_v52 = vld [vmem:[#allocation258] sm:$0x3] }
 0xed2   : > { %v7994_v36 = vunpack.c.0.f8e4m3b11 %v7993_v52 }
 0xed4   : > { %v7998_v44 = vand.u32 2147483647, %v7994_v36  ;;  %vm8000_vm8 = vcmp.ne.f32.partialorder %v7994_v36, %v7994_v36  ;;  %v8001_v51 = vmul.f32 16.0, %v7994_v36 }
 0xed6   : > { %vm14584_vm11 = vcmp.gt.f32.partialorder %v7998_v44, 29.0  ;;  %v14588_v46 = vsel %vm8000_vm8, -0.0, %v8001_v51 }
 0xed7   : > { %v18413_v32 = vsel %vm14584_vm11, 4294967295, %v18412_v32  ;;  %18415 = vst [vmem:[#allocation718_spill] sm:$0xff] %v14588_v46 }
 0xed8   : > { %18414 = vst [vmem:[#allocation278_spill] sm:$0xff] %v18413_v32 }
 0xed9   : > { %8022 = vst [vmem:[#allocation259] sm:$0xff] %v18406_v61  ;;  %v18416_v35 = vmov 0 }
 0xee0   : > { %v8024_v50 = vld [vmem:[#allocation259 + $0x2] sm:$0x3] }
 0xee1   : > { %v8025_v59 = vunpack.c.0.f8e4m3b11 %v8024_v50 }
 0xee3   : > { %v8029_v29 = vand.u32 2147483647, %v8025_v59  ;;  %vm8031_vm0 = vcmp.ne.f32.partialorder %v8025_v59, %v8025_v59  ;;  %v8032_v52 = vmul.f32 16.0, %v8025_v59 }
 0xee5   : > { %vm14594_vm15 = vcmp.gt.f32.partialorder %v8029_v29, 29.0  ;;  %v14598_v44 = vsel %vm8031_vm0, -0.0, %v8032_v52 }
 0xee6   : > { %v18417_v35 = vsel %vm14594_vm15, 4294967295, %v18416_v35  ;;  %18419 = vst [vmem:[#allocation720_spill] sm:$0xff] %v14598_v44 }
 0xee7   : > { %18418 = vst [vmem:[#allocation719_spill] sm:$0xff] %v18417_v35 }
 0xee8   : > { %8053 = vst [vmem:[#allocation260] sm:$0xff] %v18411_v49  ;;  %v18420_v32 = vmov 0 }
 0xeef   : > { %v8055_v51 = vld [vmem:[#allocation260 + $0x2] sm:$0x3] }
 0xef0   : > { %v8056_v57 = vunpack.c.0.f8e4m3b11 %v8055_v51 }
 0xef2   : > { %v8060_v46 = vand.u32 2147483647, %v8056_v57  ;;  %vm8062_vm8 = vcmp.ne.f32.partialorder %v8056_v57, %v8056_v57  ;;  %v8063_v50 = vmul.f32 16.0, %v8056_v57 }
 0xef4   : > { %vm14604_vm11 = vcmp.gt.f32.partialorder %v8060_v46, 29.0  ;;  %v14608_v29 = vsel %vm8062_vm8, -0.0, %v8063_v50 }
 0xef5   : > { %v18421_v32 = vsel %vm14604_vm11, 4294967295, %v18420_v32  ;;  %18423 = vst [vmem:[#allocation722_spill] sm:$0xff] %v14608_v29 }
 0xef6   : > { %18422 = vst [vmem:[#allocation721_spill] sm:$0xff] %v18421_v32 }
 0xef7   : > { %8084 = vst [vmem:[#allocation261] sm:$0xff] %v18406_v61  ;;  %v18424_v35 = vmov 0 }
 0xefe   : > { %v8086_v52 = vld [vmem:[#allocation261 + $0x4] sm:$0x3] }
 0xeff   : > { %v8087_v36 = vunpack.c.0.f8e4m3b11 %v8086_v52 }
 0xf01   : > { %v8091_v44 = vand.u32 2147483647, %v8087_v36  ;;  %vm8093_vm0 = vcmp.ne.f32.partialorder %v8087_v36, %v8087_v36  ;;  %v8094_v51 = vmul.f32 16.0, %v8087_v36 }
 0xf03   : > { %vm14614_vm15 = vcmp.gt.f32.partialorder %v8091_v44, 29.0  ;;  %v14618_v46 = vsel %vm8093_vm0, -0.0, %v8094_v51 }
 0xf04   : > { %v18425_v35 = vsel %vm14614_vm15, 4294967295, %v18424_v35 }
 0xf05   : > { %8115 = vst [vmem:[#allocation262] sm:$0xff] %v18411_v49  ;;  %v18426_v32 = vmov 0 }
 0xf0c   : > { %v8117_v50 = vld [vmem:[#allocation262 + $0x4] sm:$0x3] }
 0xf0d   : > { %v8118_v59 = vunpack.c.0.f8e4m3b11 %v8117_v50 }
 0xf0f   : > { %v8122_v29 = vand.u32 2147483647, %v8118_v59  ;;  %vm8124_vm8 = vcmp.ne.f32.partialorder %v8118_v59, %v8118_v59  ;;  %v8125_v52 = vmul.f32 16.0, %v8118_v59 }
 0xf11   : > { %vm14624_vm11 = vcmp.gt.f32.partialorder %v8122_v29, 29.0  ;;  %v14628_v44 = vsel %vm8124_vm8, -0.0, %v8125_v52 }
 0xf12   : > { %v18427_v32 = vsel %vm14624_vm11, 4294967295, %v18426_v32  ;;  %18428 = vst [vmem:[#allocation723_spill] sm:$0xff] %v14628_v44 }
 0xf13   : > { %8146 = vst [vmem:[#allocation263] sm:$0xff] %v18406_v61 }
 0xf1a   : > { %v8148_v51 = vld [vmem:[#allocation263 + $0x6] sm:$0x3] }
 0xf1b   : > { %v8149_v57 = vunpack.c.0.f8e4m3b11 %v8148_v51 }
 0xf1d   : > { %v8153_v24 = vand.u32 2147483647, %v8149_v57  ;;  %vm8155_vm0 = vcmp.ne.f32.partialorder %v8149_v57, %v8149_v57  ;;  %v8156_v50 = vmul.f32 16.0, %v8149_v57 }
 0xf1f   : > { %vm14634_vm15 = vcmp.gt.f32.partialorder %v8153_v24, 29.0  ;;  %v14638_v29 = vsel %vm8155_vm0, -0.0, %v8156_v50 }
 0xf20   : > { %v8158_v59 = vsel %vm14634_vm15, nan, %v14638_v29 }
 0xf21   : > { %8177 = vst [vmem:[#allocation264] sm:$0xff] %v18411_v49  ;;  %v18433_v50 = vsel %vm12374_vm1, nan, %v12378_v2  ;;  %v18434_v49 = vsel %vm12394_vm13, nan, %v12398_v58  ;;  %v18437_v53 = vsel %vm13014_vm9, nan, %v13018_v18  ;;  %v18438_v60 = vsel %vm13034_vm6, nan, %v13038_v15  ;;  %v18461_v15 = vld [vmem:[#allocation375_spill] sm:$0xff] }
 0xf22   : > { %v8254_v2 = vpack.c.bf16 %v18438_v60, %v18437_v53  ;;  %v18439_v62 = vsel %vm13334_vm3, nan, %v13338_v26  ;;  %v18440_v63 = vsel %vm13354_vm7, nan, %v13358_v23  ;;  %v18442_v6 = vsel %vm12354_vm5, nan, %v12358_v55  ;;  %v18465_v26 = vld [vmem:[#allocation379_spill] sm:$0xff]  ;;  %v11314_v44 = vld [vmem:[#allocation2 + $0x3f0] sm:$0xf0] }
 0xf23   : > { %v8270_v58 = vpack.c.bf16 %v18440_v63, %v18439_v62  ;;  %v18444_v14 = vsel %vm12674_vm10, nan, %v12678_v5  ;;  %vm18445_vm1 = vnez %v17791_v12  ;;  %vm18447_vm3 = vnez %v17797_v8  ;;  %v18455_v5 = vld [vmem:[#allocation320_spill] sm:$0xff]  ;;  %v18477_v60 = vld [vmem:[#allocation487_spill] sm:$0xff]  ;;  %s11460_s27 = sshll.u32 %s11714_s15, 3  ;;  %s10678_s5 = sshll.u32 %s12091_s20, 4  ;;  %s10679_s5 = int_to_ptr.vmem [resolvable:$true] %s10678_s5 }
 0xf24   : > { %9282 = vmatpush.bf16.msra.mxu2 %v8254_v2  ;;  %v18446_v56 = vsel %vm18445_vm1, nan, %v12978_v17  ;;  %v18448_v54 = vsel %vm18447_vm3, nan, %v12998_v13  ;;  %vm18449_vm5 = vnez %v17911_v20  ;;  %vm18451_vm7 = vnez %v17917_v16  ;;  %v18457_v17 = vld [vmem:[#allocation323_spill] sm:$0xff]  ;;  %v18459_v8 = vld [vmem:[#allocation324_spill] sm:$0xff]  ;;  %s10677_s4 = scalar_lea.hbm %s16620_s3, %s11460_s27  ;;  %s10663_s15 = scalar_lea.sflag [#allocation4], %s11882_s29 }
 0xf25   : > { %9371 = vmatpush.bf16.msra.mxu3 %v8270_v58  ;;  %v18450_v55 = vsel %vm18449_vm5, nan, %v13298_v25  ;;  %v18452_v0 = vsel %vm18451_vm7, nan, %v13318_v21  ;;  %vm18458_vm13 = vnez %v18457_v17  ;;  %v18463_v20 = vld [vmem:[#allocation376_spill] sm:$0xff]  ;;  %vm18466_vm6 = vnez %v18465_v26  ;;  %v18481_v63 = vld [vmem:[#allocation491_spill] sm:$0xff]  ;;  %s10680_s9 = sshll.u32 %s10677_s4, 4  ;;  %s11656_s23 = scalar_lea.hbm %s16620_s3, 512  ;;  %s10681_s9 = int_to_ptr.hbm [resolvable:$true] %s10680_s9 }
 0xf26   : > { %v8268_v4 = vpack.c.bf16 %v18452_v0, %v18450_v55  ;;  %v18460_v13 = vsel %vm18458_vm13, nan, %v18459_v8  ;;  %v18467_v16 = vld [vmem:[#allocation380_spill] sm:$0xff]  ;;  %v18493_v55 = vld [vmem:[#allocation367_spill] sm:$0xff]  ;;  %vm18659_vm15 = vnez %v18280_v40  ;;  %v18672_v40 = vld [vmem:[#allocation717_spill] sm:$0xff]  ;;  %s11650_s10 = sshra.s32 %s10681_s9, 4  ;;  %s11651_s10 = int_to_ptr.hbm [resolvable:$true] %s11650_s10 }
 0xf27   : > { %v18468_v21 = vsel %vm18466_vm6, nan, %v18467_v16  ;;  %v18479_v2 = vld [vmem:[#allocation488_spill] sm:$0xff]  ;;  %vm18494_vm1 = vnez %v18493_v55  ;;  %v18501_v8 = vld [vmem:[#allocation423_spill] sm:$0xff]  ;;  %v18660_v33 = vsel %vm18659_vm15, nan, %v14258_v45  ;;  %s11652_s19 = scalar_lea.hbm %s11651_s10, 256  ;;  %p11657_p10 = scmp.lt.s32.totalorder %s11651_s10, %s16620_s3 }
 0xf28   : > { %v8179_v52 = vld [vmem:[#allocation264 + $0x6] sm:$0x3]  ;;  %vm18502_vm5 = vnez %v18501_v8  ;;  %v18509_v16 = vld [vmem:[#allocation479_spill] sm:$0xff]  ;;  %p11653_p7 = scmp.ne.s32.totalorder %s11651_s10, %s11652_s19  ;;  %p11658_p11 = scmp.lt.s32.totalorder %s11656_s23, %s11652_s19 }
 0xf29   : > { %v8180_v36 = vunpack.c.0.f8e4m3b11 %v8179_v52  ;;  %v8222_v52 = vpack.c.bf16 %v18434_v49, %v18433_v50  ;;  %9372 = vmatpush.bf16.msra.mxu3 %v8268_v4  ;;  %v18469_v50 = vld [vmem:[#allocation431_spill] sm:$0xff]  ;;  %v18471_v49 = vld [vmem:[#allocation432_spill] sm:$0xff] }
 0xf2a   : > { %vm18470_vm10 = vnez %v18469_v50  ;;  %v18483_v58 = vld [vmem:[#allocation492_spill] sm:$0xff]  ;;  %v18513_v50 = vld [vmem:[#allocation483_spill] sm:$0xff]  ;;  %p11654_p8 = pnand %p11653_p7, %p11843_p0  ;;  %p11659_p12 = por %p11658_p11, %p11657_p10 }
 0xf2b   : > { %v8184_v61 = vand.u32 2147483647, %v8180_v36  ;;  %vm8186_vm8 = vcmp.ne.f32.partialorder %v8180_v36, %v8180_v36  ;;  %v8187_v51 = vmul.f32 16.0, %v8180_v36  ;;  %v18435_v36 = vsel %vm12694_vm2, nan, %v12698_v10  ;;  %9104 = vmatpush.bf16.msra.mxu0 %v8222_v52  ;;  %v18495_v0 = vld [vmem:[#allocation368_spill] sm:$0xff]  ;;  %v18537_v55 = vld [vmem:[#allocation419_spill] sm:$0xff] }
 0xf2c   : > { %v18441_v10 = vsel %vm12334_vm12, nan, %v12338_v1  ;;  %v8252_v1 = vpack.c.bf16 %v18448_v54, %v18446_v56  ;;  %vm18462_vm2 = vnez %v18461_v15  ;;  %v18472_v52 = vsel %vm18470_vm10, nan, %v18471_v49  ;;  %v18491_v56 = vld [vmem:[#allocation316_spill] sm:$0xff]  ;;  %v18505_v15 = vld [vmem:[#allocation427_spill] sm:$0xff]  ;;  %p11655_p9 = pneg %p11654_p8 }
 0xf2d   : > { %vm14644_vm11 = vcmp.gt.f32.partialorder %v8184_v61, 29.0  ;;  %v14648_v24 = vsel %vm8186_vm8, -0.0, %v8187_v51  ;;  %v18436_v61 = vsel %vm12714_vm14, nan, %v12718_v7  ;;  %v8220_v3 = vpack.c.bf16 %v18442_v6, %v18441_v10  ;;  %v18515_v49 = vld [vmem:[#allocation484_spill] sm:$0xff]  ;;  %v18545_v8 = vld [vmem:[#allocation475_spill] sm:$0xff] }
 0xf2e   : > { %v8238_v51 = vpack.c.bf16 %v18436_v61, %v18435_v36  ;;  %v18443_v7 = vsel %vm12654_vm4, nan, %v12658_v9  ;;  %v18453_v9 = vld [vmem:[#allocation319_spill] sm:$0xff]  ;;  %v18464_v25 = vsel %vm18462_vm2, nan, %v18463_v20  ;;  %9283 = vmatpush.bf16.msra.mxu2 %v8252_v1  ;;  %v18475_v61 = vld [vmem:[#allocation436_spill] sm:$0xff]  ;;  %vm18478_vm4 = vnez %v18477_v60  ;;  %p11660_p13 = pnand %p11659_p12, %p11655_p9 }
 0xf2f   : > { %v8236_v18 = vpack.c.bf16 %v18444_v14, %v18443_v7  ;;  %9105 = vmatpush.bf16.msra.mxu0 %v8220_v3  ;;  %vm18454_vm9 = vnez %v18453_v9  ;;  %v8234_v23 = vpack.c.bf16 %v18468_v21, %v18464_v25  ;;  %v18473_v36 = vld [vmem:[#allocation435_spill] sm:$0xff]  ;;  %v18480_v62 = vsel %vm18478_vm4, nan, %v18479_v2  ;;  %v18487_v7 = vld [vmem:[#allocation312_spill] sm:$0xff] }
 0xf30   : > { %9193 = vmatpush.bf16.msra.mxu1 %v8238_v51  ;;  %v18456_v12 = vsel %vm18454_vm9, nan, %v18455_v5  ;;  %vm18474_vm14 = vnez %v18473_v36  ;;  %vm18482_vm12 = vnez %v18481_v63  ;;  %v18485_v3 = vld [vmem:[#allocation311_spill] sm:$0xff]  ;;  %v18496_v4 = vsel %vm18494_vm1, nan, %v18495_v0  ;;  %v18499_v5 = vld [vmem:[#allocation372_spill] sm:$0xff] }
 0xf31   : > { %v8218_v11 = vpack.c.bf16 %v18460_v13, %v18456_v12  ;;  %v18476_v51 = vsel %vm18474_vm14, nan, %v18475_v61  ;;  %v18484_v10 = vsel %vm18482_vm12, nan, %v18483_v58  ;;  %vm18486_vm0 = vnez %v18485_v3  ;;  %v18497_v9 = vld [vmem:[#allocation371_spill] sm:$0xff]  ;;  %v18503_v13 = vld [vmem:[#allocation424_spill] sm:$0xff] }
 0xf32   : > { %v8250_v53 = vpack.c.bf16 %v18476_v51, %v18472_v52  ;;  %v8266_v6 = vpack.c.bf16 %v18484_v10, %v18480_v62  ;;  %v18488_v14 = vsel %vm18486_vm0, nan, %v18487_v7  ;;  %vm18498_vm3 = vnez %v18497_v9  ;;  %v18507_v20 = vld [vmem:[#allocation428_spill] sm:$0xff]  ;;  %v18517_v61 = vld [vmem:[#allocation303_spill] sm:$0xff] }
 0xf33   : > { %9106 = vmatpush.bf16.msra.mxu0 %v8218_v11  ;;  %v18500_v12 = vsel %vm18498_vm3, nan, %v18499_v5  ;;  %v18504_v11 = vsel %vm18502_vm5, nan, %v18503_v13  ;;  %vm18506_vm7 = vnez %v18505_v15  ;;  %vm18510_vm9 = vnez %v18509_v16  ;;  %v18511_v21 = vld [vmem:[#allocation480_spill] sm:$0xff]  ;;  %v18521_v60 = vld [vmem:[#allocation307_spill] sm:$0xff] }
 0xf34   : > { %9194 = vmatpush.bf16.msra.mxu1 %v8236_v18  ;;  %v18489_v18 = vld [vmem:[#allocation315_spill] sm:$0xff]  ;;  %v8232_v17 = vpack.c.bf16 %v18500_v12, %v18496_v4  ;;  %9284 = vmatpush.bf16.msra.mxu2 %v8250_v53  ;;  %v18508_v25 = vsel %vm18506_vm7, nan, %v18507_v20  ;;  %vm18514_vm13 = vnez %v18513_v50  ;;  %vm18518_vm2 = vnez %v18517_v61  ;;  %v18519_v51 = vld [vmem:[#allocation304_spill] sm:$0xff] }
 0xf35   : > { %vm18490_vm8 = vnez %v18489_v18  ;;  %9373 = vmatpush.bf16.msra.mxu3 %v8266_v6  ;;  %v8248_v26 = vpack.c.bf16 %v18508_v25, %v18504_v11  ;;  %v18516_v52 = vsel %vm18514_vm13, nan, %v18515_v49  ;;  %v18520_v53 = vsel %vm18518_vm2, nan, %v18519_v51  ;;  %v18523_v2 = vld [vmem:[#allocation308_spill] sm:$0xff]  ;;  %v18525_v58 = vld [vmem:[#allocation359_spill] sm:$0xff] }
 0xf36   : > { %v18492_v54 = vsel %vm18490_vm8, nan, %v18491_v56  ;;  %vm18522_vm6 = vnez %v18521_v60  ;;  %vm18526_vm10 = vnez %v18525_v58  ;;  %v18527_v10 = vld [vmem:[#allocation360_spill] sm:$0xff]  ;;  %v18529_v3 = vld [vmem:[#allocation363_spill] sm:$0xff]  ;;  %vm18538_vm12 = vnez %v18537_v55 }
 0xf37   : > { %v8216_v1 = vpack.c.bf16 %v18492_v54, %v18488_v14  ;;  %v18524_v62 = vsel %vm18522_vm6, nan, %v18523_v2  ;;  %v18528_v6 = vsel %vm18526_vm10, nan, %v18527_v10  ;;  %vm18530_vm14 = vnez %v18529_v3  ;;  %v18531_v7 = vld [vmem:[#allocation364_spill] sm:$0xff]  ;;  %v18533_v56 = vld [vmem:[#allocation415_spill] sm:$0xff] }
 0xf38   : > { %9195 = vmatpush.bf16.msra.mxu1 %v8234_v23  ;;  %v18512_v23 = vsel %vm18510_vm9, nan, %v18511_v21  ;;  %v8214_v63 = vpack.c.bf16 %v18524_v62, %v18520_v53  ;;  %v18532_v14 = vsel %vm18530_vm14, nan, %v18531_v7  ;;  %9285 = vmatpush.bf16.msra.mxu2 %v8248_v26  ;;  %vm18534_vm4 = vnez %v18533_v56  ;;  %v18535_v54 = vld [vmem:[#allocation416_spill] sm:$0xff]  ;;  %v18541_v5 = vld [vmem:[#allocation471_spill] sm:$0xff] }
 0xf39   : > { %v8264_v36 = vpack.c.bf16 %v18516_v52, %v18512_v23  ;;  %9107 = vmatpush.bf16.msra.mxu0 %v8216_v1  ;;  %v8230_v18 = vpack.c.bf16 %v18532_v14, %v18528_v6  ;;  %v18536_v1 = vsel %vm18534_vm4, nan, %v18535_v54  ;;  %v18539_v0 = vld [vmem:[#allocation420_spill] sm:$0xff]  ;;  %vm18542_vm0 = vnez %v18541_v5  ;;  %v18549_v20 = vld [vmem:[#allocation295_spill] sm:$0xff] }
 0xf3a   : > { %v18540_v4 = vsel %vm18538_vm12, nan, %v18539_v0  ;;  %v18543_v12 = vld [vmem:[#allocation472_spill] sm:$0xff]  ;;  %vm18546_vm8 = vnez %v18545_v8  ;;  %vm18550_vm1 = vnez %v18549_v20  ;;  %v18553_v16 = vld [vmem:[#allocation299_spill] sm:$0xff] }
 0xf3b   : > { %9374 = vmatpush.bf16.msra.mxu3 %v8264_v36  ;;  %v8246_v9 = vpack.c.bf16 %v18540_v4, %v18536_v1  ;;  %v18547_v13 = vld [vmem:[#allocation476_spill] sm:$0xff]  ;;  %vm18554_vm3 = vnez %v18553_v16  ;;  %v18557_v49 = vld [vmem:[#allocation351_spill] sm:$0xff] }
 0xf3c   : > { %9196 = vmatpush.bf16.msra.mxu1 %v8232_v17  ;;  %v18544_v17 = vsel %vm18542_vm0, nan, %v18543_v12  ;;  %v18548_v11 = vsel %vm18546_vm8, nan, %v18547_v13  ;;  %v18551_v25 = vld [vmem:[#allocation296_spill] sm:$0xff]  ;;  %vm18558_vm5 = vnez %v18557_v49  ;;  %v18561_v61 = vld [vmem:[#allocation355_spill] sm:$0xff] }
 0xf3d   : > { %v8262_v15 = vpack.c.bf16 %v18548_v11, %v18544_v17  ;;  %9108 = vmatpush.bf16.msra.mxu0 %v8214_v63  ;;  %v18552_v26 = vsel %vm18550_vm1, nan, %v18551_v25  ;;  %v18555_v21 = vld [vmem:[#allocation300_spill] sm:$0xff]  ;;  %vm18562_vm7 = vnez %v18561_v61  ;;  %9286 = vmatpush.bf16.msra.mxu2 %v8246_v9  ;;  %v18565_v2 = vld [vmem:[#allocation407_spill] sm:$0xff] }
 0xf3e   : > { %v18556_v23 = vsel %vm18554_vm3, nan, %v18555_v21  ;;  %v18559_v52 = vld [vmem:[#allocation352_spill] sm:$0xff]  ;;  %vm18566_vm9 = vnez %v18565_v2  ;;  %v18569_v58 = vld [vmem:[#allocation411_spill] sm:$0xff] }
 0xf3f   : > { %v8212_v50 = vpack.c.bf16 %v18556_v23, %v18552_v26  ;;  %v18560_v36 = vsel %vm18558_vm5, nan, %v18559_v52  ;;  %v18563_v51 = vld [vmem:[#allocation356_spill] sm:$0xff]  ;;  %9375 = vmatpush.bf16.msra.mxu3 %v8262_v15  ;;  %vm18570_vm13 = vnez %v18569_v58  ;;  %v18573_v7 = vld [vmem:[#allocation463_spill] sm:$0xff] }
 0xf40   : > { %9197 = vmatpush.bf16.msra.mxu1 %v8230_v18  ;;  %v18564_v53 = vsel %vm18562_vm7, nan, %v18563_v51  ;;  %v18567_v62 = vld [vmem:[#allocation408_spill] sm:$0xff]  ;;  %vm18574_vm2 = vnez %v18573_v7  ;;  %v18577_v56 = vld [vmem:[#allocation467_spill] sm:$0xff] }
 0xf41   : > { %v8228_v60 = vpack.c.bf16 %v18564_v53, %v18560_v36  ;;  %v18568_v63 = vsel %vm18566_vm9, nan, %v18567_v62  ;;  %v18571_v10 = vld [vmem:[#allocation412_spill] sm:$0xff]  ;;  %vm18578_vm6 = vnez %v18577_v56  ;;  %9109 = vmatpush.bf16.msra.mxu0 %v8212_v50  ;;  %v18581_v0 = vld [vmem:[#allocation287_spill] sm:$0xff] }
 0xf42   : > { %v18572_v6 = vsel %vm18570_vm13, nan, %v18571_v10  ;;  %v18575_v14 = vld [vmem:[#allocation464_spill] sm:$0xff]  ;;  %vm18582_vm10 = vnez %v18581_v0  ;;  %v18585_v5 = vld [vmem:[#allocation291_spill] sm:$0xff] }
 0xf43   : > { %v8244_v3 = vpack.c.bf16 %v18572_v6, %v18568_v63  ;;  %v18576_v18 = vsel %vm18574_vm2, nan, %v18575_v14  ;;  %v18579_v54 = vld [vmem:[#allocation468_spill] sm:$0xff]  ;;  %vm18586_vm14 = vnez %v18585_v5  ;;  %v18589_v13 = vld [vmem:[#allocation343_spill] sm:$0xff] }
 0xf44   : > { %v18580_v1 = vsel %vm18578_vm6, nan, %v18579_v54  ;;  %9198 = vmatpush.bf16.msra.mxu1 %v8228_v60  ;;  %v18583_v4 = vld [vmem:[#allocation288_spill] sm:$0xff]  ;;  %vm18590_vm4 = vnez %v18589_v13  ;;  %v18593_v20 = vld [vmem:[#allocation347_spill] sm:$0xff] }
 0xf45   : > { %v8260_v55 = vpack.c.bf16 %v18580_v1, %v18576_v18  ;;  %v18584_v9 = vsel %vm18582_vm10, nan, %v18583_v4  ;;  %v18587_v12 = vld [vmem:[#allocation292_spill] sm:$0xff]  ;;  %vm18594_vm12 = vnez %v18593_v20  ;;  %9287 = vmatpush.bf16.msra.mxu2 %v8244_v3  ;;  %v18597_v21 = vld [vmem:[#allocation399_spill] sm:$0xff] }
 0xf46   : > { %v18588_v17 = vsel %vm18586_vm14, nan, %v18587_v12  ;;  %v18591_v11 = vld [vmem:[#allocation344_spill] sm:$0xff]  ;;  %vm18598_vm0 = vnez %v18597_v21  ;;  %v18601_v49 = vld [vmem:[#allocation403_spill] sm:$0xff] }
 0xf47   : > { %v8210_v8 = vpack.c.bf16 %v18588_v17, %v18584_v9  ;;  %v18592_v15 = vsel %vm18590_vm4, nan, %v18591_v11  ;;  %v18595_v25 = vld [vmem:[#allocation348_spill] sm:$0xff]  ;;  %9376 = vmatpush.bf16.msra.mxu3 %v8260_v55  ;;  %vm18602_vm8 = vnez %v18601_v49  ;;  %v18605_v51 = vld [vmem:[#allocation455_spill] sm:$0xff]  ;;  %vm18645_vm4 = vnez %v18293_v37 }
 0xf48   : > { %v18596_v26 = vsel %vm18594_vm12, nan, %v18595_v25  ;;  %v18599_v23 = vld [vmem:[#allocation400_spill] sm:$0xff]  ;;  %vm18606_vm1 = vnez %v18605_v51  ;;  %v18609_v2 = vld [vmem:[#allocation459_spill] sm:$0xff]  ;;  %vm18647_vm12 = vnez %v18299_v41 }
 0xf49   : > { %v8226_v16 = vpack.c.bf16 %v18596_v26, %v18592_v15  ;;  %v18600_v50 = vsel %vm18598_vm0, nan, %v18599_v23  ;;  %v18603_v52 = vld [vmem:[#allocation404_spill] sm:$0xff]  ;;  %vm18610_vm3 = vnez %v18609_v2  ;;  %v10816_v10 = vld [vmem:[#allocation2] sm:$0xf]  ;;  %9110 = vmatpush.bf16.msra.mxu0 %v8210_v8  ;;  %v11333_v2 = vld [vmem:[#allocation2 + $0xc] sm:$0xf]  ;;  %vm18649_vm0 = vnez %v18046_v19 }
 0xf4a   : > { %v18604_v36 = vsel %vm18602_vm8, nan, %v18603_v52  ;;  %v18607_v53 = vld [vmem:[#allocation456_spill] sm:$0xff]  ;;  %v11336_v6 = vld [vmem:[#allocation2 + $0x1c] sm:$0xf0]  ;;  %vm18651_vm8 = vnez %v18052_v22 }
 0xf4b   : > { %v8242_v61 = vpack.c.bf16 %v18604_v36, %v18600_v50  ;;  %v18608_v60 = vsel %vm18606_vm1, nan, %v18607_v53  ;;  %v18611_v62 = vld [vmem:[#allocation460_spill] sm:$0xff]  ;;  %9199 = vmatpush.bf16.msra.mxu1 %v8226_v16  ;;  %v18613_v3 = vld [vmem:[#allocation279_spill] sm:$0xff]  ;;  %vm18653_vm1 = vnez %v18425_v35 }
 0xf4c   : > { %v18612_v63 = vsel %vm18610_vm3, nan, %v18611_v62  ;;  %vm18614_vm5 = vnez %v18613_v3  ;;  %v18615_v7 = vld [vmem:[#allocation280_spill] sm:$0xff]  ;;  %v18617_v18 = vld [vmem:[#allocation283_spill] sm:$0xff]  ;;  %v10826_v62 = vld [vmem:[#allocation2 + $0x28] sm:$0xf0]  ;;  %v18654_v19 = vsel %vm18653_vm1, nan, %v14618_v46  ;;  %vm18655_vm3 = vnez %v18170_v27 }
 0xf4d   : > { %v8258_v58 = vpack.c.bf16 %v18612_v63, %v18608_v60  ;;  %v18616_v14 = vsel %vm18614_vm5, nan, %v18615_v7  ;;  %vm18618_vm7 = vnez %v18617_v18  ;;  %v18619_v56 = vld [vmem:[#allocation284_spill] sm:$0xff]  ;;  %v18621_v55 = vld [vmem:[#allocation335_spill] sm:$0xff]  ;;  %9288 = vmatpush.bf16.msra.mxu2 %v8242_v61  ;;  %v18646_v63 = vsel %vm18645_vm4, nan, %v14298_v43 }
 0xf4e   : > { %v18620_v54 = vsel %vm18618_vm7, nan, %v18619_v56  ;;  %vm18622_vm9 = vnez %v18621_v55  ;;  %v18623_v0 = vld [vmem:[#allocation336_spill] sm:$0xff]  ;;  %v18625_v9 = vld [vmem:[#allocation339_spill] sm:$0xff]  ;;  %v18650_v7 = vsel %vm18649_vm0, nan, %v13658_v34  ;;  %v14925_v56 = vor.u32 %v11336_v6, %v10816_v10 }
 0xf4f   : > { %v8208_v1 = vpack.c.bf16 %v18620_v54, %v18616_v14  ;;  %v18624_v4 = vsel %vm18622_vm9, nan, %v18623_v0  ;;  %vm18626_vm13 = vnez %v18625_v9  ;;  %v18627_v5 = vld [vmem:[#allocation340_spill] sm:$0xff]  ;;  %9377 = vmatpush.bf16.msra.mxu3 %v8258_v58  ;;  %v18629_v15 = vld [vmem:[#allocation391_spill] sm:$0xff]  ;;  %v18648_v58 = vsel %vm18647_vm12, nan, %v14318_v47  ;;  %v18666_v47 = vld [vmem:[#allocation554_spill] sm:$0xff] }
 0xf50   : > { %v18628_v12 = vsel %vm18626_vm13, nan, %v18627_v5  ;;  %v11332_v8 = vld [vmem:[#allocation2 + $0x4] sm:$0xf]  ;;  %v10824_v11 = vld [vmem:[#allocation2 + $0x8] sm:$0xf]  ;;  %vm18630_vm2 = vnez %v18629_v15  ;;  %v18633_v26 = vld [vmem:[#allocation395_spill] sm:$0xff]  ;;  %v8318_v3 = vpack.c.bf16 %v18648_v58, %v18646_v63  ;;  %v14931_v41 = vor.u32 %v11333_v2, %v10826_v62 }
 0xf51   : > { %v8224_v17 = vpack.c.bf16 %v18628_v12, %v18624_v4  ;;  %v10818_v13 = vld [vmem:[#allocation2 + $0x20] sm:$0xf0]  ;;  %vm18634_vm6 = vnez %v18633_v26  ;;  %v18637_v50 = vld [vmem:[#allocation447_spill] sm:$0xff]  ;;  %v11337_v61 = vld [vmem:[#allocation2 + $0x24] sm:$0xf0]  ;;  %v18652_v14 = vsel %vm18651_vm8, nan, %v13678_v31  ;;  %9111 = vmatpush.bf16.msra.mxu0 %v8208_v1  ;;  %v8334_v22 = vpack.c.bf16 %v8158_v59, %v18654_v19 }
 0xf52   : > { %v18631_v20 = vld [vmem:[#allocation392_spill] sm:$0xff]  ;;  %vm18638_vm10 = vnez %v18637_v50  ;;  %v18641_v36 = vld [vmem:[#allocation451_spill] sm:$0xff]  ;;  %v8286_v18 = vpack.c.bf16 %v18652_v14, %v18650_v7  ;;  %v14927_v54 = vor.u32 %v11332_v8, %v10818_v13  ;;  %v14929_v37 = vor.u32 %v11337_v61, %v10824_v11  ;;  %v18670_v59 = vld [vmem:[#allocation277_spill] sm:$0xff] }
 0xf53   : > { %v18632_v25 = vsel %vm18630_vm2, nan, %v18631_v20  ;;  %v18635_v16 = vld [vmem:[#allocation396_spill] sm:$0xff]  ;;  %vm18642_vm14 = vnez %v18641_v36  ;;  %9200 = vmatpush.bf16.msra.mxu1 %v8224_v17  ;;  %v18656_v34 = vsel %vm18655_vm3, nan, %v13978_v42  ;;  %vm18657_vm5 = vnez %v18176_v30  ;;  %v18664_v42 = vld [vmem:[#allocation551_spill] sm:$0xff]  ;;  %v18678_v1 = vld [vmem:[#allocation610_spill] sm:$0xff] }
 0xf54   : > { %v18636_v21 = vsel %vm18634_vm6, nan, %v18635_v16  ;;  %v18639_v49 = vld [vmem:[#allocation448_spill] sm:$0xff]  ;;  %v18658_v31 = vsel %vm18657_vm5, nan, %v13998_v39  ;;  %9112 = vmatmul.bf16.vlgmr.msra.gmra.mxu0 %v14925_v56  ;;  %vm18661_vm7 = vnez %v18287_v48  ;;  %vm18663_vm9 = vnez %v18031_v28  ;;  %v18668_v35 = vld [vmem:[#allocation555_spill] sm:$0xff]  ;;  %v18682_v0 = vld [vmem:[#allocation614_spill] sm:$0xff] }
 0xf55   : > { %v8240_v23 = vpack.c.bf16 %v18636_v21, %v18632_v25  ;;  %v18640_v52 = vsel %vm18638_vm10, nan, %v18639_v49  ;;  %v18643_v51 = vld [vmem:[#allocation452_spill] sm:$0xff]  ;;  %v8302_v43 = vpack.c.bf16 %v18658_v31, %v18656_v34  ;;  %9460 = vmatpush.bf16.msrb.mxu0 %v8286_v18  ;;  %v18662_v30 = vsel %vm18661_vm7, nan, %v14278_v38  ;;  %v18674_v10 = vld [vmem:[#allocation719_spill] sm:$0xff]  ;;  %v11341_v20 = vld [vmem:[#allocation2 + $0x4c] sm:$0xf] }
 0xf56   : > { %v18644_v53 = vsel %vm18642_vm14, nan, %v18643_v51  ;;  %9201 = vmatmul.bf16.vlgmr.msra.gmra.mxu1 %v14927_v54  ;;  %v8316_v27 = vpack.c.bf16 %v18662_v30, %v18660_v33  ;;  %v18665_v39 = vsel %vm18663_vm9, nan, %v18664_v42  ;;  %vm18667_vm13 = vnez %v18666_v47  ;;  %v18676_v48 = vld [vmem:[#allocation720_spill] sm:$0xff]  ;;  %v18680_v28 = vld [vmem:[#allocation611_spill] sm:$0xff]  ;;  %v10858_v25 = vld [vmem:[#allocation2 + $0x68] sm:$0xf0] }
 0xf57   : > { %v8256_v60 = vpack.c.bf16 %v18644_v53, %v18640_v52  ;;  %9289 = vmatpush.bf16.msra.mxu2 %v8240_v23  ;;  %v18669_v46 = vsel %vm18667_vm13, nan, %v18668_v35  ;;  %9549 = vmatpush.bf16.msrb.mxu1 %v8302_v43  ;;  %vm18671_vm2 = vnez %v18670_v59  ;;  %vm18675_vm6 = vnez %v18674_v10  ;;  %v18684_v4 = vld [vmem:[#allocation615_spill] sm:$0xff]  ;;  %v11340_v8 = vld [vmem:[#allocation2 + $0x44] sm:$0xf]  ;;  %v10856_v11 = vld [vmem:[#allocation2 + $0x48] sm:$0xf] }
 0xf58   : > { %v8284_v29 = vpack.c.bf16 %v18669_v46, %v18665_v39  ;;  %v18673_v45 = vsel %vm18671_vm2, nan, %v18672_v40  ;;  %v18677_v38 = vsel %vm18675_vm6, nan, %v18676_v48  ;;  %vm18679_vm10 = vnez %v18678_v1  ;;  %v10848_v12 = vld [vmem:[#allocation2 + $0x40] sm:$0xf]  ;;  %v10850_v13 = vld [vmem:[#allocation2 + $0x60] sm:$0xf0] }
 0xf59   : > { %9378 = vmatpush.bf16.msra.mxu3 %v8256_v60  ;;  %v8332_v6 = vpack.c.bf16 %v18677_v38, %v18673_v45  ;;  %v18681_v55 = vsel %vm18679_vm10, nan, %v18680_v28  ;;  %vm18683_vm14 = vnez %v18682_v0  ;;  %v11344_v17 = vld [vmem:[#allocation2 + $0x5c] sm:$0xf0]  ;;  %v11345_v15 = vld [vmem:[#allocation2 + $0x64] sm:$0xf0]  ;;  %v14987_v16 = vor.u32 %v11340_v8, %v10850_v13  ;;  %v18688_v7 = vld [vmem:[#allocation662_spill] sm:$0xff] }
 0xf5a   : > { %9290 = vmatmul.bf16.vlgmr.msra.gmra.mxu2 %v14929_v37  ;;  %v18685_v9 = vsel %vm18683_vm14, nan, %v18684_v4  ;;  %9461 = vmatpush.bf16.msrb.mxu0 %v8284_v29  ;;  %v14985_v26 = vor.u32 %v11344_v17, %v10848_v12  ;;  %v14989_v21 = vor.u32 %v11345_v15, %v10856_v11  ;;  %v14991_v23 = vor.u32 %v11341_v20, %v10858_v25  ;;  %v10880_v50 = vld [vmem:[#allocation2 + $0x80] sm:$0xf]  ;;  %v11348_v52 = vld [vmem:[#allocation2 + $0x84] sm:$0xf]  ;;  %v18690_v18 = vld [vmem:[#allocation665_spill] sm:$0xff] }
 0xf5b   : > { %9638 = vmatpush.bf16.msrb.mxu2 %v8318_v3  ;;  %v8300_v5 = vpack.c.bf16 %v18685_v9, %v18681_v55  ;;  %v11352_v49 = vld [vmem:[#allocation2 + $0x9c] sm:$0xf0]  ;;  %v10882_v36 = vld [vmem:[#allocation2 + $0xa0] sm:$0xf0]  ;;  %v10888_v51 = vld [vmem:[#allocation2 + $0x88] sm:$0xf]  ;;  %vm18691_vm12 = vnez %v18690_v18 }
 0xf5c   : > { %9379 = vmatmul.bf16.vlgmr.msra.gmra.mxu3 %v14931_v41  ;;  %v11353_v53 = vld [vmem:[#allocation2 + $0xa4] sm:$0xf0]  ;;  %v11349_v60 = vld [vmem:[#allocation2 + $0x8c] sm:$0xf]  ;;  %v14997_v2 = vor.u32 %v11352_v49, %v10880_v50  ;;  %v14999_v62 = vor.u32 %v11348_v52, %v10882_v36  ;;  %v18692_v19 = vld [vmem:[#allocation666_spill] sm:$0xff] }
 0xf5d   : > { %9727 = vmatpush.bf16.msrb.mxu3 %v8334_v22  ;;  %9550 = vmatpush.bf16.msrb.mxu1 %v8300_v5  ;;  %v10890_v61 = vld [vmem:[#allocation2 + $0xa8] sm:$0xf0]  ;;  %v15001_v63 = vor.u32 %v11353_v53, %v10888_v51  ;;  %v18693_v22 = vsel %vm18691_vm12, nan, %v18692_v19  ;;  %v18694_v31 = vld [vmem:[#allocation543_spill] sm:$0xff]  ;;  %v18696_v43 = vld [vmem:[#allocation544_spill] sm:$0xff] }
 0xf5e   : > { %v15003_v58 = vor.u32 %v11349_v60, %v10890_v61  ;;  %v18686_v3 = vld [vmem:[#allocation661_spill] sm:$0xff]  ;;  %vm18695_vm0 = vnez %v18694_v31  ;;  %v18698_v30 = vld [vmem:[#allocation547_spill] sm:$0xff]  ;;  %v18704_v35 = vld [vmem:[#allocation710_spill] sm:$0xff] }
 0xf5f   : > { %9639 = vmatpush.bf16.msrb.mxu2 %v8316_v27  ;;  %vm18687_vm4 = vnez %v18686_v3  ;;  %v18697_v33 = vsel %vm18695_vm0, nan, %v18696_v43  ;;  %vm18699_vm8 = vnez %v18698_v30  ;;  %v18700_v27 = vld [vmem:[#allocation548_spill] sm:$0xff]  ;;  %v18702_v47 = vld [vmem:[#allocation709_spill] sm:$0xff]  ;;  %v18708_v59 = vld [vmem:[#allocation714_spill] sm:$0xff] }
 0xf60   : > { %v18689_v14 = vsel %vm18687_vm4, nan, %v18688_v7  ;;  %v18701_v42 = vsel %vm18699_vm8, nan, %v18700_v27  ;;  %vm18703_vm1 = vnez %v18702_v47  ;;  %v18706_v29 = vld [vmem:[#allocation713_spill] sm:$0xff]  ;;  %v18710_v10 = vld [vmem:[#allocation602_spill] sm:$0xff]  ;;  %v18712_v48 = vld [vmem:[#allocation603_spill] sm:$0xff] }
 0xf61   : > { %9728 = vmatpush.bf16.msrb.mxu3 %v8332_v6  ;;  %v8314_v34 = vpack.c.bf16 %v18693_v22, %v18689_v14  ;;  %v8282_v39 = vpack.c.bf16 %v18701_v42, %v18697_v33  ;;  %v18705_v46 = vsel %vm18703_vm1, nan, %v18704_v35  ;;  %vm18707_vm3 = vnez %v18706_v29  ;;  %v18714_v6 = vld [vmem:[#allocation606_spill] sm:$0xff]  ;;  %v18716_v1 = vld [vmem:[#allocation607_spill] sm:$0xff]  ;;  %v11356_v9 = vld [vmem:[#allocation2 + $0xc4] sm:$0xf] }
 0xf62   : > { %v18709_v40 = vsel %vm18707_vm3, nan, %v18708_v59  ;;  %vm18711_vm5 = vnez %v18710_v10  ;;  %vm18715_vm15 = vnez %v18714_v6  ;;  %v10912_v0 = vld [vmem:[#allocation2 + $0xc0] sm:$0xf]  ;;  %v10914_v5 = vld [vmem:[#allocation2 + $0xe0] sm:$0xf0]  ;;  %v18723_v19 = vld [vmem:[#allocation654_spill] sm:$0xff] }
 0xf63   : > { %v8330_v45 = vpack.c.bf16 %v18709_v40, %v18705_v46  ;;  %v18713_v38 = vsel %vm18711_vm5, nan, %v18712_v48  ;;  %v18717_v28 = vsel %vm18715_vm15, nan, %v18716_v1  ;;  %9640 = vmatpush.bf16.msrb.mxu2 %v8314_v34  ;;  %9462 = vmatpush.bf16.msrb.mxu0 %v8282_v39  ;;  %v11360_v4 = vld [vmem:[#allocation2 + $0xdc] sm:$0xf0]  ;;  %v10920_v12 = vld [vmem:[#allocation2 + $0xc8] sm:$0xf]  ;;  %v15043_v15 = vor.u32 %v11356_v9, %v10914_v5 }
 0xf64   : > { %9117 = vmatmul.bf16.gmra.mxu0 %v14985_v26  ;;  %v8298_v55 = vpack.c.bf16 %v18717_v28, %v18713_v38  ;;  %v11361_v17 = vld [vmem:[#allocation2 + $0xe4] sm:$0xf0]  ;;  %v11357_v8 = vld [vmem:[#allocation2 + $0xcc] sm:$0xf]  ;;  %v15041_v11 = vor.u32 %v11360_v4, %v10912_v0  ;;  %v10944_v50 = vld [vmem:[#allocation2 + $0x100] sm:$0xf]  ;;  %vm18724_vm7 = vnez %v18723_v19 }
 0xf65   : > { %9729 = vmatpush.bf16.msrb.mxu3 %v8330_v45  ;;  %v10922_v13 = vld [vmem:[#allocation2 + $0xe8] sm:$0xf0]  ;;  %v15045_v20 = vor.u32 %v11361_v17, %v10920_v12  ;;  %v11368_v49 = vld [vmem:[#allocation2 + $0x11c] sm:$0xf0]  ;;  %v11364_v52 = vld [vmem:[#allocation2 + $0x104] sm:$0xf] }
 0xf66   : > { %9206 = vmatmul.bf16.gmra.mxu1 %v14987_v16  ;;  %v15047_v25 = vor.u32 %v11357_v8, %v10922_v13  ;;  %v10946_v36 = vld [vmem:[#allocation2 + $0x120] sm:$0xf0]  ;;  %v10952_v51 = vld [vmem:[#allocation2 + $0x108] sm:$0xf]  ;;  %v11365_v60 = vld [vmem:[#allocation2 + $0x10c] sm:$0xf]  ;;  %v15053_v3 = vor.u32 %v11368_v49, %v10944_v50 }
 0xf67   : > { %9551 = vmatpush.bf16.msrb.mxu1 %v8298_v55  ;;  %v11369_v53 = vld [vmem:[#allocation2 + $0x124] sm:$0xf0]  ;;  %v10954_v61 = vld [vmem:[#allocation2 + $0x128] sm:$0xf0]  ;;  %v15055_v7 = vor.u32 %v11364_v52, %v10946_v36  ;;  %v18725_v22 = vld [vmem:[#allocation655_spill] sm:$0xff] }
 0xf68   : > { %18718 = vst [vmem:[#allocation319_spill] sm:$0xff] %v15047_v25  ;;  %v15057_v14 = vor.u32 %v11369_v53, %v10952_v51  ;;  %v15059_v18 = vor.u32 %v11365_v60, %v10954_v61  ;;  %v18726_v34 = vsel %vm18724_vm7, nan, %v18725_v22  ;;  %v18727_v31 = vld [vmem:[#allocation657_spill] sm:$0xff]  ;;  %v18729_v43 = vld [vmem:[#allocation658_spill] sm:$0xff]  ;;  %v18731_v27 = vld [vmem:[#allocation535_spill] sm:$0xff] }
 0xf69   : > { %18719 = vst [vmem:[#allocation320_spill] sm:$0xff] %v15053_v3  ;;  %vm18728_vm9 = vnez %v18727_v31  ;;  %vm18732_vm13 = vnez %v18731_v27  ;;  %v18733_v42 = vld [vmem:[#allocation536_spill] sm:$0xff]  ;;  %v18735_v47 = vld [vmem:[#allocation539_spill] sm:$0xff]  ;;  %v18743_v10 = vld [vmem:[#allocation705_spill] sm:$0xff] }
 0xf6a   : > { %9295 = vmatmul.bf16.gmra.mxu2 %v14989_v21  ;;  %18720 = vst [vmem:[#allocation323_spill] sm:$0xff] %v15055_v7  ;;  %v18730_v33 = vsel %vm18728_vm9, nan, %v18729_v43  ;;  %v18734_v39 = vsel %vm18732_vm13, nan, %v18733_v42  ;;  %vm18736_vm2 = vnez %v18735_v47  ;;  %v18737_v35 = vld [vmem:[#allocation540_spill] sm:$0xff]  ;;  %v18739_v59 = vld [vmem:[#allocation275_spill] sm:$0xff]  ;;  %vm18744_vm10 = vnez %v18743_v10  ;;  %v18745_v48 = vld [vmem:[#allocation706_spill] sm:$0xff] }
 0xf6b   : > { %18721 = vst [vmem:[#allocation324_spill] sm:$0xff] %v15057_v14  ;;  %v8312_v30 = vpack.c.bf16 %v18730_v33, %v18726_v34  ;;  %v18738_v46 = vsel %vm18736_vm2, nan, %v18737_v35  ;;  %vm18740_vm6 = vnez %v18739_v59  ;;  %v18741_v40 = vld [vmem:[#allocation703_spill] sm:$0xff]  ;;  %v18746_v38 = vsel %vm18744_vm10, nan, %v18745_v48  ;;  %v18747_v1 = vld [vmem:[#allocation594_spill] sm:$0xff] }
 0xf6c   : > { %9384 = vmatmul.bf16.gmra.mxu3 %v14991_v23  ;;  %18722 = vst [vmem:[#allocation375_spill] sm:$0xff] %v15059_v18  ;;  %v8280_v29 = vpack.c.bf16 %v18738_v46, %v18734_v39  ;;  %v18742_v45 = vsel %vm18740_vm6, nan, %v18741_v40  ;;  %vm18748_vm14 = vnez %v18747_v1  ;;  %v18749_v28 = vld [vmem:[#allocation595_spill] sm:$0xff]  ;;  %v18751_v0 = vld [vmem:[#allocation598_spill] sm:$0xff]  ;;  %v11372_v8 = vld [vmem:[#allocation2 + $0x144] sm:$0xf] }
 0xf6d   : > { %v8328_v6 = vpack.c.bf16 %v18746_v38, %v18742_v45  ;;  %v18750_v55 = vsel %vm18748_vm14, nan, %v18749_v28  ;;  %vm18752_vm4 = vnez %v18751_v0  ;;  %v18753_v4 = vld [vmem:[#allocation599_spill] sm:$0xff]  ;;  %9641 = vmatpush.bf16.msrb.mxu2 %v8312_v30  ;;  %v10978_v13 = vld [vmem:[#allocation2 + $0x160] sm:$0xf0]  ;;  %v10984_v50 = vld [vmem:[#allocation2 + $0x148] sm:$0xf] }
 0xf6e   : > { %v18754_v9 = vsel %vm18752_vm4, nan, %v18753_v4  ;;  %9463 = vmatpush.bf16.msrb.mxu0 %v8280_v29  ;;  %v10976_v12 = vld [vmem:[#allocation2 + $0x140] sm:$0xf]  ;;  %v11377_v49 = vld [vmem:[#allocation2 + $0x164] sm:$0xf0]  ;;  %v15099_v53 = vor.u32 %v11372_v8, %v10978_v13  ;;  %v18763_v46 = vld [vmem:[#allocation646_spill] sm:$0xff] }
 0xf6f   : > { %v8296_v5 = vpack.c.bf16 %v18754_v9, %v18750_v55  ;;  %9730 = vmatpush.bf16.msrb.mxu3 %v8328_v6  ;;  %v11376_v17 = vld [vmem:[#allocation2 + $0x15c] sm:$0xf0]  ;;  %v11373_v52 = vld [vmem:[#allocation2 + $0x14c] sm:$0xf]  ;;  %v15101_v60 = vor.u32 %v11377_v49, %v10984_v50  ;;  %v11380_v34 = vld [vmem:[#allocation2 + $0x184] sm:$0xf]  ;;  %vm18764_vm12 = vnez %v18763_v46 }
 0xf70   : > { %v10986_v36 = vld [vmem:[#allocation2 + $0x168] sm:$0xf0]  ;;  %v15097_v51 = vor.u32 %v11376_v17, %v10976_v12  ;;  %18756 = vst [vmem:[#allocation379_spill] sm:$0xff] %v15099_v53  ;;  %v11008_v19 = vld [vmem:[#allocation2 + $0x180] sm:$0xf]  ;;  %v18767_v40 = vld [vmem:[#allocation650_spill] sm:$0xff] }
 0xf71   : > { %9552 = vmatpush.bf16.msrb.mxu1 %v8296_v5  ;;  %18757 = vst [vmem:[#allocation380_spill] sm:$0xff] %v15101_v60  ;;  %v15103_v61 = vor.u32 %v11373_v52, %v10986_v36  ;;  %v11384_v22 = vld [vmem:[#allocation2 + $0x19c] sm:$0xf0]  ;;  %v11010_v31 = vld [vmem:[#allocation2 + $0x1a0] sm:$0xf0]  ;;  %vm18768_vm0 = vnez %v18767_v40  ;;  %v18787_v49 = vld [vmem:[#allocation586_spill] sm:$0xff] }
 0xf72   : > { %18755 = vst [vmem:[#allocation376_spill] sm:$0xff] %v15097_v51  ;;  %v11016_v43 = vld [vmem:[#allocation2 + $0x188] sm:$0xf]  ;;  %v11381_v30 = vld [vmem:[#allocation2 + $0x18c] sm:$0xf]  ;;  %v15109_v42 = vor.u32 %v11384_v22, %v11008_v19  ;;  %v15111_v39 = vor.u32 %v11380_v34, %v11010_v31  ;;  %v18765_v29 = vld [vmem:[#allocation647_spill] sm:$0xff]  ;;  %vm18788_vm15 = vnez %v18787_v49 }
 0xf73   : > { %18758 = vst [vmem:[#allocation431_spill] sm:$0xff] %v15103_v61  ;;  %v11385_v33 = vld [vmem:[#allocation2 + $0x1a4] sm:$0xf0]  ;;  %v11018_v27 = vld [vmem:[#allocation2 + $0x1a8] sm:$0xf0]  ;;  %v18766_v59 = vsel %vm18764_vm12, nan, %v18765_v29 }
 0xf74   : > { %9122 = vmatmul.bf16.gmra.mxu0 %v14997_v2  ;;  %18759 = vst [vmem:[#allocation432_spill] sm:$0xff] %v15109_v42  ;;  %v15113_v47 = vor.u32 %v11385_v33, %v11016_v43  ;;  %v15115_v35 = vor.u32 %v11381_v30, %v11018_v27  ;;  %v18769_v45 = vld [vmem:[#allocation651_spill] sm:$0xff]  ;;  %v18773_v6 = vld [vmem:[#allocation528_spill] sm:$0xff]  ;;  %v18791_v19 = vld [vmem:[#allocation590_spill] sm:$0xff] }
 0xf75   : > { %18760 = vst [vmem:[#allocation435_spill] sm:$0xff] %v15111_v39  ;;  %v18770_v10 = vsel %vm18768_vm0, nan, %v18769_v45  ;;  %v18771_v38 = vld [vmem:[#allocation527_spill] sm:$0xff]  ;;  %v18777_v55 = vld [vmem:[#allocation532_spill] sm:$0xff]  ;;  %vm18792_vm7 = vnez %v18791_v19  ;;  %v11050_v40 = vld [vmem:[#allocation2 + $0x1e8] sm:$0xf0] }
 0xf76   : > { %9211 = vmatmul.bf16.gmra.mxu1 %v14999_v62  ;;  %18761 = vst [vmem:[#allocation436_spill] sm:$0xff] %v15113_v47  ;;  %v8310_v48 = vpack.c.bf16 %v18770_v10, %v18766_v59  ;;  %vm18772_vm8 = vnez %v18771_v38  ;;  %v18775_v28 = vld [vmem:[#allocation531_spill] sm:$0xff]  ;;  %v18781_v5 = vld [vmem:[#allocation696_spill] sm:$0xff]  ;;  %v11389_v59 = vld [vmem:[#allocation2 + $0x1cc] sm:$0xf] }
 0xf77   : > { %18762 = vst [vmem:[#allocation487_spill] sm:$0xff] %v15115_v35  ;;  %v18774_v1 = vsel %vm18772_vm8, nan, %v18773_v6  ;;  %vm18776_vm1 = vnez %v18775_v28  ;;  %v18779_v9 = vld [vmem:[#allocation695_spill] sm:$0xff]  ;;  %v18785_v8 = vld [vmem:[#allocation700_spill] sm:$0xff]  ;;  %v15159_v38 = vor.u32 %v11389_v59, %v11050_v40 }
 0xf78   : > { %v18778_v0 = vsel %vm18776_vm1, nan, %v18777_v55  ;;  %vm18780_vm3 = vnez %v18779_v9  ;;  %v18783_v17 = vld [vmem:[#allocation699_spill] sm:$0xff]  ;;  %9642 = vmatpush.bf16.msrb.mxu2 %v8310_v48  ;;  %v11388_v30 = vld [vmem:[#allocation2 + $0x1c4] sm:$0xf]  ;;  %v11048_v46 = vld [vmem:[#allocation2 + $0x1c8] sm:$0xf] }
 0xf79   : > { %v8278_v4 = vpack.c.bf16 %v18778_v0, %v18774_v1  ;;  %v18782_v12 = vsel %vm18780_vm3, nan, %v18781_v5  ;;  %vm18784_vm5 = vnez %v18783_v17  ;;  %v18789_v52 = vld [vmem:[#allocation587_spill] sm:$0xff]  ;;  %v11042_v27 = vld [vmem:[#allocation2 + $0x1e0] sm:$0xf0]  ;;  %v11393_v29 = vld [vmem:[#allocation2 + $0x1e4] sm:$0xf0] }
 0xf7a   : > { %9300 = vmatmul.bf16.gmra.mxu2 %v15001_v63  ;;  %v18786_v13 = vsel %vm18784_vm5, nan, %v18785_v8  ;;  %v18790_v36 = vsel %vm18788_vm15, nan, %v18789_v52  ;;  %v18793_v22 = vld [vmem:[#allocation591_spill] sm:$0xff]  ;;  %v15155_v10 = vor.u32 %v11388_v30, %v11042_v27  ;;  %v15157_v48 = vor.u32 %v11393_v29, %v11048_v46  ;;  %18798 = vst [vmem:[#allocation311_spill] sm:$0xff] %v15159_v38  ;;  %v11396_v28 = vld [vmem:[#allocation2 + $0x204] sm:$0xf] }
 0xf7b   : > { %v8326_v50 = vpack.c.bf16 %v18786_v13, %v18782_v12  ;;  %9464 = vmatpush.bf16.msrb.mxu0 %v8278_v4  ;;  %v18794_v34 = vsel %vm18792_vm7, nan, %v18793_v22  ;;  %v11040_v43 = vld [vmem:[#allocation2 + $0x1c0] sm:$0xf]  ;;  %v11074_v55 = vld [vmem:[#allocation2 + $0x220] sm:$0xf0] }
 0xf7c   : > { %9389 = vmatmul.bf16.gmra.mxu3 %v15003_v58  ;;  %v8294_v31 = vpack.c.bf16 %v18794_v34, %v18790_v36  ;;  %v11392_v33 = vld [vmem:[#allocation2 + $0x1dc] sm:$0xf0]  ;;  %18796 = vst [vmem:[#allocation491_spill] sm:$0xff] %v15155_v10  ;;  %v11080_v0 = vld [vmem:[#allocation2 + $0x208] sm:$0xf]  ;;  %v15167_v17 = vor.u32 %v11396_v28, %v11074_v55  ;;  %v18803_v36 = vld [vmem:[#allocation638_spill] sm:$0xff] }
 0xf7d   : > { %9731 = vmatpush.bf16.msrb.mxu3 %v8326_v50  ;;  %v15153_v45 = vor.u32 %v11392_v33, %v11040_v43  ;;  %18797 = vst [vmem:[#allocation492_spill] sm:$0xff] %v15157_v48  ;;  %v11072_v6 = vld [vmem:[#allocation2 + $0x200] sm:$0xf]  ;;  %v11401_v4 = vld [vmem:[#allocation2 + $0x224] sm:$0xf0]  ;;  %vm18804_vm9 = vnez %v18803_v36  ;;  %v18807_v34 = vld [vmem:[#allocation642_spill] sm:$0xff] }
 0xf7e   : > { %9553 = vmatpush.bf16.msrb.mxu1 %v8294_v31  ;;  %v11400_v1 = vld [vmem:[#allocation2 + $0x21c] sm:$0xf0]  ;;  %v11397_v9 = vld [vmem:[#allocation2 + $0x20c] sm:$0xf]  ;;  %18800 = vst [vmem:[#allocation315_spill] sm:$0xff] %v15167_v17  ;;  %v15169_v50 = vor.u32 %v11401_v4, %v11080_v0  ;;  %vm18808_vm13 = vnez %v18807_v34  ;;  %v18813_v27 = vld [vmem:[#allocation520_spill] sm:$0xff] }
 0xf7f   : > { %18795 = vst [vmem:[#allocation488_spill] sm:$0xff] %v15153_v45  ;;  %v11082_v5 = vld [vmem:[#allocation2 + $0x228] sm:$0xf0]  ;;  %v15165_v12 = vor.u32 %v11400_v1, %v11072_v6  ;;  %v18805_v19 = vld [vmem:[#allocation639_spill] sm:$0xff]  ;;  %v18817_v59 = vld [vmem:[#allocation524_spill] sm:$0xff] }
 0xf80   : > { %18801 = vst [vmem:[#allocation316_spill] sm:$0xff] %v15169_v50  ;;  %v15171_v49 = vor.u32 %v11397_v9, %v11082_v5  ;;  %v18806_v22 = vsel %vm18804_vm9, nan, %v18805_v19  ;;  %v18809_v31 = vld [vmem:[#allocation643_spill] sm:$0xff]  ;;  %v18819_v1 = vld [vmem:[#allocation273_spill] sm:$0xff]  ;;  %v18825_v4 = vld [vmem:[#allocation692_spill] sm:$0xff] }
 0xf81   : > { %18799 = vst [vmem:[#allocation312_spill] sm:$0xff] %v15165_v12  ;;  %v18810_v43 = vsel %vm18808_vm13, nan, %v18809_v31  ;;  %v18811_v30 = vld [vmem:[#allocation519_spill] sm:$0xff]  ;;  %vm18820_vm10 = vnez %v18819_v1  ;;  %v18821_v28 = vld [vmem:[#allocation689_spill] sm:$0xff]  ;;  %v11404_v1 = vld [vmem:[#allocation2 + $0x244] sm:$0xf] }
 0xf82   : > { %18802 = vst [vmem:[#allocation367_spill] sm:$0xff] %v15171_v49  ;;  %v8308_v33 = vpack.c.bf16 %v18810_v43, %v18806_v22  ;;  %vm18812_vm2 = vnez %v18811_v30  ;;  %v18815_v29 = vld [vmem:[#allocation523_spill] sm:$0xff]  ;;  %v18822_v55 = vsel %vm18820_vm10, nan, %v18821_v28  ;;  %v18827_v43 = vld [vmem:[#allocation578_spill] sm:$0xff]  ;;  %v11106_v28 = vld [vmem:[#allocation2 + $0x260] sm:$0xf0] }
 0xf83   : > { %v18814_v46 = vsel %vm18812_vm2, nan, %v18813_v27  ;;  %vm18816_vm6 = vnez %v18815_v29  ;;  %v18823_v0 = vld [vmem:[#allocation691_spill] sm:$0xff]  ;;  %vm18828_vm4 = vnez %v18827_v43 }
 0xf84   : > { %9127 = vmatmul.bf16.gmra.mxu0 %v15041_v11  ;;  %v18818_v40 = vsel %vm18816_vm6, nan, %v18817_v59  ;;  %vm18824_vm14 = vnez %v18823_v0  ;;  %9643 = vmatpush.bf16.msrb.mxu2 %v8308_v33  ;;  %v18829_v30 = vld [vmem:[#allocation579_spill] sm:$0xff]  ;;  %v11405_v0 = vld [vmem:[#allocation2 + $0x24c] sm:$0xf] }
 0xf85   : > { %v8276_v6 = vpack.c.bf16 %v18818_v40, %v18814_v46  ;;  %v18826_v9 = vsel %vm18824_vm14, nan, %v18825_v4  ;;  %v18830_v27 = vsel %vm18828_vm4, nan, %v18829_v30  ;;  %v18831_v46 = vld [vmem:[#allocation582_spill] sm:$0xff]  ;;  %v18833_v29 = vld [vmem:[#allocation583_spill] sm:$0xff]  ;;  %v11114_v4 = vld [vmem:[#allocation2 + $0x268] sm:$0xf0] }
 0xf86   : > { %9216 = vmatmul.bf16.gmra.mxu1 %v15043_v15  ;;  %v8324_v5 = vpack.c.bf16 %v18826_v9, %v18822_v55  ;;  %vm18832_vm12 = vnez %v18831_v46  ;;  %v11104_v33 = vld [vmem:[#allocation2 + $0x240] sm:$0xf]  ;;  %v11112_v55 = vld [vmem:[#allocation2 + $0x248] sm:$0xf]  ;;  %v15217_v30 = vor.u32 %v11405_v0, %v11114_v4  ;;  %v11138_v0 = vld [vmem:[#allocation2 + $0x2a0] sm:$0xf0] }
 0xf87   : > { %9465 = vmatpush.bf16.msrb.mxu0 %v8276_v6  ;;  %v18834_v59 = vsel %vm18832_vm12, nan, %v18833_v29  ;;  %v11408_v6 = vld [vmem:[#allocation2 + $0x25c] sm:$0xf0]  ;;  %v11144_v4 = vld [vmem:[#allocation2 + $0x288] sm:$0xf] }
 0xf88   : > { %9732 = vmatpush.bf16.msrb.mxu3 %v8324_v5  ;;  %v8292_v40 = vpack.c.bf16 %v18834_v59, %v18830_v27  ;;  %18838 = vst [vmem:[#allocation423_spill] sm:$0xff] %v15217_v30 }
 0xf8a   : > { %9305 = vmatmul.bf16.gmra.mxu2 %v15045_v20  ;;  %9554 = vmatpush.bf16.msrb.mxu1 %v8292_v40 }
 0xf8c   : > { %9394 = vmatmul.bf16.gmra.mxu3 %v15047_v25 }
 0xf94   : > { %9132 = vmatmul.bf16.gmra.mxu0 %v15053_v3 }
 0xf96   : > { %9221 = vmatmul.bf16.gmra.mxu1 %v15055_v7  ;;  %v10994_v7 = vld [vmem:[#allocation2 + $0x170] sm:$0xf0] }
 0xf9a   : > { %9310 = vmatmul.bf16.gmra.mxu2 %v15057_v14 }
 0xf9c   : > { %9399 = vmatmul.bf16.gmra.mxu3 %v15059_v18 }
 0xfa4   : > { %9137 = vmatmul.bf16.gmra.mxu0 %v15097_v51 }
 0xfa6   : > { %9226 = vmatmul.bf16.gmra.mxu1 %v15099_v53  ;;  %v10930_v53 = vld [vmem:[#allocation2 + $0xf0] sm:$0xf0] }
 0xfaa   : > { %9315 = vmatmul.bf16.gmra.mxu2 %v15101_v60 }
 0xfac   : > { %9404 = vmatmul.bf16.gmra.mxu3 %v15103_v61 }
 0xfb4   : > { %9142 = vmatmul.bf16.gmra.mxu0 %v15109_v42 }
 0xfb6   : > { %9231 = vmatmul.bf16.gmra.mxu1 %v15111_v39  ;;  %v10866_v39 = vld [vmem:[#allocation2 + $0x70] sm:$0xf0] }
 0xfba   : > { %9320 = vmatmul.bf16.gmra.mxu2 %v15113_v47 }
 0xfbc   : > { %9409 = vmatmul.bf16.gmra.mxu3 %v15115_v35 }
 0xfc4   : > { %9147 = vmatmul.bf16.gmra.mxu0 %v15153_v45 }
 0xfc6   : > { %9236 = vmatmul.bf16.gmra.mxu1 %v15155_v10  ;;  %v11298_v10 = vld [vmem:[#allocation2 + $0x3e0] sm:$0xf0] }
 0xfca   : > { %9325 = vmatmul.bf16.gmra.mxu2 %v15157_v48 }
 0xfcc   : > { %9414 = vmatmul.bf16.gmra.mxu3 %v15159_v38 }
 0xfd1   : > { %v9113_v8 = vpop.f32.mrf.mxu0 }
 0xfd3   : > { %v9202_v13 = vpop.f32.mrf.mxu1 }
 0xfd4   : > { %v9203_v52 = vadd.f32 %v9202_v13, %v9113_v8  ;;  %9152 = vmatmul.bf16.gmra.mxu0 %v15165_v12 }
 0xfd6   : > { %9241 = vmatmul.bf16.gmra.mxu1 %v15167_v17  ;;  %v11234_v17 = vld [vmem:[#allocation2 + $0x360] sm:$0xf0] }
 0xfd9   : > { %v9115_v19 = vpop.f32.mrf.mxu0 }
 0xfda   : > { %9330 = vmatmul.bf16.gmra.mxu2 %v15169_v50 }
 0xfdb   : > { %v9204_v22 = vpop.f32.mrf.mxu1 }
 0xfdc   : > { %9419 = vmatmul.bf16.gmra.mxu3 %v15171_v49  ;;  %v9205_v34 = vadd.f32 %v9204_v22, %v9115_v19 }
 0xfdd   : > { %v9291_v8 = vpop.f32.mrf.mxu2 }
 0xfde   : > { %v9292_v36 = vadd.f32 %v9291_v8, %v9203_v52  ;;  %v11409_v52 = vld [vmem:[#allocation2 + $0x264] sm:$0xf0]  ;;  %v15211_v8 = vor.u32 %v11408_v6, %v11104_v33 }
 0xfdf   : > { %v9380_v13 = vpop.f32.mrf.mxu3  ;;  %v15215_v43 = vor.u32 %v11409_v52, %v11112_v55  ;;  %v11416_v55 = vld [vmem:[#allocation2 + $0x29c] sm:$0xf0]  ;;  %v11412_v52 = vld [vmem:[#allocation2 + $0x284] sm:$0xf] }
 0xfe0   : > { %v15201_v31 = vadd.f32 %v9380_v13, %v9292_v36  ;;  %18835 = vst [vmem:[#allocation368_spill] sm:$0xff] %v15211_v8  ;;  %v15213_v13 = vor.u32 %v11404_v1, %v11106_v28  ;;  %v11136_v28 = vld [vmem:[#allocation2 + $0x280] sm:$0xf] }
 0xfe1   : > { %v9118_v19 = vpop.f32.mrf.mxu0  ;;  %18837 = vst [vmem:[#allocation372_spill] sm:$0xff] %v15215_v43  ;;  %v15227_v57 = vor.u32 %v11416_v55, %v11136_v28  ;;  %v18843_v28 = vld [vmem:[#allocation630_spill] sm:$0xff] }
 0xfe2   : > { %18836 = vst [vmem:[#allocation371_spill] sm:$0xff] %v15213_v13  ;;  %vm18844_vm0 = vnez %v18843_v28 }
 0xfe3   : > { %v9207_v22 = vpop.f32.mrf.mxu1  ;;  %18839 = vst [vmem:[#allocation424_spill] sm:$0xff] %v15227_v57 }
 0xfe4   : > { %v9208_v27 = vadd.f32 %v9207_v22, %v9118_v19  ;;  %9157 = vmatmul.bf16.gmra.mxu0 %v15211_v8 }
 0xfe5   : > { %v9293_v9 = vpop.f32.mrf.mxu2 }
 0xfe6   : > { %v9294_v36 = vadd.f32 %v9293_v9, %v9205_v34  ;;  %9246 = vmatmul.bf16.gmra.mxu1 %v15213_v13  ;;  %v11417_v9 = vld [vmem:[#allocation2 + $0x2a4] sm:$0xf0]  ;;  %v11170_v13 = vld [vmem:[#allocation2 + $0x2e0] sm:$0xf0] }
 0xfe7   : > { %v9382_v5 = vpop.f32.mrf.mxu3 }
 0xfe8   : > { %v15219_v46 = vadd.f32 %v9382_v5, %v9294_v36  ;;  %v11413_v5 = vld [vmem:[#allocation2 + $0x28c] sm:$0xf] }
 0xfe9   : > { %v9120_v40 = vpop.f32.mrf.mxu0  ;;  %v11146_v36 = vld [vmem:[#allocation2 + $0x2a8] sm:$0xf0] }
 0xfea   : > { %9335 = vmatmul.bf16.gmra.mxu2 %v15215_v43 }
 0xfeb   : > { %v9209_v33 = vpop.f32.mrf.mxu1 }
 0xfec   : > { %9424 = vmatmul.bf16.gmra.mxu3 %v15217_v30  ;;  %v9210_v6 = vadd.f32 %v9209_v33, %v9120_v40  ;;  %v15229_v30 = vor.u32 %v11412_v52, %v11138_v0  ;;  %v15231_v40 = vor.u32 %v11417_v9, %v11144_v4  ;;  %v18847_v52 = vld [vmem:[#allocation634_spill] sm:$0xff]  ;;  %v18849_v0 = vld [vmem:[#allocation635_spill] sm:$0xff] }
 0xfed   : > { %v9296_v29 = vpop.f32.mrf.mxu2  ;;  %vm18848_vm8 = vnez %v18847_v52 }
 0xfee   : > { %v9297_v34 = vadd.f32 %v9296_v29, %v9208_v27  ;;  %18840 = vst [vmem:[#allocation427_spill] sm:$0xff] %v15229_v30  ;;  %v18850_v4 = vsel %vm18848_vm8, nan, %v18849_v0 }
 0xfef   : > { %v9385_v59 = vpop.f32.mrf.mxu3  ;;  %18841 = vst [vmem:[#allocation428_spill] sm:$0xff] %v15231_v40 }
 0xff0   : > { %v15225_v1 = vadd.f32 %v9385_v59, %v9297_v34  ;;  %v15233_v59 = vor.u32 %v11413_v5, %v11146_v36  ;;  %v18853_v5 = vld [vmem:[#allocation512_spill] sm:$0xff] }
 0xff1   : > { %v9123_v29 = vpop.f32.mrf.mxu0 }
 0xff2   : > { %18842 = vst [vmem:[#allocation479_spill] sm:$0xff] %v15233_v59 }
 0xff3   : > { %v9212_v43 = vpop.f32.mrf.mxu1 }
 0xff4   : > { %v9213_v34 = vadd.f32 %v9212_v43, %v9123_v29  ;;  %9162 = vmatmul.bf16.gmra.mxu0 %v15227_v57  ;;  %v18851_v43 = vld [vmem:[#allocation511_spill] sm:$0xff] }
 0xff5   : > { %v9298_v19 = vpop.f32.mrf.mxu2  ;;  %vm18852_vm1 = vnez %v18851_v43 }
 0xff6   : > { %v9299_v27 = vadd.f32 %v9298_v19, %v9210_v6  ;;  %9251 = vmatmul.bf16.gmra.mxu1 %v15229_v30  ;;  %v18845_v6 = vld [vmem:[#allocation631_spill] sm:$0xff]  ;;  %v18854_v36 = vsel %vm18852_vm1, nan, %v18853_v5  ;;  %v18863_v30 = vld [vmem:[#allocation685_spill] sm:$0xff] }
 0xff7   : > { %v9387_v22 = vpop.f32.mrf.mxu3  ;;  %v18846_v55 = vsel %vm18844_vm0, nan, %v18845_v6  ;;  %v18855_v19 = vld [vmem:[#allocation515_spill] sm:$0xff]  ;;  %vm18864_vm15 = vnez %v18863_v30  ;;  %v18865_v6 = vld [vmem:[#allocation686_spill] sm:$0xff] }
 0xff8   : > { %v15235_v33 = vadd.f32 %v9387_v22, %v9299_v27  ;;  %v8306_v9 = vpack.c.bf16 %v18850_v4, %v18846_v55  ;;  %vm18856_vm3 = vnez %v18855_v19  ;;  %v18857_v22 = vld [vmem:[#allocation516_spill] sm:$0xff]  ;;  %v18866_v52 = vsel %vm18864_vm15, nan, %v18865_v6  ;;  %v18873_v30 = vld [vmem:[#allocation575_spill] sm:$0xff] }
 0xff9   : > { %v18858_v27 = vsel %vm18856_vm3, nan, %v18857_v22  ;;  %v9125_v43 = vpop.f32.mrf.mxu0 }
 0xffa   : > { %9340 = vmatmul.bf16.gmra.mxu2 %v15231_v40  ;;  %v8274_v29 = vpack.c.bf16 %v18858_v27, %v18854_v36  ;;  %v18859_v40 = vld [vmem:[#allocation681_spill] sm:$0xff]  ;;  %v18867_v36 = vld [vmem:[#allocation570_spill] sm:$0xff] }
 0xffb   : > { %vm18860_vm5 = vnez %v18859_v40  ;;  %9644 = vmatpush.bf16.msrb.mxu2 %v8306_v9  ;;  %v9214_v5 = vpop.f32.mrf.mxu1  ;;  %vm18868_vm7 = vnez %v18867_v36  ;;  %v18869_v40 = vld [vmem:[#allocation571_spill] sm:$0xff]  ;;  %v18871_v27 = vld [vmem:[#allocation574_spill] sm:$0xff] }
 0xffc   : > { %9429 = vmatmul.bf16.gmra.mxu3 %v15233_v59  ;;  %v18861_v59 = vld [vmem:[#allocation682_spill] sm:$0xff]  ;;  %9466 = vmatpush.bf16.msrb.mxu0 %v8274_v29  ;;  %v9215_v19 = vadd.f32 %v9214_v5, %v9125_v43  ;;  %vm18872_vm9 = vnez %v18871_v27  ;;  %v11168_v9 = vld [vmem:[#allocation2 + $0x2c0] sm:$0xf]  ;;  %v11178_v43 = vld [vmem:[#allocation2 + $0x2e8] sm:$0xf0] }
 0xffd   : > { %v18862_v28 = vsel %vm18860_vm5, nan, %v18861_v59  ;;  %v9301_v55 = vpop.f32.mrf.mxu2  ;;  %v18870_v59 = vsel %vm18868_vm7, nan, %v18869_v40  ;;  %v18874_v6 = vsel %vm18872_vm9, nan, %v18873_v30  ;;  %v11424_v29 = vld [vmem:[#allocation2 + $0x2dc] sm:$0xf0] }
 0xffe   : > { %v8322_v57 = vpack.c.bf16 %v18866_v52, %v18862_v28  ;;  %v9302_v4 = vadd.f32 %v9301_v55, %v9213_v34  ;;  %v8290_v28 = vpack.c.bf16 %v18874_v6, %v18870_v59  ;;  %v11420_v52 = vld [vmem:[#allocation2 + $0x2c4] sm:$0xf]  ;;  %v11425_v34 = vld [vmem:[#allocation2 + $0x2e4] sm:$0xf0]  ;;  %v11421_v55 = vld [vmem:[#allocation2 + $0x2cc] sm:$0xf]  ;;  %v15275_v5 = vor.u32 %v11424_v29, %v11168_v9 }
 0xfff   : > { %v9390_v0 = vpop.f32.mrf.mxu3  ;;  %v15277_v36 = vor.u32 %v11420_v52, %v11170_v13  ;;  %v15281_v59 = vor.u32 %v11421_v55, %v11178_v43  ;;  %v11428_v55 = vld [vmem:[#allocation2 + $0x304] sm:$0xf] }
0x1000   : > { %9733 = vmatpush.bf16.msrb.mxu3 %v8322_v57  ;;  %v15265_v22 = vadd.f32 %v9390_v0, %v9302_v4  ;;  %v11176_v57 = vld [vmem:[#allocation2 + $0x2c8] sm:$0xf]  ;;  %9555 = vmatpush.bf16.msrb.mxu1 %v8290_v28  ;;  %18875 = vst [vmem:[#allocation480_spill] sm:$0xff] %v15275_v5  ;;  %v11202_v43 = vld [vmem:[#allocation2 + $0x320] sm:$0xf0] }
0x1001   : > { %18876 = vst [vmem:[#allocation483_spill] sm:$0xff] %v15277_v36  ;;  %v9128_v27 = vpop.f32.mrf.mxu0  ;;  %v15279_v30 = vor.u32 %v11425_v34, %v11176_v57  ;;  %v11200_v34 = vld [vmem:[#allocation2 + $0x300] sm:$0xf] }
0x1002   : > { %18878 = vst [vmem:[#allocation303_spill] sm:$0xff] %v15281_v59 }
0x1003   : > { %v9217_v8 = vpop.f32.mrf.mxu1  ;;  %18877 = vst [vmem:[#allocation484_spill] sm:$0xff] %v15279_v30 }
0x1004   : > { %v9218_v6 = vadd.f32 %v9217_v8, %v9128_v27  ;;  %9167 = vmatmul.bf16.gmra.mxu0 %v15275_v5  ;;  %v11432_v8 = vld [vmem:[#allocation2 + $0x31c] sm:$0xf0]  ;;  %v11210_v27 = vld [vmem:[#allocation2 + $0x328] sm:$0xf0] }
0x1005   : > { %v9303_v0 = vpop.f32.mrf.mxu2  ;;  %v15291_v5 = vor.u32 %v11432_v8, %v11200_v34  ;;  %v18883_v34 = vld [vmem:[#allocation622_spill] sm:$0xff] }
0x1006   : > { %v9304_v40 = vadd.f32 %v9303_v0, %v9215_v19  ;;  %9256 = vmatmul.bf16.gmra.mxu1 %v15277_v36  ;;  %v11208_v0 = vld [vmem:[#allocation2 + $0x308] sm:$0xf]  ;;  %vm18884_vm13 = vnez %v18883_v34  ;;  %v18887_v8 = vld [vmem:[#allocation626_spill] sm:$0xff] }
0x1007   : > { %v9392_v4 = vpop.f32.mrf.mxu3  ;;  %18879 = vst [vmem:[#allocation304_spill] sm:$0xff] %v15291_v5  ;;  %vm18888_vm2 = vnez %v18887_v8 }
0x1008   : > { %v15283_v49 = vadd.f32 %v9392_v4, %v9304_v40  ;;  %v11433_v4 = vld [vmem:[#allocation2 + $0x324] sm:$0xf0]  ;;  %v11429_v40 = vld [vmem:[#allocation2 + $0x30c] sm:$0xf] }
0x1009   : > { %v9130_v9 = vpop.f32.mrf.mxu0 }
0x100a   : > { %9345 = vmatmul.bf16.gmra.mxu2 %v15279_v30 }
0x100b   : > { %v9219_v29 = vpop.f32.mrf.mxu1 }
0x100c   : > { %9434 = vmatmul.bf16.gmra.mxu3 %v15281_v59  ;;  %v9220_v52 = vadd.f32 %v9219_v29, %v9130_v9  ;;  %v15293_v59 = vor.u32 %v11428_v55, %v11202_v43  ;;  %v15295_v9 = vor.u32 %v11433_v4, %v11208_v0  ;;  %v18889_v55 = vld [vmem:[#allocation627_spill] sm:$0xff] }
0x100d   : > { %v9306_v13 = vpop.f32.mrf.mxu2  ;;  %v18890_v43 = vsel %vm18888_vm2, nan, %v18889_v55 }
0x100e   : > { %v9307_v19 = vadd.f32 %v9306_v13, %v9218_v6  ;;  %18880 = vst [vmem:[#allocation307_spill] sm:$0xff] %v15293_v59 }
0x100f   : > { %v9395_v28 = vpop.f32.mrf.mxu3  ;;  %18881 = vst [vmem:[#allocation308_spill] sm:$0xff] %v15295_v9 }
0x1010   : > { %v15289_v57 = vadd.f32 %v9395_v28, %v9307_v19  ;;  %v15297_v28 = vor.u32 %v11429_v40, %v11210_v27  ;;  %v18895_v40 = vld [vmem:[#allocation507_spill] sm:$0xff]  ;;  %v18897_v27 = vld [vmem:[#allocation508_spill] sm:$0xff] }
0x1011   : > { %v9133_v13 = vpop.f32.mrf.mxu0  ;;  %vm18896_vm10 = vnez %v18895_v40 }
0x1012   : > { %18882 = vst [vmem:[#allocation359_spill] sm:$0xff] %v15297_v28 }
0x1013   : > { %v9222_v50 = vpop.f32.mrf.mxu1 }
0x1014   : > { %v9223_v19 = vadd.f32 %v9222_v50, %v9133_v13  ;;  %9172 = vmatmul.bf16.gmra.mxu0 %v15291_v5  ;;  %v18891_v50 = vld [vmem:[#allocation503_spill] sm:$0xff] }
0x1015   : > { %v9308_v36 = vpop.f32.mrf.mxu2  ;;  %vm18892_vm6 = vnez %v18891_v50 }
0x1016   : > { %v9309_v6 = vadd.f32 %v9308_v36, %v9220_v52  ;;  %9261 = vmatmul.bf16.gmra.mxu1 %v15293_v59  ;;  %v18885_v36 = vld [vmem:[#allocation623_spill] sm:$0xff]  ;;  %v18903_v59 = vld [vmem:[#allocation677_spill] sm:$0xff] }
0x1017   : > { %v9397_v30 = vpop.f32.mrf.mxu3  ;;  %v18886_v52 = vsel %vm18884_vm13, nan, %v18885_v36  ;;  %vm18904_vm4 = vnez %v18903_v59  ;;  %v18905_v36 = vld [vmem:[#allocation678_spill] sm:$0xff]  ;;  %v18913_v59 = vld [vmem:[#allocation567_spill] sm:$0xff] }
0x1018   : > { %v15299_v29 = vadd.f32 %v9397_v30, %v9309_v6  ;;  %v8304_v0 = vpack.c.bf16 %v18890_v43, %v18886_v52  ;;  %v18893_v30 = vld [vmem:[#allocation504_spill] sm:$0xff]  ;;  %v18898_v6 = vsel %vm18896_vm10, nan, %v18897_v27  ;;  %v18906_v8 = vsel %vm18904_vm4, nan, %v18905_v36 }
0x1019   : > { %v18894_v4 = vsel %vm18892_vm6, nan, %v18893_v30  ;;  %v9135_v50 = vpop.f32.mrf.mxu0 }
0x101a   : > { %9350 = vmatmul.bf16.gmra.mxu2 %v15295_v9  ;;  %v8272_v13 = vpack.c.bf16 %v18898_v6, %v18894_v4  ;;  %v18899_v9 = vld [vmem:[#allocation271_spill] sm:$0xff]  ;;  %v18907_v4 = vld [vmem:[#allocation562_spill] sm:$0xff] }
0x101b   : > { %vm18900_vm14 = vnez %v18899_v9  ;;  %9645 = vmatpush.bf16.msrb.mxu2 %v8304_v0  ;;  %v9224_v30 = vpop.f32.mrf.mxu1  ;;  %vm18908_vm12 = vnez %v18907_v4  ;;  %v18909_v9 = vld [vmem:[#allocation563_spill] sm:$0xff]  ;;  %v18911_v6 = vld [vmem:[#allocation566_spill] sm:$0xff] }
0x101c   : > { %9439 = vmatmul.bf16.gmra.mxu3 %v15297_v28  ;;  %v18901_v28 = vld [vmem:[#allocation675_spill] sm:$0xff]  ;;  %9467 = vmatpush.bf16.msrb.mxu0 %v8272_v13  ;;  %v9225_v40 = vadd.f32 %v9224_v30, %v9135_v50  ;;  %vm18912_vm0 = vnez %v18911_v6  ;;  %v11242_v50 = vld [vmem:[#allocation2 + $0x368] sm:$0xf0] }
0x101d   : > { %v18902_v34 = vsel %vm18900_vm14, nan, %v18901_v28  ;;  %v9311_v52 = vpop.f32.mrf.mxu2  ;;  %v18910_v28 = vsel %vm18908_vm12, nan, %v18909_v9  ;;  %v18914_v36 = vsel %vm18912_vm0, nan, %v18913_v59  ;;  %v11232_v0 = vld [vmem:[#allocation2 + $0x340] sm:$0xf] }
0x101e   : > { %v8320_v5 = vpack.c.bf16 %v18906_v8, %v18902_v34  ;;  %v9312_v43 = vadd.f32 %v9311_v52, %v9223_v19  ;;  %v8288_v34 = vpack.c.bf16 %v18914_v36, %v18910_v28  ;;  %v11440_v13 = vld [vmem:[#allocation2 + $0x35c] sm:$0xf0]  ;;  %v11436_v8 = vld [vmem:[#allocation2 + $0x344] sm:$0xf]  ;;  %v11441_v19 = vld [vmem:[#allocation2 + $0x364] sm:$0xf0] }
0x101f   : > { %v9400_v55 = vpop.f32.mrf.mxu3  ;;  %v11437_v52 = vld [vmem:[#allocation2 + $0x34c] sm:$0xf]  ;;  %v15339_v30 = vor.u32 %v11440_v13, %v11232_v0  ;;  %v15341_v4 = vor.u32 %v11436_v8, %v11234_v17 }
0x1020   : > { %9734 = vmatpush.bf16.msrb.mxu3 %v8320_v5  ;;  %v15329_v27 = vadd.f32 %v9400_v55, %v9312_v43  ;;  %v11240_v5 = vld [vmem:[#allocation2 + $0x348] sm:$0xf]  ;;  %9556 = vmatpush.bf16.msrb.mxu1 %v8288_v34  ;;  %v15345_v28 = vor.u32 %v11437_v52, %v11242_v50  ;;  %v11444_v52 = vld [vmem:[#allocation2 + $0x384] sm:$0xf] }
0x1021   : > { %18915 = vst [vmem:[#allocation360_spill] sm:$0xff] %v15339_v30  ;;  %v9138_v6 = vpop.f32.mrf.mxu0  ;;  %v15343_v59 = vor.u32 %v11441_v19, %v11240_v5  ;;  %v11264_v19 = vld [vmem:[#allocation2 + $0x380] sm:$0xf]  ;;  %v11266_v50 = vld [vmem:[#allocation2 + $0x3a0] sm:$0xf0] }
0x1022   : > { %18916 = vst [vmem:[#allocation363_spill] sm:$0xff] %v15341_v4 }
0x1023   : > { %v9227_v12 = vpop.f32.mrf.mxu1  ;;  %18917 = vst [vmem:[#allocation364_spill] sm:$0xff] %v15343_v59 }
0x1024   : > { %18918 = vst [vmem:[#allocation415_spill] sm:$0xff] %v15345_v28  ;;  %v9228_v36 = vadd.f32 %v9227_v12, %v9138_v6  ;;  %9177 = vmatmul.bf16.gmra.mxu0 %v15339_v30  ;;  %v11448_v12 = vld [vmem:[#allocation2 + $0x39c] sm:$0xf0]  ;;  %v11274_v6 = vld [vmem:[#allocation2 + $0x3a8] sm:$0xf0] }
0x1025   : > { %v9313_v55 = vpop.f32.mrf.mxu2  ;;  %v15355_v30 = vor.u32 %v11448_v12, %v11264_v19  ;;  %v18923_v19 = vld [vmem:[#allocation443_spill] sm:$0xff]  ;;  %v18927_v12 = vld [vmem:[#allocation445_spill] sm:$0xff] }
0x1026   : > { %v9314_v9 = vadd.f32 %v9313_v55, %v9225_v40  ;;  %9266 = vmatmul.bf16.gmra.mxu1 %v15341_v4  ;;  %v11272_v55 = vld [vmem:[#allocation2 + $0x388] sm:$0xf]  ;;  %vm18924_vm8 = vnez %v18923_v19  ;;  %vm18928_vm1 = vnez %v18927_v12 }
0x1027   : > { %v9402_v43 = vpop.f32.mrf.mxu3  ;;  %18919 = vst [vmem:[#allocation416_spill] sm:$0xff] %v15355_v30 }
0x1028   : > { %v15347_v38 = vadd.f32 %v9402_v43, %v9314_v9  ;;  %v11449_v43 = vld [vmem:[#allocation2 + $0x3a4] sm:$0xf0]  ;;  %v11445_v9 = vld [vmem:[#allocation2 + $0x38c] sm:$0xf] }
0x1029   : > { %v9140_v0 = vpop.f32.mrf.mxu0 }
0x102a   : > { %9355 = vmatmul.bf16.gmra.mxu2 %v15343_v59 }
0x102b   : > { %v9229_v13 = vpop.f32.mrf.mxu1 }
0x102c   : > { %9444 = vmatmul.bf16.gmra.mxu3 %v15345_v28  ;;  %v9230_v8 = vadd.f32 %v9229_v13, %v9140_v0  ;;  %v15357_v28 = vor.u32 %v11444_v52, %v11266_v50  ;;  %v15359_v0 = vor.u32 %v11449_v43, %v11272_v55  ;;  %v18929_v52 = vld [vmem:[#allocation446_spill] sm:$0xff] }
0x102d   : > { %v9316_v17 = vpop.f32.mrf.mxu2  ;;  %v18930_v50 = vsel %vm18928_vm1, nan, %v18929_v52 }
0x102e   : > { %v9317_v40 = vadd.f32 %v9316_v17, %v9228_v36  ;;  %18920 = vst [vmem:[#allocation419_spill] sm:$0xff] %v15357_v28 }
0x102f   : > { %v9405_v34 = vpop.f32.mrf.mxu3  ;;  %18921 = vst [vmem:[#allocation420_spill] sm:$0xff] %v15359_v0 }
0x1030   : > { %v15353_v5 = vadd.f32 %v9405_v34, %v9317_v40  ;;  %v15361_v34 = vor.u32 %v11445_v9, %v11274_v6  ;;  %v18935_v9 = vld [vmem:[#allocation333_spill] sm:$0xff]  ;;  %v18937_v6 = vld [vmem:[#allocation334_spill] sm:$0xff] }
0x1031   : > { %v9143_v17 = vpop.f32.mrf.mxu0  ;;  %vm18936_vm5 = vnez %v18935_v9 }
0x1032   : > { %18922 = vst [vmem:[#allocation471_spill] sm:$0xff] %v15361_v34 }
0x1033   : > { %v9232_v48 = vpop.f32.mrf.mxu1 }
0x1034   : > { %v9233_v40 = vadd.f32 %v9232_v48, %v9143_v17  ;;  %9182 = vmatmul.bf16.gmra.mxu0 %v15355_v30  ;;  %v18931_v48 = vld [vmem:[#allocation331_spill] sm:$0xff] }
0x1035   : > { %v9318_v4 = vpop.f32.mrf.mxu2  ;;  %vm18932_vm3 = vnez %v18931_v48 }
0x1036   : > { %v9319_v36 = vadd.f32 %v9318_v4, %v9230_v8  ;;  %9271 = vmatmul.bf16.gmra.mxu1 %v15357_v28  ;;  %v18925_v4 = vld [vmem:[#allocation444_spill] sm:$0xff]  ;;  %v18943_v28 = vld [vmem:[#allocation501_spill] sm:$0xff] }
0x1037   : > { %v9407_v59 = vpop.f32.mrf.mxu3  ;;  %v18926_v8 = vsel %vm18924_vm8, nan, %v18925_v4  ;;  %vm18944_vm7 = vnez %v18943_v28  ;;  %v18945_v4 = vld [vmem:[#allocation502_spill] sm:$0xff] }
0x1038   : > { %v15363_v13 = vadd.f32 %v9407_v59, %v9319_v36  ;;  %v8255_v55 = vpack.c.bf16 %v18930_v50, %v18926_v8  ;;  %v18933_v59 = vld [vmem:[#allocation332_spill] sm:$0xff]  ;;  %v18938_v36 = vsel %vm18936_vm5, nan, %v18937_v6  ;;  %v18946_v12 = vsel %vm18944_vm7, nan, %v18945_v4  ;;  %v18953_v28 = vld [vmem:[#allocation390_spill] sm:$0xff] }
0x1039   : > { %v18934_v43 = vsel %vm18932_vm3, nan, %v18933_v59  ;;  %v9145_v48 = vpop.f32.mrf.mxu0 }
0x103a   : > { %9360 = vmatmul.bf16.gmra.mxu2 %v15359_v0  ;;  %v8223_v17 = vpack.c.bf16 %v18938_v36, %v18934_v43  ;;  %v18939_v0 = vld [vmem:[#allocation499_spill] sm:$0xff]  ;;  %v18951_v36 = vld [vmem:[#allocation389_spill] sm:$0xff] }
0x103b   : > { %vm18940_vm15 = vnez %v18939_v0  ;;  %9994 = vmatpush.bf16.msra.mxu2 %v8255_v55  ;;  %v9234_v59 = vpop.f32.mrf.mxu1  ;;  %v18947_v43 = vld [vmem:[#allocation387_spill] sm:$0xff]  ;;  %v18949_v0 = vld [vmem:[#allocation388_spill] sm:$0xff]  ;;  %vm18952_vm13 = vnez %v18951_v36 }
0x103c   : > { %9449 = vmatmul.bf16.gmra.mxu3 %v15361_v34  ;;  %v18941_v34 = vld [vmem:[#allocation500_spill] sm:$0xff]  ;;  %9816 = vmatpush.bf16.msra.mxu0 %v8223_v17  ;;  %v9235_v9 = vadd.f32 %v9234_v59, %v9145_v48  ;;  %vm18948_vm9 = vnez %v18947_v43  ;;  %v18954_v4 = vsel %vm18952_vm13, nan, %v18953_v28  ;;  %v11296_v55 = vld [vmem:[#allocation2 + $0x3c0] sm:$0xf]  ;;  %v11306_v48 = vld [vmem:[#allocation2 + $0x3e8] sm:$0xf0] }
0x103d   : > { %v18942_v19 = vsel %vm18940_vm15, nan, %v18941_v34  ;;  %v9321_v8 = vpop.f32.mrf.mxu2  ;;  %v18950_v34 = vsel %vm18948_vm9, nan, %v18949_v0  ;;  %v11456_v17 = vld [vmem:[#allocation2 + $0x3dc] sm:$0xf0] }
0x103e   : > { %v8271_v30 = vpack.c.bf16 %v18946_v12, %v18942_v19  ;;  %v9322_v50 = vadd.f32 %v9321_v8, %v9233_v40  ;;  %v8239_v19 = vpack.c.bf16 %v18954_v4, %v18950_v34  ;;  %v11452_v12 = vld [vmem:[#allocation2 + $0x3c4] sm:$0xf]  ;;  %v11457_v40 = vld [vmem:[#allocation2 + $0x3e4] sm:$0xf0]  ;;  %v11453_v8 = vld [vmem:[#allocation2 + $0x3cc] sm:$0xf]  ;;  %v15403_v59 = vor.u32 %v11456_v17, %v11296_v55 }
0x103f   : > { %v9410_v52 = vpop.f32.mrf.mxu3  ;;  %v15405_v43 = vor.u32 %v11452_v12, %v11298_v10  ;;  %v15409_v34 = vor.u32 %v11453_v8, %v11306_v48  ;;  %v11334_v8 = vld [vmem:[#allocation2 + $0x14] sm:$0xf] }
0x1040   : > { %10083 = vmatpush.bf16.msra.mxu3 %v8271_v30  ;;  %v15393_v6 = vadd.f32 %v9410_v52, %v9322_v50  ;;  %v11304_v30 = vld [vmem:[#allocation2 + $0x3c8] sm:$0xf]  ;;  %9905 = vmatpush.bf16.msra.mxu1 %v8239_v19  ;;  %18955 = vst [vmem:[#allocation472_spill] sm:$0xff] %v15403_v59  ;;  %v10834_v48 = vld [vmem:[#allocation2 + $0x30] sm:$0xf0] }
0x1041   : > { %18956 = vst [vmem:[#allocation475_spill] sm:$0xff] %v15405_v43  ;;  %v9148_v36 = vpop.f32.mrf.mxu0  ;;  %v15407_v28 = vor.u32 %v11457_v40, %v11304_v30  ;;  %v10832_v40 = vld [vmem:[#allocation2 + $0x10] sm:$0xf] }
0x1042   : > { %18958 = vst [vmem:[#allocation295_spill] sm:$0xff] %v15409_v34 }
0x1043   : > { %v9237_v45 = vpop.f32.mrf.mxu1  ;;  %18957 = vst [vmem:[#allocation476_spill] sm:$0xff] %v15407_v28 }
0x1044   : > { %v9238_v4 = vadd.f32 %v9237_v45, %v9148_v36  ;;  %9187 = vmatmul.bf16.gmra.mxu0 %v15403_v59  ;;  %v11338_v45 = vld [vmem:[#allocation2 + $0x2c] sm:$0xf0]  ;;  %v10842_v36 = vld [vmem:[#allocation2 + $0x38] sm:$0xf0] }
0x1045   : > { %v9323_v52 = vpop.f32.mrf.mxu2  ;;  %v15419_v59 = vor.u32 %v11338_v45, %v10832_v40  ;;  %v18963_v40 = vld [vmem:[#allocation439_spill] sm:$0xff]  ;;  %v18967_v45 = vld [vmem:[#allocation441_spill] sm:$0xff] }
0x1046   : > { %v9324_v0 = vadd.f32 %v9323_v52, %v9235_v9  ;;  %9276 = vmatmul.bf16.gmra.mxu1 %v15405_v43  ;;  %v10840_v52 = vld [vmem:[#allocation2 + $0x18] sm:$0xf]  ;;  %vm18964_vm2 = vnez %v18963_v40  ;;  %vm18968_vm6 = vnez %v18967_v45 }
0x1047   : > { %v9412_v50 = vpop.f32.mrf.mxu3  ;;  %18959 = vst [vmem:[#allocation296_spill] sm:$0xff] %v15419_v59 }
0x1048   : > { %v15411_v35 = vadd.f32 %v9412_v50, %v9324_v0  ;;  %v11339_v50 = vld [vmem:[#allocation2 + $0x34] sm:$0xf0]  ;;  %v11335_v0 = vld [vmem:[#allocation2 + $0x1c] sm:$0xf] }
0x1049   : > { %v9150_v55 = vpop.f32.mrf.mxu0 }
0x104a   : > { %9365 = vmatmul.bf16.gmra.mxu2 %v15407_v28 }
0x104b   : > { %v9239_v17 = vpop.f32.mrf.mxu1 }
0x104c   : > { %9454 = vmatmul.bf16.gmra.mxu3 %v15409_v34  ;;  %v9240_v12 = vadd.f32 %v9239_v17, %v9150_v55  ;;  %v15421_v34 = vor.u32 %v11334_v8, %v10834_v48  ;;  %v15423_v55 = vor.u32 %v11339_v50, %v10840_v52  ;;  %v18969_v8 = vld [vmem:[#allocation442_spill] sm:$0xff] }
0x104d   : > { %v9326_v10 = vpop.f32.mrf.mxu2  ;;  %v18970_v48 = vsel %vm18968_vm6, nan, %v18969_v8 }
0x104e   : > { %v9327_v9 = vadd.f32 %v9326_v10, %v9238_v4  ;;  %18960 = vst [vmem:[#allocation299_spill] sm:$0xff] %v15421_v34 }
0x104f   : > { %v9415_v19 = vpop.f32.mrf.mxu3  ;;  %18961 = vst [vmem:[#allocation300_spill] sm:$0xff] %v15423_v55 }
0x1050   : > { %v15417_v30 = vadd.f32 %v9415_v19, %v9327_v9  ;;  %v15425_v19 = vor.u32 %v11335_v0, %v10842_v36  ;;  %v18975_v0 = vld [vmem:[#allocation329_spill] sm:$0xff]  ;;  %v18977_v36 = vld [vmem:[#allocation330_spill] sm:$0xff] }
0x1051   : > { %v9153_v10 = vpop.f32.mrf.mxu0  ;;  %vm18976_vm14 = vnez %v18975_v0 }
0x1052   : > { %18962 = vst [vmem:[#allocation351_spill] sm:$0xff] %v15425_v19 }
0x1053   : > { %v9242_v47 = vpop.f32.mrf.mxu1 }
0x1054   : > { %v9243_v9 = vadd.f32 %v9242_v47, %v9153_v10  ;;  %9468 = vmatmul.bf16.vlgmr.msrb.gmra.mxu0 %v15419_v59  ;;  %v18971_v47 = vld [vmem:[#allocation327_spill] sm:$0xff] }
0x1055   : > { %v9328_v43 = vpop.f32.mrf.mxu2  ;;  %vm18972_vm10 = vnez %v18971_v47 }
0x1056   : > { %v9329_v4 = vadd.f32 %v9328_v43, %v9240_v12  ;;  %9557 = vmatmul.bf16.vlgmr.msrb.gmra.mxu1 %v15421_v34  ;;  %v18965_v43 = vld [vmem:[#allocation440_spill] sm:$0xff]  ;;  %v18983_v34 = vld [vmem:[#allocation497_spill] sm:$0xff] }
0x1057   : > { %v9417_v28 = vpop.f32.mrf.mxu3  ;;  %v18966_v12 = vsel %vm18964_vm2, nan, %v18965_v43  ;;  %vm18984_vm12 = vnez %v18983_v34  ;;  %v18985_v43 = vld [vmem:[#allocation498_spill] sm:$0xff] }
0x1058   : > { %v15427_v17 = vadd.f32 %v9417_v28, %v9329_v4  ;;  %v8253_v52 = vpack.c.bf16 %v18970_v48, %v18966_v12  ;;  %v18973_v28 = vld [vmem:[#allocation328_spill] sm:$0xff]  ;;  %v18978_v4 = vsel %vm18976_vm14, nan, %v18977_v36  ;;  %v18986_v45 = vsel %vm18984_vm12, nan, %v18985_v43  ;;  %v18993_v34 = vld [vmem:[#allocation386_spill] sm:$0xff] }
0x1059   : > { %v18974_v50 = vsel %vm18972_vm10, nan, %v18973_v28  ;;  %v9155_v47 = vpop.f32.mrf.mxu0 }
0x105a   : > { %9646 = vmatmul.bf16.vlgmr.msrb.gmra.mxu2 %v15423_v55  ;;  %v8221_v10 = vpack.c.bf16 %v18978_v4, %v18974_v50  ;;  %v18979_v55 = vld [vmem:[#allocation495_spill] sm:$0xff]  ;;  %v18991_v4 = vld [vmem:[#allocation385_spill] sm:$0xff] }
0x105b   : > { %vm18980_vm4 = vnez %v18979_v55  ;;  %9995 = vmatpush.bf16.msra.mxu2 %v8253_v52  ;;  %v9244_v28 = vpop.f32.mrf.mxu1  ;;  %v18987_v50 = vld [vmem:[#allocation383_spill] sm:$0xff]  ;;  %v18989_v55 = vld [vmem:[#allocation384_spill] sm:$0xff]  ;;  %vm18992_vm8 = vnez %v18991_v4  ;;  %v10864_v52 = vld [vmem:[#allocation2 + $0x50] sm:$0xf] }
0x105c   : > { %9735 = vmatmul.bf16.vlgmr.msrb.gmra.mxu3 %v15425_v19  ;;  %v18981_v19 = vld [vmem:[#allocation496_spill] sm:$0xff]  ;;  %9817 = vmatpush.bf16.msra.mxu0 %v8221_v10  ;;  %v9245_v0 = vadd.f32 %v9244_v28, %v9155_v47  ;;  %vm18988_vm0 = vnez %v18987_v50  ;;  %v18994_v43 = vsel %vm18992_vm8, nan, %v18993_v34  ;;  %v11346_v10 = vld [vmem:[#allocation2 + $0x6c] sm:$0xf0]  ;;  %v10874_v47 = vld [vmem:[#allocation2 + $0x78] sm:$0xf0] }
0x105d   : > { %v18982_v40 = vsel %vm18980_vm4, nan, %v18981_v19  ;;  %v9331_v12 = vpop.f32.mrf.mxu2  ;;  %v18990_v19 = vsel %vm18988_vm0, nan, %v18989_v55  ;;  %v15467_v28 = vor.u32 %v11346_v10, %v10864_v52 }
0x105e   : > { %v8269_v59 = vpack.c.bf16 %v18986_v45, %v18982_v40  ;;  %v9332_v48 = vadd.f32 %v9331_v12, %v9243_v9  ;;  %v8237_v40 = vpack.c.bf16 %v18994_v43, %v18990_v19  ;;  %v11342_v45 = vld [vmem:[#allocation2 + $0x54] sm:$0xf]  ;;  %v11347_v9 = vld [vmem:[#allocation2 + $0x74] sm:$0xf0]  ;;  %v11343_v12 = vld [vmem:[#allocation2 + $0x5c] sm:$0xf] }
0x105f   : > { %v9420_v8 = vpop.f32.mrf.mxu3  ;;  %18995 = vst [vmem:[#allocation352_spill] sm:$0xff] %v15467_v28  ;;  %v15469_v50 = vor.u32 %v11342_v45, %v10866_v39  ;;  %v15473_v19 = vor.u32 %v11343_v12, %v10874_v47  ;;  %v11350_v12 = vld [vmem:[#allocation2 + $0x94] sm:$0xf] }
0x1060   : > { %10084 = vmatpush.bf16.msra.mxu3 %v8269_v59  ;;  %v15457_v36 = vadd.f32 %v9420_v8, %v9332_v48  ;;  %v10872_v59 = vld [vmem:[#allocation2 + $0x58] sm:$0xf]  ;;  %9906 = vmatpush.bf16.msra.mxu1 %v8237_v40  ;;  %v10898_v47 = vld [vmem:[#allocation2 + $0xb0] sm:$0xf0] }
0x1061   : > { %18996 = vst [vmem:[#allocation355_spill] sm:$0xff] %v15469_v50  ;;  %v9158_v4 = vpop.f32.mrf.mxu0  ;;  %v15471_v34 = vor.u32 %v11347_v9, %v10872_v59  ;;  %v10896_v9 = vld [vmem:[#allocation2 + $0x90] sm:$0xf] }
0x1062   : > { %18998 = vst [vmem:[#allocation407_spill] sm:$0xff] %v15473_v19 }
0x1063   : > { %v9247_v42 = vpop.f32.mrf.mxu1  ;;  %18997 = vst [vmem:[#allocation356_spill] sm:$0xff] %v15471_v34 }
0x1064   : > { %v9248_v43 = vadd.f32 %v9247_v42, %v9158_v4  ;;  %9473 = vmatmul.bf16.gmra.mxu0 %v15467_v28  ;;  %v11354_v42 = vld [vmem:[#allocation2 + $0xac] sm:$0xf0]  ;;  %v10906_v4 = vld [vmem:[#allocation2 + $0xb8] sm:$0xf0] }
0x1065   : > { %v9333_v8 = vpop.f32.mrf.mxu2  ;;  %v15483_v28 = vor.u32 %v11354_v42, %v10896_v9  ;;  %v19003_v9 = vld [vmem:[#allocation433_spill] sm:$0xff] }
0x1066   : > { %v9334_v55 = vadd.f32 %v9333_v8, %v9245_v0  ;;  %9562 = vmatmul.bf16.gmra.mxu1 %v15469_v50  ;;  %v10904_v8 = vld [vmem:[#allocation2 + $0x98] sm:$0xf]  ;;  %vm19004_vm1 = vnez %v19003_v9  ;;  %v19007_v42 = vld [vmem:[#allocation437_spill] sm:$0xff] }
0x1067   : > { %v9422_v48 = vpop.f32.mrf.mxu3  ;;  %18999 = vst [vmem:[#allocation408_spill] sm:$0xff] %v15483_v28  ;;  %vm19008_vm3 = vnez %v19007_v42 }
0x1068   : > { %v15475_v61 = vadd.f32 %v9422_v48, %v9334_v55  ;;  %v11355_v48 = vld [vmem:[#allocation2 + $0xb4] sm:$0xf0]  ;;  %v11351_v55 = vld [vmem:[#allocation2 + $0x9c] sm:$0xf] }
0x1069   : > { %v9160_v52 = vpop.f32.mrf.mxu0 }
0x106a   : > { %9651 = vmatmul.bf16.gmra.mxu2 %v15471_v34 }
0x106b   : > { %v9249_v10 = vpop.f32.mrf.mxu1 }
0x106c   : > { %9740 = vmatmul.bf16.gmra.mxu3 %v15473_v19  ;;  %v9250_v45 = vadd.f32 %v9249_v10, %v9160_v52  ;;  %v15485_v19 = vor.u32 %v11350_v12, %v10898_v47  ;;  %v15487_v52 = vor.u32 %v11355_v48, %v10904_v8  ;;  %v19009_v12 = vld [vmem:[#allocation438_spill] sm:$0xff] }
0x106d   : > { %v9336_v39 = vpop.f32.mrf.mxu2  ;;  %v19010_v47 = vsel %vm19008_vm3, nan, %v19009_v12 }
0x106e   : > { %v9337_v0 = vadd.f32 %v9336_v39, %v9248_v43  ;;  %19000 = vst [vmem:[#allocation411_spill] sm:$0xff] %v15485_v19 }
0x106f   : > { %v9425_v40 = vpop.f32.mrf.mxu3  ;;  %19001 = vst [vmem:[#allocation412_spill] sm:$0xff] %v15487_v52 }
0x1070   : > { %v15481_v59 = vadd.f32 %v9425_v40, %v9337_v0  ;;  %v15489_v40 = vor.u32 %v11351_v55, %v10906_v4  ;;  %v19015_v55 = vld [vmem:[#allocation325_spill] sm:$0xff]  ;;  %v19017_v4 = vld [vmem:[#allocation326_spill] sm:$0xff] }
0x1071   : > { %v9163_v39 = vpop.f32.mrf.mxu0  ;;  %vm19016_vm15 = vnez %v19015_v55 }
0x1072   : > { %19002 = vst [vmem:[#allocation463_spill] sm:$0xff] %v15489_v40 }
0x1073   : > { %v9252_v60 = vpop.f32.mrf.mxu1 }
0x1074   : > { %v9253_v0 = vadd.f32 %v9252_v60, %v9163_v39  ;;  %9478 = vmatmul.bf16.gmra.mxu0 %v15483_v28  ;;  %v19011_v60 = vld [vmem:[#allocation321_spill] sm:$0xff] }
0x1075   : > { %v9338_v50 = vpop.f32.mrf.mxu2  ;;  %vm19012_vm5 = vnez %v19011_v60 }
0x1076   : > { %v9339_v43 = vadd.f32 %v9338_v50, %v9250_v45  ;;  %9567 = vmatmul.bf16.gmra.mxu1 %v15485_v19  ;;  %v19005_v50 = vld [vmem:[#allocation434_spill] sm:$0xff]  ;;  %v19023_v19 = vld [vmem:[#allocation493_spill] sm:$0xff] }
0x1077   : > { %v9427_v34 = vpop.f32.mrf.mxu3  ;;  %v19006_v45 = vsel %vm19004_vm1, nan, %v19005_v50  ;;  %vm19024_vm9 = vnez %v19023_v19  ;;  %v19025_v50 = vld [vmem:[#allocation494_spill] sm:$0xff] }
0x1078   : > { %v15491_v10 = vadd.f32 %v9427_v34, %v9339_v43  ;;  %v8251_v8 = vpack.c.bf16 %v19010_v47, %v19006_v45  ;;  %v19013_v34 = vld [vmem:[#allocation322_spill] sm:$0xff]  ;;  %v19018_v43 = vsel %vm19016_vm15, nan, %v19017_v4  ;;  %v19026_v42 = vsel %vm19024_vm9, nan, %v19025_v50 }
0x1079   : > { %v19014_v48 = vsel %vm19012_vm5, nan, %v19013_v34  ;;  %v9165_v60 = vpop.f32.mrf.mxu0  ;;  %v19033_v19 = vld [vmem:[#allocation382_spill] sm:$0xff] }
0x107a   : > { %9656 = vmatmul.bf16.gmra.mxu2 %v15487_v52  ;;  %v8219_v39 = vpack.c.bf16 %v19018_v43, %v19014_v48  ;;  %v19019_v52 = vld [vmem:[#allocation489_spill] sm:$0xff] }
0x107b   : > { %vm19020_vm7 = vnez %v19019_v52  ;;  %9996 = vmatpush.bf16.msra.mxu2 %v8251_v8  ;;  %v9254_v34 = vpop.f32.mrf.mxu1  ;;  %v19027_v48 = vld [vmem:[#allocation377_spill] sm:$0xff]  ;;  %v19029_v52 = vld [vmem:[#allocation378_spill] sm:$0xff] }
0x107c   : > { %9745 = vmatmul.bf16.gmra.mxu3 %v15489_v40  ;;  %v19021_v40 = vld [vmem:[#allocation490_spill] sm:$0xff]  ;;  %9818 = vmatpush.bf16.msra.mxu0 %v8219_v39  ;;  %v9255_v55 = vadd.f32 %v9254_v34, %v9165_v60  ;;  %vm19028_vm13 = vnez %v19027_v48  ;;  %v19031_v43 = vld [vmem:[#allocation381_spill] sm:$0xff]  ;;  %v10938_v60 = vld [vmem:[#allocation2 + $0xf8] sm:$0xf0] }
0x107d   : > { %v19022_v9 = vsel %vm19020_vm7, nan, %v19021_v40  ;;  %v9341_v45 = vpop.f32.mrf.mxu2  ;;  %v19030_v40 = vsel %vm19028_vm13, nan, %v19029_v52  ;;  %vm19032_vm2 = vnez %v19031_v43  ;;  %v10928_v8 = vld [vmem:[#allocation2 + $0xd0] sm:$0xf] }
0x107e   : > { %v8267_v28 = vpack.c.bf16 %v19026_v42, %v19022_v9  ;;  %v9342_v47 = vadd.f32 %v9341_v45, %v9253_v0  ;;  %v19034_v50 = vsel %vm19032_vm2, nan, %v19033_v19  ;;  %v11362_v39 = vld [vmem:[#allocation2 + $0xec] sm:$0xf0]  ;;  %v11358_v42 = vld [vmem:[#allocation2 + $0xd4] sm:$0xf] }
0x107f   : > { %v9430_v12 = vpop.f32.mrf.mxu3  ;;  %v8235_v9 = vpack.c.bf16 %v19034_v50, %v19030_v40  ;;  %v11363_v0 = vld [vmem:[#allocation2 + $0xf4] sm:$0xf0]  ;;  %v11359_v45 = vld [vmem:[#allocation2 + $0xdc] sm:$0xf]  ;;  %v15531_v34 = vor.u32 %v11362_v39, %v10928_v8  ;;  %v15533_v48 = vor.u32 %v11358_v42, %v10930_v53 }
0x1080   : > { %10085 = vmatpush.bf16.msra.mxu3 %v8267_v28  ;;  %v15521_v4 = vadd.f32 %v9430_v12, %v9342_v47  ;;  %v10936_v28 = vld [vmem:[#allocation2 + $0xd8] sm:$0xf]  ;;  %v15537_v40 = vor.u32 %v11359_v45, %v10938_v60  ;;  %v11366_v45 = vld [vmem:[#allocation2 + $0x114] sm:$0xf] }
0x1081   : > { %9907 = vmatpush.bf16.msra.mxu1 %v8235_v9  ;;  %19035 = vst [vmem:[#allocation464_spill] sm:$0xff] %v15531_v34  ;;  %v9168_v43 = vpop.f32.mrf.mxu0  ;;  %v15535_v19 = vor.u32 %v11363_v0, %v10936_v28  ;;  %v10960_v0 = vld [vmem:[#allocation2 + $0x110] sm:$0xf]  ;;  %v10962_v60 = vld [vmem:[#allocation2 + $0x130] sm:$0xf0] }
0x1082   : > { %19036 = vst [vmem:[#allocation467_spill] sm:$0xff] %v15533_v48 }
0x1083   : > { %v9257_v51 = vpop.f32.mrf.mxu1  ;;  %19037 = vst [vmem:[#allocation468_spill] sm:$0xff] %v15535_v19 }
0x1084   : > { %19038 = vst [vmem:[#allocation287_spill] sm:$0xff] %v15537_v40  ;;  %v9258_v50 = vadd.f32 %v9257_v51, %v9168_v43  ;;  %9483 = vmatmul.bf16.gmra.mxu0 %v15531_v34  ;;  %v11370_v51 = vld [vmem:[#allocation2 + $0x12c] sm:$0xf0]  ;;  %v10970_v43 = vld [vmem:[#allocation2 + $0x138] sm:$0xf0] }
0x1085   : > { %v9343_v12 = vpop.f32.mrf.mxu2  ;;  %v15547_v34 = vor.u32 %v11370_v51, %v10960_v0  ;;  %v19044_v0 = vld [vmem:[#allocation425_spill] sm:$0xff] }
0x1086   : > { %v9344_v52 = vadd.f32 %v9343_v12, %v9255_v55  ;;  %9572 = vmatmul.bf16.gmra.mxu1 %v15533_v48  ;;  %v10968_v12 = vld [vmem:[#allocation2 + $0x118] sm:$0xf]  ;;  %vm19045_vm6 = vnez %v19044_v0  ;;  %v19048_v51 = vld [vmem:[#allocation429_spill] sm:$0xff] }
0x1087   : > { %v9432_v47 = vpop.f32.mrf.mxu3  ;;  %19039 = vst [vmem:[#allocation288_spill] sm:$0xff] %v15547_v34  ;;  %vm19049_vm10 = vnez %v19048_v51 }
0x1088   : > { %v15539_v18 = vadd.f32 %v9432_v47, %v9344_v52  ;;  %v11371_v47 = vld [vmem:[#allocation2 + $0x134] sm:$0xf0]  ;;  %v11367_v52 = vld [vmem:[#allocation2 + $0x11c] sm:$0xf] }
0x1089   : > { %v9170_v8 = vpop.f32.mrf.mxu0 }
0x108a   : > { %9661 = vmatmul.bf16.gmra.mxu2 %v15535_v19 }
0x108b   : > { %v9259_v39 = vpop.f32.mrf.mxu1 }
0x108c   : > { %9750 = vmatmul.bf16.gmra.mxu3 %v15537_v40  ;;  %v9260_v42 = vadd.f32 %v9259_v39, %v9170_v8  ;;  %v15549_v40 = vor.u32 %v11366_v45, %v10962_v60  ;;  %v15551_v8 = vor.u32 %v11371_v47, %v10968_v12  ;;  %v19050_v45 = vld [vmem:[#allocation430_spill] sm:$0xff] }
0x108d   : > { %v9346_v53 = vpop.f32.mrf.mxu2  ;;  %v19051_v60 = vsel %vm19049_vm10, nan, %v19050_v45 }
0x108e   : > { %v9347_v55 = vadd.f32 %v9346_v53, %v9258_v50  ;;  %19040 = vst [vmem:[#allocation291_spill] sm:$0xff] %v15549_v40 }
0x108f   : > { %v9435_v9 = vpop.f32.mrf.mxu3  ;;  %19041 = vst [vmem:[#allocation292_spill] sm:$0xff] %v15551_v8 }
0x1090   : > { %v15545_v28 = vadd.f32 %v9435_v9, %v9347_v55  ;;  %v15553_v9 = vor.u32 %v11367_v52, %v10970_v43  ;;  %v19056_v52 = vld [vmem:[#allocation317_spill] sm:$0xff]  ;;  %v19058_v43 = vld [vmem:[#allocation318_spill] sm:$0xff] }
0x1091   : > { %v9173_v53 = vpop.f32.mrf.mxu0  ;;  %vm19057_vm4 = vnez %v19056_v52 }
0x1092   : > { %19042 = vst [vmem:[#allocation343_spill] sm:$0xff] %v15553_v9 }
0x1093   : > { %v9262_v14 = vpop.f32.mrf.mxu1 }
0x1094   : > { %v9263_v55 = vadd.f32 %v9262_v14, %v9173_v53  ;;  %9488 = vmatmul.bf16.gmra.mxu0 %v15547_v34  ;;  %v19052_v14 = vld [vmem:[#allocation313_spill] sm:$0xff] }
0x1095   : > { %v9348_v48 = vpop.f32.mrf.mxu2  ;;  %vm19053_vm14 = vnez %v19052_v14 }
0x1096   : > { %v9349_v50 = vadd.f32 %v9348_v48, %v9260_v42  ;;  %9577 = vmatmul.bf16.gmra.mxu1 %v15549_v40  ;;  %v19046_v48 = vld [vmem:[#allocation426_spill] sm:$0xff]  ;;  %v19064_v40 = vld [vmem:[#allocation485_spill] sm:$0xff] }
0x1097   : > { %v9437_v19 = vpop.f32.mrf.mxu3  ;;  %v19047_v42 = vsel %vm19045_vm6, nan, %v19046_v48  ;;  %vm19065_vm0 = vnez %v19064_v40  ;;  %v19066_v48 = vld [vmem:[#allocation486_spill] sm:$0xff] }
0x1098   : > { %v15555_v39 = vadd.f32 %v9437_v19, %v9349_v50  ;;  %v8249_v12 = vpack.c.bf16 %v19051_v60, %v19047_v42  ;;  %v19054_v19 = vld [vmem:[#allocation314_spill] sm:$0xff]  ;;  %v19059_v50 = vsel %vm19057_vm4, nan, %v19058_v43  ;;  %v19067_v51 = vsel %vm19065_vm0, nan, %v19066_v48 }
0x1099   : > { %v19055_v47 = vsel %vm19053_vm14, nan, %v19054_v19  ;;  %v9175_v14 = vpop.f32.mrf.mxu0  ;;  %v19075_v40 = vld [vmem:[#allocation374_spill] sm:$0xff] }
0x109a   : > { %19043 = vst [vmem:[#allocation344_spill] sm:$0xff] %v15555_v39  ;;  %9666 = vmatmul.bf16.gmra.mxu2 %v15551_v8  ;;  %v8217_v53 = vpack.c.bf16 %v19059_v50, %v19055_v47  ;;  %v19060_v8 = vld [vmem:[#allocation481_spill] sm:$0xff] }
0x109b   : > { %vm19061_vm12 = vnez %v19060_v8  ;;  %9997 = vmatpush.bf16.msra.mxu2 %v8249_v12  ;;  %v9264_v19 = vpop.f32.mrf.mxu1  ;;  %v19069_v47 = vld [vmem:[#allocation369_spill] sm:$0xff]  ;;  %v19071_v8 = vld [vmem:[#allocation370_spill] sm:$0xff] }
0x109c   : > { %9755 = vmatmul.bf16.gmra.mxu3 %v15553_v9  ;;  %v19062_v9 = vld [vmem:[#allocation482_spill] sm:$0xff]  ;;  %9819 = vmatpush.bf16.msra.mxu0 %v8217_v53  ;;  %v9265_v52 = vadd.f32 %v9264_v19, %v9175_v14  ;;  %vm19070_vm8 = vnez %v19069_v47  ;;  %v19073_v50 = vld [vmem:[#allocation373_spill] sm:$0xff]  ;;  %v11002_v14 = vld [vmem:[#allocation2 + $0x178] sm:$0xf0] }
0x109d   : > { %v19063_v0 = vsel %vm19061_vm12, nan, %v19062_v9  ;;  %v9351_v42 = vpop.f32.mrf.mxu2  ;;  %v19072_v9 = vsel %vm19070_vm8, nan, %v19071_v8  ;;  %vm19074_vm1 = vnez %v19073_v50  ;;  %v10992_v12 = vld [vmem:[#allocation2 + $0x150] sm:$0xf] }
0x109e   : > { %v8265_v34 = vpack.c.bf16 %v19067_v51, %v19063_v0  ;;  %v9352_v60 = vadd.f32 %v9351_v42, %v9263_v55  ;;  %v19076_v48 = vsel %vm19074_vm1, nan, %v19075_v40  ;;  %v11378_v53 = vld [vmem:[#allocation2 + $0x16c] sm:$0xf0]  ;;  %v11374_v51 = vld [vmem:[#allocation2 + $0x154] sm:$0xf] }
0x109f   : > { %v9440_v45 = vpop.f32.mrf.mxu3  ;;  %v8233_v0 = vpack.c.bf16 %v19076_v48, %v19072_v9  ;;  %v11379_v55 = vld [vmem:[#allocation2 + $0x174] sm:$0xf0]  ;;  %v11375_v42 = vld [vmem:[#allocation2 + $0x15c] sm:$0xf]  ;;  %v15595_v19 = vor.u32 %v11378_v53, %v10992_v12  ;;  %v15597_v47 = vor.u32 %v11374_v51, %v10994_v7 }
0x10a0   : > { %10086 = vmatpush.bf16.msra.mxu3 %v8265_v34  ;;  %v15585_v43 = vadd.f32 %v9440_v45, %v9352_v60  ;;  %v11000_v34 = vld [vmem:[#allocation2 + $0x158] sm:$0xf]  ;;  %v15601_v9 = vor.u32 %v11375_v42, %v11002_v14  ;;  %v11382_v42 = vld [vmem:[#allocation2 + $0x194] sm:$0xf] }
0x10a1   : > { %9908 = vmatpush.bf16.msra.mxu1 %v8233_v0  ;;  %19077 = vst [vmem:[#allocation348_spill] sm:$0xff] %v15595_v19  ;;  %v9178_v50 = vpop.f32.mrf.mxu0  ;;  %v15599_v40 = vor.u32 %v11379_v55, %v11000_v34  ;;  %v11024_v55 = vld [vmem:[#allocation2 + $0x190] sm:$0xf]  ;;  %v11026_v14 = vld [vmem:[#allocation2 + $0x1b0] sm:$0xf0] }
0x10a2   : > { %19068 = vst [vmem:[#allocation347_spill] sm:$0xff] %v15585_v43 }
0x10a3   : > { %19078 = vst [vmem:[#allocation399_spill] sm:$0xff] %v15597_v47  ;;  %v9267_v3 = vpop.f32.mrf.mxu1 }
0x10a4   : > { %19079 = vst [vmem:[#allocation400_spill] sm:$0xff] %v15599_v40  ;;  %v9268_v48 = vadd.f32 %v9267_v3, %v9178_v50  ;;  %9493 = vmatmul.bf16.gmra.mxu0 %v15595_v19  ;;  %v11386_v3 = vld [vmem:[#allocation2 + $0x1ac] sm:$0xf0]  ;;  %v11034_v50 = vld [vmem:[#allocation2 + $0x1b8] sm:$0xf0] }
0x10a5   : > { %v9353_v45 = vpop.f32.mrf.mxu2  ;;  %19080 = vst [vmem:[#allocation403_spill] sm:$0xff] %v15601_v9  ;;  %v15611_v19 = vor.u32 %v11386_v3, %v11024_v55  ;;  %v19088_v55 = vld [vmem:[#allocation417_spill] sm:$0xff] }
0x10a6   : > { %v9354_v8 = vadd.f32 %v9353_v45, %v9265_v52  ;;  %9582 = vmatmul.bf16.gmra.mxu1 %v15597_v47  ;;  %v11032_v45 = vld [vmem:[#allocation2 + $0x198] sm:$0xf]  ;;  %vm19089_vm3 = vnez %v19088_v55  ;;  %v19092_v3 = vld [vmem:[#allocation421_spill] sm:$0xff] }
0x10a7   : > { %v9442_v60 = vpop.f32.mrf.mxu3  ;;  %19083 = vst [vmem:[#allocation456_spill] sm:$0xff] %v15611_v19  ;;  %vm19093_vm5 = vnez %v19092_v3 }
0x10a8   : > { %v15603_v43 = vadd.f32 %v9442_v60, %v9354_v8  ;;  %v11387_v60 = vld [vmem:[#allocation2 + $0x1b4] sm:$0xf0]  ;;  %v11383_v8 = vld [vmem:[#allocation2 + $0x19c] sm:$0xf] }
0x10a9   : > { %v9180_v12 = vpop.f32.mrf.mxu0 }
0x10aa   : > { %19081 = vst [vmem:[#allocation404_spill] sm:$0xff] %v15603_v43  ;;  %9671 = vmatmul.bf16.gmra.mxu2 %v15599_v40 }
0x10ab   : > { %v9269_v53 = vpop.f32.mrf.mxu1 }
0x10ac   : > { %9760 = vmatmul.bf16.gmra.mxu3 %v15601_v9  ;;  %v9270_v51 = vadd.f32 %v9269_v53, %v9180_v12  ;;  %v15613_v9 = vor.u32 %v11382_v42, %v11026_v14  ;;  %v15615_v12 = vor.u32 %v11387_v60, %v11032_v45  ;;  %v19094_v42 = vld [vmem:[#allocation422_spill] sm:$0xff] }
0x10ad   : > { %v9356_v7 = vpop.f32.mrf.mxu2  ;;  %v19095_v14 = vsel %vm19093_vm5, nan, %v19094_v42 }
0x10ae   : > { %v9357_v52 = vadd.f32 %v9356_v7, %v9268_v48  ;;  %19084 = vst [vmem:[#allocation459_spill] sm:$0xff] %v15613_v9 }
0x10af   : > { %v9445_v0 = vpop.f32.mrf.mxu3  ;;  %19085 = vst [vmem:[#allocation460_spill] sm:$0xff] %v15615_v12 }
0x10b0   : > { %v15609_v34 = vadd.f32 %v9445_v0, %v9357_v52  ;;  %v15617_v0 = vor.u32 %v11383_v8, %v11034_v50  ;;  %v19100_v8 = vld [vmem:[#allocation309_spill] sm:$0xff]  ;;  %v19102_v50 = vld [vmem:[#allocation310_spill] sm:$0xff] }
0x10b1   : > { %v9183_v7 = vpop.f32.mrf.mxu0  ;;  %vm19101_vm7 = vnez %v19100_v8 }
0x10b2   : > { %19082 = vst [vmem:[#allocation455_spill] sm:$0xff] %v15609_v34  ;;  %v11066_v34 = vld [vmem:[#allocation2 + $0x1f8] sm:$0xf0] }
0x10b3   : > { %v9272_v43 = vpop.f32.mrf.mxu1  ;;  %19086 = vst [vmem:[#allocation279_spill] sm:$0xff] %v15617_v0 }
0x10b4   : > { %v9273_v52 = vadd.f32 %v9272_v43, %v9183_v7  ;;  %9498 = vmatmul.bf16.gmra.mxu0 %v15611_v19  ;;  %v19096_v43 = vld [vmem:[#allocation305_spill] sm:$0xff] }
0x10b5   : > { %v9358_v47 = vpop.f32.mrf.mxu2  ;;  %vm19097_vm15 = vnez %v19096_v43 }
0x10b6   : > { %v9359_v48 = vadd.f32 %v9358_v47, %v9270_v51  ;;  %9587 = vmatmul.bf16.gmra.mxu1 %v15613_v9  ;;  %v19090_v47 = vld [vmem:[#allocation418_spill] sm:$0xff]  ;;  %v19108_v9 = vld [vmem:[#allocation477_spill] sm:$0xff] }
0x10b7   : > { %v9447_v40 = vpop.f32.mrf.mxu3  ;;  %v19091_v51 = vsel %vm19089_vm3, nan, %v19090_v47  ;;  %vm19109_vm13 = vnez %v19108_v9  ;;  %v19110_v47 = vld [vmem:[#allocation478_spill] sm:$0xff]  ;;  %v19113_v9 = vld [vmem:[#allocation361_spill] sm:$0xff] }
0x10b8   : > { %v15619_v53 = vadd.f32 %v9447_v40, %v9359_v48  ;;  %v8247_v45 = vpack.c.bf16 %v19095_v14, %v19091_v51  ;;  %v19098_v40 = vld [vmem:[#allocation306_spill] sm:$0xff]  ;;  %v19103_v48 = vsel %vm19101_vm7, nan, %v19102_v50  ;;  %v19111_v3 = vsel %vm19109_vm13, nan, %v19110_v47 }
0x10b9   : > { %v19099_v60 = vsel %vm19097_vm15, nan, %v19098_v40  ;;  %v9185_v43 = vpop.f32.mrf.mxu0  ;;  %vm19114_vm2 = vnez %v19113_v9  ;;  %v19115_v47 = vld [vmem:[#allocation362_spill] sm:$0xff] }
0x10ba   : > { %19087 = vst [vmem:[#allocation280_spill] sm:$0xff] %v15619_v53  ;;  %9676 = vmatmul.bf16.gmra.mxu2 %v15615_v12  ;;  %v8215_v7 = vpack.c.bf16 %v19103_v48, %v19099_v60  ;;  %v19104_v12 = vld [vmem:[#allocation473_spill] sm:$0xff]  ;;  %v11390_v48 = vld [vmem:[#allocation2 + $0x1d4] sm:$0xf]  ;;  %v11064_v53 = vld [vmem:[#allocation2 + $0x1d8] sm:$0xf] }
0x10bb   : > { %vm19105_vm9 = vnez %v19104_v12  ;;  %9998 = vmatpush.bf16.msra.mxu2 %v8247_v45  ;;  %v9274_v40 = vpop.f32.mrf.mxu1  ;;  %v11056_v60 = vld [vmem:[#allocation2 + $0x1d0] sm:$0xf] }
0x10bc   : > { %9765 = vmatmul.bf16.gmra.mxu3 %v15617_v0  ;;  %v19106_v0 = vld [vmem:[#allocation474_spill] sm:$0xff]  ;;  %9820 = vmatpush.bf16.msra.mxu0 %v8215_v7  ;;  %v9275_v8 = vadd.f32 %v9274_v40, %v9185_v43  ;;  %v11394_v12 = vld [vmem:[#allocation2 + $0x1ec] sm:$0xf0] }
0x10bd   : > { %v19107_v55 = vsel %vm19105_vm9, nan, %v19106_v0  ;;  %v9361_v51 = vpop.f32.mrf.mxu2  ;;  %v11058_v0 = vld [vmem:[#allocation2 + $0x1f0] sm:$0xf0]  ;;  %v19117_v45 = vld [vmem:[#allocation365_spill] sm:$0xff]  ;;  %v15659_v43 = vor.u32 %v11394_v12, %v11056_v60 }
0x10be   : > { %v8263_v19 = vpack.c.bf16 %v19111_v3, %v19107_v55  ;;  %v9362_v14 = vadd.f32 %v9361_v51, %v9273_v52  ;;  %v19116_v55 = vsel %vm19114_vm2, nan, %v19115_v47  ;;  %vm19118_vm6 = vnez %v19117_v45  ;;  %v19119_v7 = vld [vmem:[#allocation366_spill] sm:$0xff]  ;;  %v11391_v51 = vld [vmem:[#allocation2 + $0x1dc] sm:$0xf] }
0x10bf   : > { %v9450_v42 = vpop.f32.mrf.mxu3  ;;  %v19120_v3 = vsel %vm19118_vm6, nan, %v19119_v7  ;;  %v11395_v52 = vld [vmem:[#allocation2 + $0x1f4] sm:$0xf0]  ;;  %19121 = vst [vmem:[#allocation284_spill] sm:$0xff] %v15659_v43  ;;  %v15661_v40 = vor.u32 %v11390_v48, %v11058_v0  ;;  %v15665_v47 = vor.u32 %v11391_v51, %v11066_v34  ;;  %v11088_v34 = vld [vmem:[#allocation2 + $0x210] sm:$0xf] }
0x10c0   : > { %10087 = vmatpush.bf16.msra.mxu3 %v8263_v19  ;;  %v15649_v50 = vadd.f32 %v9450_v42, %v9362_v14  ;;  %v8231_v19 = vpack.c.bf16 %v19120_v3, %v19116_v55  ;;  %v15663_v25 = vor.u32 %v11395_v52, %v11064_v53  ;;  %v11090_v3 = vld [vmem:[#allocation2 + $0x230] sm:$0xf0]  ;;  %v11403_v52 = vld [vmem:[#allocation2 + $0x234] sm:$0xf0]  ;;  %v11399_v51 = vld [vmem:[#allocation2 + $0x21c] sm:$0xf] }
0x10c1   : > { %19122 = vst [vmem:[#allocation335_spill] sm:$0xff] %v15661_v40  ;;  %v9188_v39 = vpop.f32.mrf.mxu0 }
0x10c2   : > { %19112 = vst [vmem:[#allocation283_spill] sm:$0xff] %v15649_v50  ;;  %9909 = vmatpush.bf16.msra.mxu1 %v8231_v19  ;;  %v11096_v19 = vld [vmem:[#allocation2 + $0x218] sm:$0xf] }
0x10c3   : > { %v9277_v9 = vpop.f32.mrf.mxu1  ;;  %19123 = vst [vmem:[#allocation336_spill] sm:$0xff] %v15663_v25 }
0x10c4   : > { %19124 = vst [vmem:[#allocation339_spill] sm:$0xff] %v15665_v47  ;;  %v9278_v45 = vadd.f32 %v9277_v9, %v9188_v39  ;;  %9503 = vmatmul.bf16.gmra.mxu0 %v15659_v43  ;;  %v11402_v39 = vld [vmem:[#allocation2 + $0x22c] sm:$0xf0] }
0x10c5   : > { %v9363_v42 = vpop.f32.mrf.mxu2 }
0x10c6   : > { %v9364_v50 = vadd.f32 %v9363_v42, %v9275_v8  ;;  %9592 = vmatmul.bf16.gmra.mxu1 %v15661_v40  ;;  %v11098_v42 = vld [vmem:[#allocation2 + $0x238] sm:$0xf0] }
0x10c7   : > { %v9452_v14 = vpop.f32.mrf.mxu3 }
0x10c8   : > { %v15667_v7 = vadd.f32 %v9452_v14, %v9364_v50  ;;  %v11398_v50 = vld [vmem:[#allocation2 + $0x214] sm:$0xf] }
0x10c9   : > { %v9190_v48 = vpop.f32.mrf.mxu0 }
0x10ca   : > { %9681 = vmatmul.bf16.gmra.mxu2 %v15663_v25  ;;  %v15675_v25 = vor.u32 %v11402_v39, %v11088_v34  ;;  %v19132_v34 = vld [vmem:[#allocation410_spill] sm:$0xff] }
0x10cb   : > { %v9279_v0 = vpop.f32.mrf.mxu1 }
0x10cc   : > { %9770 = vmatmul.bf16.gmra.mxu3 %v15665_v47  ;;  %v9280_v53 = vadd.f32 %v9279_v0, %v9190_v48  ;;  %19125 = vst [vmem:[#allocation340_spill] sm:$0xff] %v15675_v25  ;;  %v15677_v47 = vor.u32 %v11398_v50, %v11090_v3  ;;  %v15679_v48 = vor.u32 %v11403_v52, %v11096_v19  ;;  %v19134_v50 = vld [vmem:[#allocation413_spill] sm:$0xff]  ;;  %v19136_v3 = vld [vmem:[#allocation414_spill] sm:$0xff] }
0x10cd   : > { %v9366_v60 = vpop.f32.mrf.mxu2  ;;  %vm19135_vm14 = vnez %v19134_v50  ;;  %v19138_v52 = vld [vmem:[#allocation297_spill] sm:$0xff] }
0x10ce   : > { %v9367_v8 = vadd.f32 %v9366_v60, %v9278_v45  ;;  %19126 = vst [vmem:[#allocation391_spill] sm:$0xff] %v15677_v47  ;;  %v19137_v19 = vsel %vm19135_vm14, nan, %v19136_v3  ;;  %vm19139_vm4 = vnez %v19138_v52 }
0x10cf   : > { %v9455_v12 = vpop.f32.mrf.mxu3  ;;  %19127 = vst [vmem:[#allocation392_spill] sm:$0xff] %v15679_v48 }
0x10d0   : > { %v15673_v55 = vadd.f32 %v9455_v12, %v9367_v8  ;;  %v15681_v12 = vor.u32 %v11399_v51, %v11098_v42  ;;  %v19142_v42 = vld [vmem:[#allocation301_spill] sm:$0xff] }
0x10d1   : > { %v9469_v60 = vpop.f32.mrf.mxu0  ;;  %vm19143_vm12 = vnez %v19142_v42 }
0x10d2   : > { %19128 = vst [vmem:[#allocation395_spill] sm:$0xff] %v15681_v12  ;;  %v9470_v8 = vadd.f32 %v9469_v60, %v15201_v31  ;;  %v19146_v60 = vld [vmem:[#allocation465_spill] sm:$0xff] }
0x10d3   : > { %v9558_v40 = vpop.f32.mrf.mxu1  ;;  %vm19147_vm0 = vnez %v19146_v60  ;;  %v11410_v60 = vld [vmem:[#allocation2 + $0x26c] sm:$0xf0] }
0x10d4   : > { %v9559_v43 = vadd.f32 %v9558_v40, %v9470_v8  ;;  %9508 = vmatmul.bf16.gmra.mxu0 %v15675_v25  ;;  %v19140_v40 = vld [vmem:[#allocation298_spill] sm:$0xff]  ;;  %v11407_v25 = vld [vmem:[#allocation2 + $0x25c] sm:$0xf] }
0x10d5   : > { %v9368_v14 = vpop.f32.mrf.mxu2  ;;  %v19141_v51 = vsel %vm19139_vm4, nan, %v19140_v40  ;;  %v19148_v8 = vld [vmem:[#allocation466_spill] sm:$0xff] }
0x10d6   : > { %v9369_v45 = vadd.f32 %v9368_v14, %v9280_v53  ;;  %9597 = vmatmul.bf16.gmra.mxu1 %v15677_v47  ;;  %v19130_v53 = vld [vmem:[#allocation409_spill] sm:$0xff]  ;;  %v19144_v14 = vld [vmem:[#allocation302_spill] sm:$0xff] }
0x10d7   : > { %v9457_v9 = vpop.f32.mrf.mxu3  ;;  %vm19131_vm10 = vnez %v19130_v53  ;;  %v19149_v53 = vsel %vm19147_vm0, nan, %v19148_v8  ;;  %v11406_v8 = vld [vmem:[#allocation2 + $0x254] sm:$0xf]  ;;  %v11128_v47 = vld [vmem:[#allocation2 + $0x258] sm:$0xf] }
0x10d8   : > { %v15684_v0 = vadd.f32 %v9457_v9, %v9369_v45  ;;  %v19133_v39 = vsel %vm19131_vm10, nan, %v19132_v34  ;;  %v19145_v9 = vsel %vm19143_vm12, nan, %v19144_v14  ;;  %v19152_v34 = vld [vmem:[#allocation470_spill] sm:$0xff] }
0x10d9   : > { %v8245_v31 = vpack.c.bf16 %v19137_v19, %v19133_v39  ;;  %v8213_v45 = vpack.c.bf16 %v19145_v9, %v19141_v51  ;;  %v9471_v52 = vpop.f32.mrf.mxu0  ;;  %v11120_v9 = vld [vmem:[#allocation2 + $0x250] sm:$0xf] }
0x10da   : > { %19129 = vst [vmem:[#allocation396_spill] sm:$0xff] %v15684_v0  ;;  %9686 = vmatmul.bf16.gmra.mxu2 %v15679_v48  ;;  %v9472_v42 = vadd.f32 %v9471_v52, %v15219_v46  ;;  %v11130_v46 = vld [vmem:[#allocation2 + $0x278] sm:$0xf0]  ;;  %v15725_v52 = vor.u32 %v11410_v60, %v11120_v9 }
0x10db   : > { %9999 = vmatpush.bf16.msra.mxu2 %v8245_v31  ;;  %9821 = vmatpush.bf16.msra.mxu0 %v8213_v45  ;;  %v9560_v40 = vpop.f32.mrf.mxu1  ;;  %v19157_v31 = vld [vmem:[#allocation354_spill] sm:$0xff] }
0x10dc   : > { %9775 = vmatmul.bf16.gmra.mxu3 %v15681_v12  ;;  %v19150_v12 = vld [vmem:[#allocation469_spill] sm:$0xff]  ;;  %v9561_v14 = vadd.f32 %v9560_v40, %v9472_v42 }
0x10dd   : > { %vm19151_vm8 = vnez %v19150_v12  ;;  %v9647_v39 = vpop.f32.mrf.mxu2  ;;  %v11122_v12 = vld [vmem:[#allocation2 + $0x270] sm:$0xf0] }
0x10de   : > { %v19153_v50 = vsel %vm19151_vm8, nan, %v19152_v34  ;;  %v9648_v19 = vadd.f32 %v9647_v39, %v9559_v43  ;;  %v19155_v34 = vld [vmem:[#allocation353_spill] sm:$0xff]  ;;  %v11411_v39 = vld [vmem:[#allocation2 + $0x274] sm:$0xf0]  ;;  %v15727_v40 = vor.u32 %v11406_v8, %v11122_v12 }
0x10df   : > { %v8261_v48 = vpack.c.bf16 %v19153_v50, %v19149_v53  ;;  %v9736_v3 = vpop.f32.mrf.mxu3  ;;  %vm19156_vm1 = vnez %v19155_v34  ;;  %v19159_v53 = vld [vmem:[#allocation357_spill] sm:$0xff]  ;;  %v15729_v0 = vor.u32 %v11411_v39, %v11128_v47  ;;  %v11154_v39 = vld [vmem:[#allocation2 + $0x2b0] sm:$0xf0] }
0x10e0   : > { %v15715_v51 = vadd.f32 %v9736_v3, %v9648_v19  ;;  %v19158_v45 = vsel %vm19156_vm1, nan, %v19157_v31  ;;  %vm19160_vm3 = vnez %v19159_v53  ;;  %v15731_v31 = vor.u32 %v11407_v25, %v11130_v46  ;;  %v11160_v46 = vld [vmem:[#allocation2 + $0x298] sm:$0xf] }
0x10e1   : > { %10088 = vmatpush.bf16.msra.mxu3 %v8261_v48  ;;  %v19161_v48 = vld [vmem:[#allocation358_spill] sm:$0xff]  ;;  %19163 = vst [vmem:[#allocation448_spill] sm:$0xff] %v15729_v0 }
0x10e2   : > { %19154 = vst [vmem:[#allocation447_spill] sm:$0xff] %v15715_v51  ;;  %v19162_v43 = vsel %vm19160_vm3, nan, %v19161_v48  ;;  %v9474_v51 = vpop.f32.mrf.mxu0 }
0x10e3   : > { %v8229_v50 = vpack.c.bf16 %v19162_v43, %v19158_v45  ;;  %v9563_v34 = vpop.f32.mrf.mxu1  ;;  %19164 = vst [vmem:[#allocation451_spill] sm:$0xff] %v15731_v31  ;;  %v9475_v53 = vadd.f32 %v9474_v51, %v15225_v1  ;;  %v11152_v51 = vld [vmem:[#allocation2 + $0x290] sm:$0xf] }
0x10e4   : > { %9513 = vmatmul.bf16.gmra.mxu0 %v15725_v52  ;;  %v11418_v43 = vld [vmem:[#allocation2 + $0x2ac] sm:$0xf0] }
0x10e5   : > { %9910 = vmatpush.bf16.msra.mxu1 %v8229_v50  ;;  %v9649_v3 = vpop.f32.mrf.mxu2  ;;  %v9564_v48 = vadd.f32 %v9563_v34, %v9475_v53  ;;  %v11414_v50 = vld [vmem:[#allocation2 + $0x294] sm:$0xf] }
0x10e6   : > { %v9650_v42 = vadd.f32 %v9649_v3, %v9561_v14  ;;  %9602 = vmatmul.bf16.gmra.mxu1 %v15727_v40  ;;  %v11419_v3 = vld [vmem:[#allocation2 + $0x2b4] sm:$0xf0] }
0x10e7   : > { %v9738_v19 = vpop.f32.mrf.mxu3 }
0x10e8   : > { %v15734_v45 = vadd.f32 %v9738_v19, %v9650_v42  ;;  %v11415_v19 = vld [vmem:[#allocation2 + $0x29c] sm:$0xf] }
0x10e9   : > { %v11162_v42 = vld [vmem:[#allocation2 + $0x2b8] sm:$0xf0] }
0x10ea   : > { %9691 = vmatmul.bf16.gmra.mxu2 %v15729_v0  ;;  %v9476_v47 = vpop.f32.mrf.mxu0 }
0x10eb   : > { %v9565_v8 = vpop.f32.mrf.mxu1  ;;  %v9477_v25 = vadd.f32 %v9476_v47, %v15235_v33 }
0x10ec   : > { %9780 = vmatmul.bf16.gmra.mxu3 %v15731_v31  ;;  %v15743_v31 = vor.u32 %v11418_v43, %v11152_v51  ;;  %v19172_v51 = vld [vmem:[#allocation402_spill] sm:$0xff] }
0x10ed   : > { %v9652_v14 = vpop.f32.mrf.mxu2  ;;  %v9566_v1 = vadd.f32 %v9565_v8, %v9477_v25 }
0x10ee   : > { %v9653_v60 = vadd.f32 %v9652_v14, %v9564_v48  ;;  %19165 = vst [vmem:[#allocation452_spill] sm:$0xff] %v15743_v31  ;;  %v15745_v48 = vor.u32 %v11414_v50, %v11154_v39  ;;  %v19174_v50 = vld [vmem:[#allocation405_spill] sm:$0xff]  ;;  %v19176_v39 = vld [vmem:[#allocation406_spill] sm:$0xff] }
0x10ef   : > { %v9741_v9 = vpop.f32.mrf.mxu3  ;;  %vm19175_vm15 = vnez %v19174_v50 }
0x10f0   : > { %v15741_v12 = vadd.f32 %v9741_v9, %v9653_v60  ;;  %19166 = vst [vmem:[#allocation551_spill] sm:$0xff] %v15745_v48  ;;  %v15747_v9 = vor.u32 %v11419_v3, %v11160_v46  ;;  %v15749_v60 = vor.u32 %v11415_v19, %v11162_v42  ;;  %v19177_v46 = vsel %vm19175_vm15, nan, %v19176_v39  ;;  %v19180_v3 = vld [vmem:[#allocation290_spill] sm:$0xff]  ;;  %v19182_v42 = vld [vmem:[#allocation293_spill] sm:$0xff] }
0x10f1   : > { %vm19183_vm9 = vnez %v19182_v42 }
0x10f2   : > { %v9479_v0 = vpop.f32.mrf.mxu0  ;;  %19167 = vst [vmem:[#allocation554_spill] sm:$0xff] %v15747_v9 }
0x10f3   : > { %v9568_v33 = vpop.f32.mrf.mxu1  ;;  %19168 = vst [vmem:[#allocation555_spill] sm:$0xff] %v15749_v60  ;;  %v9480_v47 = vadd.f32 %v9479_v0, %v15265_v22  ;;  %v19178_v0 = vld [vmem:[#allocation289_spill] sm:$0xff] }
0x10f4   : > { %9518 = vmatmul.bf16.gmra.mxu0 %v15743_v31  ;;  %vm19179_vm7 = vnez %v19178_v0 }
0x10f5   : > { %v9654_v34 = vpop.f32.mrf.mxu2  ;;  %v9569_v25 = vadd.f32 %v9568_v33, %v9480_v47  ;;  %v19181_v19 = vsel %vm19179_vm7, nan, %v19180_v3  ;;  %v19186_v33 = vld [vmem:[#allocation457_spill] sm:$0xff]  ;;  %v19188_v47 = vld [vmem:[#allocation458_spill] sm:$0xff] }
0x10f6   : > { %v9655_v14 = vadd.f32 %v9654_v34, %v9566_v1  ;;  %9607 = vmatmul.bf16.gmra.mxu1 %v15745_v48  ;;  %v19170_v1 = vld [vmem:[#allocation401_spill] sm:$0xff]  ;;  %v19184_v34 = vld [vmem:[#allocation294_spill] sm:$0xff]  ;;  %vm19187_vm13 = vnez %v19186_v33  ;;  %v11423_v48 = vld [vmem:[#allocation2 + $0x2dc] sm:$0xf] }
0x10f7   : > { %v9743_v53 = vpop.f32.mrf.mxu3  ;;  %vm19171_vm5 = vnez %v19170_v1  ;;  %v19189_v1 = vsel %vm19187_vm13, nan, %v19188_v47  ;;  %v11426_v33 = vld [vmem:[#allocation2 + $0x2ec] sm:$0xf0]  ;;  %v11422_v47 = vld [vmem:[#allocation2 + $0x2d4] sm:$0xf] }
0x10f8   : > { %v15752_v8 = vadd.f32 %v9743_v53, %v9655_v14  ;;  %v19173_v43 = vsel %vm19171_vm5, nan, %v19172_v51  ;;  %v19185_v53 = vsel %vm19183_vm9, nan, %v19184_v34  ;;  %v19192_v51 = vld [vmem:[#allocation462_spill] sm:$0xff] }
0x10f9   : > { %v8243_v22 = vpack.c.bf16 %v19177_v46, %v19173_v43  ;;  %v8211_v14 = vpack.c.bf16 %v19185_v53, %v19181_v19  ;;  %v11184_v53 = vld [vmem:[#allocation2 + $0x2d0] sm:$0xf] }
0x10fa   : > { %19169 = vst [vmem:[#allocation277_spill] sm:$0xff] %v15752_v8  ;;  %9696 = vmatmul.bf16.gmra.mxu2 %v15747_v9  ;;  %v9481_v0 = vpop.f32.mrf.mxu0  ;;  %v11192_v8 = vld [vmem:[#allocation2 + $0x2d8] sm:$0xf] }
0x10fb   : > { %10000 = vmatpush.bf16.msra.mxu2 %v8243_v22  ;;  %9822 = vmatpush.bf16.msra.mxu0 %v8211_v14  ;;  %v9570_v3 = vpop.f32.mrf.mxu1  ;;  %v9482_v42 = vadd.f32 %v9481_v0, %v15283_v49  ;;  %v19197_v22 = vld [vmem:[#allocation346_spill] sm:$0xff]  ;;  %v11194_v49 = vld [vmem:[#allocation2 + $0x2f8] sm:$0xf0]  ;;  %v15793_v0 = vor.u32 %v11426_v33, %v11184_v53 }
0x10fc   : > { %9785 = vmatmul.bf16.gmra.mxu3 %v15749_v60  ;;  %v19190_v60 = vld [vmem:[#allocation461_spill] sm:$0xff] }
0x10fd   : > { %vm19191_vm2 = vnez %v19190_v60  ;;  %v9657_v43 = vpop.f32.mrf.mxu2  ;;  %v9571_v34 = vadd.f32 %v9570_v3, %v9482_v42  ;;  %v11186_v60 = vld [vmem:[#allocation2 + $0x2f0] sm:$0xf0] }
0x10fe   : > { %v19193_v50 = vsel %vm19191_vm2, nan, %v19192_v51  ;;  %v9658_v46 = vadd.f32 %v9657_v43, %v9569_v25  ;;  %v19195_v51 = vld [vmem:[#allocation345_spill] sm:$0xff]  ;;  %v11427_v43 = vld [vmem:[#allocation2 + $0x2f4] sm:$0xf0]  ;;  %v15795_v3 = vor.u32 %v11422_v47, %v11186_v60  ;;  %vm19263_vm2 = vnez %v18427_v32 }
0x10ff   : > { %v8259_v9 = vpack.c.bf16 %v19193_v50, %v19189_v1  ;;  %v9746_v39 = vpop.f32.mrf.mxu3  ;;  %vm19196_vm6 = vnez %v19195_v51  ;;  %v19199_v50 = vld [vmem:[#allocation349_spill] sm:$0xff]  ;;  %v15797_v31 = vor.u32 %v11427_v43, %v11192_v8  ;;  %v11218_v43 = vld [vmem:[#allocation2 + $0x330] sm:$0xf0] }
0x1100   : > { %v15783_v19 = vadd.f32 %v9746_v39, %v9658_v46  ;;  %v19198_v1 = vsel %vm19196_vm6, nan, %v19197_v22  ;;  %vm19200_vm10 = vnez %v19199_v50  ;;  %v15799_v22 = vor.u32 %v11423_v48, %v11194_v49  ;;  %v11224_v49 = vld [vmem:[#allocation2 + $0x318] sm:$0xf] }
0x1101   : > { %10089 = vmatpush.bf16.msra.mxu3 %v8259_v9  ;;  %v19201_v9 = vld [vmem:[#allocation350_spill] sm:$0xff]  ;;  %19203 = vst [vmem:[#allocation719_spill] sm:$0xff] %v15797_v31 }
0x1102   : > { %19194 = vst [vmem:[#allocation717_spill] sm:$0xff] %v15783_v19  ;;  %v19202_v25 = vsel %vm19200_vm10, nan, %v19201_v9  ;;  %v9484_v19 = vpop.f32.mrf.mxu0 }
0x1103   : > { %v8227_v14 = vpack.c.bf16 %v19202_v25, %v19198_v1  ;;  %v9573_v51 = vpop.f32.mrf.mxu1  ;;  %19204 = vst [vmem:[#allocation720_spill] sm:$0xff] %v15799_v22  ;;  %v9485_v50 = vadd.f32 %v9484_v19, %v15289_v57  ;;  %v11216_v19 = vld [vmem:[#allocation2 + $0x310] sm:$0xf] }
0x1104   : > { %9523 = vmatmul.bf16.gmra.mxu0 %v15793_v0  ;;  %v11434_v25 = vld [vmem:[#allocation2 + $0x32c] sm:$0xf0] }
0x1105   : > { %9911 = vmatpush.bf16.msra.mxu1 %v8227_v14  ;;  %v9659_v39 = vpop.f32.mrf.mxu2  ;;  %v9574_v9 = vadd.f32 %v9573_v51, %v9485_v50  ;;  %v11430_v14 = vld [vmem:[#allocation2 + $0x314] sm:$0xf] }
0x1106   : > { %v9660_v42 = vadd.f32 %v9659_v39, %v9571_v34  ;;  %9612 = vmatmul.bf16.gmra.mxu1 %v15795_v3  ;;  %v11435_v39 = vld [vmem:[#allocation2 + $0x334] sm:$0xf0] }
0x1107   : > { %v9748_v46 = vpop.f32.mrf.mxu3 }
0x1108   : > { %v15802_v1 = vadd.f32 %v9748_v46, %v9660_v42  ;;  %v11431_v46 = vld [vmem:[#allocation2 + $0x31c] sm:$0xf] }
0x1109   : > { %v11226_v42 = vld [vmem:[#allocation2 + $0x338] sm:$0xf0] }
0x110a   : > { %9701 = vmatmul.bf16.gmra.mxu2 %v15797_v31  ;;  %v9486_v8 = vpop.f32.mrf.mxu0 }
0x110b   : > { %v9575_v47 = vpop.f32.mrf.mxu1  ;;  %v9487_v48 = vadd.f32 %v9486_v8, %v15299_v29 }
0x110c   : > { %9790 = vmatmul.bf16.gmra.mxu3 %v15799_v22  ;;  %v15811_v22 = vor.u32 %v11434_v25, %v11216_v19  ;;  %v19212_v19 = vld [vmem:[#allocation394_spill] sm:$0xff] }
0x110d   : > { %v9662_v34 = vpop.f32.mrf.mxu2  ;;  %v9576_v57 = vadd.f32 %v9575_v47, %v9487_v48 }
0x110e   : > { %v9663_v33 = vadd.f32 %v9662_v34, %v9574_v9  ;;  %19205 = vst [vmem:[#allocation610_spill] sm:$0xff] %v15811_v22  ;;  %v15813_v9 = vor.u32 %v11430_v14, %v11218_v43  ;;  %v19214_v14 = vld [vmem:[#allocation397_spill] sm:$0xff]  ;;  %v19216_v43 = vld [vmem:[#allocation398_spill] sm:$0xff] }
0x110f   : > { %v9751_v53 = vpop.f32.mrf.mxu3  ;;  %vm19215_vm4 = vnez %v19214_v14 }
0x1110   : > { %v15809_v60 = vadd.f32 %v9751_v53, %v9663_v33  ;;  %19206 = vst [vmem:[#allocation611_spill] sm:$0xff] %v15813_v9  ;;  %v15815_v53 = vor.u32 %v11435_v39, %v11224_v49  ;;  %v15817_v33 = vor.u32 %v11431_v46, %v11226_v42  ;;  %v19217_v49 = vsel %vm19215_vm4, nan, %v19216_v43  ;;  %v19220_v39 = vld [vmem:[#allocation282_spill] sm:$0xff]  ;;  %v19222_v42 = vld [vmem:[#allocation285_spill] sm:$0xff] }
0x1111   : > { %vm19223_vm0 = vnez %v19222_v42 }
0x1112   : > { %v9489_v31 = vpop.f32.mrf.mxu0  ;;  %19207 = vst [vmem:[#allocation614_spill] sm:$0xff] %v15815_v53 }
0x1113   : > { %v9578_v29 = vpop.f32.mrf.mxu1  ;;  %19208 = vst [vmem:[#allocation615_spill] sm:$0xff] %v15817_v33  ;;  %v9490_v8 = vadd.f32 %v9489_v31, %v15329_v27  ;;  %v19218_v31 = vld [vmem:[#allocation281_spill] sm:$0xff] }
0x1114   : > { %9528 = vmatmul.bf16.gmra.mxu0 %v15811_v22  ;;  %vm19219_vm12 = vnez %v19218_v31 }
0x1115   : > { %v9664_v51 = vpop.f32.mrf.mxu2  ;;  %v9579_v48 = vadd.f32 %v9578_v29, %v9490_v8  ;;  %v19221_v46 = vsel %vm19219_vm12, nan, %v19220_v39  ;;  %v19226_v29 = vld [vmem:[#allocation449_spill] sm:$0xff]  ;;  %v19228_v8 = vld [vmem:[#allocation450_spill] sm:$0xff] }
0x1116   : > { %v9665_v34 = vadd.f32 %v9664_v51, %v9576_v57  ;;  %9617 = vmatmul.bf16.gmra.mxu1 %v15813_v9  ;;  %v19210_v57 = vld [vmem:[#allocation393_spill] sm:$0xff]  ;;  %v19224_v51 = vld [vmem:[#allocation286_spill] sm:$0xff]  ;;  %vm19227_vm8 = vnez %v19226_v29  ;;  %v11439_v9 = vld [vmem:[#allocation2 + $0x35c] sm:$0xf] }
0x1117   : > { %v9753_v50 = vpop.f32.mrf.mxu3  ;;  %vm19211_vm14 = vnez %v19210_v57  ;;  %v19229_v57 = vsel %vm19227_vm8, nan, %v19228_v8  ;;  %v11442_v29 = vld [vmem:[#allocation2 + $0x36c] sm:$0xf0]  ;;  %v11438_v8 = vld [vmem:[#allocation2 + $0x354] sm:$0xf] }
0x1118   : > { %v15820_v47 = vadd.f32 %v9753_v50, %v9665_v34  ;;  %v19213_v25 = vsel %vm19211_vm14, nan, %v19212_v19  ;;  %v19225_v50 = vsel %vm19223_vm0, nan, %v19224_v51  ;;  %v19232_v19 = vld [vmem:[#allocation454_spill] sm:$0xff] }
0x1119   : > { %v8241_v27 = vpack.c.bf16 %v19217_v49, %v19213_v25  ;;  %v8209_v34 = vpack.c.bf16 %v19225_v50, %v19221_v46  ;;  %v11248_v50 = vld [vmem:[#allocation2 + $0x350] sm:$0xf] }
0x111a   : > { %19209 = vst [vmem:[#allocation661_spill] sm:$0xff] %v15820_v47  ;;  %9706 = vmatmul.bf16.gmra.mxu2 %v15815_v53  ;;  %v9491_v31 = vpop.f32.mrf.mxu0  ;;  %v11256_v47 = vld [vmem:[#allocation2 + $0x358] sm:$0xf] }
0x111b   : > { %10001 = vmatpush.bf16.msra.mxu2 %v8241_v27  ;;  %9823 = vmatpush.bf16.msra.mxu0 %v8209_v34  ;;  %v9580_v39 = vpop.f32.mrf.mxu1  ;;  %v9492_v42 = vadd.f32 %v9491_v31, %v15347_v38  ;;  %v19237_v27 = vld [vmem:[#allocation338_spill] sm:$0xff]  ;;  %v11258_v38 = vld [vmem:[#allocation2 + $0x378] sm:$0xf0]  ;;  %v15861_v31 = vor.u32 %v11442_v29, %v11248_v50 }
0x111c   : > { %9795 = vmatmul.bf16.gmra.mxu3 %v15817_v33  ;;  %v19230_v33 = vld [vmem:[#allocation453_spill] sm:$0xff] }
0x111d   : > { %vm19231_vm1 = vnez %v19230_v33  ;;  %v9667_v25 = vpop.f32.mrf.mxu2  ;;  %v9581_v51 = vadd.f32 %v9580_v39, %v9492_v42  ;;  %v11250_v33 = vld [vmem:[#allocation2 + $0x370] sm:$0xf0] }
0x111e   : > { %v19233_v14 = vsel %vm19231_vm1, nan, %v19232_v19  ;;  %v9668_v49 = vadd.f32 %v9667_v25, %v9579_v48  ;;  %v19235_v19 = vld [vmem:[#allocation337_spill] sm:$0xff]  ;;  %v11443_v25 = vld [vmem:[#allocation2 + $0x374] sm:$0xf0]  ;;  %v15863_v39 = vor.u32 %v11438_v8, %v11250_v33 }
0x111f   : > { %v8257_v53 = vpack.c.bf16 %v19233_v14, %v19229_v57  ;;  %v9756_v43 = vpop.f32.mrf.mxu3  ;;  %vm19236_vm3 = vnez %v19235_v19  ;;  %v19239_v14 = vld [vmem:[#allocation341_spill] sm:$0xff]  ;;  %v15865_v22 = vor.u32 %v11443_v25, %v11256_v47  ;;  %v11282_v25 = vld [vmem:[#allocation2 + $0x3b0] sm:$0xf0] }
0x1120   : > { %v15851_v46 = vadd.f32 %v9756_v43, %v9668_v49  ;;  %v19238_v57 = vsel %vm19236_vm3, nan, %v19237_v27  ;;  %vm19240_vm5 = vnez %v19239_v14  ;;  %v15867_v27 = vor.u32 %v11439_v9, %v11258_v38  ;;  %v11288_v38 = vld [vmem:[#allocation2 + $0x398] sm:$0xf] }
0x1121   : > { %10090 = vmatpush.bf16.msra.mxu3 %v8257_v53  ;;  %v19241_v53 = vld [vmem:[#allocation342_spill] sm:$0xff]  ;;  %19243 = vst [vmem:[#allocation665_spill] sm:$0xff] %v15865_v22 }
0x1122   : > { %19234 = vst [vmem:[#allocation662_spill] sm:$0xff] %v15851_v46  ;;  %v19242_v48 = vsel %vm19240_vm5, nan, %v19241_v53  ;;  %v9494_v46 = vpop.f32.mrf.mxu0 }
0x1123   : > { %v8225_v34 = vpack.c.bf16 %v19242_v48, %v19238_v57  ;;  %v9583_v19 = vpop.f32.mrf.mxu1  ;;  %19244 = vst [vmem:[#allocation666_spill] sm:$0xff] %v15867_v27  ;;  %v9495_v14 = vadd.f32 %v9494_v46, %v15353_v5  ;;  %v11280_v46 = vld [vmem:[#allocation2 + $0x390] sm:$0xf] }
0x1124   : > { %9533 = vmatmul.bf16.gmra.mxu0 %v15861_v31  ;;  %v11450_v48 = vld [vmem:[#allocation2 + $0x3ac] sm:$0xf0] }
0x1125   : > { %9912 = vmatpush.bf16.msra.mxu1 %v8225_v34  ;;  %v9669_v43 = vpop.f32.mrf.mxu2  ;;  %v9584_v53 = vadd.f32 %v9583_v19, %v9495_v14  ;;  %v11446_v34 = vld [vmem:[#allocation2 + $0x394] sm:$0xf] }
0x1126   : > { %v9670_v42 = vadd.f32 %v9669_v43, %v9581_v51  ;;  %9622 = vmatmul.bf16.gmra.mxu1 %v15863_v39  ;;  %v11451_v43 = vld [vmem:[#allocation2 + $0x3b4] sm:$0xf0] }
0x1127   : > { %v9758_v49 = vpop.f32.mrf.mxu3 }
0x1128   : > { %v15870_v57 = vadd.f32 %v9758_v49, %v9670_v42  ;;  %v11447_v49 = vld [vmem:[#allocation2 + $0x39c] sm:$0xf] }
0x1129   : > { %v11290_v42 = vld [vmem:[#allocation2 + $0x3b8] sm:$0xf0] }
0x112a   : > { %9711 = vmatmul.bf16.gmra.mxu2 %v15865_v22  ;;  %v9496_v47 = vpop.f32.mrf.mxu0 }
0x112b   : > { %v9585_v8 = vpop.f32.mrf.mxu1  ;;  %v9497_v9 = vadd.f32 %v9496_v47, %v15363_v13 }
0x112c   : > { %9800 = vmatmul.bf16.gmra.mxu3 %v15867_v27  ;;  %v15879_v27 = vor.u32 %v11450_v48, %v11280_v46  ;;  %v19249_v46 = vld [vmem:[#allocation672_spill] sm:$0xff] }
0x112d   : > { %v9672_v51 = vpop.f32.mrf.mxu2  ;;  %v9586_v5 = vadd.f32 %v9585_v8, %v9497_v9 }
0x112e   : > { %v9673_v29 = vadd.f32 %v9672_v51, %v9584_v53  ;;  %v15881_v53 = vor.u32 %v11446_v34, %v11282_v25  ;;  %v19251_v34 = vld [vmem:[#allocation673_spill] sm:$0xff]  ;;  %v19253_v25 = vld [vmem:[#allocation674_spill] sm:$0xff] }
0x112f   : > { %v9761_v50 = vpop.f32.mrf.mxu3  ;;  %vm19252_vm7 = vnez %v19251_v34 }
0x1130   : > { %v15877_v33 = vadd.f32 %v9761_v50, %v9673_v29  ;;  %v15883_v50 = vor.u32 %v11451_v43, %v11288_v38  ;;  %v15885_v29 = vor.u32 %v11447_v49, %v11290_v42  ;;  %v19254_v38 = vsel %vm19252_vm7, nan, %v19253_v25  ;;  %v19257_v43 = vld [vmem:[#allocation559_spill] sm:$0xff]  ;;  %v19259_v42 = vld [vmem:[#allocation560_spill] sm:$0xff] }
0x1131   : > { %vm19260_vm13 = vnez %v19259_v42  ;;  %v11312_v42 = vld [vmem:[#allocation2 + $0x3d0] sm:$0xf] }
0x1132   : > { %v9499_v22 = vpop.f32.mrf.mxu0  ;;  %19245 = vst [vmem:[#allocation543_spill] sm:$0xff] %v15883_v50 }
0x1133   : > { %v9588_v13 = vpop.f32.mrf.mxu1  ;;  %19246 = vst [vmem:[#allocation544_spill] sm:$0xff] %v15885_v29  ;;  %v9500_v47 = vadd.f32 %v9499_v22, %v15393_v6  ;;  %v19255_v22 = vld [vmem:[#allocation558_spill] sm:$0xff] }
0x1134   : > { %9538 = vmatmul.bf16.gmra.mxu0 %v15879_v27  ;;  %vm19256_vm9 = vnez %v19255_v22 }
0x1135   : > { %v9674_v19 = vpop.f32.mrf.mxu2  ;;  %v9589_v9 = vadd.f32 %v9588_v13, %v9500_v47  ;;  %v19258_v49 = vsel %vm19256_vm9, nan, %v19257_v43  ;;  %v19264_v13 = vld [vmem:[#allocation723_spill] sm:$0xff] }
0x1136   : > { %v9675_v51 = vadd.f32 %v9674_v19, %v9586_v5  ;;  %9627 = vmatmul.bf16.gmra.mxu1 %v15881_v53  ;;  %v19247_v5 = vld [vmem:[#allocation671_spill] sm:$0xff]  ;;  %v19261_v19 = vld [vmem:[#allocation561_spill] sm:$0xff]  ;;  %v19265_v47 = vsel %vm19263_vm2, nan, %v19264_v13  ;;  %v11320_v13 = vld [vmem:[#allocation2 + $0x3d8] sm:$0xf] }
0x1137   : > { %v9763_v14 = vpop.f32.mrf.mxu3  ;;  %vm19248_vm15 = vnez %v19247_v5  ;;  %v19266_v5 = vsel %vm14644_vm11, nan, %v14648_v24  ;;  %v19268_v24 = vld [vmem:[#allocation618_spill] sm:$0xff] }
0x1138   : > { %v15888_v8 = vadd.f32 %v9763_v14, %v9675_v51  ;;  %v19250_v48 = vsel %vm19248_vm15, nan, %v19249_v46  ;;  %v19262_v14 = vsel %vm19260_vm13, nan, %v19261_v19  ;;  %v8335_v46 = vpack.c.bf16 %v19266_v5, %v19265_v47  ;;  %v11458_v19 = vld [vmem:[#allocation2 + $0x3ec] sm:$0xf0]  ;;  %v19272_v47 = vld [vmem:[#allocation620_spill] sm:$0xff] }
0x1139   : > { %v8319_v6 = vpack.c.bf16 %v19254_v38, %v19250_v48  ;;  %v8287_v51 = vpack.c.bf16 %v19262_v14, %v19258_v49  ;;  %v11454_v14 = vld [vmem:[#allocation2 + $0x3d4] sm:$0xf]  ;;  %vm19269_vm11 = vnez %v19268_v24  ;;  %vm19273_vm6 = vnez %v19272_v47  ;;  %v19274_v5 = vld [vmem:[#allocation621_spill] sm:$0xff] }
0x113a   : > { %9716 = vmatmul.bf16.gmra.mxu2 %v15883_v50  ;;  %10439 = vmatpush.bf16.msrb.mxu3 %v8335_v46  ;;  %v9501_v38 = vpop.f32.mrf.mxu0 }
0x113b   : > { %10350 = vmatpush.bf16.msrb.mxu2 %v8319_v6  ;;  %10172 = vmatpush.bf16.msrb.mxu0 %v8287_v51  ;;  %v9590_v22 = vpop.f32.mrf.mxu1  ;;  %v9502_v43 = vadd.f32 %v9501_v38, %v15411_v35  ;;  %v19270_v6 = vld [vmem:[#allocation619_spill] sm:$0xff]  ;;  %v15929_v38 = vor.u32 %v11458_v19, %v11312_v42 }
0x113c   : > { %9805 = vmatmul.bf16.gmra.mxu3 %v15885_v29  ;;  %v19271_v51 = vsel %vm19269_vm11, nan, %v19270_v6  ;;  %v11455_v29 = vld [vmem:[#allocation2 + $0x3dc] sm:$0xf] }
0x113d   : > { %v9677_v48 = vpop.f32.mrf.mxu2  ;;  %v9591_v32 = vadd.f32 %v9590_v22, %v9502_v43  ;;  %v11322_v35 = vld [vmem:[#allocation2 + $0x3f8] sm:$0xf0]  ;;  %v15931_v22 = vor.u32 %v11454_v14, %v11314_v44 }
0x113e   : > { %v9678_v25 = vadd.f32 %v9677_v48, %v9589_v9  ;;  %v19275_v9 = vsel %vm19273_vm6, nan, %v19274_v5  ;;  %v11459_v48 = vld [vmem:[#allocation2 + $0x3f4] sm:$0xf0]  ;;  %v15935_v6 = vor.u32 %v11455_v29, %v11322_v35 }
0x113f   : > { %v9766_v34 = vpop.f32.mrf.mxu3  ;;  %v8303_v46 = vpack.c.bf16 %v19275_v9, %v19271_v51  ;;  %v15933_v50 = vor.u32 %v11459_v48, %v11320_v13 }
0x1140   : > { %v15919_v49 = vadd.f32 %v9766_v34, %v9678_v25 }
0x1141   : > { %10261 = vmatpush.bf16.msrb.mxu1 %v8303_v46 }
0x1142   : > { %19267 = vst [vmem:[#allocation547_spill] sm:$0xff] %v15919_v49  ;;  %v9504_v49 = vpop.f32.mrf.mxu0 }
0x1143   : > { %v9593_v24 = vpop.f32.mrf.mxu1  ;;  %v9505_v47 = vadd.f32 %v9504_v49, %v15417_v30 }
0x1144   : > { %9543 = vmatmul.bf16.gmra.mxu0 %v15929_v38 }
0x1145   : > { %v9679_v34 = vpop.f32.mrf.mxu2  ;;  %v9594_v5 = vadd.f32 %v9593_v24, %v9505_v47  ;;  %v19278_v24 = vld [vmem:[#allocation270_spill] sm:$0xff] }
0x1146   : > { %v9680_v43 = vadd.f32 %v9679_v34, %v9591_v32  ;;  %9632 = vmatmul.bf16.gmra.mxu1 %v15931_v22 }
0x1147   : > { %v9768_v25 = vpop.f32.mrf.mxu3 }
0x1148   : > { %v15938_v51 = vadd.f32 %v9768_v25, %v9680_v43 }
0x114a   : > { %9721 = vmatmul.bf16.gmra.mxu2 %v15933_v50  ;;  %v9506_v14 = vpop.f32.mrf.mxu0 }
0x114b   : > { %v9595_v44 = vpop.f32.mrf.mxu1  ;;  %v9507_v29 = vadd.f32 %v9506_v14, %v15427_v17  ;;  %v19276_v17 = vld [vmem:[#allocation269_spill] sm:$0xff] }
0x114c   : > { %9810 = vmatmul.bf16.gmra.mxu3 %v15935_v6  ;;  %vm19277_vm10 = vnez %v19276_v17  ;;  %v19286_v14 = vld [vmem:[#allocation553_spill] sm:$0xff] }
0x114d   : > { %v9682_v32 = vpop.f32.mrf.mxu2  ;;  %v9596_v30 = vadd.f32 %v9595_v44, %v9507_v29  ;;  %v19279_v47 = vsel %vm19277_vm10, nan, %v19278_v24 }
0x114e   : > { %v9683_v19 = vadd.f32 %v9682_v32, %v9594_v5  ;;  %v19280_v5 = vld [vmem:[#allocation669_spill] sm:$0xff]  ;;  %v19282_v32 = vld [vmem:[#allocation670_spill] sm:$0xff] }
0x114f   : > { %v9771_v42 = vpop.f32.mrf.mxu3  ;;  %vm19281_vm14 = vnez %v19280_v5 }
0x1150   : > { %v15945_v13 = vadd.f32 %v9771_v42, %v9683_v19  ;;  %v19283_v42 = vsel %vm19281_vm14, nan, %v19282_v32  ;;  %v19284_v19 = vld [vmem:[#allocation552_spill] sm:$0xff] }
0x1151   : > { %vm19285_vm4 = vnez %v19284_v19 }
0x1152   : > { %v9509_v48 = vpop.f32.mrf.mxu0  ;;  %v19287_v44 = vsel %vm19285_vm4, nan, %v19286_v14  ;;  %v19300_v14 = vld [vmem:[#allocation612_spill] sm:$0xff] }
0x1153   : > { %v9598_v35 = vpop.f32.mrf.mxu1  ;;  %v9510_v34 = vadd.f32 %v9509_v48, %v15457_v36  ;;  %v8317_v36 = vpack.c.bf16 %v19283_v42, %v19279_v47  ;;  %vm19301_vm1 = vnez %v19300_v14 }
0x1154   : > { %9824 = vmatmul.bf16.vlgmr.msra.gmra.mxu0 %v14925_v56  ;;  %v19288_v56 = vld [vmem:[#allocation556_spill] sm:$0xff] }
0x1155   : > { %v9684_v49 = vpop.f32.mrf.mxu2  ;;  %v9599_v43 = vadd.f32 %v9598_v35, %v9510_v34  ;;  %vm19289_vm12 = vnez %v19288_v56  ;;  %10351 = vmatpush.bf16.msrb.mxu2 %v8317_v36 }
0x1156   : > { %v9685_v46 = vadd.f32 %v9684_v49, %v9596_v30  ;;  %9913 = vmatmul.bf16.vlgmr.msra.gmra.mxu1 %v14927_v54  ;;  %v19290_v54 = vld [vmem:[#allocation557_spill] sm:$0xff]  ;;  %v19292_v30 = vld [vmem:[#allocation278_spill] sm:$0xff] }
0x1157   : > { %v9773_v9 = vpop.f32.mrf.mxu3  ;;  %v19291_v29 = vsel %vm19289_vm12, nan, %v19290_v54  ;;  %vm19293_vm0 = vnez %v19292_v30  ;;  %v19304_v54 = vld [vmem:[#allocation616_spill] sm:$0xff] }
0x1158   : > { %v15948_v25 = vadd.f32 %v9773_v9, %v9685_v46  ;;  %v19296_v9 = vld [vmem:[#allocation721_spill] sm:$0xff]  ;;  %v19298_v46 = vld [vmem:[#allocation722_spill] sm:$0xff]  ;;  %vm19305_vm3 = vnez %v19304_v54  ;;  %v19311_v54 = vld [vmem:[#allocation664_spill] sm:$0xff] }
0x1159   : > { %vm19297_vm8 = vnez %v19296_v9 }
0x115a   : > { %10002 = vmatmul.bf16.vlgmr.msra.gmra.mxu2 %v14929_v37  ;;  %v8285_v37 = vpack.c.bf16 %v19291_v29, %v19287_v44  ;;  %v19299_v48 = vsel %vm19297_vm8, nan, %v19298_v46  ;;  %v9511_v47 = vpop.f32.mrf.mxu0  ;;  %v19302_v44 = vld [vmem:[#allocation613_spill] sm:$0xff] }
0x115b   : > { %v9600_v5 = vpop.f32.mrf.mxu1  ;;  %v9512_v32 = vadd.f32 %v9511_v47, %v15475_v61  ;;  %v19303_v56 = vsel %vm19301_vm1, nan, %v19302_v44  ;;  %v19306_v29 = vld [vmem:[#allocation617_spill] sm:$0xff] }
0x115c   : > { %10091 = vmatmul.bf16.vlgmr.msra.gmra.mxu3 %v14931_v41  ;;  %v19294_v41 = vld [vmem:[#allocation718_spill] sm:$0xff]  ;;  %10173 = vmatpush.bf16.msrb.mxu0 %v8285_v37  ;;  %v19307_v36 = vsel %vm19305_vm3, nan, %v19306_v29 }
0x115d   : > { %v19295_v49 = vsel %vm19293_vm0, nan, %v19294_v41  ;;  %v9687_v34 = vpop.f32.mrf.mxu2  ;;  %v9601_v19 = vadd.f32 %v9600_v5, %v9512_v32  ;;  %v8301_v37 = vpack.c.bf16 %v19307_v36, %v19303_v56  ;;  %v19313_v36 = vld [vmem:[#allocation667_spill] sm:$0xff] }
0x115e   : > { %v8333_v35 = vpack.c.bf16 %v19299_v48, %v19295_v49  ;;  %v9688_v24 = vadd.f32 %v9687_v34, %v9599_v43  ;;  %vm19314_vm15 = vnez %v19313_v36  ;;  %v19340_v36 = vld [vmem:[#allocation609_spill] sm:$0xff] }
0x115f   : > { %v9776_v17 = vpop.f32.mrf.mxu3  ;;  %10262 = vmatpush.bf16.msrb.mxu1 %v8301_v37  ;;  %v19315_v37 = vld [vmem:[#allocation668_spill] sm:$0xff] }
0x1160   : > { %10440 = vmatpush.bf16.msrb.mxu3 %v8333_v35  ;;  %v15979_v42 = vadd.f32 %v9776_v17, %v9688_v24 }
0x1162   : > { %v9514_v49 = vpop.f32.mrf.mxu0 }
0x1163   : > { %v9603_v9 = vpop.f32.mrf.mxu1  ;;  %v9515_v61 = vadd.f32 %v9514_v49, %v15481_v59 }
0x1164   : > { %9829 = vmatmul.bf16.gmra.mxu0 %v14985_v26 }
0x1165   : > { %v9689_v30 = vpop.f32.mrf.mxu2  ;;  %v9604_v48 = vadd.f32 %v9603_v9, %v9515_v61  ;;  %v19325_v61 = vld [vmem:[#allocation711_spill] sm:$0xff] }
0x1166   : > { %v9690_v43 = vadd.f32 %v9689_v30, %v9601_v19  ;;  %9918 = vmatmul.bf16.gmra.mxu1 %v14987_v16  ;;  %v19316_v30 = vsel %vm19314_vm15, nan, %v19315_v37  ;;  %vm19326_vm13 = vnez %v19325_v61 }
0x1167   : > { %v9778_v41 = vpop.f32.mrf.mxu3 }
0x1168   : > { %v15990_v46 = vadd.f32 %v9778_v41, %v9690_v43  ;;  %v19317_v41 = vld [vmem:[#allocation545_spill] sm:$0xff]  ;;  %v19319_v43 = vld [vmem:[#allocation546_spill] sm:$0xff] }
0x1169   : > { %vm19318_vm7 = vnez %v19317_v41 }
0x116a   : > { %10007 = vmatmul.bf16.gmra.mxu2 %v14989_v21  ;;  %v9516_v24 = vpop.f32.mrf.mxu0  ;;  %v19320_v49 = vsel %vm19318_vm7, nan, %v19319_v43 }
0x116b   : > { %v9605_v47 = vpop.f32.mrf.mxu1  ;;  %v9517_v5 = vadd.f32 %v9516_v24, %v15491_v10  ;;  %v19309_v10 = vld [vmem:[#allocation663_spill] sm:$0xff] }
0x116c   : > { %10096 = vmatmul.bf16.gmra.mxu3 %v14991_v23  ;;  %vm19310_vm5 = vnez %v19309_v10  ;;  %v19336_v10 = vld [vmem:[#allocation605_spill] sm:$0xff] }
0x116d   : > { %v9692_v35 = vpop.f32.mrf.mxu2  ;;  %v9606_v59 = vadd.f32 %v9605_v47, %v9517_v5  ;;  %v19312_v29 = vsel %vm19310_vm5, nan, %v19311_v54 }
0x116e   : > { %v9693_v17 = vadd.f32 %v9692_v35, %v9604_v48  ;;  %v19329_v35 = vld [vmem:[#allocation715_spill] sm:$0xff] }
0x116f   : > { %v9781_v34 = vpop.f32.mrf.mxu3  ;;  %vm19330_vm2 = vnez %v19329_v35 }
0x1170   : > { %v15997_v32 = vadd.f32 %v9781_v34, %v9693_v17  ;;  %v19331_v34 = vld [vmem:[#allocation716_spill] sm:$0xff] }
0x1171   : > { %v19332_v17 = vsel %vm19330_vm2, nan, %v19331_v34  ;;  %v19344_v34 = vld [vmem:[#allocation344_spill] sm:$0xff] }
0x1172   : > { %v9519_v26 = vpop.f32.mrf.mxu0 }
0x1173   : > { %v9608_v56 = vpop.f32.mrf.mxu1  ;;  %v9520_v16 = vadd.f32 %v9519_v26, %v15521_v4  ;;  %v8315_v4 = vpack.c.bf16 %v19316_v30, %v19312_v29  ;;  %v19338_v29 = vld [vmem:[#allocation608_spill] sm:$0xff] }
0x1174   : > { %9834 = vmatmul.bf16.gmra.mxu0 %v14997_v2  ;;  %v19321_v2 = vld [vmem:[#allocation549_spill] sm:$0xff]  ;;  %vm19339_vm6 = vnez %v19338_v29  ;;  %v19352_v29 = vld [vmem:[#allocation268_spill] sm:$0xff] }
0x1175   : > { %v9694_v19 = vpop.f32.mrf.mxu2  ;;  %v9609_v23 = vadd.f32 %v9608_v56, %v9520_v16  ;;  %vm19322_vm9 = vnez %v19321_v2  ;;  %10352 = vmatpush.bf16.msrb.mxu2 %v8315_v4  ;;  %v19334_v16 = vld [vmem:[#allocation604_spill] sm:$0xff]  ;;  %v19341_v37 = vsel %vm19339_vm6, nan, %v19340_v36  ;;  %vm19353_vm10 = vnez %v19352_v29  ;;  %v19380_v29 = vld [vmem:[#allocation597_spill] sm:$0xff] }
0x1176   : > { %v9695_v44 = vadd.f32 %v9694_v19, %v9606_v59  ;;  %9923 = vmatmul.bf16.gmra.mxu1 %v14999_v62  ;;  %v19323_v62 = vld [vmem:[#allocation550_spill] sm:$0xff]  ;;  %vm19335_vm11 = vnez %v19334_v16  ;;  %v19349_v16 = vld [vmem:[#allocation323_spill] sm:$0xff]  ;;  %v19354_v36 = vld [vmem:[#allocation656_spill] sm:$0xff] }
0x1177   : > { %v9783_v14 = vpop.f32.mrf.mxu3  ;;  %v19324_v9 = vsel %vm19322_vm9, nan, %v19323_v62  ;;  %v19337_v54 = vsel %vm19335_vm11, nan, %v19336_v10  ;;  %v19350_v10 = vld [vmem:[#allocation324_spill] sm:$0xff] }
0x1178   : > { %v16000_v21 = vadd.f32 %v9783_v14, %v9695_v44  ;;  %v8299_v30 = vpack.c.bf16 %v19341_v37, %v19337_v54  ;;  %v19351_v54 = vld [vmem:[#allocation375_spill] sm:$0xff]  ;;  %v19355_v37 = vsel %vm19353_vm10, nan, %v19354_v36 }
0x117a   : > { %19308 = vst [vmem:[#allocation548_spill] sm:$0xff] %v16000_v21  ;;  %10012 = vmatmul.bf16.gmra.mxu2 %v15001_v63  ;;  %v8283_v63 = vpack.c.bf16 %v19324_v9, %v19320_v49  ;;  %v9521_v19 = vpop.f32.mrf.mxu0  ;;  %10263 = vmatpush.bf16.msrb.mxu1 %v8299_v30  ;;  %v19343_v9 = vld [vmem:[#allocation319_spill] sm:$0xff] }
0x117b   : > { %v9610_v14 = vpop.f32.mrf.mxu1  ;;  %v9522_v44 = vadd.f32 %v9521_v19, %v15539_v18  ;;  %v19356_v30 = vld [vmem:[#allocation659_spill] sm:$0xff] }
0x117c   : > { %10101 = vmatmul.bf16.gmra.mxu3 %v15003_v58  ;;  %v19327_v58 = vld [vmem:[#allocation712_spill] sm:$0xff]  ;;  %10174 = vmatpush.bf16.msrb.mxu0 %v8283_v63  ;;  %vm19357_vm14 = vnez %v19356_v30  ;;  %v19384_v30 = vld [vmem:[#allocation601_spill] sm:$0xff] }
0x117d   : > { %v19328_v48 = vsel %vm19326_vm13, nan, %v19327_v58  ;;  %v9697_v47 = vpop.f32.mrf.mxu2  ;;  %v9611_v56 = vadd.f32 %v9610_v14, %v9522_v44 }
0x117e   : > { %v8331_v24 = vpack.c.bf16 %v19332_v17, %v19328_v48  ;;  %v9698_v59 = vadd.f32 %v9697_v47, %v9609_v23 }
0x117f   : > { %v9786_v5 = vpop.f32.mrf.mxu3 }
0x1180   : > { %10441 = vmatpush.bf16.msrb.mxu3 %v8331_v24  ;;  %v16031_v26 = vadd.f32 %v9786_v5, %v9698_v59 }
0x1182   : > { %19333 = vst [vmem:[#allocation709_spill] sm:$0xff] %v16031_v26  ;;  %v9524_v43 = vpop.f32.mrf.mxu0 }
0x1183   : > { %v9613_v49 = vpop.f32.mrf.mxu1  ;;  %v9525_v18 = vadd.f32 %v9524_v43, %v15545_v28  ;;  %v19360_v43 = vld [vmem:[#allocation537_spill] sm:$0xff] }
0x1184   : > { %9839 = vmatmul.bf16.gmra.mxu0 %v15041_v11  ;;  %vm19361_vm4 = vnez %v19360_v43 }
0x1185   : > { %v9699_v4 = vpop.f32.mrf.mxu2  ;;  %v9614_v62 = vadd.f32 %v9613_v49, %v9525_v18  ;;  %v19362_v49 = vld [vmem:[#allocation538_spill] sm:$0xff] }
0x1186   : > { %v9700_v23 = vadd.f32 %v9699_v4, %v9611_v56  ;;  %9928 = vmatmul.bf16.gmra.mxu1 %v15043_v15  ;;  %v19346_v15 = vld [vmem:[#allocation347_spill] sm:$0xff]  ;;  %v19348_v56 = vld [vmem:[#allocation320_spill] sm:$0xff]  ;;  %v19363_v18 = vsel %vm19361_vm4, nan, %v19362_v49 }
0x1187   : > { %v9788_v41 = vpop.f32.mrf.mxu3  ;;  %v19358_v4 = vld [vmem:[#allocation660_spill] sm:$0xff] }
0x1188   : > { %v16042_v2 = vadd.f32 %v9788_v41, %v9700_v23  ;;  %v19359_v41 = vsel %vm19357_vm14, nan, %v19358_v4 }
0x1189   : > { %v8313_v23 = vpack.c.bf16 %v19359_v41, %v19355_v37  ;;  %v19382_v37 = vld [vmem:[#allocation600_spill] sm:$0xff] }
0x118a   : > { %19342 = vst [vmem:[#allocation710_spill] sm:$0xff] %v16042_v2  ;;  %10017 = vmatmul.bf16.gmra.mxu2 %v15045_v20  ;;  %v9526_v48 = vpop.f32.mrf.mxu0  ;;  %vm19383_vm3 = vnez %v19382_v37  ;;  %v19394_v37 = vld [vmem:[#allocation283_spill] sm:$0xff] }
0x118b   : > { %v9615_v35 = vpop.f32.mrf.mxu1  ;;  %v9527_v17 = vadd.f32 %v9526_v48, %v19344_v34  ;;  %v19370_v48 = vld [vmem:[#allocation704_spill] sm:$0xff]  ;;  %v19372_v34 = vld [vmem:[#allocation707_spill] sm:$0xff]  ;;  %10353 = vmatpush.bf16.msrb.mxu2 %v8313_v23  ;;  %v19385_v4 = vsel %vm19383_vm3, nan, %v19384_v30 }
0x118c   : > { %10106 = vmatmul.bf16.gmra.mxu3 %v19343_v9  ;;  %v19366_v9 = vld [vmem:[#allocation542_spill] sm:$0xff]  ;;  %vm19373_vm8 = vnez %v19372_v34  ;;  %v19391_v34 = vld [vmem:[#allocation431_spill] sm:$0xff] }
0x118d   : > { %v9702_v63 = vpop.f32.mrf.mxu2  ;;  %v9616_v28 = vadd.f32 %v9615_v35, %v9527_v17  ;;  %v19374_v17 = vld [vmem:[#allocation708_spill] sm:$0xff] }
0x118e   : > { %v9703_v58 = vadd.f32 %v9702_v63, %v9614_v62  ;;  %v19364_v62 = vld [vmem:[#allocation541_spill] sm:$0xff] }
0x118f   : > { %v9791_v61 = vpop.f32.mrf.mxu3  ;;  %vm19365_vm12 = vnez %v19364_v62  ;;  %v19386_v62 = vld [vmem:[#allocation455_spill] sm:$0xff] }
0x1190   : > { %v16049_v24 = vadd.f32 %v9791_v61, %v9703_v58  ;;  %v19367_v63 = vsel %vm19365_vm12, nan, %v19366_v9  ;;  %v19368_v58 = vld [vmem:[#allocation276_spill] sm:$0xff] }
0x1191   : > { %v8281_v61 = vpack.c.bf16 %v19367_v63, %v19363_v18  ;;  %vm19369_vm0 = vnez %v19368_v58  ;;  %v19388_v58 = vld [vmem:[#allocation376_spill] sm:$0xff] }
0x1192   : > { %19345 = vst [vmem:[#allocation713_spill] sm:$0xff] %v16049_v24  ;;  %v9529_v11 = vpop.f32.mrf.mxu0  ;;  %v19371_v35 = vsel %vm19369_vm0, nan, %v19370_v48  ;;  %v19389_v48 = vld [vmem:[#allocation379_spill] sm:$0xff] }
0x1193   : > { %v9618_v19 = vpop.f32.mrf.mxu1  ;;  %v9530_v14 = vadd.f32 %v9529_v11, %v19346_v15  ;;  %10175 = vmatpush.bf16.msrb.mxu0 %v8281_v61 }
0x1194   : > { %9844 = vmatmul.bf16.gmra.mxu0 %v19348_v56 }
0x1195   : > { %v9704_v47 = vpop.f32.mrf.mxu2  ;;  %v9619_v44 = vadd.f32 %v9618_v19, %v9530_v14  ;;  %v19376_v14 = vld [vmem:[#allocation404_spill] sm:$0xff] }
0x1196   : > { %v9705_v59 = vadd.f32 %v9704_v47, %v9616_v28  ;;  %9933 = vmatmul.bf16.gmra.mxu1 %v19349_v16  ;;  %v19375_v28 = vsel %vm19373_vm8, nan, %v19374_v17 }
0x1197   : > { %v9793_v5 = vpop.f32.mrf.mxu3  ;;  %v8329_v47 = vpack.c.bf16 %v19375_v28, %v19371_v35  ;;  %v19390_v35 = vld [vmem:[#allocation380_spill] sm:$0xff] }
0x1198   : > { %v16052_v20 = vadd.f32 %v9793_v5, %v9705_v59 }
0x1199   : > { %10442 = vmatpush.bf16.msrb.mxu3 %v8329_v47 }
0x119a   : > { %19347 = vst [vmem:[#allocation714_spill] sm:$0xff] %v16052_v20  ;;  %10022 = vmatmul.bf16.gmra.mxu2 %v19350_v10  ;;  %v9531_v19 = vpop.f32.mrf.mxu0 }
0x119b   : > { %v9620_v15 = vpop.f32.mrf.mxu1  ;;  %v9532_v56 = vadd.f32 %v9531_v19, %v19376_v14 }
0x119c   : > { %10111 = vmatmul.bf16.gmra.mxu3 %v19351_v54  ;;  %v19378_v54 = vld [vmem:[#allocation596_spill] sm:$0xff] }
0x119d   : > { %v9707_v5 = vpop.f32.mrf.mxu2  ;;  %v9621_v10 = vadd.f32 %v9620_v15, %v9532_v56  ;;  %vm19379_vm1 = vnez %v19378_v54 }
0x119e   : > { %v9708_v11 = vadd.f32 %v9707_v5, %v9619_v44  ;;  %v19381_v36 = vsel %vm19379_vm1, nan, %v19380_v29 }
0x119f   : > { %v9796_v59 = vpop.f32.mrf.mxu3  ;;  %v8297_v41 = vpack.c.bf16 %v19385_v4, %v19381_v36 }
0x11a0   : > { %v16083_v16 = vadd.f32 %v9796_v59, %v9708_v11  ;;  %v19392_v11 = vld [vmem:[#allocation280_spill] sm:$0xff] }
0x11a1   : > { %10264 = vmatpush.bf16.msrb.mxu1 %v8297_v41 }
0x11a2   : > { %19377 = vst [vmem:[#allocation602_spill] sm:$0xff] %v16083_v16  ;;  %v9534_v49 = vpop.f32.mrf.mxu0 }
0x11a3   : > { %v9623_v18 = vpop.f32.mrf.mxu1  ;;  %v9535_v9 = vadd.f32 %v9534_v49, %v19386_v62  ;;  %v19399_v49 = vld [vmem:[#allocation487_spill] sm:$0xff]  ;;  %v19402_v62 = vld [vmem:[#allocation649_spill] sm:$0xff] }
0x11a4   : > { %9849 = vmatmul.bf16.gmra.mxu0 %v19388_v58  ;;  %v19406_v58 = vld [vmem:[#allocation653_spill] sm:$0xff] }
0x11a5   : > { %v9709_v23 = vpop.f32.mrf.mxu2  ;;  %v9624_v61 = vadd.f32 %v9623_v18, %v9535_v9  ;;  %v19400_v18 = vld [vmem:[#allocation648_spill] sm:$0xff] }
0x11a6   : > { %v9710_v44 = vadd.f32 %v9709_v23, %v9621_v10  ;;  %9938 = vmatmul.bf16.gmra.mxu1 %v19389_v48  ;;  %v19396_v23 = vld [vmem:[#allocation432_spill] sm:$0xff]  ;;  %vm19401_vm5 = vnez %v19400_v18 }
0x11a7   : > { %v9798_v43 = vpop.f32.mrf.mxu3  ;;  %v19403_v9 = vsel %vm19401_vm5, nan, %v19402_v62  ;;  %v19425_v62 = vld [vmem:[#allocation588_spill] sm:$0xff] }
0x11a8   : > { %v16094_v63 = vadd.f32 %v9798_v43, %v9710_v44  ;;  %v19397_v43 = vld [vmem:[#allocation435_spill] sm:$0xff]  ;;  %v19398_v44 = vld [vmem:[#allocation436_spill] sm:$0xff]  ;;  %vm19426_vm11 = vnez %v19425_v62 }
0x11aa   : > { %19387 = vst [vmem:[#allocation603_spill] sm:$0xff] %v16094_v63  ;;  %10027 = vmatmul.bf16.gmra.mxu2 %v19390_v35  ;;  %v9536_v5 = vpop.f32.mrf.mxu0 }
0x11ab   : > { %v9625_v59 = vpop.f32.mrf.mxu1  ;;  %v9537_v19 = vadd.f32 %v9536_v5, %v19392_v11  ;;  %v19414_v5 = vld [vmem:[#allocation534_spill] sm:$0xff] }
0x11ac   : > { %10116 = vmatmul.bf16.gmra.mxu3 %v19391_v34  ;;  %v19408_v34 = vld [vmem:[#allocation529_spill] sm:$0xff] }
0x11ad   : > { %v9712_v17 = vpop.f32.mrf.mxu2  ;;  %v9626_v14 = vadd.f32 %v9625_v59, %v9537_v19  ;;  %vm19409_vm7 = vnez %v19408_v34  ;;  %v19416_v19 = vld [vmem:[#allocation697_spill] sm:$0xff] }
0x11ae   : > { %v9713_v47 = vadd.f32 %v9712_v17, %v9624_v61  ;;  %v19404_v61 = vld [vmem:[#allocation652_spill] sm:$0xff]  ;;  %v19410_v17 = vld [vmem:[#allocation530_spill] sm:$0xff]  ;;  %vm19417_vm13 = vnez %v19416_v19 }
0x11af   : > { %v9801_v28 = vpop.f32.mrf.mxu3  ;;  %vm19405_vm15 = vnez %v19404_v61 }
0x11b0   : > { %v16101_v15 = vadd.f32 %v9801_v28, %v9713_v47  ;;  %v19407_v48 = vsel %vm19405_vm15, nan, %v19406_v58  ;;  %v19411_v28 = vsel %vm19409_vm7, nan, %v19410_v17  ;;  %v19412_v47 = vld [vmem:[#allocation533_spill] sm:$0xff]  ;;  %v19429_v58 = vld [vmem:[#allocation592_spill] sm:$0xff] }
0x11b1   : > { %v8311_v35 = vpack.c.bf16 %v19407_v48, %v19403_v9  ;;  %vm19413_vm9 = vnez %v19412_v47  ;;  %v19427_v9 = vld [vmem:[#allocation589_spill] sm:$0xff]  ;;  %vm19430_vm6 = vnez %v19429_v58 }
0x11b2   : > { %19393 = vst [vmem:[#allocation606_spill] sm:$0xff] %v16101_v15  ;;  %v9539_v29 = vpop.f32.mrf.mxu0  ;;  %v19415_v59 = vsel %vm19413_vm9, nan, %v19414_v5  ;;  %v19428_v61 = vsel %vm19426_vm11, nan, %v19427_v9  ;;  %v19431_v48 = vld [vmem:[#allocation593_spill] sm:$0xff] }
0x11b3   : > { %v9628_v36 = vpop.f32.mrf.mxu1  ;;  %v9540_v30 = vadd.f32 %v9539_v29, %v19394_v37  ;;  %v8279_v11 = vpack.c.bf16 %v19415_v59, %v19411_v28  ;;  %10354 = vmatpush.bf16.msrb.mxu2 %v8311_v35  ;;  %v19432_v34 = vsel %vm19430_vm6, nan, %v19431_v48 }
0x11b4   : > { %9854 = vmatmul.bf16.gmra.mxu0 %v19396_v23  ;;  %v8295_v35 = vpack.c.bf16 %v19432_v34, %v19428_v61 }
0x11b5   : > { %v9714_v56 = vpop.f32.mrf.mxu2  ;;  %v9629_v41 = vadd.f32 %v9628_v36, %v9540_v30  ;;  %10176 = vmatpush.bf16.msrb.mxu0 %v8279_v11 }
0x11b6   : > { %v9715_v54 = vadd.f32 %v9714_v56, %v9626_v14  ;;  %9943 = vmatmul.bf16.gmra.mxu1 %v19397_v43  ;;  %v19418_v14 = vld [vmem:[#allocation698_spill] sm:$0xff] }
0x11b7   : > { %v9803_v10 = vpop.f32.mrf.mxu3  ;;  %v19419_v56 = vsel %vm19417_vm13, nan, %v19418_v14  ;;  %10265 = vmatpush.bf16.msrb.mxu1 %v8295_v35  ;;  %v19434_v14 = vld [vmem:[#allocation488_spill] sm:$0xff] }
0x11b8   : > { %v16104_v4 = vadd.f32 %v9803_v10, %v9715_v54  ;;  %v19420_v10 = vld [vmem:[#allocation701_spill] sm:$0xff]  ;;  %v19422_v54 = vld [vmem:[#allocation702_spill] sm:$0xff] }
0x11b9   : > { %vm19421_vm2 = vnez %v19420_v10  ;;  %v19436_v10 = vld [vmem:[#allocation492_spill] sm:$0xff] }
0x11ba   : > { %19395 = vst [vmem:[#allocation607_spill] sm:$0xff] %v16104_v4  ;;  %10032 = vmatmul.bf16.gmra.mxu2 %v19398_v44  ;;  %v19423_v29 = vsel %vm19421_vm2, nan, %v19422_v54  ;;  %v9541_v43 = vpop.f32.mrf.mxu0  ;;  %v19437_v54 = vld [vmem:[#allocation311_spill] sm:$0xff] }
0x11bb   : > { %v8327_v36 = vpack.c.bf16 %v19423_v29, %v19419_v56  ;;  %v9630_v44 = vpop.f32.mrf.mxu1  ;;  %v19435_v56 = vld [vmem:[#allocation491_spill] sm:$0xff] }
0x11bc   : > { %10121 = vmatmul.bf16.gmra.mxu3 %v19399_v49  ;;  %v9542_v49 = vadd.f32 %v9541_v43, %v15667_v7  ;;  %v19438_v43 = vld [vmem:[#allocation396_spill] sm:$0xff] }
0x11bd   : > { %v9717_v37 = vpop.f32.mrf.mxu2  ;;  %10443 = vmatpush.bf16.msrb.mxu3 %v8327_v36 }
0x11be   : > { %v9718_v23 = vadd.f32 %v9717_v37, %v9629_v41  ;;  %v9631_v17 = vadd.f32 %v9630_v44, %v9542_v49 }
0x11bf   : > { %v9806_v30 = vpop.f32.mrf.mxu3 }
0x11c0   : > { %v16135_v18 = vadd.f32 %v9806_v30, %v9718_v23 }
0x11c2   : > { %19424 = vst [vmem:[#allocation654_spill] sm:$0xff] %v16135_v18  ;;  %v9544_v5 = vpop.f32.mrf.mxu0 }
0x11c3   : > { %v9633_v59 = vpop.f32.mrf.mxu1  ;;  %v9545_v7 = vadd.f32 %v9544_v5, %v15673_v55  ;;  %v19445_v5 = vld [vmem:[#allocation640_spill] sm:$0xff] }
0x11c4   : > { %9859 = vmatmul.bf16.gmra.mxu0 %v19434_v14  ;;  %vm19446_vm10 = vnez %v19445_v5  ;;  %v19451_v14 = vld [vmem:[#allocation645_spill] sm:$0xff] }
0x11c5   : > { %v9719_v28 = vpop.f32.mrf.mxu2  ;;  %v9634_v19 = vadd.f32 %v9633_v59, %v9545_v7  ;;  %v19447_v59 = vld [vmem:[#allocation641_spill] sm:$0xff] }
0x11c6   : > { %v9720_v41 = vadd.f32 %v9719_v28, %v9631_v17  ;;  %9948 = vmatmul.bf16.gmra.mxu1 %v19435_v56  ;;  %v19441_v17 = vld [vmem:[#allocation312_spill] sm:$0xff]  ;;  %v19442_v28 = vld [vmem:[#allocation315_spill] sm:$0xff]  ;;  %v19448_v7 = vsel %vm19446_vm10, nan, %v19447_v59 }
0x11c7   : > { %v9808_v47 = vpop.f32.mrf.mxu3 }
0x11c8   : > { %v16146_v11 = vadd.f32 %v9808_v47, %v9720_v41  ;;  %v19443_v47 = vld [vmem:[#allocation316_spill] sm:$0xff]  ;;  %v19444_v41 = vld [vmem:[#allocation367_spill] sm:$0xff] }
0x11ca   : > { %19433 = vst [vmem:[#allocation655_spill] sm:$0xff] %v16146_v11  ;;  %10037 = vmatmul.bf16.gmra.mxu2 %v19436_v10  ;;  %v9546_v30 = vpop.f32.mrf.mxu0 }
0x11cb   : > { %v9635_v23 = vpop.f32.mrf.mxu1  ;;  %v9547_v44 = vadd.f32 %v9546_v30, %v19438_v43  ;;  %v19459_v30 = vld [vmem:[#allocation526_spill] sm:$0xff] }
0x11cc   : > { %10126 = vmatmul.bf16.gmra.mxu3 %v19437_v54  ;;  %v19453_v54 = vld [vmem:[#allocation521_spill] sm:$0xff] }
0x11cd   : > { %v9722_v29 = vpop.f32.mrf.mxu2  ;;  %v9636_v55 = vadd.f32 %v9635_v23, %v9547_v44  ;;  %vm19454_vm4 = vnez %v19453_v54  ;;  %v19461_v44 = vld [vmem:[#allocation274_spill] sm:$0xff]  ;;  %v19473_v54 = vld [vmem:[#allocation584_spill] sm:$0xff] }
0x11ce   : > { %v9723_v37 = vadd.f32 %v9722_v29, %v9634_v19  ;;  %v19449_v19 = vld [vmem:[#allocation644_spill] sm:$0xff]  ;;  %v19455_v29 = vld [vmem:[#allocation522_spill] sm:$0xff]  ;;  %vm19462_vm0 = vnez %v19461_v44  ;;  %vm19474_vm3 = vnez %v19473_v54 }
0x11cf   : > { %v9811_v36 = vpop.f32.mrf.mxu3  ;;  %vm19450_vm14 = vnez %v19449_v19  ;;  %v19469_v19 = vld [vmem:[#allocation580_spill] sm:$0xff] }
0x11d0   : > { %v16153_v49 = vadd.f32 %v9811_v36, %v9723_v37  ;;  %v19452_v56 = vsel %vm19450_vm14, nan, %v19451_v14  ;;  %v19456_v36 = vsel %vm19454_vm4, nan, %v19455_v29  ;;  %v19457_v37 = vld [vmem:[#allocation525_spill] sm:$0xff]  ;;  %vm19470_vm1 = vnez %v19469_v19 }
0x11d1   : > { %v8309_v10 = vpack.c.bf16 %v19452_v56, %v19448_v7  ;;  %vm19458_vm12 = vnez %v19457_v37  ;;  %v19471_v14 = vld [vmem:[#allocation581_spill] sm:$0xff] }
0x11d2   : > { %19439 = vst [vmem:[#allocation657_spill] sm:$0xff] %v16153_v49  ;;  %v9825_v58 = vpop.f32.mrf.mxu0  ;;  %v19460_v23 = vsel %vm19458_vm12, nan, %v19459_v30  ;;  %v19472_v56 = vsel %vm19470_vm1, nan, %v19471_v14  ;;  %v19475_v29 = vld [vmem:[#allocation585_spill] sm:$0xff] }
0x11d3   : > { %v9914_v48 = vpop.f32.mrf.mxu1  ;;  %v8277_v43 = vpack.c.bf16 %v19460_v23, %v19456_v36  ;;  %10355 = vmatpush.bf16.msrb.mxu2 %v8309_v10  ;;  %v19476_v36 = vsel %vm19474_vm3, nan, %v19475_v29 }
0x11d4   : > { %v9915_v34 = vadd.f32 %v9914_v48, %v9825_v58  ;;  %9864 = vmatmul.bf16.gmra.mxu0 %v19441_v17  ;;  %v8293_v37 = vpack.c.bf16 %v19476_v36, %v19472_v56 }
0x11d5   : > { %v9724_v62 = vpop.f32.mrf.mxu2  ;;  %10177 = vmatpush.bf16.msrb.mxu0 %v8277_v43 }
0x11d6   : > { %v9725_v61 = vadd.f32 %v9724_v62, %v9636_v55  ;;  %9953 = vmatmul.bf16.gmra.mxu1 %v19442_v28  ;;  %v19463_v55 = vld [vmem:[#allocation690_spill] sm:$0xff] }
0x11d7   : > { %v9813_v9 = vpop.f32.mrf.mxu3  ;;  %v19464_v62 = vsel %vm19462_vm0, nan, %v19463_v55  ;;  %10266 = vmatpush.bf16.msrb.mxu1 %v8293_v37 }
0x11d8   : > { %v16155_v35 = vadd.f32 %v9813_v9, %v9725_v61  ;;  %v19465_v9 = vld [vmem:[#allocation693_spill] sm:$0xff]  ;;  %v19467_v61 = vld [vmem:[#allocation694_spill] sm:$0xff] }
0x11d9   : > { %vm19466_vm8 = vnez %v19465_v9  ;;  %v19478_v9 = vld [vmem:[#allocation371_spill] sm:$0xff] }
0x11da   : > { %19440 = vst [vmem:[#allocation658_spill] sm:$0xff] %v16155_v35  ;;  %10042 = vmatmul.bf16.gmra.mxu2 %v19443_v47  ;;  %v19468_v58 = vsel %vm19466_vm8, nan, %v19467_v61  ;;  %v19479_v61 = vld [vmem:[#allocation372_spill] sm:$0xff] }
0x11db   : > { %v8325_v48 = vpack.c.bf16 %v19468_v58, %v19464_v62  ;;  %v9916_v5 = vpop.f32.mrf.mxu1  ;;  %v19477_v62 = vld [vmem:[#allocation368_spill] sm:$0xff]  ;;  %v19480_v58 = vld [vmem:[#allocation423_spill] sm:$0xff] }
0x11dc   : > { %10131 = vmatmul.bf16.gmra.mxu3 %v19444_v41  ;;  %v9827_v41 = vpop.f32.mrf.mxu0 }
0x11dd   : > { %v10003_v17 = vpop.f32.mrf.mxu2  ;;  %10444 = vmatpush.bf16.msrb.mxu3 %v8325_v48  ;;  %v9917_v59 = vadd.f32 %v9916_v5, %v9827_v41 }
0x11de   : > { %v10004_v47 = vadd.f32 %v10003_v17, %v9915_v34 }
0x11df   : > { %v10092_v28 = vpop.f32.mrf.mxu3 }
0x11e0   : > { %v16185_v7 = vadd.f32 %v10092_v28, %v10004_v47 }
0x11e3   : > { %v9919_v34 = vpop.f32.mrf.mxu1 }
0x11e4   : > { %v9830_v43 = vpop.f32.mrf.mxu0  ;;  %9869 = vmatmul.bf16.gmra.mxu0 %v19477_v62 }
0x11e5   : > { %v10005_v10 = vpop.f32.mrf.mxu2  ;;  %v9920_v44 = vadd.f32 %v9919_v34, %v9830_v43  ;;  %v19484_v43 = vld [vmem:[#allocation479_spill] sm:$0xff]  ;;  %v19485_v34 = vld [vmem:[#allocation632_spill] sm:$0xff] }
0x11e6   : > { %v10006_v23 = vadd.f32 %v10005_v10, %v9917_v59  ;;  %9958 = vmatmul.bf16.gmra.mxu1 %v19478_v9  ;;  %v19481_v10 = vld [vmem:[#allocation424_spill] sm:$0xff]  ;;  %vm19486_vm5 = vnez %v19485_v34 }
0x11e7   : > { %v10094_v30 = vpop.f32.mrf.mxu3  ;;  %v19489_v9 = vld [vmem:[#allocation636_spill] sm:$0xff] }
0x11e8   : > { %v16195_v55 = vadd.f32 %v10094_v30, %v10006_v23  ;;  %v19482_v30 = vld [vmem:[#allocation427_spill] sm:$0xff]  ;;  %v19483_v23 = vld [vmem:[#allocation428_spill] sm:$0xff]  ;;  %vm19490_vm15 = vnez %v19489_v9 }
0x11ea   : > { %10047 = vmatmul.bf16.gmra.mxu2 %v19479_v61  ;;  %v19491_v61 = vld [vmem:[#allocation637_spill] sm:$0xff] }
0x11eb   : > { %v9921_v41 = vpop.f32.mrf.mxu1 }
0x11ec   : > { %10136 = vmatmul.bf16.gmra.mxu3 %v19480_v58  ;;  %v9832_v47 = vpop.f32.mrf.mxu0  ;;  %v19492_v58 = vsel %vm19490_vm15, nan, %v19491_v61 }
0x11ed   : > { %v10008_v48 = vpop.f32.mrf.mxu2  ;;  %v9922_v5 = vadd.f32 %v9921_v41, %v9832_v47  ;;  %v19497_v41 = vld [vmem:[#allocation517_spill] sm:$0xff] }
0x11ee   : > { %v10009_v28 = vadd.f32 %v10008_v48, %v9920_v44  ;;  %v19487_v44 = vld [vmem:[#allocation633_spill] sm:$0xff]  ;;  %vm19498_vm9 = vnez %v19497_v41 }
0x11ef   : > { %v10097_v17 = vpop.f32.mrf.mxu3  ;;  %v19488_v62 = vsel %vm19486_vm5, nan, %v19487_v44 }
0x11f0   : > { %v16201_v59 = vadd.f32 %v10097_v17, %v10009_v28  ;;  %v8307_v48 = vpack.c.bf16 %v19492_v58, %v19488_v62  ;;  %v19493_v17 = vld [vmem:[#allocation513_spill] sm:$0xff]  ;;  %v19495_v28 = vld [vmem:[#allocation514_spill] sm:$0xff] }
0x11f1   : > { %vm19494_vm7 = vnez %v19493_v17 }
0x11f2   : > { %v19496_v47 = vsel %vm19494_vm7, nan, %v19495_v28  ;;  %10356 = vmatpush.bf16.msrb.mxu2 %v8307_v48  ;;  %v19509_v28 = vld [vmem:[#allocation572_spill] sm:$0xff] }
0x11f3   : > { %v9924_v29 = vpop.f32.mrf.mxu1  ;;  %vm19510_vm11 = vnez %v19509_v28 }
0x11f4   : > { %v9835_v54 = vpop.f32.mrf.mxu0  ;;  %9874 = vmatmul.bf16.gmra.mxu0 %v19481_v10  ;;  %v19505_v10 = vld [vmem:[#allocation687_spill] sm:$0xff] }
0x11f5   : > { %v10010_v19 = vpop.f32.mrf.mxu2  ;;  %v9925_v36 = vadd.f32 %v9924_v29, %v9835_v54  ;;  %v19503_v54 = vld [vmem:[#allocation684_spill] sm:$0xff]  ;;  %vm19506_vm2 = vnez %v19505_v10 }
0x11f6   : > { %v10011_v56 = vadd.f32 %v10010_v19, %v9922_v5  ;;  %9963 = vmatmul.bf16.gmra.mxu1 %v19482_v30  ;;  %v19499_v5 = vld [vmem:[#allocation518_spill] sm:$0xff]  ;;  %v19507_v30 = vld [vmem:[#allocation688_spill] sm:$0xff] }
0x11f7   : > { %v10099_v14 = vpop.f32.mrf.mxu3  ;;  %v19500_v19 = vsel %vm19498_vm9, nan, %v19499_v5  ;;  %v19513_v5 = vld [vmem:[#allocation576_spill] sm:$0xff] }
0x11f8   : > { %v16203_v37 = vadd.f32 %v10099_v14, %v10011_v56  ;;  %v8275_v14 = vpack.c.bf16 %v19500_v19, %v19496_v47  ;;  %v19501_v56 = vld [vmem:[#allocation683_spill] sm:$0xff]  ;;  %v19511_v47 = vld [vmem:[#allocation573_spill] sm:$0xff]  ;;  %vm19514_vm6 = vnez %v19513_v5 }
0x11f9   : > { %vm19502_vm13 = vnez %v19501_v56  ;;  %v19512_v41 = vsel %vm19510_vm11, nan, %v19511_v47  ;;  %v19515_v19 = vld [vmem:[#allocation577_spill] sm:$0xff] }
0x11fa   : > { %10052 = vmatmul.bf16.gmra.mxu2 %v19483_v23  ;;  %v19504_v29 = vsel %vm19502_vm13, nan, %v19503_v54  ;;  %v19508_v23 = vsel %vm19506_vm2, nan, %v19507_v30  ;;  %10178 = vmatpush.bf16.msrb.mxu0 %v8275_v14  ;;  %v19516_v56 = vsel %vm19514_vm6, nan, %v19515_v19 }
0x11fb   : > { %v9926_v61 = vpop.f32.mrf.mxu1  ;;  %v8291_v54 = vpack.c.bf16 %v19516_v56, %v19512_v41 }
0x11fc   : > { %10141 = vmatmul.bf16.gmra.mxu3 %v19484_v43  ;;  %v8323_v43 = vpack.c.bf16 %v19508_v23, %v19504_v29  ;;  %v9837_v9 = vpop.f32.mrf.mxu0 }
0x11fd   : > { %v10013_v34 = vpop.f32.mrf.mxu2  ;;  %v9927_v58 = vadd.f32 %v9926_v61, %v9837_v9  ;;  %10267 = vmatpush.bf16.msrb.mxu1 %v8291_v54 }
0x11fe   : > { %10445 = vmatpush.bf16.msrb.mxu3 %v8323_v43  ;;  %v10014_v62 = vadd.f32 %v10013_v34, %v9925_v36  ;;  %v19517_v43 = vld [vmem:[#allocation480_spill] sm:$0xff]  ;;  %v19518_v34 = vld [vmem:[#allocation483_spill] sm:$0xff] }
0x11ff   : > { %v10102_v44 = vpop.f32.mrf.mxu3 }
0x1200   : > { %v16233_v17 = vadd.f32 %v10102_v44, %v10014_v62  ;;  %v19519_v44 = vld [vmem:[#allocation484_spill] sm:$0xff]  ;;  %v19520_v62 = vld [vmem:[#allocation303_spill] sm:$0xff] }
0x1203   : > { %v9929_v36 = vpop.f32.mrf.mxu1 }
0x1204   : > { %v9840_v10 = vpop.f32.mrf.mxu0  ;;  %9879 = vmatmul.bf16.gmra.mxu0 %v19517_v43  ;;  %v19522_v43 = vld [vmem:[#allocation307_spill] sm:$0xff] }
0x1205   : > { %v10015_v48 = vpop.f32.mrf.mxu2  ;;  %v9930_v30 = vadd.f32 %v9929_v36, %v9840_v10  ;;  %v19521_v36 = vld [vmem:[#allocation304_spill] sm:$0xff] }
0x1206   : > { %v10016_v29 = vadd.f32 %v10015_v48, %v9927_v58  ;;  %9968 = vmatmul.bf16.gmra.mxu1 %v19518_v34  ;;  %v19523_v34 = vld [vmem:[#allocation308_spill] sm:$0xff] }
0x1207   : > { %v10104_v14 = vpop.f32.mrf.mxu3 }
0x1208   : > { %v16243_v23 = vadd.f32 %v10104_v14, %v10016_v29 }
0x120a   : > { %10057 = vmatmul.bf16.gmra.mxu2 %v19519_v44  ;;  %v19525_v44 = vld [vmem:[#allocation624_spill] sm:$0xff] }
0x120b   : > { %v9931_v41 = vpop.f32.mrf.mxu1  ;;  %vm19526_vm10 = vnez %v19525_v44  ;;  %v19545_v44 = vld [vmem:[#allocation679_spill] sm:$0xff] }
0x120c   : > { %10146 = vmatmul.bf16.gmra.mxu3 %v19520_v62  ;;  %v9842_v47 = vpop.f32.mrf.mxu0  ;;  %v19527_v62 = vld [vmem:[#allocation625_spill] sm:$0xff]  ;;  %vm19546_vm8 = vnez %v19545_v44 }
0x120d   : > { %v10018_v9 = vpop.f32.mrf.mxu2  ;;  %v9932_v5 = vadd.f32 %v9931_v41, %v9842_v47  ;;  %v19555_v44 = vld [vmem:[#allocation569_spill] sm:$0xff] }
0x120e   : > { %v10019_v28 = vadd.f32 %v10018_v9, %v9930_v30  ;;  %v19524_v30 = vld [vmem:[#allocation359_spill] sm:$0xff]  ;;  %v19528_v9 = vsel %vm19526_vm10, nan, %v19527_v62  ;;  %v19547_v62 = vld [vmem:[#allocation680_spill] sm:$0xff] }
0x120f   : > { %v10107_v61 = vpop.f32.mrf.mxu3 }
0x1210   : > { %v16249_v58 = vadd.f32 %v10107_v61, %v10019_v28  ;;  %v19529_v61 = vld [vmem:[#allocation628_spill] sm:$0xff]  ;;  %v19531_v28 = vld [vmem:[#allocation629_spill] sm:$0xff] }
0x1211   : > { %vm19530_vm14 = vnez %v19529_v61  ;;  %v19548_v61 = vsel %vm19546_vm8, nan, %v19547_v62 }
0x1212   : > { %v19532_v47 = vsel %vm19530_vm14, nan, %v19531_v28 }
0x1213   : > { %v9934_v14 = vpop.f32.mrf.mxu1  ;;  %v8305_v41 = vpack.c.bf16 %v19532_v47, %v19528_v9 }
0x1214   : > { %v9845_v48 = vpop.f32.mrf.mxu0  ;;  %9884 = vmatmul.bf16.gmra.mxu0 %v19521_v36 }
0x1215   : > { %v10020_v19 = vpop.f32.mrf.mxu2  ;;  %v9935_v29 = vadd.f32 %v9934_v14, %v9845_v48  ;;  %v19539_v48 = vld [vmem:[#allocation510_spill] sm:$0xff]  ;;  %10357 = vmatpush.bf16.msrb.mxu2 %v8305_v41 }
0x1216   : > { %v10021_v54 = vadd.f32 %v10020_v19, %v9932_v5  ;;  %9973 = vmatmul.bf16.gmra.mxu1 %v19522_v43  ;;  %v19533_v5 = vld [vmem:[#allocation505_spill] sm:$0xff]  ;;  %v19535_v19 = vld [vmem:[#allocation506_spill] sm:$0xff]  ;;  %v19541_v43 = vld [vmem:[#allocation272_spill] sm:$0xff] }
0x1217   : > { %v10109_v56 = vpop.f32.mrf.mxu3  ;;  %vm19534_vm4 = vnez %v19533_v5  ;;  %vm19542_vm0 = vnez %v19541_v43 }
0x1218   : > { %v16251_v10 = vadd.f32 %v10109_v56, %v10021_v54  ;;  %v19536_v56 = vsel %vm19534_vm4, nan, %v19535_v19  ;;  %v19537_v54 = vld [vmem:[#allocation509_spill] sm:$0xff] }
0x1219   : > { %vm19538_vm12 = vnez %v19537_v54 }
0x121a   : > { %10062 = vmatmul.bf16.gmra.mxu2 %v19523_v34  ;;  %v19540_v14 = vsel %vm19538_vm12, nan, %v19539_v48  ;;  %v19543_v34 = vld [vmem:[#allocation676_spill] sm:$0xff] }
0x121b   : > { %v8273_v36 = vpack.c.bf16 %v19540_v14, %v19536_v56  ;;  %v9936_v19 = vpop.f32.mrf.mxu1  ;;  %v19549_v56 = vld [vmem:[#allocation564_spill] sm:$0xff]  ;;  %v19551_v14 = vld [vmem:[#allocation565_spill] sm:$0xff] }
0x121c   : > { %10151 = vmatmul.bf16.gmra.mxu3 %v19524_v30  ;;  %v19544_v30 = vsel %vm19542_vm0, nan, %v19543_v34  ;;  %v9847_v5 = vpop.f32.mrf.mxu0  ;;  %vm19550_vm1 = vnez %v19549_v56  ;;  %v19553_v34 = vld [vmem:[#allocation568_spill] sm:$0xff] }
0x121d   : > { %v8321_v35 = vpack.c.bf16 %v19548_v61, %v19544_v30  ;;  %10179 = vmatpush.bf16.msrb.mxu0 %v8273_v36  ;;  %v10023_v9 = vpop.f32.mrf.mxu2  ;;  %v9937_v54 = vadd.f32 %v9936_v19, %v9847_v5  ;;  %v19552_v43 = vsel %vm19550_vm1, nan, %v19551_v14  ;;  %vm19554_vm3 = vnez %v19553_v34  ;;  %v19559_v5 = vld [vmem:[#allocation364_spill] sm:$0xff]  ;;  %v19560_v19 = vld [vmem:[#allocation415_spill] sm:$0xff] }
0x121e   : > { %v10024_v47 = vadd.f32 %v10023_v9, %v9935_v29  ;;  %v19556_v62 = vsel %vm19554_vm3, nan, %v19555_v44 }
0x121f   : > { %v10112_v28 = vpop.f32.mrf.mxu3  ;;  %10446 = vmatpush.bf16.msrb.mxu3 %v8321_v35  ;;  %v8289_v30 = vpack.c.bf16 %v19556_v62, %v19552_v43 }
0x1220   : > { %v16281_v48 = vadd.f32 %v10112_v28, %v10024_v47  ;;  %v19557_v28 = vld [vmem:[#allocation360_spill] sm:$0xff]  ;;  %v19558_v47 = vld [vmem:[#allocation363_spill] sm:$0xff] }
0x1221   : > { %10268 = vmatpush.bf16.msrb.mxu1 %v8289_v30 }
0x1223   : > { %v9939_v29 = vpop.f32.mrf.mxu1 }
0x1224   : > { %v9850_v35 = vpop.f32.mrf.mxu0  ;;  %9889 = vmatmul.bf16.gmra.mxu0 %v19557_v28 }
0x1225   : > { %v10025_v41 = vpop.f32.mrf.mxu2  ;;  %v9940_v9 = vadd.f32 %v9939_v29, %v9850_v35 }
0x1226   : > { %v10026_v61 = vadd.f32 %v10025_v41, %v9937_v54  ;;  %9978 = vmatmul.bf16.gmra.mxu1 %v19558_v47  ;;  %v19561_v47 = vld [vmem:[#allocation416_spill] sm:$0xff] }
0x1227   : > { %v10114_v36 = vpop.f32.mrf.mxu3 }
0x1228   : > { %v16291_v49 = vadd.f32 %v10114_v36, %v10026_v61 }
0x122a   : > { %10067 = vmatmul.bf16.gmra.mxu2 %v19559_v5  ;;  %v19562_v5 = vld [vmem:[#allocation419_spill] sm:$0xff] }
0x122b   : > { %v9941_v44 = vpop.f32.mrf.mxu1 }
0x122c   : > { %10156 = vmatmul.bf16.gmra.mxu3 %v19560_v19  ;;  %v9852_v34 = vpop.f32.mrf.mxu0  ;;  %v19563_v19 = vld [vmem:[#allocation420_spill] sm:$0xff] }
0x122d   : > { %v10028_v56 = vpop.f32.mrf.mxu2  ;;  %v9942_v62 = vadd.f32 %v9941_v44, %v9852_v34 }
0x122e   : > { %v10029_v43 = vadd.f32 %v10028_v56, %v9940_v9  ;;  %v19564_v9 = vld [vmem:[#allocation471_spill] sm:$0xff] }
0x122f   : > { %v10117_v14 = vpop.f32.mrf.mxu3 }
0x1230   : > { %v16297_v54 = vadd.f32 %v10117_v14, %v10029_v43 }
0x1233   : > { %v9944_v35 = vpop.f32.mrf.mxu1 }
0x1234   : > { %v9855_v61 = vpop.f32.mrf.mxu0  ;;  %9894 = vmatmul.bf16.gmra.mxu0 %v19561_v47 }
0x1235   : > { %v10030_v30 = vpop.f32.mrf.mxu2  ;;  %v9945_v29 = vadd.f32 %v9944_v35, %v9855_v61 }
0x1236   : > { %v10031_v36 = vadd.f32 %v10030_v30, %v9942_v62  ;;  %9983 = vmatmul.bf16.gmra.mxu1 %v19562_v5  ;;  %v19565_v5 = vld [vmem:[#allocation472_spill] sm:$0xff] }
0x1237   : > { %v10119_v41 = vpop.f32.mrf.mxu3 }
0x1238   : > { %v16299_v28 = vadd.f32 %v10119_v41, %v10031_v36 }
0x123a   : > { %10072 = vmatmul.bf16.gmra.mxu2 %v19563_v19  ;;  %v19566_v19 = vld [vmem:[#allocation475_spill] sm:$0xff] }
0x123b   : > { %v9946_v44 = vpop.f32.mrf.mxu1 }
0x123c   : > { %10161 = vmatmul.bf16.gmra.mxu3 %v19564_v9  ;;  %v9857_v43 = vpop.f32.mrf.mxu0  ;;  %v19567_v9 = vld [vmem:[#allocation476_spill] sm:$0xff] }
0x123d   : > { %v10033_v56 = vpop.f32.mrf.mxu2  ;;  %v9947_v11 = vadd.f32 %v9946_v44, %v9857_v43 }
0x123e   : > { %v10034_v14 = vadd.f32 %v10033_v56, %v9945_v29  ;;  %v19568_v29 = vld [vmem:[#allocation295_spill] sm:$0xff] }
0x123f   : > { %v10122_v34 = vpop.f32.mrf.mxu3 }
0x1240   : > { %v16305_v62 = vadd.f32 %v10122_v34, %v10034_v14 }
0x1243   : > { %v9949_v35 = vpop.f32.mrf.mxu1 }
0x1244   : > { %v9860_v36 = vpop.f32.mrf.mxu0  ;;  %9899 = vmatmul.bf16.gmra.mxu0 %v19565_v5 }
0x1245   : > { %v10035_v30 = vpop.f32.mrf.mxu2  ;;  %v9950_v47 = vadd.f32 %v9949_v35, %v9860_v36 }
0x1246   : > { %v10036_v41 = vadd.f32 %v10035_v30, %v9947_v11  ;;  %9988 = vmatmul.bf16.gmra.mxu1 %v19566_v19  ;;  %v19569_v19 = vld [vmem:[#allocation296_spill] sm:$0xff] }
0x1247   : > { %v10124_v61 = vpop.f32.mrf.mxu3 }
0x1248   : > { %v16307_v18 = vadd.f32 %v10124_v61, %v10036_v41 }
0x124a   : > { %10077 = vmatmul.bf16.gmra.mxu2 %v19567_v9  ;;  %v19570_v9 = vld [vmem:[#allocation299_spill] sm:$0xff] }
0x124b   : > { %v9951_v44 = vpop.f32.mrf.mxu1 }
0x124c   : > { %10166 = vmatmul.bf16.gmra.mxu3 %v19568_v29  ;;  %v9862_v14 = vpop.f32.mrf.mxu0  ;;  %v19571_v29 = vld [vmem:[#allocation300_spill] sm:$0xff] }
0x124d   : > { %v10038_v56 = vpop.f32.mrf.mxu2  ;;  %v9952_v4 = vadd.f32 %v9951_v44, %v9862_v14 }
0x124e   : > { %v10039_v34 = vadd.f32 %v10038_v56, %v9950_v47  ;;  %v19572_v47 = vld [vmem:[#allocation351_spill] sm:$0xff] }
0x124f   : > { %v10127_v43 = vpop.f32.mrf.mxu3 }
0x1250   : > { %v16313_v11 = vadd.f32 %v10127_v43, %v10039_v34 }
0x1253   : > { %v9954_v35 = vpop.f32.mrf.mxu1 }
0x1254   : > { %v9865_v41 = vpop.f32.mrf.mxu0  ;;  %10180 = vmatmul.bf16.vlgmr.msrb.gmra.mxu0 %v19569_v19 }
0x1255   : > { %v10040_v30 = vpop.f32.mrf.mxu2  ;;  %v9955_v5 = vadd.f32 %v9954_v35, %v9865_v41 }
0x1256   : > { %v10041_v61 = vadd.f32 %v10040_v30, %v9952_v4  ;;  %10269 = vmatmul.bf16.vlgmr.msrb.gmra.mxu1 %v19570_v9  ;;  %v19573_v9 = vld [vmem:[#allocation352_spill] sm:$0xff] }
0x1257   : > { %v10129_v36 = vpop.f32.mrf.mxu3 }
0x1258   : > { %v16315_v15 = vadd.f32 %v10129_v36, %v10041_v61 }
0x125a   : > { %10358 = vmatmul.bf16.vlgmr.msrb.gmra.mxu2 %v19571_v29  ;;  %v19574_v29 = vld [vmem:[#allocation355_spill] sm:$0xff] }
0x125b   : > { %v9956_v44 = vpop.f32.mrf.mxu1 }
0x125c   : > { %10447 = vmatmul.bf16.vlgmr.msrb.gmra.mxu3 %v19572_v47  ;;  %v9867_v34 = vpop.f32.mrf.mxu0  ;;  %v19575_v47 = vld [vmem:[#allocation356_spill] sm:$0xff] }
0x125d   : > { %v10043_v56 = vpop.f32.mrf.mxu2  ;;  %v9957_v63 = vadd.f32 %v9956_v44, %v9867_v34 }
0x125e   : > { %v10044_v43 = vadd.f32 %v10043_v56, %v9955_v5  ;;  %v19576_v5 = vld [vmem:[#allocation407_spill] sm:$0xff] }
0x125f   : > { %v10132_v14 = vpop.f32.mrf.mxu3 }
0x1260   : > { %v16321_v4 = vadd.f32 %v10132_v14, %v10044_v43 }
0x1263   : > { %v9959_v35 = vpop.f32.mrf.mxu1 }
0x1264   : > { %v9870_v61 = vpop.f32.mrf.mxu0  ;;  %10185 = vmatmul.bf16.gmra.mxu0 %v19573_v9 }
0x1265   : > { %v10045_v30 = vpop.f32.mrf.mxu2  ;;  %v9960_v19 = vadd.f32 %v9959_v35, %v9870_v61 }
0x1266   : > { %v10046_v36 = vadd.f32 %v10045_v30, %v9957_v63  ;;  %10274 = vmatmul.bf16.gmra.mxu1 %v19574_v29  ;;  %v19577_v29 = vld [vmem:[#allocation408_spill] sm:$0xff] }
0x1267   : > { %v10134_v41 = vpop.f32.mrf.mxu3 }
0x1268   : > { %v16323_v16 = vadd.f32 %v10134_v41, %v10046_v36 }
0x126a   : > { %10363 = vmatmul.bf16.gmra.mxu2 %v19575_v47  ;;  %v19578_v47 = vld [vmem:[#allocation411_spill] sm:$0xff] }
0x126b   : > { %v9961_v44 = vpop.f32.mrf.mxu1 }
0x126c   : > { %10452 = vmatmul.bf16.gmra.mxu3 %v19576_v5  ;;  %v9872_v43 = vpop.f32.mrf.mxu0  ;;  %v19579_v5 = vld [vmem:[#allocation412_spill] sm:$0xff] }
0x126d   : > { %v10048_v56 = vpop.f32.mrf.mxu2  ;;  %v9962_v20 = vadd.f32 %v9961_v44, %v9872_v43 }
0x126e   : > { %v10049_v14 = vadd.f32 %v10048_v56, %v9960_v19  ;;  %v19580_v19 = vld [vmem:[#allocation463_spill] sm:$0xff] }
0x126f   : > { %v10137_v34 = vpop.f32.mrf.mxu3 }
0x1270   : > { %v16329_v63 = vadd.f32 %v10137_v34, %v10049_v14 }
0x1273   : > { %v9964_v35 = vpop.f32.mrf.mxu1 }
0x1274   : > { %v9875_v36 = vpop.f32.mrf.mxu0  ;;  %10190 = vmatmul.bf16.gmra.mxu0 %v19577_v29 }
0x1275   : > { %v10050_v30 = vpop.f32.mrf.mxu2  ;;  %v9965_v9 = vadd.f32 %v9964_v35, %v9875_v36 }
0x1276   : > { %v10051_v41 = vadd.f32 %v10050_v30, %v9962_v20  ;;  %10279 = vmatmul.bf16.gmra.mxu1 %v19578_v47  ;;  %v19583_v47 = vld [vmem:[#allocation464_spill] sm:$0xff] }
0x1277   : > { %v10139_v61 = vpop.f32.mrf.mxu3 }
0x1278   : > { %v16331_v24 = vadd.f32 %v10139_v61, %v10051_v41 }
0x127a   : > { %10368 = vmatmul.bf16.gmra.mxu2 %v19579_v5  ;;  %v19584_v5 = vld [vmem:[#allocation467_spill] sm:$0xff] }
0x127b   : > { %v9966_v44 = vpop.f32.mrf.mxu1 }
0x127c   : > { %10457 = vmatmul.bf16.gmra.mxu3 %v19580_v19  ;;  %v9877_v14 = vpop.f32.mrf.mxu0  ;;  %v19585_v19 = vld [vmem:[#allocation468_spill] sm:$0xff] }
0x127d   : > { %v10053_v56 = vpop.f32.mrf.mxu2  ;;  %v9967_v2 = vadd.f32 %v9966_v44, %v9877_v14 }
0x127e   : > { %v10054_v34 = vadd.f32 %v10053_v56, %v9965_v9  ;;  %v19586_v9 = vld [vmem:[#allocation287_spill] sm:$0xff] }
0x127f   : > { %v10142_v43 = vpop.f32.mrf.mxu3 }
0x1280   : > { %v16337_v20 = vadd.f32 %v10142_v43, %v10054_v34 }
0x1282   : > { %19581 = vst [vmem:[#allocation535_spill] sm:$0xff] %v16337_v20 }
0x1283   : > { %v9969_v35 = vpop.f32.mrf.mxu1 }
0x1284   : > { %v9880_v41 = vpop.f32.mrf.mxu0  ;;  %10195 = vmatmul.bf16.gmra.mxu0 %v19583_v47 }
0x1285   : > { %v10055_v30 = vpop.f32.mrf.mxu2  ;;  %v9970_v29 = vadd.f32 %v9969_v35, %v9880_v41 }
0x1286   : > { %v10056_v61 = vadd.f32 %v10055_v30, %v9967_v2  ;;  %10284 = vmatmul.bf16.gmra.mxu1 %v19584_v5  ;;  %v19589_v5 = vld [vmem:[#allocation288_spill] sm:$0xff] }
0x1287   : > { %v10144_v36 = vpop.f32.mrf.mxu3 }
0x1288   : > { %v16339_v26 = vadd.f32 %v10144_v36, %v10056_v61 }
0x128a   : > { %19582 = vst [vmem:[#allocation536_spill] sm:$0xff] %v16339_v26  ;;  %10373 = vmatmul.bf16.gmra.mxu2 %v19585_v19  ;;  %v19590_v19 = vld [vmem:[#allocation291_spill] sm:$0xff] }
0x128b   : > { %v9971_v44 = vpop.f32.mrf.mxu1 }
0x128c   : > { %10462 = vmatmul.bf16.gmra.mxu3 %v19586_v9  ;;  %v9882_v34 = vpop.f32.mrf.mxu0  ;;  %v19591_v9 = vld [vmem:[#allocation292_spill] sm:$0xff] }
0x128d   : > { %v10058_v56 = vpop.f32.mrf.mxu2  ;;  %v9972_v21 = vadd.f32 %v9971_v44, %v9882_v34 }
0x128e   : > { %v10059_v43 = vadd.f32 %v10058_v56, %v9970_v29  ;;  %v19592_v29 = vld [vmem:[#allocation343_spill] sm:$0xff] }
0x128f   : > { %v10147_v14 = vpop.f32.mrf.mxu3 }
0x1290   : > { %v16345_v2 = vadd.f32 %v10147_v14, %v10059_v43 }
0x1292   : > { %19587 = vst [vmem:[#allocation539_spill] sm:$0xff] %v16345_v2 }
0x1293   : > { %v9974_v35 = vpop.f32.mrf.mxu1 }
0x1294   : > { %v9885_v61 = vpop.f32.mrf.mxu0  ;;  %10200 = vmatmul.bf16.gmra.mxu0 %v19589_v5 }
0x1295   : > { %v10060_v30 = vpop.f32.mrf.mxu2  ;;  %v9975_v47 = vadd.f32 %v9974_v35, %v9885_v61 }
0x1296   : > { %v10061_v36 = vadd.f32 %v10060_v30, %v9972_v21  ;;  %10289 = vmatmul.bf16.gmra.mxu1 %v19590_v19  ;;  %v19595_v19 = vld [vmem:[#allocation348_spill] sm:$0xff] }
0x1297   : > { %v10149_v41 = vpop.f32.mrf.mxu3 }
0x1298   : > { %v16347_v26 = vadd.f32 %v10149_v41, %v10061_v36 }
0x129a   : > { %19588 = vst [vmem:[#allocation540_spill] sm:$0xff] %v16347_v26  ;;  %10378 = vmatmul.bf16.gmra.mxu2 %v19591_v9  ;;  %v19596_v9 = vld [vmem:[#allocation399_spill] sm:$0xff] }
0x129b   : > { %v9976_v44 = vpop.f32.mrf.mxu1 }
0x129c   : > { %10467 = vmatmul.bf16.gmra.mxu3 %v19592_v29  ;;  %v9887_v43 = vpop.f32.mrf.mxu0  ;;  %v19597_v29 = vld [vmem:[#allocation400_spill] sm:$0xff] }
0x129d   : > { %v10063_v56 = vpop.f32.mrf.mxu2  ;;  %v9977_v2 = vadd.f32 %v9976_v44, %v9887_v43 }
0x129e   : > { %v10064_v14 = vadd.f32 %v10063_v56, %v9975_v47  ;;  %v19598_v47 = vld [vmem:[#allocation403_spill] sm:$0xff] }
0x129f   : > { %v10152_v34 = vpop.f32.mrf.mxu3 }
0x12a0   : > { %v16353_v21 = vadd.f32 %v10152_v34, %v10064_v14 }
0x12a2   : > { %19593 = vst [vmem:[#allocation275_spill] sm:$0xff] %v16353_v21 }
0x12a3   : > { %v9979_v35 = vpop.f32.mrf.mxu1 }
0x12a4   : > { %v9890_v36 = vpop.f32.mrf.mxu0  ;;  %10205 = vmatmul.bf16.gmra.mxu0 %v19595_v19 }
0x12a5   : > { %v10065_v30 = vpop.f32.mrf.mxu2  ;;  %v9980_v5 = vadd.f32 %v9979_v35, %v9890_v36 }
0x12a6   : > { %v10066_v41 = vadd.f32 %v10065_v30, %v9977_v2  ;;  %10294 = vmatmul.bf16.gmra.mxu1 %v19596_v9  ;;  %v19601_v9 = vld [vmem:[#allocation456_spill] sm:$0xff] }
0x12a7   : > { %v10154_v61 = vpop.f32.mrf.mxu3 }
0x12a8   : > { %v16355_v26 = vadd.f32 %v10154_v61, %v10066_v41 }
0x12aa   : > { %19594 = vst [vmem:[#allocation703_spill] sm:$0xff] %v16355_v26  ;;  %10383 = vmatmul.bf16.gmra.mxu2 %v19597_v29  ;;  %v19602_v29 = vld [vmem:[#allocation459_spill] sm:$0xff] }
0x12ab   : > { %v9981_v44 = vpop.f32.mrf.mxu1 }
0x12ac   : > { %10472 = vmatmul.bf16.gmra.mxu3 %v19598_v47  ;;  %v9892_v14 = vpop.f32.mrf.mxu0  ;;  %v19603_v47 = vld [vmem:[#allocation460_spill] sm:$0xff] }
0x12ad   : > { %v10068_v56 = vpop.f32.mrf.mxu2  ;;  %v9982_v21 = vadd.f32 %v9981_v44, %v9892_v14 }
0x12ae   : > { %v10069_v34 = vadd.f32 %v10068_v56, %v9980_v5  ;;  %v19604_v5 = vld [vmem:[#allocation279_spill] sm:$0xff] }
0x12af   : > { %v10157_v43 = vpop.f32.mrf.mxu3 }
0x12b0   : > { %v16361_v2 = vadd.f32 %v10157_v43, %v10069_v34 }
0x12b2   : > { %19599 = vst [vmem:[#allocation705_spill] sm:$0xff] %v16361_v2 }
0x12b3   : > { %v9984_v35 = vpop.f32.mrf.mxu1 }
0x12b4   : > { %v9895_v41 = vpop.f32.mrf.mxu0  ;;  %10210 = vmatmul.bf16.gmra.mxu0 %v19601_v9 }
0x12b5   : > { %v10070_v30 = vpop.f32.mrf.mxu2  ;;  %v9985_v19 = vadd.f32 %v9984_v35, %v9895_v41 }
0x12b6   : > { %v10071_v61 = vadd.f32 %v10070_v30, %v9982_v21  ;;  %10299 = vmatmul.bf16.gmra.mxu1 %v19602_v29  ;;  %v19607_v29 = vld [vmem:[#allocation284_spill] sm:$0xff] }
0x12b7   : > { %v10159_v36 = vpop.f32.mrf.mxu3 }
0x12b8   : > { %v16363_v26 = vadd.f32 %v10159_v36, %v10071_v61 }
0x12ba   : > { %19600 = vst [vmem:[#allocation706_spill] sm:$0xff] %v16363_v26  ;;  %10388 = vmatmul.bf16.gmra.mxu2 %v19603_v47  ;;  %v19608_v47 = vld [vmem:[#allocation335_spill] sm:$0xff] }
0x12bb   : > { %v9986_v44 = vpop.f32.mrf.mxu1 }
0x12bc   : > { %10477 = vmatmul.bf16.gmra.mxu3 %v19604_v5  ;;  %v9897_v34 = vpop.f32.mrf.mxu0  ;;  %v19609_v5 = vld [vmem:[#allocation336_spill] sm:$0xff] }
0x12bd   : > { %v10073_v56 = vpop.f32.mrf.mxu2  ;;  %v9987_v2 = vadd.f32 %v9986_v44, %v9897_v34 }
0x12be   : > { %v10074_v43 = vadd.f32 %v10073_v56, %v9985_v19  ;;  %v19610_v19 = vld [vmem:[#allocation339_spill] sm:$0xff] }
0x12bf   : > { %v10162_v14 = vpop.f32.mrf.mxu3 }
0x12c0   : > { %v16369_v21 = vadd.f32 %v10162_v14, %v10074_v43 }
0x12c2   : > { %19605 = vst [vmem:[#allocation594_spill] sm:$0xff] %v16369_v21 }
0x12c3   : > { %v9989_v35 = vpop.f32.mrf.mxu1 }
0x12c4   : > { %v9900_v61 = vpop.f32.mrf.mxu0  ;;  %10215 = vmatmul.bf16.gmra.mxu0 %v19607_v29 }
0x12c5   : > { %v10075_v30 = vpop.f32.mrf.mxu2  ;;  %v9990_v9 = vadd.f32 %v9989_v35, %v9900_v61 }
0x12c6   : > { %v10076_v36 = vadd.f32 %v10075_v30, %v9987_v2  ;;  %10304 = vmatmul.bf16.gmra.mxu1 %v19608_v47 }
0x12c7   : > { %v10164_v41 = vpop.f32.mrf.mxu3 }
0x12c8   : > { %v16371_v26 = vadd.f32 %v10164_v41, %v10076_v36 }
0x12ca   : > { %19606 = vst [vmem:[#allocation595_spill] sm:$0xff] %v16371_v26  ;;  %10393 = vmatmul.bf16.gmra.mxu2 %v19609_v5  ;;  %v19613_v5 = vld [vmem:[#allocation340_spill] sm:$0xff] }
0x12cb   : > { %v9991_v44 = vpop.f32.mrf.mxu1 }
0x12cc   : > { %10482 = vmatmul.bf16.gmra.mxu3 %v19610_v19  ;;  %v9902_v43 = vpop.f32.mrf.mxu0  ;;  %v19614_v19 = vld [vmem:[#allocation391_spill] sm:$0xff] }
0x12cd   : > { %v10078_v56 = vpop.f32.mrf.mxu2  ;;  %v9992_v2 = vadd.f32 %v9991_v44, %v9902_v43  ;;  %v10528_v43 = vld [vmem:[%s12087_s11] sm:$0x3] }
0x12ce   : > { %v10079_v14 = vadd.f32 %v10078_v56, %v9990_v9  ;;  %v19615_v9 = vld [vmem:[#allocation392_spill] sm:$0xff]  ;;  %v19616_v56 = vld [vmem:[#allocation395_spill] sm:$0xff] }
0x12cf   : > { %v10167_v34 = vpop.f32.mrf.mxu3 }
0x12d0   : > { %v16377_v30 = vadd.f32 %v10167_v34, %v10079_v14 }
0x12d2   : > { %19611 = vst [vmem:[#allocation598_spill] sm:$0xff] %v16377_v30 }
0x12d3   : > { %v10270_v29 = vpop.f32.mrf.mxu1 }
0x12d4   : > { %v10181_v35 = vpop.f32.mrf.mxu0  ;;  %10220 = vmatmul.bf16.gmra.mxu0 %v19613_v5 }
0x12d5   : > { %v10080_v61 = vpop.f32.mrf.mxu2  ;;  %v10182_v47 = vadd.f32 %v10181_v35, %v16185_v7 }
0x12d6   : > { %v10081_v36 = vadd.f32 %v10080_v61, %v9992_v2  ;;  %10309 = vmatmul.bf16.gmra.mxu1 %v19614_v19  ;;  %v16387_v2 = vperm.slane %v10528_v43, 0  ;;  %v19617_v19 = vld [vmem:[#allocation447_spill] sm:$0xff] }
0x12d7   : > { %v10169_v41 = vpop.f32.mrf.mxu3  ;;  %v10271_v34 = vadd.f32 %v10270_v29, %v10182_v47 }
0x12d8   : > { %v16379_v26 = vadd.f32 %v10169_v41, %v10081_v36  ;;  %v16389_v41 = vperm.slane %v10528_v43, 1 }
0x12da   : > { %19612 = vst [vmem:[#allocation599_spill] sm:$0xff] %v16379_v26  ;;  %10398 = vmatmul.bf16.gmra.mxu2 %v19615_v9  ;;  %v10534_v9 = vmul.f32 %v16387_v2, %v19617_v19 }
0x12db   : > { %v10272_v7 = vpop.f32.mrf.mxu1 }
0x12dc   : > { %10487 = vmatmul.bf16.gmra.mxu3 %v19616_v56  ;;  %v10183_v36 = vpop.f32.mrf.mxu0 }
0x12dd   : > { %v10359_v14 = vpop.f32.mrf.mxu2  ;;  %v10184_v5 = vadd.f32 %v10183_v36, %v16195_v55  ;;  %v10536_v55 = vmul.f32 %v16387_v2, %v15734_v45  ;;  %v19619_v36 = vld [vmem:[#allocation451_spill] sm:$0xff]  ;;  %v10538_v45 = vmul.f32 %v16387_v2, %v15741_v12 }
0x12de   : > { %v10360_v61 = vadd.f32 %v10359_v14, %v10271_v34 }
0x12df   : > { %v10448_v44 = vpop.f32.mrf.mxu3  ;;  %v10273_v29 = vadd.f32 %v10272_v7, %v10184_v5 }
0x12e0   : > { %v10449_v35 = vadd.f32 %v10448_v44, %v10360_v61  ;;  %v19618_v61 = vld [vmem:[#allocation448_spill] sm:$0xff] }
0x12e2   : > { %v10535_v56 = vmul.f32 %v16389_v41, %v10449_v35 }
0x12e3   : > { %v10275_v43 = vpop.f32.mrf.mxu1 }
0x12e4   : > { %v10598_v26 = vpack.c.bf16 %v10535_v56, %v10534_v9  ;;  %v10186_v34 = vpop.f32.mrf.mxu0  ;;  %10225 = vmatmul.bf16.gmra.mxu0 %v15725_v52 }
0x12e5   : > { %v10361_v47 = vpop.f32.mrf.mxu2  ;;  %v10187_v20 = vadd.f32 %v10186_v34, %v16201_v59 }
0x12e6   : > { %10630 = vst [vmem:[%s12091_s20] sm:$0xff] %v10598_v26  ;;  %v10362_v21 = vadd.f32 %v10361_v47, %v10273_v29  ;;  %10314 = vmatmul.bf16.gmra.mxu1 %v15727_v40 }
0x12e7   : > { %v10450_v30 = vpop.f32.mrf.mxu3  ;;  %v10276_v7 = vadd.f32 %v10275_v43, %v10187_v20 }
0x12e8   : > { %v10451_v14 = vadd.f32 %v10450_v30, %v10362_v21 }
0x12ea   : > { %v10537_v44 = vmul.f32 %v16389_v41, %v10451_v14  ;;  %10403 = vmatmul.bf16.gmra.mxu2 %v19618_v61  ;;  %v19622_v61 = vld [vmem:[#allocation277_spill] sm:$0xff] }
0x12eb   : > { %v10277_v52 = vpop.f32.mrf.mxu1  ;;  %v10540_v12 = vmul.f32 %v16387_v2, %v19622_v61 }
0x12ec   : > { %10492 = vmatmul.bf16.gmra.mxu3 %v19619_v36  ;;  %v10599_v26 = vpack.c.bf16 %v10537_v44, %v10536_v55  ;;  %v10188_v30 = vpop.f32.mrf.mxu0  ;;  %v19620_v44 = vld [vmem:[#allocation452_spill] sm:$0xff] }
0x12ed   : > { %v10364_v35 = vpop.f32.mrf.mxu2  ;;  %v10189_v40 = vadd.f32 %v10188_v30, %v16203_v37  ;;  %v19621_v37 = vld [vmem:[#allocation551_spill] sm:$0xff] }
0x12ee   : > { %10631 = vst [vmem:[%s12091_s20 + $0x8] sm:$0xff] %v10599_v26  ;;  %v10365_v59 = vadd.f32 %v10364_v35, %v10276_v7  ;;  %v19623_v26 = vld [vmem:[#allocation554_spill] sm:$0xff]  ;;  %v19624_v7 = vld [vmem:[#allocation555_spill] sm:$0xff] }
0x12ef   : > { %v10453_v21 = vpop.f32.mrf.mxu3  ;;  %v10278_v56 = vadd.f32 %v10277_v52, %v10189_v40 }
0x12f0   : > { %v10454_v5 = vadd.f32 %v10453_v21, %v10365_v59 }
0x12f2   : > { %v10539_v19 = vmul.f32 %v16389_v41, %v10454_v5 }
0x12f3   : > { %v10280_v43 = vpop.f32.mrf.mxu1 }
0x12f4   : > { %v10600_v9 = vpack.c.bf16 %v10539_v19, %v10538_v45  ;;  %v10191_v34 = vpop.f32.mrf.mxu0  ;;  %10230 = vmatmul.bf16.gmra.mxu0 %v19620_v44  ;;  %v19625_v19 = vld [vmem:[#allocation717_spill] sm:$0xff] }
0x12f5   : > { %v10366_v29 = vpop.f32.mrf.mxu2  ;;  %v10192_v55 = vadd.f32 %v10191_v34, %v16233_v17 }
0x12f6   : > { %10632 = vst [vmem:[%s12091_s20 + $0x10] sm:$0xff] %v10600_v9  ;;  %v10367_v20 = vadd.f32 %v10366_v29, %v10278_v56  ;;  %10319 = vmatmul.bf16.gmra.mxu1 %v19621_v37  ;;  %v10542_v9 = vmul.f32 %v16387_v2, %v19625_v19 }
0x12f7   : > { %v10455_v47 = vpop.f32.mrf.mxu3  ;;  %v10281_v21 = vadd.f32 %v10280_v43, %v10192_v55 }
0x12f8   : > { %v10456_v14 = vadd.f32 %v10455_v47, %v10367_v20 }
0x12fa   : > { %v10541_v36 = vmul.f32 %v16389_v41, %v10456_v14  ;;  %10408 = vmatmul.bf16.gmra.mxu2 %v19623_v26 }
0x12fb   : > { %v10282_v5 = vpop.f32.mrf.mxu1 }
0x12fc   : > { %10497 = vmatmul.bf16.gmra.mxu3 %v19624_v7  ;;  %v10601_v35 = vpack.c.bf16 %v10541_v36, %v10540_v12  ;;  %v10193_v52 = vpop.f32.mrf.mxu0  ;;  %v19626_v12 = vld [vmem:[#allocation719_spill] sm:$0xff]  ;;  %v19627_v36 = vld [vmem:[#allocation720_spill] sm:$0xff] }
0x12fd   : > { %v10369_v59 = vpop.f32.mrf.mxu2  ;;  %v10194_v45 = vadd.f32 %v10193_v52, %v16243_v23  ;;  %v10544_v23 = vmul.f32 %v16387_v2, %v15802_v1  ;;  %v10546_v1 = vmul.f32 %v16387_v2, %v15809_v60 }
0x12fe   : > { %10633 = vst [vmem:[%s12091_s20 + $0x18] sm:$0xff] %v10601_v35  ;;  %v10370_v17 = vadd.f32 %v10369_v59, %v10281_v21 }
0x12ff   : > { %v10458_v30 = vpop.f32.mrf.mxu3  ;;  %v10283_v47 = vadd.f32 %v10282_v5, %v10194_v45 }
0x1300   : > { %v10459_v40 = vadd.f32 %v10458_v30, %v10370_v17 }
0x1302   : > { %v10543_v56 = vmul.f32 %v16389_v41, %v10459_v40 }
0x1303   : > { %v10285_v55 = vpop.f32.mrf.mxu1 }
0x1304   : > { %v10602_v29 = vpack.c.bf16 %v10543_v56, %v10542_v9  ;;  %v10196_v14 = vpop.f32.mrf.mxu0  ;;  %10235 = vmatmul.bf16.gmra.mxu0 %v15793_v0 }
0x1305   : > { %v10371_v20 = vpop.f32.mrf.mxu2  ;;  %v10197_v37 = vadd.f32 %v10196_v14, %v16249_v58  ;;  %v19631_v14 = vld [vmem:[#allocation614_spill] sm:$0xff] }
0x1306   : > { %10634 = vst [vmem:[%s12091_s20 + $0x20] sm:$0xff] %v10602_v29  ;;  %v10372_v43 = vadd.f32 %v10371_v20, %v10283_v47  ;;  %10324 = vmatmul.bf16.gmra.mxu1 %v15795_v3  ;;  %v19628_v20 = vld [vmem:[#allocation610_spill] sm:$0xff] }
0x1307   : > { %v10460_v34 = vpop.f32.mrf.mxu3  ;;  %v10286_v7 = vadd.f32 %v10285_v55, %v10197_v37  ;;  %v19632_v55 = vld [vmem:[#allocation615_spill] sm:$0xff] }
0x1308   : > { %v10461_v44 = vadd.f32 %v10460_v34, %v10372_v43  ;;  %v19630_v34 = vld [vmem:[#allocation661_spill] sm:$0xff] }
0x1309   : > { %v10548_v60 = vmul.f32 %v16387_v2, %v19630_v34 }
0x130a   : > { %v10545_v61 = vmul.f32 %v16389_v41, %v10461_v44  ;;  %10413 = vmatmul.bf16.gmra.mxu2 %v19626_v12 }
0x130b   : > { %v10287_v0 = vpop.f32.mrf.mxu1 }
0x130c   : > { %10502 = vmatmul.bf16.gmra.mxu3 %v19627_v36  ;;  %v10603_v26 = vpack.c.bf16 %v10545_v61, %v10544_v23  ;;  %v10198_v59 = vpop.f32.mrf.mxu0 }
0x130d   : > { %v10374_v35 = vpop.f32.mrf.mxu2  ;;  %v10199_v3 = vadd.f32 %v10198_v59, %v16251_v10  ;;  %v19629_v10 = vld [vmem:[#allocation611_spill] sm:$0xff] }
0x130e   : > { %10635 = vst [vmem:[%s12091_s20 + $0x28] sm:$0xff] %v10603_v26  ;;  %v10375_v58 = vadd.f32 %v10374_v35, %v10286_v7  ;;  %v19633_v35 = vld [vmem:[#allocation662_spill] sm:$0xff] }
0x130f   : > { %v10463_v21 = vpop.f32.mrf.mxu3  ;;  %v10288_v5 = vadd.f32 %v10287_v0, %v10199_v3 }
0x1310   : > { %v10464_v30 = vadd.f32 %v10463_v21, %v10375_v58  ;;  %v10550_v21 = vmul.f32 %v16387_v2, %v19633_v35 }
0x1312   : > { %v10547_v17 = vmul.f32 %v16389_v41, %v10464_v30 }
0x1313   : > { %v10290_v56 = vpop.f32.mrf.mxu1 }
0x1314   : > { %v10604_v52 = vpack.c.bf16 %v10547_v17, %v10546_v1  ;;  %v10201_v9 = vpop.f32.mrf.mxu0  ;;  %10240 = vmatmul.bf16.gmra.mxu0 %v19628_v20 }
0x1315   : > { %v10376_v40 = vpop.f32.mrf.mxu2  ;;  %v10202_v47 = vadd.f32 %v10201_v9, %v16281_v48  ;;  %v19635_v9 = vld [vmem:[#allocation666_spill] sm:$0xff] }
0x1316   : > { %10636 = vst [vmem:[%s12091_s20 + $0x30] sm:$0xff] %v10604_v52  ;;  %v10377_v19 = vadd.f32 %v10376_v40, %v10288_v5  ;;  %10329 = vmatmul.bf16.gmra.mxu1 %v19629_v10 }
0x1317   : > { %v10465_v45 = vpop.f32.mrf.mxu3  ;;  %v10291_v37 = vadd.f32 %v10290_v56, %v10202_v47 }
0x1318   : > { %v10466_v29 = vadd.f32 %v10465_v45, %v10377_v19  ;;  %v19634_v19 = vld [vmem:[#allocation665_spill] sm:$0xff] }
0x131a   : > { %v10549_v43 = vmul.f32 %v16389_v41, %v10466_v29  ;;  %10418 = vmatmul.bf16.gmra.mxu2 %v19631_v14 }
0x131b   : > { %v10292_v36 = vpop.f32.mrf.mxu1 }
0x131c   : > { %10507 = vmatmul.bf16.gmra.mxu3 %v19632_v55  ;;  %v10605_v44 = vpack.c.bf16 %v10549_v43, %v10548_v60  ;;  %v10203_v12 = vpop.f32.mrf.mxu0 }
0x131d   : > { %v10379_v23 = vpop.f32.mrf.mxu2  ;;  %v10204_v7 = vadd.f32 %v10203_v12, %v16291_v49  ;;  %v10552_v49 = vmul.f32 %v16387_v2, %v15870_v57  ;;  %v10554_v57 = vmul.f32 %v16387_v2, %v15877_v33  ;;  %v10556_v33 = vmul.f32 %v16387_v2, %v15888_v8 }
0x131e   : > { %10637 = vst [vmem:[%s12091_s20 + $0x38] sm:$0xff] %v10605_v44  ;;  %v10380_v48 = vadd.f32 %v10379_v23, %v10291_v37 }
0x131f   : > { %v10468_v61 = vpop.f32.mrf.mxu3  ;;  %v10293_v0 = vadd.f32 %v10292_v36, %v10204_v7  ;;  %v19636_v36 = vld [vmem:[#allocation543_spill] sm:$0xff] }
0x1320   : > { %v10469_v26 = vadd.f32 %v10468_v61, %v10380_v48 }
0x1322   : > { %v10551_v58 = vmul.f32 %v16389_v41, %v10469_v26  ;;  %v19637_v26 = vld [vmem:[#allocation544_spill] sm:$0xff] }
0x1323   : > { %v10295_v52 = vpop.f32.mrf.mxu1 }
0x1324   : > { %v10606_v59 = vpack.c.bf16 %v10551_v58, %v10550_v21  ;;  %v10206_v17 = vpop.f32.mrf.mxu0  ;;  %10245 = vmatmul.bf16.gmra.mxu0 %v15861_v31 }
0x1325   : > { %v10381_v30 = vpop.f32.mrf.mxu2  ;;  %v10207_v40 = vadd.f32 %v10206_v17, %v16297_v54 }
0x1326   : > { %10638 = vst [vmem:[%s12091_s20 + $0x40] sm:$0xff] %v10606_v59  ;;  %v10382_v1 = vadd.f32 %v10381_v30, %v10293_v0  ;;  %10334 = vmatmul.bf16.gmra.mxu1 %v15863_v39  ;;  %v19638_v30 = vld [vmem:[#allocation547_spill] sm:$0xff] }
0x1327   : > { %v10470_v3 = vpop.f32.mrf.mxu3  ;;  %v10296_v29 = vadd.f32 %v10295_v52, %v10207_v40  ;;  %v10558_v8 = vmul.f32 %v16387_v2, %v19638_v30 }
0x1328   : > { %v10471_v5 = vadd.f32 %v10470_v3, %v10382_v1 }
0x132a   : > { %v10553_v45 = vmul.f32 %v16389_v41, %v10471_v5  ;;  %10423 = vmatmul.bf16.gmra.mxu2 %v19634_v19 }
0x132b   : > { %v10297_v31 = vpop.f32.mrf.mxu1 }
0x132c   : > { %10512 = vmatmul.bf16.gmra.mxu3 %v19635_v9  ;;  %v10607_v56 = vpack.c.bf16 %v10553_v45, %v10552_v49  ;;  %v10208_v10 = vpop.f32.mrf.mxu0 }
0x132d   : > { %v10384_v47 = vpop.f32.mrf.mxu2  ;;  %v10209_v39 = vadd.f32 %v10208_v10, %v16299_v28 }
0x132e   : > { %10639 = vst [vmem:[%s12091_s20 + $0x48] sm:$0xff] %v10607_v56  ;;  %v10385_v54 = vadd.f32 %v10384_v47, %v10296_v29 }
0x132f   : > { %v10473_v20 = vpop.f32.mrf.mxu3  ;;  %v10298_v14 = vadd.f32 %v10297_v31, %v10209_v39 }
0x1330   : > { %v10474_v34 = vadd.f32 %v10473_v20, %v10385_v54 }
0x1332   : > { %v10555_v60 = vmul.f32 %v16389_v41, %v10474_v34 }
0x1333   : > { %v10300_v61 = vpop.f32.mrf.mxu1 }
0x1334   : > { %v10608_v43 = vpack.c.bf16 %v10555_v60, %v10554_v57  ;;  %v10211_v23 = vpop.f32.mrf.mxu0  ;;  %10250 = vmatmul.bf16.gmra.mxu0 %v15879_v27 }
0x1335   : > { %v10386_v55 = vpop.f32.mrf.mxu2  ;;  %v10212_v12 = vadd.f32 %v10211_v23, %v16305_v62 }
0x1336   : > { %10640 = vst [vmem:[%s12091_s20 + $0x50] sm:$0xff] %v10608_v43  ;;  %v10387_v37 = vadd.f32 %v10386_v55, %v10298_v14  ;;  %10339 = vmatmul.bf16.gmra.mxu1 %v15881_v53 }
0x1337   : > { %v10475_v44 = vpop.f32.mrf.mxu3  ;;  %v10301_v35 = vadd.f32 %v10300_v61, %v10212_v12 }
0x1338   : > { %v10476_v48 = vadd.f32 %v10475_v44, %v10387_v37 }
0x133a   : > { %v10557_v28 = vmul.f32 %v16389_v41, %v10476_v48  ;;  %10428 = vmatmul.bf16.gmra.mxu2 %v19636_v36 }
0x133b   : > { %v10302_v27 = vpop.f32.mrf.mxu1 }
0x133c   : > { %10517 = vmatmul.bf16.gmra.mxu3 %v19637_v26  ;;  %v10609_v7 = vpack.c.bf16 %v10557_v28, %v10556_v33  ;;  %v10213_v59 = vpop.f32.mrf.mxu0 }
0x133d   : > { %v10389_v21 = vpop.f32.mrf.mxu2  ;;  %v10214_v53 = vadd.f32 %v10213_v59, %v16307_v18  ;;  %v10560_v18 = vmul.f32 %v16387_v2, %v15938_v51  ;;  %v10562_v51 = vmul.f32 %v16387_v2, %v15945_v13 }
0x133e   : > { %10641 = vst [vmem:[%s12091_s20 + $0x58] sm:$0xff] %v10609_v7  ;;  %v10390_v62 = vadd.f32 %v10389_v21, %v10301_v35 }
0x133f   : > { %v10478_v58 = vpop.f32.mrf.mxu3  ;;  %v10303_v17 = vadd.f32 %v10302_v27, %v10214_v53 }
0x1340   : > { %v10479_v0 = vadd.f32 %v10478_v58, %v10390_v62 }
0x1342   : > { %v10559_v3 = vmul.f32 %v16389_v41, %v10479_v0 }
0x1343   : > { %v10305_v45 = vpop.f32.mrf.mxu1 }
0x1344   : > { %v10610_v1 = vpack.c.bf16 %v10559_v3, %v10558_v8  ;;  %v10216_v49 = vpop.f32.mrf.mxu0  ;;  %10255 = vmatmul.bf16.gmra.mxu0 %v15929_v38 }
0x1345   : > { %v10391_v52 = vpop.f32.mrf.mxu2  ;;  %v10217_v9 = vadd.f32 %v10216_v49, %v16313_v11 }
0x1346   : > { %10642 = vst [vmem:[%s12091_s20 + $0x60] sm:$0xff] %v10610_v1  ;;  %v10392_v40 = vadd.f32 %v10391_v52, %v10303_v17  ;;  %10344 = vmatmul.bf16.gmra.mxu1 %v15931_v22 }
0x1347   : > { %v10480_v5 = vpop.f32.mrf.mxu3  ;;  %v10306_v47 = vadd.f32 %v10305_v45, %v10217_v9 }
0x1348   : > { %v10481_v19 = vadd.f32 %v10480_v5, %v10392_v40 }
0x134a   : > { %v10561_v56 = vmul.f32 %v16389_v41, %v10481_v19  ;;  %10433 = vmatmul.bf16.gmra.mxu2 %v15933_v50 }
0x134b   : > { %v10307_v38 = vpop.f32.mrf.mxu1 }
0x134c   : > { %10522 = vmatmul.bf16.gmra.mxu3 %v15935_v6  ;;  %v10611_v29 = vpack.c.bf16 %v10561_v56, %v10560_v18  ;;  %v10218_v10 = vpop.f32.mrf.mxu0 }
0x134d   : > { %v10394_v20 = vpop.f32.mrf.mxu2  ;;  %v10219_v22 = vadd.f32 %v10218_v10, %v16315_v15  ;;  %v10564_v15 = vmul.f32 %v16387_v2, %v15948_v25  ;;  %v19640_v10 = vld [vmem:[#allocation548_spill] sm:$0xff] }
0x134e   : > { %10643 = vst [vmem:[%s12091_s20 + $0x68] sm:$0xff] %v10611_v29  ;;  %v10395_v11 = vadd.f32 %v10394_v20, %v10306_v47 }
0x134f   : > { %v10483_v54 = vpop.f32.mrf.mxu3  ;;  %v10308_v6 = vadd.f32 %v10307_v38, %v10219_v22 }
0x1350   : > { %v10484_v31 = vadd.f32 %v10483_v54, %v10395_v11  ;;  %v19639_v54 = vld [vmem:[#allocation535_spill] sm:$0xff] }
0x1352   : > { %v10563_v34 = vmul.f32 %v16389_v41, %v10484_v31 }
0x1353   : > { %v10310_v14 = vpop.f32.mrf.mxu1 }
0x1354   : > { %v10612_v50 = vpack.c.bf16 %v10563_v34, %v10562_v51  ;;  %v10221_v43 = vpop.f32.mrf.mxu0 }
0x1355   : > { %v10396_v39 = vpop.f32.mrf.mxu2  ;;  %v10222_v44 = vadd.f32 %v10221_v43, %v16321_v4  ;;  %v10566_v4 = vmul.f32 %v16387_v2, %v15979_v42  ;;  %v19642_v43 = vld [vmem:[#allocation709_spill] sm:$0xff] }
0x1356   : > { %10644 = vst [vmem:[%s12091_s20 + $0x70] sm:$0xff] %v10612_v50  ;;  %v10397_v60 = vadd.f32 %v10396_v39, %v10308_v6 }
0x1357   : > { %v10485_v57 = vpop.f32.mrf.mxu3  ;;  %v10311_v23 = vadd.f32 %v10310_v14, %v10222_v44  ;;  %v10574_v14 = vmul.f32 %v16387_v2, %v19642_v43 }
0x1358   : > { %v10486_v55 = vadd.f32 %v10485_v57, %v10397_v60  ;;  %v19641_v57 = vld [vmem:[#allocation536_spill] sm:$0xff] }
0x135a   : > { %v10565_v37 = vmul.f32 %v16389_v41, %v10486_v55 }
0x135b   : > { %v10312_v28 = vpop.f32.mrf.mxu1 }
0x135c   : > { %v10613_v13 = vpack.c.bf16 %v10565_v37, %v10564_v15  ;;  %v10223_v33 = vpop.f32.mrf.mxu0 }
0x135d   : > { %v10399_v61 = vpop.f32.mrf.mxu2  ;;  %v10224_v26 = vadd.f32 %v10223_v33, %v16323_v16  ;;  %v10568_v16 = vmul.f32 %v16387_v2, %v15990_v46  ;;  %v19643_v33 = vld [vmem:[#allocation539_spill] sm:$0xff] }
0x135e   : > { %10645 = vst [vmem:[%s12091_s20 + $0x78] sm:$0xff] %v10613_v13  ;;  %v10400_v12 = vadd.f32 %v10399_v61, %v10311_v23 }
0x135f   : > { %v10488_v48 = vpop.f32.mrf.mxu3  ;;  %v10313_v35 = vadd.f32 %v10312_v28, %v10224_v26 }
0x1360   : > { %v10489_v36 = vadd.f32 %v10488_v48, %v10400_v12 }
0x1362   : > { %v10567_v7 = vmul.f32 %v16389_v41, %v10489_v36  ;;  %v19644_v36 = vld [vmem:[#allocation710_spill] sm:$0xff] }
0x1363   : > { %v10315_v27 = vpop.f32.mrf.mxu1  ;;  %v10576_v26 = vmul.f32 %v16387_v2, %v19644_v36 }
0x1364   : > { %v10614_v25 = vpack.c.bf16 %v10567_v7, %v10566_v4  ;;  %v10226_v59 = vpop.f32.mrf.mxu0 }
0x1365   : > { %v10401_v21 = vpop.f32.mrf.mxu2  ;;  %v10227_v53 = vadd.f32 %v10226_v59, %v16329_v63  ;;  %v10570_v63 = vmul.f32 %v16387_v2, %v15997_v32 }
0x1366   : > { %10646 = vst [vmem:[%s12091_s20 + $0x80] sm:$0xff] %v10614_v25  ;;  %v10402_v62 = vadd.f32 %v10401_v21, %v10313_v35 }
0x1367   : > { %v10490_v58 = vpop.f32.mrf.mxu3  ;;  %v10316_v8 = vadd.f32 %v10315_v27, %v10227_v53 }
0x1368   : > { %v10491_v0 = vadd.f32 %v10490_v58, %v10402_v62 }
0x136a   : > { %v10569_v30 = vmul.f32 %v16389_v41, %v10491_v0  ;;  %v19645_v0 = vld [vmem:[#allocation540_spill] sm:$0xff] }
0x136b   : > { %v10317_v5 = vpop.f32.mrf.mxu1 }
0x136c   : > { %v10615_v42 = vpack.c.bf16 %v10569_v30, %v10568_v16  ;;  %v10228_v52 = vpop.f32.mrf.mxu0  ;;  %v19646_v16 = vld [vmem:[#allocation713_spill] sm:$0xff] }
0x136d   : > { %v10404_v3 = vpop.f32.mrf.mxu2  ;;  %v10229_v49 = vadd.f32 %v10228_v52, %v16331_v24  ;;  %v10572_v24 = vmul.f32 %v16387_v2, %v19640_v10  ;;  %v10578_v30 = vmul.f32 %v16387_v2, %v19646_v16 }
0x136e   : > { %10647 = vst [vmem:[%s12091_s20 + $0x88] sm:$0xff] %v10615_v42  ;;  %v10405_v17 = vadd.f32 %v10404_v3, %v10316_v8 }
0x136f   : > { %v10493_v1 = vpop.f32.mrf.mxu3  ;;  %v10318_v19 = vadd.f32 %v10317_v5, %v10229_v49 }
0x1370   : > { %v10494_v40 = vadd.f32 %v10493_v1, %v10405_v17 }
0x1372   : > { %v10571_v45 = vmul.f32 %v16389_v41, %v10494_v40 }
0x1373   : > { %v10320_v47 = vpop.f32.mrf.mxu1 }
0x1374   : > { %v10616_v46 = vpack.c.bf16 %v10571_v45, %v10570_v63  ;;  %v10231_v29 = vpop.f32.mrf.mxu0  ;;  %v19647_v63 = vld [vmem:[#allocation275_spill] sm:$0xff] }
0x1375   : > { %v10406_v9 = vpop.f32.mrf.mxu2  ;;  %v10232_v11 = vadd.f32 %v10231_v29, %v19639_v54 }
0x1376   : > { %10648 = vst [vmem:[%s12091_s20 + $0x90] sm:$0xff] %v10616_v46  ;;  %v10407_v56 = vadd.f32 %v10406_v9, %v10318_v19  ;;  %v19648_v46 = vld [vmem:[#allocation714_spill] sm:$0xff] }
0x1377   : > { %v10495_v18 = vpop.f32.mrf.mxu3  ;;  %v10321_v31 = vadd.f32 %v10320_v47, %v10232_v11  ;;  %v10580_v19 = vmul.f32 %v16387_v2, %v19648_v46 }
0x1378   : > { %v10496_v20 = vadd.f32 %v10495_v18, %v10407_v56 }
0x137a   : > { %v10573_v38 = vmul.f32 %v16389_v41, %v10496_v20 }
0x137b   : > { %v10322_v6 = vpop.f32.mrf.mxu1 }
0x137c   : > { %v10617_v32 = vpack.c.bf16 %v10573_v38, %v10572_v24  ;;  %v10233_v50 = vpop.f32.mrf.mxu0  ;;  %v19649_v24 = vld [vmem:[#allocation703_spill] sm:$0xff] }
0x137d   : > { %v10409_v22 = vpop.f32.mrf.mxu2  ;;  %v10234_v60 = vadd.f32 %v10233_v50, %v19641_v57 }
0x137e   : > { %10649 = vst [vmem:[%s12091_s20 + $0x98] sm:$0xff] %v10617_v32  ;;  %v10410_v34 = vadd.f32 %v10409_v22, %v10321_v31  ;;  %v19650_v32 = vld [vmem:[#allocation602_spill] sm:$0xff] }
0x137f   : > { %v10498_v51 = vpop.f32.mrf.mxu3  ;;  %v10323_v15 = vadd.f32 %v10322_v6, %v10234_v60  ;;  %v10582_v31 = vmul.f32 %v16387_v2, %v19650_v32  ;;  %v19659_v32 = vld [vmem:[#allocation598_spill] sm:$0xff] }
0x1380   : > { %v10499_v39 = vadd.f32 %v10498_v51, %v10410_v34 }
0x1382   : > { %v10575_v55 = vmul.f32 %v16389_v41, %v10499_v39 }
0x1383   : > { %v10325_v48 = vpop.f32.mrf.mxu1 }
0x1384   : > { %v10618_v44 = vpack.c.bf16 %v10575_v55, %v10574_v14  ;;  %v10236_v61 = vpop.f32.mrf.mxu0  ;;  %v19651_v14 = vld [vmem:[#allocation705_spill] sm:$0xff] }
0x1385   : > { %v10411_v37 = vpop.f32.mrf.mxu2  ;;  %v10237_v28 = vadd.f32 %v10236_v61, %v19643_v33 }
0x1386   : > { %10650 = vst [vmem:[%s12091_s20 + $0xa0] sm:$0xff] %v10618_v44  ;;  %v10412_v23 = vadd.f32 %v10411_v37, %v10323_v15  ;;  %v19652_v44 = vld [vmem:[#allocation603_spill] sm:$0xff] }
0x1387   : > { %v10500_v13 = vpop.f32.mrf.mxu3  ;;  %v10326_v25 = vadd.f32 %v10325_v48, %v10237_v28  ;;  %v10584_v15 = vmul.f32 %v16387_v2, %v19652_v44  ;;  %v19661_v44 = vld [vmem:[#allocation599_spill] sm:$0xff] }
0x1388   : > { %v10501_v12 = vadd.f32 %v10500_v13, %v10412_v23 }
0x138a   : > { %v10577_v4 = vmul.f32 %v16389_v41, %v10501_v12 }
0x138b   : > { %v10327_v59 = vpop.f32.mrf.mxu1 }
0x138c   : > { %v10619_v7 = vpack.c.bf16 %v10577_v4, %v10576_v26  ;;  %v10238_v62 = vpop.f32.mrf.mxu0  ;;  %v19653_v26 = vld [vmem:[#allocation706_spill] sm:$0xff] }
0x138d   : > { %v10414_v35 = vpop.f32.mrf.mxu2  ;;  %v10239_v53 = vadd.f32 %v10238_v62, %v19645_v0 }
0x138e   : > { %10651 = vst [vmem:[%s12091_s20 + $0xa8] sm:$0xff] %v10619_v7  ;;  %v10415_v58 = vadd.f32 %v10414_v35, %v10326_v25  ;;  %v19654_v7 = vld [vmem:[#allocation606_spill] sm:$0xff] }
0x138f   : > { %v10503_v21 = vpop.f32.mrf.mxu3  ;;  %v10328_v3 = vadd.f32 %v10327_v59, %v10239_v53  ;;  %v10586_v25 = vmul.f32 %v16387_v2, %v19654_v7 }
0x1390   : > { %v10504_v27 = vadd.f32 %v10503_v21, %v10415_v58 }
0x1392   : > { %v10579_v42 = vmul.f32 %v16389_v41, %v10504_v27 }
0x1393   : > { %v10330_v40 = vpop.f32.mrf.mxu1 }
0x1394   : > { %v10620_v8 = vpack.c.bf16 %v10579_v42, %v10578_v30  ;;  %v10241_v5 = vpop.f32.mrf.mxu0  ;;  %v19655_v30 = vld [vmem:[#allocation594_spill] sm:$0xff] }
0x1395   : > { %v10416_v1 = vpop.f32.mrf.mxu2  ;;  %v10242_v45 = vadd.f32 %v10241_v5, %v19647_v63 }
0x1396   : > { %10652 = vst [vmem:[%s12091_s20 + $0xb0] sm:$0xff] %v10620_v8  ;;  %v10417_v52 = vadd.f32 %v10416_v1, %v10328_v3  ;;  %v19656_v8 = vld [vmem:[#allocation607_spill] sm:$0xff] }
0x1397   : > { %v10505_v17 = vpop.f32.mrf.mxu3  ;;  %v10331_v56 = vadd.f32 %v10330_v40, %v10242_v45  ;;  %v10588_v3 = vmul.f32 %v16387_v2, %v19656_v8 }
0x1398   : > { %v10506_v49 = vadd.f32 %v10505_v17, %v10417_v52 }
0x139a   : > { %v10581_v9 = vmul.f32 %v16389_v41, %v10506_v49 }
0x139b   : > { %v10332_v11 = vpop.f32.mrf.mxu1 }
0x139c   : > { %v10621_v18 = vpack.c.bf16 %v10581_v9, %v10580_v19  ;;  %v10243_v54 = vpop.f32.mrf.mxu0  ;;  %v19657_v19 = vld [vmem:[#allocation595_spill] sm:$0xff] }
0x139d   : > { %v10419_v29 = vpop.f32.mrf.mxu2  ;;  %v10244_v38 = vadd.f32 %v10243_v54, %v19649_v24 }
0x139e   : > { %10653 = vst [vmem:[%s12091_s20 + $0xb8] sm:$0xff] %v10621_v18  ;;  %v10420_v20 = vadd.f32 %v10419_v29, %v10331_v56  ;;  %v19658_v18 = vld [vmem:[#allocation654_spill] sm:$0xff] }
0x139f   : > { %v10508_v47 = vpop.f32.mrf.mxu3  ;;  %v10333_v34 = vadd.f32 %v10332_v11, %v10244_v38  ;;  %v10590_v56 = vmul.f32 %v16387_v2, %v19658_v18 }
0x13a0   : > { %v10509_v10 = vadd.f32 %v10508_v47, %v10420_v20 }
0x13a2   : > { %v10583_v22 = vmul.f32 %v16389_v41, %v10509_v10 }
0x13a3   : > { %v10335_v60 = vpop.f32.mrf.mxu1 }
0x13a4   : > { %v10622_v51 = vpack.c.bf16 %v10583_v22, %v10582_v31  ;;  %v10246_v57 = vpop.f32.mrf.mxu0 }
0x13a5   : > { %v10421_v50 = vpop.f32.mrf.mxu2  ;;  %v10247_v55 = vadd.f32 %v10246_v57, %v19651_v14 }
0x13a6   : > { %10654 = vst [vmem:[%s12091_s20 + $0xc0] sm:$0xff] %v10622_v51  ;;  %v10422_v39 = vadd.f32 %v10421_v50, %v10333_v34  ;;  %v19660_v51 = vld [vmem:[#allocation655_spill] sm:$0xff] }
0x13a7   : > { %v10510_v6 = vpop.f32.mrf.mxu3  ;;  %v10336_v23 = vadd.f32 %v10335_v60, %v10247_v55  ;;  %v10592_v34 = vmul.f32 %v16387_v2, %v19660_v51 }
0x13a8   : > { %v10511_v43 = vadd.f32 %v10510_v6, %v10422_v39 }
0x13aa   : > { %v10585_v37 = vmul.f32 %v16389_v41, %v10511_v43 }
0x13ab   : > { %v10337_v28 = vpop.f32.mrf.mxu1 }
0x13ac   : > { %v10623_v13 = vpack.c.bf16 %v10585_v37, %v10584_v15  ;;  %v10248_v33 = vpop.f32.mrf.mxu0  ;;  %v19662_v37 = vld [vmem:[#allocation657_spill] sm:$0xff] }
0x13ad   : > { %v10424_v61 = vpop.f32.mrf.mxu2  ;;  %v10249_v4 = vadd.f32 %v10248_v33, %v19653_v26 }
0x13ae   : > { %10655 = vst [vmem:[%s12091_s20 + $0xc8] sm:$0xff] %v10623_v13  ;;  %v10425_v12 = vadd.f32 %v10424_v61, %v10336_v23  ;;  %v10594_v13 = vmul.f32 %v16387_v2, %v19662_v37 }
0x13af   : > { %v10513_v48 = vpop.f32.mrf.mxu3  ;;  %v10338_v58 = vadd.f32 %v10337_v28, %v10249_v4  ;;  %v19663_v4 = vld [vmem:[#allocation658_spill] sm:$0xff] }
0x13b0   : > { %v10514_v36 = vadd.f32 %v10513_v48, %v10425_v12  ;;  %v10596_v7 = vmul.f32 %v16387_v2, %v19663_v4 }
0x13b2   : > { %v10587_v35 = vmul.f32 %v16389_v41, %v10514_v36 }
0x13b3   : > { %v10340_v53 = vpop.f32.mrf.mxu1 }
0x13b4   : > { %v10624_v21 = vpack.c.bf16 %v10587_v35, %v10586_v25  ;;  %v10251_v0 = vpop.f32.mrf.mxu0 }
0x13b5   : > { %v10426_v62 = vpop.f32.mrf.mxu2  ;;  %v10252_v42 = vadd.f32 %v10251_v0, %v19655_v30 }
0x13b6   : > { %10656 = vst [vmem:[%s12091_s20 + $0xd0] sm:$0xff] %v10624_v21  ;;  %v10427_v27 = vadd.f32 %v10426_v62, %v10338_v58 }
0x13b7   : > { %v10515_v59 = vpop.f32.mrf.mxu3  ;;  %v10341_v52 = vadd.f32 %v10340_v53, %v10252_v42 }
0x13b8   : > { %v10516_v16 = vadd.f32 %v10515_v59, %v10427_v27 }
0x13ba   : > { %v10589_v1 = vmul.f32 %v16389_v41, %v10516_v16 }
0x13bb   : > { %v10342_v45 = vpop.f32.mrf.mxu1 }
0x13bc   : > { %v10625_v17 = vpack.c.bf16 %v10589_v1, %v10588_v3  ;;  %v10253_v63 = vpop.f32.mrf.mxu0 }
0x13bd   : > { %v10429_v5 = vpop.f32.mrf.mxu2  ;;  %v10254_v9 = vadd.f32 %v10253_v63, %v19657_v19 }
0x13be   : > { %10657 = vst [vmem:[%s12091_s20 + $0xd8] sm:$0xff] %v10625_v17  ;;  %v10430_v49 = vadd.f32 %v10429_v5, %v10341_v52 }
0x13bf   : > { %v10518_v40 = vpop.f32.mrf.mxu3  ;;  %v10343_v20 = vadd.f32 %v10342_v45, %v10254_v9 }
0x13c0   : > { %v10519_v46 = vadd.f32 %v10518_v40, %v10430_v49 }
0x13c2   : > { %v10591_v29 = vmul.f32 %v16389_v41, %v10519_v46 }
0x13c3   : > { %v10345_v22 = vpop.f32.mrf.mxu1 }
0x13c4   : > { %v10626_v47 = vpack.c.bf16 %v10591_v29, %v10590_v56  ;;  %v10256_v24 = vpop.f32.mrf.mxu0 }
0x13c5   : > { %v10431_v54 = vpop.f32.mrf.mxu2  ;;  %v10257_v31 = vadd.f32 %v10256_v24, %v19659_v32 }
0x13c6   : > { %10658 = vst [vmem:[%s12091_s20 + $0xe0] sm:$0xff] %v10626_v47  ;;  %v10432_v10 = vadd.f32 %v10431_v54, %v10343_v20 }
0x13c7   : > { %v10520_v11 = vpop.f32.mrf.mxu3  ;;  %v10346_v39 = vadd.f32 %v10345_v22, %v10257_v31 }
0x13c8   : > { %v10521_v38 = vadd.f32 %v10520_v11, %v10432_v10 }
0x13ca   : > { %v10593_v50 = vmul.f32 %v16389_v41, %v10521_v38 }
0x13cb   : > { %v10347_v61 = vpop.f32.mrf.mxu1 }
0x13cc   : > { %v10627_v6 = vpack.c.bf16 %v10593_v50, %v10592_v34  ;;  %v10258_v14 = vpop.f32.mrf.mxu0 }
0x13cd   : > { %v10434_v57 = vpop.f32.mrf.mxu2  ;;  %v10259_v15 = vadd.f32 %v10258_v14, %v19661_v44 }
0x13ce   : > { %10659 = vst [vmem:[%s12091_s20 + $0xe8] sm:$0xff] %v10627_v6  ;;  %v10435_v43 = vadd.f32 %v10434_v57, %v10346_v39 }
0x13cf   : > { %v10523_v60 = vpop.f32.mrf.mxu3  ;;  %v10348_v12 = vadd.f32 %v10347_v61, %v10259_v15 }
0x13d0   : > { %v10524_v55 = vadd.f32 %v10523_v60, %v10435_v43 }
0x13d2   : > { %v10595_v23 = vmul.f32 %v16389_v41, %v10524_v55 }
0x13d4   : > { %v10628_v48 = vpack.c.bf16 %v10595_v23, %v10594_v13 }
0x13d5   : > { %v10436_v33 = vpop.f32.mrf.mxu2 }
0x13d6   : > { %10660 = vst [vmem:[%s12091_s20 + $0xf0] sm:$0xff] %v10628_v48  ;;  %v10437_v28 = vadd.f32 %v10436_v33, %v10348_v12 }
0x13d7   : > { %v10525_v36 = vpop.f32.mrf.mxu3 }
0x13d8   : > { %v10526_v26 = vadd.f32 %v10525_v36, %v10437_v28 }
0x13da   : > { %v10597_v25 = vmul.f32 %v16389_v41, %v10526_v26 }
0x13dc   : > { %v10629_v35 = vpack.c.bf16 %v10597_v25, %v10596_v7 }
0x13de   : > { %10661 = vst [vmem:[%s12091_s20 + $0xf8] sm:$0xff] %v10629_v35 }
0x13df   : > { %11663 = shalt.err (!%p11660_p13)
}
0x13e0   : > { %s11729_s29 = smov 128   ;;  %s11730_s6 = smov 256  }
0x13e1   : > { %s11731_s7 = smov 8  }
0x13e2   : > { %11469 = dma.vmem_to_hbm [thread:$0]  (%p11843_p0), %s10679_s5, 4096, %s10681_s9, %s10663_s15, %s11729_s29, %s11730_s6, %s11731_s7  }
0x13e3 PF: > { %s10695_s8 = sand.u32 1, %s11702_s12   ;;  %p11483_p3 = pnand %p10803_p4, %p11847_p2 }
0x13e4   : > { %s10696_s11 = scalar_lea.sflag [#allocation4], %s10695_s8 }
0x13e5   : > { %p11484_p5 = pneg %p11483_p3 }
0x13e7   : > { %11697 = dma.done.wait (%p11484_p5), %s10696_s11, 4096  }
0x13e8   : > { %11699 = vsyncadd (%p11484_p5), %s10696_s11, 4294963200  ;;  %s20_s17 = sadd.s32 1, %s11722_s17   ;;  %s19664_s12 = smov %s11706_s13 }
0x13e9   : > { %p17_p1 = scmp.ge.s32.totalorder %s20_s17, 4   ;;  %s19665_s13 = smov %s11710_s14 }
0x13ea   : > { %s19666_s14 = smov %s11803_s24  ;;  %s19667_s15 = smov %s11718_s16 }
0x13eb   : > { %s19668_s16 = smov %s19670_s18  ;;  %19 = sbr.rel (!%p17_p1) target bundleno = 10 (0xa), region = 542 }
0x13f0   :  { %10702 = vsyncpa [#allocation3], 1 }
0x13f1   :  { %10704 = vsyncpa [#allocation3 + $0x1], 1 }
0x13f2   :  { %10705 = vsyncpa [#allocation6], 1 }
0x13f3   :  { %10707 = vsyncpa [#allocation6 + $0x1], 1 }
0x13f4   :  { %10708 = vsyncpa [#allocation4], 1 }
0x13f5   :  { %10710 = vsyncpa [#allocation4 + $0x1], 1 }

</bundles_post_ra>
